<compile_context>
chip_gen: v7x
topology: tpu7x:2x2x1
jax: 0.10.0
libtpu: 0.0.40
codegen_flags: <defaults>
</compile_context>

<pallas_src>
import jax
import jax.numpy as jnp
from jax.experimental import pallas as pl
from jax.experimental.pallas import tpu as pltpu

BN_EPS = 1e-5
NORM_EPS = 1e-12


def _encoder_kernel(x_ref,
                    w1, g1, be1,
                    w2, g2, be2,
                    w3, g3, be3,
                    out_ref):
    """One grid step = one encoder: fused [Linear -> BN(train) -> ReLU] x3 -> L2 norm."""

    def layer(h, w_ref, g_ref, be_ref):
        # bf16 x bf16 matmul on the MXU, f32 accumulation. (Linear bias is
        # omitted: it is exactly cancelled by the training-mode BN mean.)
        z = jnp.dot(h.astype(jnp.bfloat16), w_ref[0],
                    preferred_element_type=jnp.float32)
        # BatchNorm1d (training mode): batch mean, biased variance.
        mu = jnp.mean(z, axis=0, keepdims=True)
        var = jnp.mean((z - mu) ** 2, axis=0, keepdims=True)
        # Fused BN affine: one scale + one shift.
        s = g_ref[0] * jax.lax.rsqrt(var + BN_EPS)
        zhat = (z - mu) * s + be_ref[0]
        return jnp.maximum(zhat, 0.0)  # ReLU

    h = x_ref[0]                       # (B, 784)  bf16
    h = layer(h, w1, g1, be1)          # (B, 1024) f32
    h = layer(h, w2, g2, be2)          # (B, 1024) f32
    h = layer(h, w3, g3, be3)          # (B, 512)  f32

    # F.normalize(h, p=2, dim=1, eps=1e-12): h / max(||h||_2, eps)
    sq = jnp.sum(h * h, axis=1, keepdims=True)
    inv = jax.lax.rsqrt(jnp.maximum(sq, NORM_EPS * NORM_EPS))   # EUP rsqrt
    out_ref[0] = h * inv


def _spec3(shape):
    # All stacked arrays are 3-D with the encoder index leading; take one
    # encoder slab per grid step.
    return pl.BlockSpec((1,) + tuple(shape[1:]), lambda e: (e, 0, 0))


def run_encoders(x_stack, stacked_params):
    """x_stack: (2, B, 784) bf16.
    stacked_params: 3 tuples of (W (2,in,out) bf16, gamma (2,1,out) f32, beta (2,1,out) f32)."""
    E, B, _ = x_stack.shape
    num_fea = stacked_params[-1][0].shape[-1]

    flat_args = [x_stack]
    for (w, g, be) in stacked_params:
        flat_args += [w, g, be]

    return pl.pallas_call(
        _encoder_kernel,
        out_shape=jax.ShapeDtypeStruct((E, B, num_fea), jnp.float32),
        grid=(E,),
        in_specs=[_spec3(a.shape) for a in flat_args],
        out_specs=_spec3((E, B, num_fea)),
        compiler_params=pltpu.CompilerParams(
            dimension_semantics=("parallel",),
            vmem_limit_bytes=48 << 20,
        ),
    )(*flat_args)


def init_encoder(key, dims=((784, 1024), (1024, 1024), (1024, 512))):
    """PyTorch nn.Linear default weight init U(-1/sqrt(fan_in), 1/sqrt(fan_in)).
    Linear bias omitted (exactly cancelled by training-mode BatchNorm)."""
    keys = jax.random.split(key, len(dims))
    params = []
    for k, (fi, fo) in zip(keys, dims):
        bound = 1.0 / (fi ** 0.5)
        w = jax.random.uniform(k, (fi, fo), jnp.float32, -bound, bound)
        gamma = jnp.ones((1, fo), jnp.float32)   # BatchNorm1d weight
        beta = jnp.zeros((1, fo), jnp.float32)   # BatchNorm1d bias
        params.append((w.astype(jnp.bfloat16), gamma, beta))
    return params


def stack_encoders(p0, p1):
    return [tuple(jnp.stack([a0, a1]) for a0, a1 in zip(l0, l1))
            for l0, l1 in zip(p0, p1)]


def sure_fc_forward(x0, x1, params0, params1):
    B = x0.shape[0]
    x0f = x0.reshape(B, -1).astype(jnp.bfloat16)
    x1f = x1.reshape(x1.shape[0], -1).astype(jnp.bfloat16)
    x_stack = jnp.stack([x0f, x1f])                 # (2, B, 784)
    out = run_encoders(x_stack, stack_encoders(params0, params1))
    return out[0], out[1]


def _reference_encoder(x_flat, params):
    """Pure-JAX reference with the same bf16-weight / f32-accumulate math."""
    h = x_flat.astype(jnp.float32)
    for (w_bf16, g, be) in params:
        z = jnp.dot(h.astype(jnp.bfloat16), w_bf16,
                    preferred_element_type=jnp.float32)
        mu = jnp.mean(z, axis=0, keepdims=True)
        var = jnp.mean((z - mu) ** 2, axis=0, keepdims=True)
        z = (z - mu) * (g / jnp.sqrt(var + BN_EPS)) + be
        h = jnp.maximum(z, 0.0)
    nrm = jnp.sqrt(jnp.sum(h * h, axis=1, keepdims=True))
    return h / jnp.maximum(nrm, NORM_EPS)


if __name__ == "__main__":
    key = jax.random.PRNGKey(0)
    k_x0, k_x1, k_e0, k_e1 = jax.random.split(key, 4)

    B = 8
    # NoisyMNIST-style views: (B, 1, 28, 28) -> flattened to 784 inside forward.
    x0 = jax.random.normal(k_x0, (B, 1, 28, 28), jnp.float32)
    x1 = jax.random.normal(k_x1, (B, 1, 28, 28), jnp.float32)

    params0 = init_encoder(k_e0)
    params1 = init_encoder(k_e1)

    h0, h1 = sure_fc_forward(x0, x1, params0, params1)
    h0 = jax.block_until_ready(h0)
    h1 = jax.block_until_ready(h1)

    # Sanity-check against a pure-JAX reference of the same math.
    r0 = _reference_encoder(x0.reshape(B, -1), params0)
    r1 = _reference_encoder(x1.reshape(B, -1), params1)
    assert h0.shape == (B, 512) and h1.shape == (B, 512)
    assert jnp.allclose(h0, r0, atol=2e-3, rtol=2e-3)
    assert jnp.allclose(h1, r1, atol=2e-3, rtol=2e-3)

    print("KERNEL_OK")
</pallas_src>

<mosaic_0001>
module attributes {stable_mosaic.version = 11 : i64} {
  func.func @_encoder_kernel(%arg0: i32, %arg1: memref<1x8x784xbf16, #tpu.memory_space<vmem>>, %arg2: memref<1x784x1024xbf16, #tpu.memory_space<vmem>>, %arg3: memref<1x1x1024xf32, #tpu.memory_space<vmem>>, %arg4: memref<1x1x1024xf32, #tpu.memory_space<vmem>>, %arg5: memref<1x1024x1024xbf16, #tpu.memory_space<vmem>>, %arg6: memref<1x1x1024xf32, #tpu.memory_space<vmem>>, %arg7: memref<1x1x1024xf32, #tpu.memory_space<vmem>>, %arg8: memref<1x1024x512xbf16, #tpu.memory_space<vmem>>, %arg9: memref<1x1x512xf32, #tpu.memory_space<vmem>>, %arg10: memref<1x1x512xf32, #tpu.memory_space<vmem>>, %arg11: memref<1x8x512xf32, #tpu.memory_space<vmem>>) attributes {dimension_semantics = [#tpu.dimension_semantics<parallel>], iteration_bounds = array<i64: 2>, scalar_prefetch = 0 : i64, scratch_operands = 0 : i64, tpu.core_type = #tpu.core_type<tc>, window_params = [{transform_indices = @transform_0, window_bounds = array<i64: 1, 8, 784>}, {transform_indices = @transform_1, window_bounds = array<i64: 1, 784, 1024>}, {transform_indices = @transform_2, window_bounds = array<i64: 1, 1, 1024>}, {transform_indices = @transform_3, window_bounds = array<i64: 1, 1, 1024>}, {transform_indices = @transform_4, window_bounds = array<i64: 1, 1024, 1024>}, {transform_indices = @transform_5, window_bounds = array<i64: 1, 1, 1024>}, {transform_indices = @transform_6, window_bounds = array<i64: 1, 1, 1024>}, {transform_indices = @transform_7, window_bounds = array<i64: 1, 1024, 512>}, {transform_indices = @transform_8, window_bounds = array<i64: 1, 1, 512>}, {transform_indices = @transform_9, window_bounds = array<i64: 1, 1, 512>}, {transform_indices = @transform_10, window_bounds = array<i64: 1, 8, 512>}]} {
    %c0 = arith.constant 0 : index
    %c0_0 = arith.constant 0 : index
    %c0_1 = arith.constant 0 : index
    %0 = vector.load %arg1[%c0, %c0_0, %c0_1] : memref<1x8x784xbf16, #tpu.memory_space<vmem>>, vector<1x8x784xbf16>
    %1 = vector.shape_cast %0 : vector<1x8x784xbf16> to vector<8x784xbf16>
    %c0_2 = arith.constant 0 : index
    %c0_3 = arith.constant 0 : index
    %c0_4 = arith.constant 0 : index
    %2 = vector.load %arg2[%c0_2, %c0_3, %c0_4] : memref<1x784x1024xbf16, #tpu.memory_space<vmem>>, vector<1x784x1024xbf16>
    %3 = vector.shape_cast %2 : vector<1x784x1024xbf16> to vector<784x1024xbf16>
    %cst = arith.constant dense<0.000000e+00> : vector<8x1024xf32>
    %4 = tpu.matmul %1, %3, %cst {dimension_numbers = #tpu.dot_dimension_numbers<[1], [0], [0], [1], [0, 0, 1, 1], [], []>} : vector<8x784xbf16>, vector<784x1024xbf16>, vector<8x1024xf32> -> vector<8x1024xf32>
    %cst_5 = arith.constant dense<0.000000e+00> : vector<1024xf32>
    %5 = vector.multi_reduction <add>, %4, %cst_5 [0] : vector<8x1024xf32> to vector<1024xf32>
    %6 = vector.shape_cast %5 : vector<1024xf32> to vector<1x1024xf32>
    %cst_6 = arith.constant 8.000000e+00 : f32
    %7 = vector.broadcast %cst_6 : f32 to vector<1x1024xf32>
    %8 = arith.divf %6, %7 : vector<1x1024xf32>
    %9 = vector.broadcast %8 : vector<1x1024xf32> to vector<8x1024xf32>
    %10 = arith.subf %4, %9 : vector<8x1024xf32>
    %11 = arith.mulf %10, %10 : vector<8x1024xf32>
    %cst_7 = arith.constant dense<0.000000e+00> : vector<1024xf32>
    %12 = vector.multi_reduction <add>, %11, %cst_7 [0] : vector<8x1024xf32> to vector<1024xf32>
    %13 = vector.shape_cast %12 : vector<1024xf32> to vector<1x1024xf32>
    %cst_8 = arith.constant 8.000000e+00 : f32
    %14 = vector.broadcast %cst_8 : f32 to vector<1x1024xf32>
    %15 = arith.divf %13, %14 : vector<1x1024xf32>
    %c0_9 = arith.constant 0 : index
    %c0_10 = arith.constant 0 : index
    %c0_11 = arith.constant 0 : index
    %16 = vector.load %arg3[%c0_9, %c0_10, %c0_11] : memref<1x1x1024xf32, #tpu.memory_space<vmem>>, vector<1x1x1024xf32>
    %17 = vector.shape_cast %16 : vector<1x1x1024xf32> to vector<1x1024xf32>
    %cst_12 = arith.constant 9.99999974E-6 : f32
    %18 = vector.broadcast %cst_12 : f32 to vector<1x1024xf32>
    %19 = arith.addf %15, %18 : vector<1x1024xf32>
    %20 = math.rsqrt %19 : vector<1x1024xf32>
    %21 = arith.mulf %17, %20 : vector<1x1024xf32>
    %22 = vector.broadcast %8 : vector<1x1024xf32> to vector<8x1024xf32>
    %23 = arith.subf %4, %22 : vector<8x1024xf32>
    %24 = vector.broadcast %21 : vector<1x1024xf32> to vector<8x1024xf32>
    %25 = arith.mulf %23, %24 : vector<8x1024xf32>
    %c0_13 = arith.constant 0 : index
    %c0_14 = arith.constant 0 : index
    %c0_15 = arith.constant 0 : index
    %26 = vector.load %arg4[%c0_13, %c0_14, %c0_15] : memref<1x1x1024xf32, #tpu.memory_space<vmem>>, vector<1x1x1024xf32>
    %27 = vector.shape_cast %26 : vector<1x1x1024xf32> to vector<1x1024xf32>
    %28 = vector.broadcast %27 : vector<1x1024xf32> to vector<8x1024xf32>
    %29 = arith.addf %25, %28 : vector<8x1024xf32>
    %cst_16 = arith.constant 0.000000e+00 : f32
    %30 = vector.broadcast %cst_16 : f32 to vector<8x1024xf32>
    %31 = arith.maximumf %29, %30 : vector<8x1024xf32>
    %32 = arith.truncf %31 : vector<8x1024xf32> to vector<8x1024xbf16>
    %c0_17 = arith.constant 0 : index
    %c0_18 = arith.constant 0 : index
    %c0_19 = arith.constant 0 : index
    %33 = vector.load %arg5[%c0_17, %c0_18, %c0_19] : memref<1x1024x1024xbf16, #tpu.memory_space<vmem>>, vector<1x1024x1024xbf16>
    %34 = vector.shape_cast %33 : vector<1x1024x1024xbf16> to vector<1024x1024xbf16>
    %cst_20 = arith.constant dense<0.000000e+00> : vector<8x1024xf32>
    %35 = tpu.matmul %32, %34, %cst_20 {dimension_numbers = #tpu.dot_dimension_numbers<[1], [0], [0], [1], [0, 0, 1, 1], [], []>} : vector<8x1024xbf16>, vector<1024x1024xbf16>, vector<8x1024xf32> -> vector<8x1024xf32>
    %cst_21 = arith.constant dense<0.000000e+00> : vector<1024xf32>
    %36 = vector.multi_reduction <add>, %35, %cst_21 [0] : vector<8x1024xf32> to vector<1024xf32>
    %37 = vector.shape_cast %36 : vector<1024xf32> to vector<1x1024xf32>
    %cst_22 = arith.constant 8.000000e+00 : f32
    %38 = vector.broadcast %cst_22 : f32 to vector<1x1024xf32>
    %39 = arith.divf %37, %38 : vector<1x1024xf32>
    %40 = vector.broadcast %39 : vector<1x1024xf32> to vector<8x1024xf32>
    %41 = arith.subf %35, %40 : vector<8x1024xf32>
    %42 = arith.mulf %41, %41 : vector<8x1024xf32>
    %cst_23 = arith.constant dense<0.000000e+00> : vector<1024xf32>
    %43 = vector.multi_reduction <add>, %42, %cst_23 [0] : vector<8x1024xf32> to vector<1024xf32>
    %44 = vector.shape_cast %43 : vector<1024xf32> to vector<1x1024xf32>
    %cst_24 = arith.constant 8.000000e+00 : f32
    %45 = vector.broadcast %cst_24 : f32 to vector<1x1024xf32>
    %46 = arith.divf %44, %45 : vector<1x1024xf32>
    %c0_25 = arith.constant 0 : index
    %c0_26 = arith.constant 0 : index
    %c0_27 = arith.constant 0 : index
    %47 = vector.load %arg6[%c0_25, %c0_26, %c0_27] : memref<1x1x1024xf32, #tpu.memory_space<vmem>>, vector<1x1x1024xf32>
    %48 = vector.shape_cast %47 : vector<1x1x1024xf32> to vector<1x1024xf32>
    %cst_28 = arith.constant 9.99999974E-6 : f32
    %49 = vector.broadcast %cst_28 : f32 to vector<1x1024xf32>
    %50 = arith.addf %46, %49 : vector<1x1024xf32>
    %51 = math.rsqrt %50 : vector<1x1024xf32>
    %52 = arith.mulf %48, %51 : vector<1x1024xf32>
    %53 = vector.broadcast %39 : vector<1x1024xf32> to vector<8x1024xf32>
    %54 = arith.subf %35, %53 : vector<8x1024xf32>
    %55 = vector.broadcast %52 : vector<1x1024xf32> to vector<8x1024xf32>
    %56 = arith.mulf %54, %55 : vector<8x1024xf32>
    %c0_29 = arith.constant 0 : index
    %c0_30 = arith.constant 0 : index
    %c0_31 = arith.constant 0 : index
    %57 = vector.load %arg7[%c0_29, %c0_30, %c0_31] : memref<1x1x1024xf32, #tpu.memory_space<vmem>>, vector<1x1x1024xf32>
    %58 = vector.shape_cast %57 : vector<1x1x1024xf32> to vector<1x1024xf32>
    %59 = vector.broadcast %58 : vector<1x1024xf32> to vector<8x1024xf32>
    %60 = arith.addf %56, %59 : vector<8x1024xf32>
    %cst_32 = arith.constant 0.000000e+00 : f32
    %61 = vector.broadcast %cst_32 : f32 to vector<8x1024xf32>
    %62 = arith.maximumf %60, %61 : vector<8x1024xf32>
    %63 = arith.truncf %62 : vector<8x1024xf32> to vector<8x1024xbf16>
    %c0_33 = arith.constant 0 : index
    %c0_34 = arith.constant 0 : index
    %c0_35 = arith.constant 0 : index
    %64 = vector.load %arg8[%c0_33, %c0_34, %c0_35] : memref<1x1024x512xbf16, #tpu.memory_space<vmem>>, vector<1x1024x512xbf16>
    %65 = vector.shape_cast %64 : vector<1x1024x512xbf16> to vector<1024x512xbf16>
    %cst_36 = arith.constant dense<0.000000e+00> : vector<8x512xf32>
    %66 = tpu.matmul %63, %65, %cst_36 {dimension_numbers = #tpu.dot_dimension_numbers<[1], [0], [0], [1], [0, 0, 1, 1], [], []>} : vector<8x1024xbf16>, vector<1024x512xbf16>, vector<8x512xf32> -> vector<8x512xf32>
    %cst_37 = arith.constant dense<0.000000e+00> : vector<512xf32>
    %67 = vector.multi_reduction <add>, %66, %cst_37 [0] : vector<8x512xf32> to vector<512xf32>
    %68 = vector.shape_cast %67 : vector<512xf32> to vector<1x512xf32>
    %cst_38 = arith.constant 8.000000e+00 : f32
    %69 = vector.broadcast %cst_38 : f32 to vector<1x512xf32>
    %70 = arith.divf %68, %69 : vector<1x512xf32>
    %71 = vector.broadcast %70 : vector<1x512xf32> to vector<8x512xf32>
    %72 = arith.subf %66, %71 : vector<8x512xf32>
    %73 = arith.mulf %72, %72 : vector<8x512xf32>
    %cst_39 = arith.constant dense<0.000000e+00> : vector<512xf32>
    %74 = vector.multi_reduction <add>, %73, %cst_39 [0] : vector<8x512xf32> to vector<512xf32>
    %75 = vector.shape_cast %74 : vector<512xf32> to vector<1x512xf32>
    %cst_40 = arith.constant 8.000000e+00 : f32
    %76 = vector.broadcast %cst_40 : f32 to vector<1x512xf32>
    %77 = arith.divf %75, %76 : vector<1x512xf32>
    %c0_41 = arith.constant 0 : index
    %c0_42 = arith.constant 0 : index
    %c0_43 = arith.constant 0 : index
    %78 = vector.load %arg9[%c0_41, %c0_42, %c0_43] : memref<1x1x512xf32, #tpu.memory_space<vmem>>, vector<1x1x512xf32>
    %79 = vector.shape_cast %78 : vector<1x1x512xf32> to vector<1x512xf32>
    %cst_44 = arith.constant 9.99999974E-6 : f32
    %80 = vector.broadcast %cst_44 : f32 to vector<1x512xf32>
    %81 = arith.addf %77, %80 : vector<1x512xf32>
    %82 = math.rsqrt %81 : vector<1x512xf32>
    %83 = arith.mulf %79, %82 : vector<1x512xf32>
    %84 = vector.broadcast %70 : vector<1x512xf32> to vector<8x512xf32>
    %85 = arith.subf %66, %84 : vector<8x512xf32>
    %86 = vector.broadcast %83 : vector<1x512xf32> to vector<8x512xf32>
    %87 = arith.mulf %85, %86 : vector<8x512xf32>
    %c0_45 = arith.constant 0 : index
    %c0_46 = arith.constant 0 : index
    %c0_47 = arith.constant 0 : index
    %88 = vector.load %arg10[%c0_45, %c0_46, %c0_47] : memref<1x1x512xf32, #tpu.memory_space<vmem>>, vector<1x1x512xf32>
    %89 = vector.shape_cast %88 : vector<1x1x512xf32> to vector<1x512xf32>
    %90 = vector.broadcast %89 : vector<1x512xf32> to vector<8x512xf32>
    %91 = arith.addf %87, %90 : vector<8x512xf32>
    %cst_48 = arith.constant 0.000000e+00 : f32
    %92 = vector.broadcast %cst_48 : f32 to vector<8x512xf32>
    %93 = arith.maximumf %91, %92 : vector<8x512xf32>
    %94 = arith.mulf %93, %93 : vector<8x512xf32>
    %cst_49 = arith.constant dense<0.000000e+00> : vector<8xf32>
    %95 = vector.multi_reduction <add>, %94, %cst_49 [1] : vector<8x512xf32> to vector<8xf32>
    %96 = vector.shape_cast %95 : vector<8xf32> to vector<8x1xf32>
    %cst_50 = arith.constant 1.000000e-24 : f32
    %97 = vector.broadcast %cst_50 : f32 to vector<8x1xf32>
    %98 = arith.maximumf %96, %97 : vector<8x1xf32>
    %99 = math.rsqrt %98 : vector<8x1xf32>
    %100 = vector.broadcast %99 : vector<8x1xf32> to vector<8x512xf32>
    %101 = arith.mulf %93, %100 : vector<8x512xf32>
    %c0_51 = arith.constant 0 : index
    %c0_52 = arith.constant 0 : index
    %c0_53 = arith.constant 0 : index
    %102 = vector.load %arg11[%c0_51, %c0_52, %c0_53] : memref<1x8x512xf32, #tpu.memory_space<vmem>>, vector<1x8x512xf32>
    %103 = vector.shape_cast %102 : vector<1x8x512xf32> to vector<8x512xf32>
    %104 = vector.shape_cast %101 : vector<8x512xf32> to vector<1x8x512xf32>
    tpu.vector_store %arg11[%c0_51, %c0_52, %c0_53], %104 {strides = array<i32>} : memref<1x8x512xf32, #tpu.memory_space<vmem>>, vector<1x8x512xf32>,
    return
  }
  func.func @transform_0(%arg0: i32) -> (i32, i32, i32) {
    %c0_i32 = arith.constant 0 : i32
    %c0_i32_0 = arith.constant 0 : i32
    %c0_i32_1 = arith.constant 0 : i32
    return %arg0, %c0_i32, %c0_i32_0 : i32, i32, i32
  }
  func.func @transform_1(%arg0: i32) -> (i32, i32, i32) {
    %c0_i32 = arith.constant 0 : i32
    %c0_i32_0 = arith.constant 0 : i32
    %c0_i32_1 = arith.constant 0 : i32
    return %arg0, %c0_i32, %c0_i32_0 : i32, i32, i32
  }
  func.func @transform_2(%arg0: i32) -> (i32, i32, i32) {
    %c0_i32 = arith.constant 0 : i32
    %c0_i32_0 = arith.constant 0 : i32
    %c0_i32_1 = arith.constant 0 : i32
    return %arg0, %c0_i32, %c0_i32_0 : i32, i32, i32
  }
  func.func @transform_3(%arg0: i32) -> (i32, i32, i32) {
    %c0_i32 = arith.constant 0 : i32
    %c0_i32_0 = arith.constant 0 : i32
    %c0_i32_1 = arith.constant 0 : i32
    return %arg0, %c0_i32, %c0_i32_0 : i32, i32, i32
  }
  func.func @transform_4(%arg0: i32) -> (i32, i32, i32) {
    %c0_i32 = arith.constant 0 : i32
    %c0_i32_0 = arith.constant 0 : i32
    %c0_i32_1 = arith.constant 0 : i32
    return %arg0, %c0_i32, %c0_i32_0 : i32, i32, i32
  }
  func.func @transform_5(%arg0: i32) -> (i32, i32, i32) {
    %c0_i32 = arith.constant 0 : i32
    %c0_i32_0 = arith.constant 0 : i32
    %c0_i32_1 = arith.constant 0 : i32
    return %arg0, %c0_i32, %c0_i32_0 : i32, i32, i32
  }
  func.func @transform_6(%arg0: i32) -> (i32, i32, i32) {
    %c0_i32 = arith.constant 0 : i32
    %c0_i32_0 = arith.constant 0 : i32
    %c0_i32_1 = arith.constant 0 : i32
    return %arg0, %c0_i32, %c0_i32_0 : i32, i32, i32
  }
  func.func @transform_7(%arg0: i32) -> (i32, i32, i32) {
    %c0_i32 = arith.constant 0 : i32
    %c0_i32_0 = arith.constant 0 : i32
    %c0_i32_1 = arith.constant 0 : i32
    return %arg0, %c0_i32, %c0_i32_0 : i32, i32, i32
  }
  func.func @transform_8(%arg0: i32) -> (i32, i32, i32) {
    %c0_i32 = arith.constant 0 : i32
    %c0_i32_0 = arith.constant 0 : i32
    %c0_i32_1 = arith.constant 0 : i32
    return %arg0, %c0_i32, %c0_i32_0 : i32, i32, i32
  }
  func.func @transform_9(%arg0: i32) -> (i32, i32, i32) {
    %c0_i32 = arith.constant 0 : i32
    %c0_i32_0 = arith.constant 0 : i32
    %c0_i32_1 = arith.constant 0 : i32
    return %arg0, %c0_i32, %c0_i32_0 : i32, i32, i32
  }
  func.func @transform_10(%arg0: i32) -> (i32, i32, i32) {
    %c0_i32 = arith.constant 0 : i32
    %c0_i32_0 = arith.constant 0 : i32
    %c0_i32_1 = arith.constant 0 : i32
    return %arg0, %c0_i32, %c0_i32_0 : i32, i32, i32
  }
}

</mosaic_0001>

<bundles_post_ra>
// kernel: tpu_custom_call.1
= control target key start
LH: loop header
LB: loop body
LE: loop exit
PB: predicated region body
PF: predicated region fallthrough
CT: control target
= control target key end

     0   :  { %s14840_s0 = inlined_call_operand.hbm [shape: bf16[2,8,784], index: 0, kind: input, shape index: {}]   ;;  %s14841_s1 = inlined_call_operand.hbm [shape: bf16[2,784,1024], index: 1, kind: input, shape index: {}]   ;;  %s14842_s2 = inlined_call_operand.hbm [shape: f32[2,1,1024], index: 2, kind: input, shape index: {}]   ;;  %s14843_s3 = inlined_call_operand.hbm [shape: f32[2,1,1024], index: 3, kind: input, shape index: {}]   ;;  %s14844_s4 = inlined_call_operand.hbm [shape: bf16[2,1024,1024], index: 4, kind: input, shape index: {}]   ;;  %s14845_s5 = inlined_call_operand.hbm [shape: f32[2,1,1024], index: 5, kind: input, shape index: {}]   ;;  %s14846_s6 = inlined_call_operand.hbm [shape: f32[2,1,1024], index: 6, kind: input, shape index: {}]   ;;  %s14847_s7 = inlined_call_operand.hbm [shape: bf16[2,1024,512], index: 7, kind: input, shape index: {}]   ;;  %s14848_s8 = inlined_call_operand.hbm [shape: f32[2,1,512], index: 8, kind: input, shape index: {}]   ;;  %s14849_s9 = inlined_call_operand.hbm [shape: f32[2,1,512], index: 9, kind: input, shape index: {}]   ;;  %s14850_s10 = inlined_call_operand.hbm [shape: f32[2,8,512], index: 10, kind: output, shape index: {}]  }
   0x1   :  { %14871 = sst [smem:[#allocation35_spill]] %s14841_s1 }
   0x2   :  { %14872 = sst [smem:[#allocation36_spill]] %s14843_s3 }
   0x3   :  { %14873 = sst [smem:[#allocation37_spill]] %s14845_s5 }
   0x4   :  { %14874 = sst [smem:[#allocation38_spill]] %s14847_s7 }
   0x5   :  { %14875 = sst [smem:[#allocation39_spill]] %s14850_s10 }
   0x6   :  { %15 = vsyncpa [#allocation3], 0 }
   0x7   :  { %17 = vsyncpa [#allocation3 + $0x1], 0 }
   0x8   :  { %18 = vsyncpa [#allocation6], 0 }
   0x9   :  { %20 = vsyncpa [#allocation6 + $0x1], 0 }
   0xa   :  { %21 = vsyncpa [#allocation9], 0 }
   0xb   :  { %23 = vsyncpa [#allocation9 + $0x1], 0 }
   0xc   :  { %24 = vsyncpa [#allocation12], 0 }
   0xd   :  { %26 = vsyncpa [#allocation12 + $0x1], 0 }
   0xe   :  { %27 = vsyncpa [#allocation15], 0 }
   0xf   :  { %29 = vsyncpa [#allocation15 + $0x1], 0 }
  0x10   :  { %30 = vsyncpa [#allocation18], 0 }
  0x11   :  { %32 = vsyncpa [#allocation18 + $0x1], 0 }
  0x12   :  { %33 = vsyncpa [#allocation4], 0 }
  0x13   :  { %35 = vsyncpa [#allocation4 + $0x1], 0  ;;  %s12782_s13 = smov 0   ;;  %s12784_s14 = smov 0  }
  0x14   :  { %s12786_s15 = smov 0   ;;  %s12788_s16 = smov 0  }
  0x15 LB: > { %14876 = sst [smem:[#allocation27_spill]] %s12696_s13  ;;  %s12803_s17 = sadd.s32 4294967295, %s12708_s16   ;;  %s12708_s16 = sphi %s12788_s16, %s14917_s16   ;;  %s12704_s15 = sphi %s12786_s15, %s14919_s15   ;;  %s12700_s14 = sphi %s12784_s14, %s14921_s14   ;;  %s12696_s13 = sphi %s12782_s13, %s14920_s13  }
  0x16   : > { %14877 = sst [smem:[#allocation28_spill]] %s12704_s15  ;;  %s10441_s18 = sadd.s32 4294967294, %s12708_s16  }
  0x17   : > { %14878 = sst [smem:[#allocation29_spill]] %s12803_s17  ;;  %s12807_s19 = sadd.s32 1, %s12708_s16  }
  0x18   : > { %14879 = sst [smem:[#allocation30_spill]] %s12807_s19  ;;  %s48_s20 = sadd.s32 1, %s12704_s15 }
  0x19   : > { %s45_s21 = ssub.s32 %s12708_s16, %s12807_s19  ;;  %p55_p0 = scmp.ne.s32.totalorder %s12704_s15, %s12700_s14 }
  0x1a   : > { %p46_p1 = scmp.eq.s32.totalorder %s45_s21, 0  ;;  %p56_p2 = scmp.eq.s32.totalorder %s12708_s16, 0 }
  0x1b   : > { %p61_p3 = scmp.ne.s32.totalorder %s12700_s14, %s12696_s13  ;;  %p62_p4 = scmp.eq.s32.totalorder %s12803_s17, 0 }
  0x1c   : > { %s12819_s22 = scalar_select %p46_p1, %s12704_s15, %s48_s20  }
  0x1d   : > { %p57_p5 = por %p56_p2, %p55_p0  ;;  %p12821_p6 = por %p62_p4, %p61_p3 }
  0x1e   : > { %14880 = sst [smem:[#allocation31_spill]] %s12819_s22  ;;  %p319_p7 = scmp.eq.s32.totalorder %s12803_s17, 1 }
  0x1f   : > { %s14881_s23 = scalar_select %p12821_p6, 1, 0 }
  0x20   : > { %p325_p8 = scmp.eq.s32.totalorder %s10441_s18, 1  ;;  %p11848_p10 = scmp.lt.s32.totalorder %s12708_s16, 2 }
  0x21   : > { %14882 = sst [smem:[#allocation32_spill]] %s14881_s23  ;;  %p12828_p11 = por %p319_p7, %p55_p0 }
  0x22   : > { %p12832_p12 = por %p325_p8, %p61_p3  ;;  %s12837_s26 = sand.u32 1, %s12704_s15  }
  0x23   : > { %s14883_s24 = scalar_select %p12828_p11, 1, 0 }
  0x24   : > { %s14885_s25 = scalar_select %p12832_p12, 1, 0 }
  0x25   : > { %14884 = sst [smem:[#allocation33_spill]] %s14883_s24  ;;  %p12839_p13 = pnand %p11848_p10, %p57_p5 }
  0x26   : > { %14886 = sst [smem:[#allocation34_spill]] %s14885_s25  ;;  %s12844_s28 = sand.u32 1, %s12708_s16  }
  0x27   : > { %s14887_s27 = scalar_select %p12839_p13, 1, 0 }
  0x28   : > { %s11787_s29 = smul.u32 3136, %s12837_s26  ;;  %s14888_s1 = sld [smem:[#allocation35_spill]] }
  0x29   : > { %s11788_s30 = smul.u32 50176, %s12708_s16  ;;  %p12861_p2 = pneg %p12839_p13 }
  0x2a   : > { %s368_s11 = scalar_lea.vmem [#allocation5], %s11787_s29 }
  0x2b   : > { %s375_s12 = sshll.u32 %s368_s11, 4  ;;  %s12853_s12 = int_to_ptr.vmem [resolvable:$true] %s375_s12 }
  0x2e   : > { %s12851_s21 = scalar_lea.hbm %s14888_s1, %s11788_s30  ;;  %s12327_s11 = scalar_lea.hbm %s14888_s1, 100352 }
  0x2f   : > { %s12322_s15 = scalar_lea.hbm %s12851_s21, 50176  ;;  %p12328_p5 = scmp.lt.u32.totalorder %s12851_s21, %s14888_s1 }
  0x30   : > { %p12323_p1 = scmp.ne.s32.totalorder %s12851_s21, %s12322_s15  ;;  %p12329_p7 = scmp.lt.u32.totalorder %s12327_s11, %s12322_s15 }
  0x31   : > { %p12331_p10 = scmp.lt.u32.totalorder %s12322_s15, %s12851_s21 }
  0x32   : > { %p12325_p3 = pnand %p12861_p2, %p12323_p1  ;;  %p12330_p8 = por %p12329_p7, %p12328_p5 }
  0x34   : > { %p12326_p4 = pneg %p12325_p3  ;;  %p12332_p9 = por %p12331_p10, %p12330_p8 }
  0x36   : > { %p12333_p0 = pnand %p12332_p9, %p12326_p4 }
  0x38   : > { %12336 = shalt.err (!%p12333_p0)
}
  0x39   : > { %s12337_s22 = scalar_lea.vmem %s12853_s12, 50176  ;;  %s12710_s29 = smov [#allocation5]  }
  0x3a   : > { %p12338_p1 = scmp.ne.s32.totalorder %s12853_s12, %s12337_s22  ;;  %s12342_s30 = sshll.u32 %s12710_s29, 4  ;;  %s12343_s30 = int_to_ptr.vmem [resolvable:$false] %s12342_s30 }
  0x3b   : > { %s12344_s18 = scalar_lea.vmem %s12343_s30, 100352  ;;  %p12345_p11 = scmp.lt.s32.totalorder %s12853_s12, %s12343_s30 }
  0x3c   : > { %p12340_p3 = pnand %p12338_p1, %p12861_p2  ;;  %p12346_p6 = scmp.lt.s32.totalorder %s12344_s18, %s12337_s22 }
  0x3e   : > { %p12341_p12 = pneg %p12340_p3  ;;  %p12347_p5 = por %p12346_p6, %p12345_p11 }
  0x40   : > { %p12348_p7 = pnand %p12347_p5, %p12341_p12 }
  0x42   : > { %12351 = shalt.err (!%p12348_p7)
}
  0x43   : > { %s14857_s15 = smov 512   ;;  %s14858_s11 = smov 32  }
  0x44   : > { %s14890_s22 = scalar_lea.sflag [#allocation6], %s12844_s28  ;;  %p539_p6 = scmp.lt.s32.totalorder %s12708_s16, 3 }
  0x45   : > { %11819 = dma.hbm_to_vmem [thread:$0]  (!%p12839_p13), %s12851_s21, 50176, %s12853_s12, %s14890_s22, %s14857_s15, %s14857_s15, %s14858_s11  }
  0x46   : > { %s12891_s20 = sshll.u32 %s12837_s26, 3  ;;  %s12894_s29 = sshll.u32 %s12708_s16, 7 }
  0x47   : > { %p14891_p9 = scmp.ge.s32.totalorder %s12708_s16, 1  ;;  %s14893_s3 = sld [smem:[#allocation36_spill]] }
  0x48   : > { %s408_s12 = scalar_lea.vmem [#allocation8], %s12891_s20 }
  0x49   : > { %p12898_p11 = pnand %p14891_p9, %p539_p6  ;;  %s416_s21 = sshll.u32 %s408_s12, 4  ;;  %s417_s21 = int_to_ptr.vmem [resolvable:$true] %s416_s21 }
  0x4b   : > { %s14892_s30 = scalar_select %p12898_p11, 1, 0 }
  0x4d   : > { %s12906_s25 = scalar_lea.hbm %s14893_s3, %s12894_s29  ;;  %s12357_s10 = scalar_lea.hbm %s14893_s3, 256 }
  0x4e   : > { %s12352_s15 = scalar_lea.hbm %s12906_s25, 128  ;;  %p12358_p8 = scmp.lt.u32.totalorder %s12906_s25, %s14893_s3 }
  0x4f   : > { %p12353_p12 = scmp.ne.s32.totalorder %s12906_s25, %s12352_s15  ;;  %p12359_p10 = scmp.lt.u32.totalorder %s12357_s10, %s12352_s15 }
  0x50   : > { %p12361_p3 = scmp.lt.u32.totalorder %s12352_s15, %s12906_s25 }
  0x51   : > { %p12355_p0 = pnand %p12353_p12, %p12861_p2  ;;  %p12360_p1 = por %p12359_p10, %p12358_p8 }
  0x53   : > { %p12356_p4 = pneg %p12355_p0  ;;  %p12362_p5 = por %p12361_p3, %p12360_p1 }
  0x55   : > { %p12363_p7 = pnand %p12362_p5, %p12356_p4 }
  0x57   : > { %12366 = shalt.err (!%p12363_p7)
}
  0x58   : > { %s12367_s12 = scalar_lea.vmem %s417_s21, 128  ;;  %s12713_s22 = smov [#allocation8]  }
  0x59   : > { %p12368_p6 = scmp.ne.s32.totalorder %s417_s21, %s12367_s12  ;;  %s12372_s24 = sshll.u32 %s12713_s22, 4  ;;  %s12373_s24 = int_to_ptr.vmem [resolvable:$false] %s12372_s24 }
  0x5a   : > { %s12374_s13 = scalar_lea.vmem %s12373_s24, 256  ;;  %p12375_p0 = scmp.lt.s32.totalorder %s417_s21, %s12373_s24 }
  0x5b   : > { %p12370_p9 = pnand %p12368_p6, %p12861_p2  ;;  %p12376_p11 = scmp.lt.s32.totalorder %s12374_s13, %s12367_s12 }
  0x5d   : > { %p12371_p12 = pneg %p12370_p9  ;;  %p12377_p13 = por %p12376_p11, %p12375_p0 }
  0x5f   : > { %p12378_p8 = pnand %p12377_p13, %p12371_p12 }
  0x61   : > { %12381 = shalt.err (!%p12378_p8)
}
  0x62   : > { %p14894_p10 = scmp.ne.s32.totalorder %s14887_s27, 0  ;;  %s14895_s10 = scalar_lea.sflag [#allocation9], %s12844_s28 }
  0x63   : > { %s14896_s5 = sld [smem:[#allocation37_spill]]  ;;  %s448_s24 = scalar_lea.vmem [#allocation11], %s12891_s20 }
  0x64   : > { %11825 = dma.hbm_to_vmem [thread:$0]  (!%p14894_p10), %s12906_s25, 128, %s417_s21, %s14895_s10  }
  0x65   : > { %s456_s1 = sshll.u32 %s448_s24, 4  ;;  %s10461_s18 = sshll.u32 %s12837_s26, 11  ;;  %s12936_s1 = int_to_ptr.vmem [resolvable:$true] %s456_s1 }
  0x66   : > { %s14865_s12 = scalar_lea.sflag [#allocation12], %s12844_s28 }
  0x69   : > { %s12933_s22 = scalar_lea.hbm %s14896_s5, %s12894_s29  ;;  %s12387_s10 = scalar_lea.hbm %s14896_s5, 256 }
  0x6a   : > { %s12382_s13 = scalar_lea.hbm %s12933_s22, 128  ;;  %p12388_p1 = scmp.lt.u32.totalorder %s12933_s22, %s14896_s5 }
  0x6b   : > { %p12383_p13 = scmp.ne.s32.totalorder %s12933_s22, %s12382_s13  ;;  %p12389_p3 = scmp.lt.u32.totalorder %s12387_s10, %s12382_s13 }
  0x6c   : > { %p12391_p7 = scmp.lt.u32.totalorder %s12382_s13, %s12933_s22 }
  0x6d   : > { %p12385_p11 = pnand %p12383_p13, %p12861_p2  ;;  %p12390_p5 = por %p12389_p3, %p12388_p1 }
  0x6f   : > { %p12386_p4 = pneg %p12385_p11  ;;  %p12392_p6 = por %p12391_p7, %p12390_p5 }
  0x71   : > { %p12393_p9 = pnand %p12392_p6, %p12386_p4 }
  0x73   : > { %12396 = shalt.err (!%p12393_p9)
}
  0x74   : > { %s12397_s24 = scalar_lea.vmem %s12936_s1, 128  ;;  %s12714_s25 = smov [#allocation11]  }
  0x75   : > { %p12398_p12 = scmp.ne.s32.totalorder %s12936_s1, %s12397_s24  ;;  %s12402_s21 = sshll.u32 %s12714_s25, 4  ;;  %s12403_s21 = int_to_ptr.vmem [resolvable:$false] %s12402_s21 }
  0x76   : > { %s12404_s15 = scalar_lea.vmem %s12403_s21, 256  ;;  %p12405_p13 = scmp.lt.s32.totalorder %s12936_s1, %s12403_s21 }
  0x77   : > { %p12400_p0 = pnand %p12398_p12, %p12861_p2  ;;  %p12406_p11 = scmp.lt.s32.totalorder %s12404_s15, %s12397_s24 }
  0x79   : > { %p12401_p8 = pneg %p12400_p0  ;;  %p12407_p1 = por %p12406_p11, %p12405_p13 }
  0x7b   : > { %p12408_p3 = pnand %p12407_p1, %p12401_p8 }
  0x7d   : > { %12411 = shalt.err (!%p12408_p3)
}
  0x7e   : > { %11831 = dma.hbm_to_vmem [thread:$0]  (!%p14894_p10), %s12933_s22, 128, %s12936_s1, %s14865_s12  }
  0x7f   : > { %s11661_s13 = sshll.u32 %s12708_s16, 15  ;;  %s14897_s7 = sld [smem:[#allocation38_spill]] }
  0x80   : > { %s486_s24 = scalar_lea.vmem [#allocation14], %s10461_s18  ;;  %s483_s15 = scalar_lea.sflag [#allocation15], %s12844_s28 }
  0x81   : > { %s493_s21 = sshll.u32 %s486_s24, 4  ;;  %s12971_s21 = int_to_ptr.vmem [resolvable:$true] %s493_s21 }
  0x85   : > { %s12967_s25 = scalar_lea.hbm %s14897_s7, %s11661_s13  ;;  %s12417_s13 = scalar_lea.hbm %s14897_s7, 65536 }
  0x86   : > { %s12412_s3 = scalar_lea.hbm %s12967_s25, 32768  ;;  %p12418_p6 = scmp.lt.u32.totalorder %s12967_s25, %s14897_s7 }
  0x87   : > { %p12413_p4 = scmp.ne.s32.totalorder %s12967_s25, %s12412_s3  ;;  %p12419_p9 = scmp.lt.u32.totalorder %s12417_s13, %s12412_s3 }
  0x88   : > { %p12421_p0 = scmp.lt.u32.totalorder %s12412_s3, %s12967_s25 }
  0x89   : > { %p12415_p5 = pnand %p12413_p4, %p12861_p2  ;;  %p12420_p12 = por %p12419_p9, %p12418_p6 }
  0x8b   : > { %p12416_p7 = pneg %p12415_p5  ;;  %p12422_p8 = por %p12421_p0, %p12420_p12 }
  0x8d   : > { %p12423_p13 = pnand %p12422_p8, %p12416_p7 }
  0x8f   : > { %12426 = shalt.err (!%p12423_p13)
}
  0x90   : > { %s12427_s18 = scalar_lea.vmem %s12971_s21, 32768  ;;  %s12715_s24 = smov [#allocation14]  }
  0x91   : > { %p12428_p11 = scmp.ne.s32.totalorder %s12971_s21, %s12427_s18  ;;  %s12432_s22 = sshll.u32 %s12715_s24, 4  ;;  %s12433_s22 = int_to_ptr.vmem [resolvable:$false] %s12432_s22 }
  0x92   : > { %s12434_s1 = scalar_lea.vmem %s12433_s22, 65536  ;;  %p12435_p4 = scmp.lt.s32.totalorder %s12971_s21, %s12433_s22 }
  0x93   : > { %p12430_p1 = pnand %p12428_p11, %p12861_p2  ;;  %p12436_p5 = scmp.lt.s32.totalorder %s12434_s1, %s12427_s18 }
  0x95   : > { %p12431_p3 = pneg %p12430_p1  ;;  %p12437_p6 = por %p12436_p5, %p12435_p4 }
  0x97   : > { %p12438_p9 = pnand %p12437_p6, %p12431_p3 }
  0x99   : > { %12441 = shalt.err (!%p12438_p9)
}
  0x9a   : > { %s12716_s3 = smov 256   ;;  %s12717_s13 = smov 16  }
  0x9b   : > { %11837 = dma.hbm_to_vmem [thread:$0]  (!%p14894_p10), %s12967_s25, 32768, %s12971_s21, %s483_s15, %s12716_s3, %s12716_s3, %s12717_s13  }
  0x9c   : > { %s11785_s10 = smul.u32 28, %s12837_s26  ;;  %s13003_s22 = scalar_lea.hbm %s14842_s2, %s12894_s29 }
  0x9d   : > { %s11786_s11 = smul.u32 448, %s12708_s16  ;;  %s389_s1 = scalar_lea.vmem [#allocation7], %s12891_s20 }
  0x9e   : > { %s397_s12 = sshll.u32 %s389_s1, 4  ;;  %s349_s23 = scalar_lea.vmem [#allocation2], %s11785_s10  ;;  %s13013_s12 = int_to_ptr.vmem [resolvable:$true] %s397_s12 }
  0x9f   : > { %s13009_s17 = scalar_lea.hbm %s14840_s0, %s11786_s11  ;;  %s357_s25 = sshll.u32 %s349_s23, 4  ;;  %s13011_s25 = int_to_ptr.vmem [resolvable:$true] %s357_s25 }
  0xa0   : > { %s346_s21 = scalar_lea.sflag [#allocation3], %s12837_s26  ;;  %s12442_s3 = scalar_lea.hbm %s13009_s17, 448 }
  0xa1   : > { %p12443_p7 = scmp.ne.s32.totalorder %s13009_s17, %s12442_s3  ;;  %s12447_s7 = scalar_lea.hbm %s14840_s0, 896 }
  0xa2   : > { %p12448_p8 = scmp.lt.u32.totalorder %s13009_s17, %s14840_s0  ;;  %p12449_p13 = scmp.lt.u32.totalorder %s12447_s7, %s12442_s3 }
  0xa3   : > { %p12445_p12 = pnand %p12443_p7, %p12861_p2  ;;  %p12451_p1 = scmp.lt.u32.totalorder %s12442_s3, %s13009_s17 }
  0xa4   : > { %p12450_p11 = por %p12449_p13, %p12448_p8 }
  0xa5   : > { %p12446_p0 = pneg %p12445_p12 }
  0xa6   : > { %p12452_p3 = por %p12451_p1, %p12450_p11 }
  0xa8   : > { %p12453_p4 = pnand %p12452_p3, %p12446_p0 }
  0xaa   : > { %12456 = shalt.err (!%p12453_p4)
}
  0xab   : > { %s12457_s23 = scalar_lea.vmem %s13011_s25, 448  ;;  %s12718_s10 = smov [#allocation2]  }
  0xac   : > { %p12458_p5 = scmp.ne.s32.totalorder %s13011_s25, %s12457_s23  ;;  %s12462_s24 = sshll.u32 %s12718_s10, 4  ;;  %s12463_s24 = int_to_ptr.vmem [resolvable:$false] %s12462_s24 }
  0xad   : > { %s12464_s1 = scalar_lea.vmem %s12463_s24, 896  ;;  %p12465_p7 = scmp.lt.s32.totalorder %s13011_s25, %s12463_s24 }
  0xae   : > { %p12460_p6 = pnand %p12458_p5, %p12861_p2  ;;  %p12466_p12 = scmp.lt.s32.totalorder %s12464_s1, %s12457_s23 }
  0xb0   : > { %p12461_p9 = pneg %p12460_p6  ;;  %p12467_p8 = por %p12466_p12, %p12465_p7 }
  0xb2   : > { %p12468_p13 = pnand %p12467_p8, %p12461_p9 }
  0xb4   : > { %12471 = shalt.err (!%p12468_p13)
}
  0xb5   : > { %11816 = dma.hbm_to_vmem [thread:$0]  (!%p14894_p10), %s13009_s17, 448, %s13011_s25, %s346_s21  }
  0xb6   : > { %s12472_s3 = scalar_lea.hbm %s13003_s22, 128  ;;  %s12477_s7 = scalar_lea.hbm %s14842_s2, 256 }
  0xb7   : > { %p12473_p0 = scmp.ne.s32.totalorder %s13003_s22, %s12472_s3  ;;  %p12478_p3 = scmp.lt.u32.totalorder %s13003_s22, %s14842_s2 }
  0xb8   : > { %p12479_p4 = scmp.lt.u32.totalorder %s12477_s7, %s12472_s3  ;;  %p12481_p6 = scmp.lt.u32.totalorder %s12472_s3, %s13003_s22 }
  0xb9   : > { %p12475_p11 = pnand %p12473_p0, %p12861_p2 }
  0xba   : > { %p12480_p5 = por %p12479_p4, %p12478_p3 }
  0xbb   : > { %p12476_p1 = pneg %p12475_p11 }
  0xbc   : > { %p12482_p9 = por %p12481_p6, %p12480_p5 }
  0xbe   : > { %p12483_p7 = pnand %p12482_p9, %p12476_p1 }
  0xc0   : > { %12486 = shalt.err (!%p12483_p7)
}
  0xc1   : > { %s12487_s17 = scalar_lea.vmem %s13013_s12, 128  ;;  %s12719_s25 = smov [#allocation7]  }
  0xc2   : > { %p12488_p12 = scmp.ne.s32.totalorder %s13013_s12, %s12487_s17  ;;  %s12492_s21 = sshll.u32 %s12719_s25, 4  ;;  %s12493_s21 = int_to_ptr.vmem [resolvable:$false] %s12492_s21 }
  0xc3   : > { %s12494_s23 = scalar_lea.vmem %s12493_s21, 256  ;;  %p12495_p0 = scmp.lt.s32.totalorder %s13013_s12, %s12493_s21 }
  0xc4   : > { %p12490_p8 = pnand %p12488_p12, %p12861_p2  ;;  %p12496_p11 = scmp.lt.s32.totalorder %s12494_s23, %s12487_s17 }
  0xc6   : > { %p12491_p13 = pneg %p12490_p8  ;;  %p12497_p3 = por %p12496_p11, %p12495_p0 }
  0xc8   : > { %p12498_p4 = pnand %p12497_p3, %p12491_p13 }
  0xca   : > { %12501 = shalt.err (!%p12498_p4)
}
  0xcb   : > { %s14898_s10 = scalar_lea.sflag [#allocation6], %s12844_s28  ;;  %s10452_s24 = sshll.u32 %s12837_s26, 12 }
  0xcc   : > { %11822 = dma.hbm_to_vmem [thread:$0]  (!%p14894_p10), %s13003_s22, 128, %s13013_s12, %s14898_s10  }
  0xcd   : > { %s11658_s1 = sshll.u32 %s12708_s16, 16  ;;  %s427_s7 = scalar_lea.vmem [#allocation10], %s10452_s24 }
  0xce   : > { %s13065_s5 = scalar_lea.hbm %s14844_s4, %s11658_s1  ;;  %s434_s11 = sshll.u32 %s427_s7, 4  ;;  %s13067_s11 = int_to_ptr.vmem [resolvable:$true] %s434_s11 }
  0xcf   : > { %s13073_s25 = scalar_lea.hbm %s14846_s6, %s12894_s29  ;;  %s12502_s12 = scalar_lea.hbm %s13065_s5, 65536 }
  0xd0   : > { %p12503_p1 = scmp.ne.s32.totalorder %s13065_s5, %s12502_s12  ;;  %s12507_s23 = scalar_lea.hbm %s14844_s4, 131072 }
  0xd1   : > { %p12508_p9 = scmp.lt.u32.totalorder %s13065_s5, %s14844_s4  ;;  %p12509_p7 = scmp.lt.u32.totalorder %s12507_s23, %s12502_s12 }
  0xd2   : > { %p12505_p5 = pnand %p12503_p1, %p12861_p2  ;;  %p12511_p8 = scmp.lt.u32.totalorder %s12502_s12, %s13065_s5 }
  0xd3   : > { %p12510_p12 = por %p12509_p7, %p12508_p9 }
  0xd4   : > { %p12506_p6 = pneg %p12505_p5 }
  0xd5   : > { %p12512_p13 = por %p12511_p8, %p12510_p12 }
  0xd7   : > { %p12513_p0 = pnand %p12512_p13, %p12506_p6 }
  0xd9   : > { %12516 = shalt.err (!%p12513_p0)
}
  0xda   : > { %s12517_s29 = scalar_lea.vmem %s13067_s11, 65536  ;;  %s12720_s24 = smov [#allocation10]  }
  0xdb   : > { %p12518_p11 = scmp.ne.s32.totalorder %s13067_s11, %s12517_s29  ;;  %s12522_s3 = sshll.u32 %s12720_s24, 4  ;;  %s12523_s3 = int_to_ptr.vmem [resolvable:$false] %s12522_s3 }
  0xdc   : > { %s12524_s13 = scalar_lea.vmem %s12523_s3, 131072  ;;  %p12525_p1 = scmp.lt.s32.totalorder %s13067_s11, %s12523_s3 }
  0xdd   : > { %p12520_p3 = pnand %p12518_p11, %p12861_p2  ;;  %p12526_p5 = scmp.lt.s32.totalorder %s12524_s13, %s12517_s29 }
  0xdf   : > { %p12521_p4 = pneg %p12520_p3  ;;  %p12527_p9 = por %p12526_p5, %p12525_p1 }
  0xe1   : > { %p12528_p7 = pnand %p12527_p9, %p12521_p4 }
  0xe3   : > { %12531 = shalt.err (!%p12528_p7)
}
  0xe4   : > { %s14899_s7 = smov 32   ;;  %s14900_s18 = smov 512  }
  0xe5   : > { %s14901_s17 = scalar_lea.sflag [#allocation9], %s12844_s28  ;;  %s467_s12 = scalar_lea.vmem [#allocation13], %s12891_s20 }
  0xe6   : > { %11828 = dma.hbm_to_vmem [thread:$0]  (!%p14894_p10), %s13065_s5, 65536, %s13067_s11, %s14901_s17, %s14900_s18, %s14900_s18, %s14899_s7  }
  0xe7   : > { %s475_s22 = sshll.u32 %s467_s12, 4  ;;  %s10464_s21 = sshll.u32 %s12837_s26, 2  ;;  %s476_s22 = int_to_ptr.vmem [resolvable:$true] %s475_s22 }
  0xe8   : > { %s12532_s23 = scalar_lea.hbm %s13073_s25, 128  ;;  %s12537_s29 = scalar_lea.hbm %s14846_s6, 256 }
  0xe9   : > { %p12533_p6 = scmp.ne.s32.totalorder %s13073_s25, %s12532_s23  ;;  %p12538_p13 = scmp.lt.u32.totalorder %s13073_s25, %s14846_s6 }
  0xea   : > { %p12539_p0 = scmp.lt.u32.totalorder %s12537_s29, %s12532_s23  ;;  %p12541_p3 = scmp.lt.u32.totalorder %s12532_s23, %s13073_s25 }
  0xeb   : > { %p12535_p12 = pnand %p12533_p6, %p12861_p2 }
  0xec   : > { %p12540_p11 = por %p12539_p0, %p12538_p13 }
  0xed   : > { %p12536_p8 = pneg %p12535_p12 }
  0xee   : > { %p12542_p4 = por %p12541_p3, %p12540_p11 }
  0xf0   : > { %p12543_p1 = pnand %p12542_p4, %p12536_p8 }
  0xf2   : > { %12546 = shalt.err (!%p12543_p1)
}
  0xf3   : > { %s12547_s20 = scalar_lea.vmem %s476_s22, 128  ;;  %s12721_s5 = smov [#allocation13]  }
  0xf4   : > { %p12548_p5 = scmp.ne.s32.totalorder %s476_s22, %s12547_s20  ;;  %s12552_s11 = sshll.u32 %s12721_s5, 4  ;;  %s12553_s11 = int_to_ptr.vmem [resolvable:$false] %s12552_s11 }
  0xf5   : > { %s12554_s13 = scalar_lea.vmem %s12553_s11, 256  ;;  %p12555_p6 = scmp.lt.s32.totalorder %s476_s22, %s12553_s11 }
  0xf6   : > { %p12550_p9 = pnand %p12548_p5, %p12861_p2  ;;  %p12556_p12 = scmp.lt.s32.totalorder %s12554_s13, %s12547_s20 }
  0xf8   : > { %p12551_p7 = pneg %p12550_p9  ;;  %p12557_p10 = por %p12556_p12, %p12555_p6 }
  0xfa   : > { %p12558_p0 = pnand %p12557_p10, %p12551_p7 }
  0xfc   : > { %12561 = shalt.err (!%p12558_p0)
}
  0xfd   : > { %p14902_p13 = scmp.ne.s32.totalorder %s14887_s27, 0  ;;  %s14903_s7 = scalar_lea.sflag [#allocation12], %s12844_s28 }
  0xfe   : > { %s11662_s18 = sshll.u32 %s12708_s16, 6  ;;  %s507_s17 = scalar_lea.vmem [#allocation16], %s10464_s21 }
  0xff   : > { %11834 = dma.hbm_to_vmem [thread:$0]  (!%p14902_p13), %s13073_s25, 128, %s476_s22, %s14903_s7  }
 0x100   : > { %s515_s12 = sshll.u32 %s507_s17, 4  ;;  %s513_s1 = scalar_lea.hbm %s14848_s8, %s11662_s18  ;;  %s516_s12 = int_to_ptr.vmem [resolvable:$true] %s515_s12 }
 0x101   : > { %s12562_s29 = scalar_lea.hbm %s513_s1, 64  ;;  %s12567_s20 = scalar_lea.hbm %s14848_s8, 128 }
 0x102   : > { %p12563_p10 = scmp.ne.s32.totalorder %s513_s1, %s12562_s29  ;;  %p12568_p3 = scmp.lt.u32.totalorder %s513_s1, %s14848_s8 }
 0x103   : > { %p12569_p4 = scmp.lt.u32.totalorder %s12567_s20, %s12562_s29  ;;  %p12571_p5 = scmp.lt.u32.totalorder %s12562_s29, %s513_s1 }
 0x104   : > { %p12565_p8 = pnand %p12563_p10, %p12861_p2 }
 0x105   : > { %p12570_p1 = por %p12569_p4, %p12568_p3 }
 0x106   : > { %p12566_p11 = pneg %p12565_p8 }
 0x107   : > { %p12572_p9 = por %p12571_p5, %p12570_p1 }
 0x109   : > { %p12573_p7 = pnand %p12572_p9, %p12566_p11 }
 0x10b   : > { %12576 = shalt.err (!%p12573_p7)
}
 0x10c   : > { %s12577_s5 = scalar_lea.vmem %s516_s12, 64  ;;  %s12722_s11 = smov [#allocation16]  }
 0x10d   : > { %p12578_p6 = scmp.ne.s32.totalorder %s516_s12, %s12577_s5  ;;  %s12582_s13 = sshll.u32 %s12722_s11, 4  ;;  %s12583_s13 = int_to_ptr.vmem [resolvable:$false] %s12582_s13 }
 0x10e   : > { %s12584_s7 = scalar_lea.vmem %s12583_s13, 128  ;;  %p12585_p10 = scmp.lt.s32.totalorder %s516_s12, %s12583_s13 }
 0x10f   : > { %p12580_p12 = pnand %p12578_p6, %p12861_p2  ;;  %p12586_p8 = scmp.lt.s32.totalorder %s12584_s7, %s12577_s5 }
 0x111   : > { %p12581_p0 = pneg %p12580_p12  ;;  %p12587_p13 = por %p12586_p8, %p12585_p10 }
 0x113   : > { %p12588_p3 = pnand %p12587_p13, %p12581_p0 }
 0x115   : > { %12591 = shalt.err (!%p12588_p3)
}
 0x116   : > { %p14904_p4 = scmp.ne.s32.totalorder %s14887_s27, 0  ;;  %s13149_s10 = scalar_lea.hbm %s14849_s9, %s11662_s18 }
 0x117   : > { %s526_s29 = scalar_lea.vmem [#allocation17], %s10464_s21  ;;  %s523_s28 = scalar_lea.sflag [#allocation18], %s12837_s26 }
 0x118   : > { %11840 = dma.hbm_to_vmem [thread:$0]  (!%p14904_p4), %s513_s1, 64, %s516_s12, %s483_s15  }
 0x119   : > { %s534_s24 = sshll.u32 %s526_s29, 4  ;;  %s12592_s3 = scalar_lea.hbm %s13149_s10, 64  ;;  %s535_s24 = int_to_ptr.vmem [resolvable:$true] %s534_s24 }
 0x11a   : > { %p12593_p13 = scmp.ne.s32.totalorder %s13149_s10, %s12592_s3  ;;  %s12597_s1 = scalar_lea.hbm %s14849_s9, 128 }
 0x11b   : > { %p12598_p5 = scmp.lt.u32.totalorder %s13149_s10, %s14849_s9  ;;  %p12599_p9 = scmp.lt.u32.totalorder %s12597_s1, %s12592_s3 }
 0x11c   : > { %p12595_p11 = pnand %p12593_p13, %p12861_p2  ;;  %p12601_p6 = scmp.lt.u32.totalorder %s12592_s3, %s13149_s10 }
 0x11d   : > { %p12600_p7 = por %p12599_p9, %p12598_p5 }
 0x11e   : > { %p12596_p1 = pneg %p12595_p11 }
 0x11f   : > { %p12602_p12 = por %p12601_p6, %p12600_p7 }
 0x121   : > { %p12603_p0 = pnand %p12602_p12, %p12596_p1 }
 0x123   : > { %12606 = shalt.err (!%p12603_p0)
}
 0x124   : > { %s12607_s26 = scalar_lea.vmem %s535_s24, 64  ;;  %s12723_s21 = smov [#allocation17]  }
 0x125   : > { %p12608_p10 = scmp.ne.s32.totalorder %s535_s24, %s12607_s26  ;;  %s12612_s25 = sshll.u32 %s12723_s21, 4  ;;  %s12613_s25 = int_to_ptr.vmem [resolvable:$false] %s12612_s25 }
 0x126   : > { %s12614_s22 = scalar_lea.vmem %s12613_s25, 128  ;;  %p12615_p13 = scmp.lt.s32.totalorder %s535_s24, %s12613_s25 }
 0x127   : > { %p12610_p8 = pnand %p12608_p10, %p12861_p2  ;;  %p12616_p11 = scmp.lt.s32.totalorder %s12614_s22, %s12607_s26 }
 0x129   : > { %p12611_p3 = pneg %p12610_p8  ;;  %p12617_p4 = por %p12616_p11, %p12615_p13 }
 0x12b   : > { %p12618_p5 = pnand %p12617_p4, %p12611_p3 }
 0x12d   : > { %12621 = shalt.err (!%p12618_p5)
}
 0x12e   : > { %p14905_p9 = scmp.ne.s32.totalorder %s14887_s27, 0  ;;  %p14906_p1 = scmp.ne.s32.totalorder %s14892_s30, 0 }
 0x12f   : > { %s14907_s19 = sld [smem:[#allocation32_spill]] (!%p14906_p1)  ;;  %s13174_s5 = sand.u32 (!%p14906_p1), 1, %s12700_s14  }
 0x130   : > { %11843 = dma.hbm_to_vmem [thread:$0]  (!%p14905_p9), %s13149_s10, 64, %s535_s24, %s523_s28  }
 0x131   : > { %543 = sbr.rel (%p14906_p1) target bundleno = 2410 (0x96a), region = 60  ;;  %s546_s13 = scalar_lea.sflag (!%p14906_p1), [#allocation3], %s13174_s5 }
 0x132   : > { %s11789_s11 = smul.u32 (!%p14906_p1), 28, %s13174_s5 }
 0x134   : > { %s13178_s7 = scalar_lea.vmem (!%p14906_p1), [#allocation2], %s11789_s11 }
 0x135   : > { %p14908_p2 = scmp.ne.s32.totalorder (!%p14906_p1), %s14907_s19, 0 }
 0x138   : > { %12667 = dma.done.wait (%p14908_p2), %s546_s13, 448  }
 0x139   : > { %12669 = vsyncadd (%p14908_p2), %s546_s13, 4294966848  ;;  %s14909_s27 = sld [smem:[#allocation29_spill]]  ;;  %s11790_s17 = smul.u32 3136, %s13174_s5 }
 0x13b   : > { %s13186_s10 = scalar_lea.vmem [#allocation5], %s11790_s17 }
 0x13f   : > { %s554_s30 = sand.u32 1, %s14909_s27  }
 0x140   : > { %s555_s23 = scalar_lea.sflag [#allocation6], %s554_s30 }
 0x141   : > { %12671 = dma.done.wait (%p14908_p2), %s555_s23, 50304  }
 0x142   : > { %12673 = vsyncadd (%p14908_p2), %s555_s23, 4294916992  ;;  %s13193_s29 = sshll.u32 %s13174_s5, 3  ;;  %s573_s28 = scalar_lea.sflag [#allocation9], %s554_s30 }
 0x143   : > { %s567_s24 = scalar_lea.vmem [#allocation7], %s13193_s29  ;;  %s576_s3 = scalar_lea.vmem [#allocation8], %s13193_s29 }
 0x144   : > { %12675 = dma.done.wait (%p14908_p2), %s573_s28, 65664  }
 0x145   : > { %12677 = vsyncadd (%p14908_p2), %s573_s28, 4294901632  ;;  %s10473_s15 = sshll.u32 %s13174_s5, 12  ;;  %s591_s1 = scalar_lea.sflag [#allocation12], %s554_s30 }
 0x146   : > { %s13202_s12 = scalar_lea.vmem [#allocation10], %s10473_s15  ;;  %s594_s18 = scalar_lea.vmem [#allocation11], %s13193_s29 }
 0x147   : > { %12679 = dma.done.wait (%p14908_p2), %s591_s1, 256  }
 0x148   : > { %12681 = vsyncadd (%p14908_p2), %s591_s1, 4294967040  ;;  %s10476_s20 = sshll.u32 %s13174_s5, 11  ;;  %s603_s26 = scalar_lea.vmem [#allocation13], %s13193_s29 }
 0x149   : > { %s609_s21 = scalar_lea.sflag [#allocation15], %s554_s30  ;;  %s13211_s25 = scalar_lea.vmem [#allocation14], %s10476_s20 }
 0x14a   : > { %12683 = dma.done.wait (%p14908_p2), %s609_s21, 32832  }
 0x14b   : > { %12685 = vsyncadd (%p14908_p2), %s609_s21, 4294934464  ;;  %s10477_s22 = sshll.u32 %s13174_s5, 2  ;;  %s627_s13 = scalar_lea.sflag [#allocation18], %s13174_s5 }
 0x14c   : > { %s13218_s11 = scalar_lea.vmem [#allocation16], %s10477_s22  ;;  %s13221_s17 = scalar_lea.vmem [#allocation17], %s10477_s22 }
 0x14d   : > { %12687 = dma.done.wait (%p14908_p2), %s627_s13, 64  }
 0x14e   : > { %12689 = vsyncadd (%p14908_p2), %s627_s13, 4294967232  ;;  %v717_v0 = vld [vmem:[%s13186_s10] sm:$0xff]  ;;  %v718_v2 = vld [vmem:[%s13186_s10 + $0x8] sm:$0xff]  ;;  %vm3093_vm0 = vcmask 130048   ;;  %s10479_s19 = sshll.u32 %s13174_s5, 5  ;;  %s14910_s23 = sld [smem:[#allocation33_spill]] }
 0x14f   : > { %v721_v1 = vld [vmem:[%s13186_s10 + $0x20] sm:$0xff]  ;;  %v722_v4 = vld [vmem:[%s13186_s10 + $0x28] sm:$0xff]  ;;  %s711_s30 = scalar_lea.vmem [#allocation19], %s10479_s19  ;;  %s14911_s28 = sld [smem:[#allocation39_spill]] }
 0x150   : > { %v10488_v3 = vcombine.high %v717_v0, %v721_v1  ;;  %v10487_v5 = vcombine.low %v717_v0, %v721_v1  ;;  %v725_v6 = vld [vmem:[%s13186_s10 + $0x40] sm:$0xff]  ;;  %v10490_v8 = vcombine.high %v718_v2, %v722_v4  ;;  %v10489_v9 = vcombine.low %v718_v2, %v722_v4  ;;  %v726_v11 = vld [vmem:[%s13186_s10 + $0x48] sm:$0xff] }
 0x151   : > { %v729_v7 = vld [vmem:[%s13186_s10 + $0x60] sm:$0xff]  ;;  %v730_v12 = vld [vmem:[%s13186_s10 + $0x68] sm:$0xff] }
 0x152   : > { %v10496_v10 = vcombine.high %v725_v6, %v729_v7  ;;  %v733_v13 = vld [vmem:[%s13186_s10 + $0x80] sm:$0xff]  ;;  %3097 = vmatprep.subr.bf16.mxu0 %v10488_v3  ;;  %v10498_v14 = vcombine.high %v726_v11, %v730_v12  ;;  %v734_v16 = vld [vmem:[%s13186_s10 + $0x88] sm:$0xff]  ;;  %3261 = vmatprep.subr.bf16.mxu1 %v10490_v8  ;;  %v10495_v18 = vcombine.low %v725_v6, %v729_v7 }
 0x153   : > { %v737_v15 = vld [vmem:[%s13186_s10 + $0xa0] sm:$0xff]  ;;  %v738_v17 = vld [vmem:[%s13186_s10 + $0xa8] sm:$0xff]  ;;  %3098 = vmatpush1.bf16.msra.mxu0 %v10487_v5  ;;  %3262 = vmatpush1.bf16.msra.mxu1 %v10489_v9  ;;  %v10497_v19 = vcombine.low %v726_v11, %v730_v12 }
 0x154   : > { %3099 = vmatprep.subr.bf16.mxu0 %v10496_v10  ;;  %v10504_v20 = vcombine.high %v733_v13, %v737_v15  ;;  %3263 = vmatprep.subr.bf16.mxu1 %v10498_v14  ;;  %v10506_v21 = vcombine.high %v734_v16, %v738_v17  ;;  %v741_v22 = vld [vmem:[%s13186_s10 + $0xc0] sm:$0xff]  ;;  %v742_v24 = vld [vmem:[%s13186_s10 + $0xc8] sm:$0xff]  ;;  %v10503_v26 = vcombine.low %v733_v13, %v737_v15  ;;  %p14912_p7 = scmp.ne.s32.totalorder %s14910_s23, 0 }
 0x155   : > { %v745_v23 = vld [vmem:[%s13186_s10 + $0xe0] sm:$0xff]  ;;  %v746_v25 = vld [vmem:[%s13186_s10 + $0xe8] sm:$0xff]  ;;  %v10505_v27 = vcombine.low %v734_v16, %v738_v17 }
 0x156   : > { %v10512_v28 = vcombine.high %v741_v22, %v745_v23  ;;  %v10514_v29 = vcombine.high %v742_v24, %v746_v25  ;;  %v749_v30 = vld [vmem:[%s13186_s10 + $0x100] sm:$0xff]  ;;  %v750_v32 = vld [vmem:[%s13186_s10 + $0x108] sm:$0xff]  ;;  %v10511_v34 = vcombine.low %v741_v22, %v745_v23  ;;  %v10513_v35 = vcombine.low %v742_v24, %v746_v25 }
 0x157   : > { %3100 = vmatpush1.bf16.msra.mxu0 %v10495_v18  ;;  %3264 = vmatpush1.bf16.msra.mxu1 %v10497_v19  ;;  %v753_v31 = vld [vmem:[%s13186_s10 + $0x120] sm:$0xff]  ;;  %v754_v33 = vld [vmem:[%s13186_s10 + $0x128] sm:$0xff] }
 0x158   : > { %3101 = vmatprep.subr.bf16.mxu0 %v10504_v20  ;;  %3265 = vmatprep.subr.bf16.mxu1 %v10506_v21  ;;  %v10520_v36 = vcombine.high %v749_v30, %v753_v31  ;;  %v10522_v37 = vcombine.high %v750_v32, %v754_v33  ;;  %v757_v38 = vld [vmem:[%s13186_s10 + $0x140] sm:$0xff]  ;;  %v758_v40 = vld [vmem:[%s13186_s10 + $0x148] sm:$0xff]  ;;  %v10519_v42 = vcombine.low %v749_v30, %v753_v31 }
 0x159   : > { %v761_v39 = vld [vmem:[%s13186_s10 + $0x160] sm:$0xff]  ;;  %v762_v41 = vld [vmem:[%s13186_s10 + $0x168] sm:$0xff]  ;;  %v10521_v43 = vcombine.low %v750_v32, %v754_v33 }
 0x15a   : > { %v10528_v44 = vcombine.high %v757_v38, %v761_v39  ;;  %v10530_v45 = vcombine.high %v758_v40, %v762_v41  ;;  %v765_v46 = vld [vmem:[%s13186_s10 + $0x180] sm:$0xff]  ;;  %v766_v48 = vld [vmem:[%s13186_s10 + $0x188] sm:$0xff]  ;;  %v10527_v50 = vcombine.low %v757_v38, %v761_v39  ;;  %v10529_v51 = vcombine.low %v758_v40, %v762_v41 }
 0x15b   : > { %3102 = vmatpush1.bf16.msra.mxu0 %v10503_v26  ;;  %3266 = vmatpush1.bf16.msra.mxu1 %v10505_v27  ;;  %v769_v47 = vld [vmem:[%s13186_s10 + $0x1a0] sm:$0xff]  ;;  %v770_v49 = vld [vmem:[%s13186_s10 + $0x1a8] sm:$0xff] }
 0x15c   : > { %3103 = vmatprep.subr.bf16.mxu0 %v10512_v28  ;;  %3267 = vmatprep.subr.bf16.mxu1 %v10514_v29  ;;  %v10536_v52 = vcombine.high %v765_v46, %v769_v47  ;;  %v13256_v53 = vld [vmem:[%s13178_s7] sm:$0xff]  ;;  %v10538_v54 = vcombine.high %v766_v48, %v770_v49  ;;  %v10535_v60 = vcombine.low %v765_v46, %v769_v47 }
 0x15d   : > { %v773_v55 = vld [vmem:[%s13186_s10 + $0x1c0] sm:$0xff]  ;;  %v13262_v57 = vcombine.high %v13256_v53, %v13256_v53  ;;  %v774_v58 = vld [vmem:[%s13186_s10 + $0x1c8] sm:$0xff]  ;;  %v10537_v61 = vcombine.low %v766_v48, %v770_v49 }
 0x15e   : > { %v777_v56 = vld [vmem:[%s13186_s10 + $0x1e0] sm:$0xff]  ;;  %v778_v59 = vld [vmem:[%s13186_s10 + $0x1e8] sm:$0xff] }
 0x15f   : > { %3104 = vmatpush1.bf16.msra.mxu0 %v10511_v34  ;;  %3268 = vmatpush1.bf16.msra.mxu1 %v10513_v35  ;;  %v10544_v62 = vcombine.high %v773_v55, %v777_v56  ;;  %v10546_v63 = vcombine.high %v774_v58, %v778_v59  ;;  %v781_v0 = vld [vmem:[%s13186_s10 + $0x200] sm:$0xff]  ;;  %v782_v2 = vld [vmem:[%s13186_s10 + $0x208] sm:$0xff]  ;;  %v10543_v4 = vcombine.low %v773_v55, %v777_v56 }
 0x160   : > { %3105 = vmatprep.subr.bf16.mxu0 %v10520_v36  ;;  %3269 = vmatprep.subr.bf16.mxu1 %v10522_v37  ;;  %v785_v1 = vld [vmem:[%s13186_s10 + $0x220] sm:$0xff]  ;;  %v786_v3 = vld [vmem:[%s13186_s10 + $0x228] sm:$0xff]  ;;  %v10545_v5 = vcombine.low %v774_v58, %v778_v59 }
 0x161   : > { %3129 = vmatprep.mubr.bf16.mxu0 %v13262_v57  ;;  %3293 = vmatprep.mubr.bf16.mxu1 %v13262_v57  ;;  %v10552_v6 = vcombine.high %v781_v0, %v785_v1  ;;  %v10554_v7 = vcombine.high %v782_v2, %v786_v3  ;;  %v789_v8 = vld [vmem:[%s13186_s10 + $0x240] sm:$0xff]  ;;  %v790_v10 = vld [vmem:[%s13186_s10 + $0x248] sm:$0xff]  ;;  %v10551_v12 = vcombine.low %v781_v0, %v785_v1 }
 0x162   : > { %v793_v9 = vld [vmem:[%s13186_s10 + $0x260] sm:$0xff]  ;;  %v794_v11 = vld [vmem:[%s13186_s10 + $0x268] sm:$0xff]  ;;  %v10553_v13 = vcombine.low %v782_v2, %v786_v3 }
 0x163   : > { %3106 = vmatpush1.bf16.msra.mxu0 %v10519_v42  ;;  %3270 = vmatpush1.bf16.msra.mxu1 %v10521_v43  ;;  %v10560_v14 = vcombine.high %v789_v8, %v793_v9  ;;  %v10562_v15 = vcombine.high %v790_v10, %v794_v11  ;;  %v797_v16 = vld [vmem:[%s13186_s10 + $0x280] sm:$0xff]  ;;  %v798_v18 = vld [vmem:[%s13186_s10 + $0x288] sm:$0xff]  ;;  %v10559_v20 = vcombine.low %v789_v8, %v793_v9 }
 0x164   : > { %3107 = vmatprep.subr.bf16.mxu0 %v10528_v44  ;;  %3271 = vmatprep.subr.bf16.mxu1 %v10530_v45  ;;  %v801_v17 = vld [vmem:[%s13186_s10 + $0x2a0] sm:$0xff]  ;;  %v802_v19 = vld [vmem:[%s13186_s10 + $0x2a8] sm:$0xff]  ;;  %v10561_v21 = vcombine.low %v790_v10, %v794_v11 }
 0x165   : > { %v10568_v22 = vcombine.high %v797_v16, %v801_v17  ;;  %v10570_v23 = vcombine.high %v798_v18, %v802_v19  ;;  %v805_v24 = vld [vmem:[%s13186_s10 + $0x2c0] sm:$0xff]  ;;  %v806_v26 = vld [vmem:[%s13186_s10 + $0x2c8] sm:$0xff]  ;;  %v10567_v28 = vcombine.low %v797_v16, %v801_v17  ;;  %v10569_v29 = vcombine.low %v798_v18, %v802_v19 }
 0x166   : > { %v809_v25 = vld [vmem:[%s13186_s10 + $0x2e0] sm:$0xff]  ;;  %v810_v27 = vld [vmem:[%s13186_s10 + $0x2e8] sm:$0xff] }
 0x167   : > { %3108 = vmatpush1.bf16.msra.mxu0 %v10527_v50  ;;  %3272 = vmatpush1.bf16.msra.mxu1 %v10529_v51  ;;  %v10576_v30 = vcombine.high %v805_v24, %v809_v25  ;;  %v10578_v31 = vcombine.high %v806_v26, %v810_v27  ;;  %v813_v32 = vld [vmem:[%s13186_s10 + $0x300] sm:$0xff]  ;;  %v814_v34 = vld [vmem:[%s13186_s10 + $0x308] sm:$0xff]  ;;  %v10575_v36 = vcombine.low %v805_v24, %v809_v25 }
 0x168   : > { %3109 = vmatprep.subr.bf16.mxu0 %v10536_v52  ;;  %3273 = vmatprep.subr.bf16.mxu1 %v10538_v54  ;;  %v817_v33 = vld [vmem:[%s13186_s10 + $0x320] sm:$0xff]  ;;  %v818_v35 = vld [vmem:[%s13186_s10 + $0x328] sm:$0xff]  ;;  %v10577_v37 = vcombine.low %v806_v26, %v810_v27 }
 0x169   : > { %v10584_v38 = vcombine.high %v813_v32, %v817_v33  ;;  %v10586_v39 = vcombine.high %v814_v34, %v818_v35  ;;  %v821_v40 = vld [vmem:[%s13186_s10 + $0x340] sm:$0xff]  ;;  %v822_v42 = vld [vmem:[%s13186_s10 + $0x348] sm:$0xff]  ;;  %v10583_v44 = vcombine.low %v813_v32, %v817_v33  ;;  %v10585_v45 = vcombine.low %v814_v34, %v818_v35 }
 0x16a   : > { %v825_v41 = vld [vmem:[%s13186_s10 + $0x360] sm:$0xff]  ;;  %v826_v43 = vld [vmem:[%s13186_s10 + $0x368] sm:$0xff] }
 0x16b   : > { %3110 = vmatpush1.bf16.msra.mxu0 %v10535_v60  ;;  %3274 = vmatpush1.bf16.msra.mxu1 %v10537_v61  ;;  %v10592_v46 = vcombine.high %v821_v40, %v825_v41  ;;  %v10594_v47 = vcombine.high %v822_v42, %v826_v43  ;;  %v829_v48 = vld [vmem:[%s13186_s10 + $0x380] sm:$0xff]  ;;  %v830_v50 = vld [vmem:[%s13186_s10 + $0x388] sm:$0xff]  ;;  %v10591_v52 = vcombine.low %v821_v40, %v825_v41 }
 0x16c   : > { %3111 = vmatprep.subr.bf16.mxu0 %v10544_v62  ;;  %3275 = vmatprep.subr.bf16.mxu1 %v10546_v63  ;;  %v833_v49 = vld [vmem:[%s13186_s10 + $0x3a0] sm:$0xff]  ;;  %v834_v51 = vld [vmem:[%s13186_s10 + $0x3a8] sm:$0xff]  ;;  %v10593_v54 = vcombine.low %v822_v42, %v826_v43 }
 0x16d   : > { %v10600_v55 = vcombine.high %v829_v48, %v833_v49  ;;  %v10602_v56 = vcombine.high %v830_v50, %v834_v51  ;;  %v837_v58 = vld [vmem:[%s13186_s10 + $0x3c0] sm:$0xff]  ;;  %v838_v60 = vld [vmem:[%s13186_s10 + $0x3c8] sm:$0xff]  ;;  %v10599_v62 = vcombine.low %v829_v48, %v833_v49  ;;  %v10601_v63 = vcombine.low %v830_v50, %v834_v51 }
 0x16e   : > { %v841_v59 = vld [vmem:[%s13186_s10 + $0x3e0] sm:$0xff]  ;;  %v842_v61 = vld [vmem:[%s13186_s10 + $0x3e8] sm:$0xff] }
 0x16f   : > { %3112 = vmatpush1.bf16.msra.mxu0 %v10543_v4  ;;  %3276 = vmatpush1.bf16.msra.mxu1 %v10545_v5  ;;  %v10608_v0 = vcombine.high %v837_v58, %v841_v59  ;;  %v10610_v1 = vcombine.high %v838_v60, %v842_v61  ;;  %v845_v2 = vld [vmem:[%s13186_s10 + $0x400] sm:$0xff]  ;;  %v846_v4 = vld [vmem:[%s13186_s10 + $0x408] sm:$0xff] }
 0x170   : > { %3113 = vmatprep.subr.bf16.mxu0 %v10552_v6  ;;  %3277 = vmatprep.subr.bf16.mxu1 %v10554_v7  ;;  %v849_v3 = vld [vmem:[%s13186_s10 + $0x420] sm:$0xff]  ;;  %v850_v5 = vld [vmem:[%s13186_s10 + $0x428] sm:$0xff]  ;;  %v10607_v6 = vcombine.low %v837_v58, %v841_v59  ;;  %v10609_v7 = vcombine.low %v838_v60, %v842_v61 }
 0x171   : > { %v10616_v8 = vcombine.high %v845_v2, %v849_v3  ;;  %v10618_v9 = vcombine.high %v846_v4, %v850_v5  ;;  %v853_v10 = vld [vmem:[%s13186_s10 + $0x440] sm:$0xff]  ;;  %v10615_v16 = vcombine.low %v845_v2, %v849_v3  ;;  %v10617_v19 = vcombine.low %v846_v4, %v850_v5 }
 0x172   : > { %v857_v11 = vld [vmem:[%s13186_s10 + $0x460] sm:$0xff] }
 0x173   : > { %3114 = vmatpush1.bf16.msra.mxu0 %v10551_v12  ;;  %3278 = vmatpush1.bf16.msra.mxu1 %v10553_v13  ;;  %v13308_v12 = vcombine.low %v13256_v53, %v13256_v53  ;;  %v854_v13 = vld [vmem:[%s13186_s10 + $0x448] sm:$0xff]  ;;  %v861_v17 = vld [vmem:[%s13186_s10 + $0x480] sm:$0xff]  ;;  %v10623_v24 = vcombine.low %v853_v10, %v857_v11 }
 0x174   : > { %3115 = vmatprep.subr.bf16.mxu0 %v10560_v14  ;;  %3279 = vmatprep.subr.bf16.mxu1 %v10562_v15  ;;  %v858_v14 = vld [vmem:[%s13186_s10 + $0x468] sm:$0xff]  ;;  %v865_v18 = vld [vmem:[%s13186_s10 + $0x4a0] sm:$0xff] }
 0x175   : > { %v13313_v15 = vld [vmem:[%s13178_s7 + $0x8] sm:$0xff]  ;;  %v10625_v25 = vcombine.low %v854_v13, %v858_v14  ;;  %v10632_v26 = vcombine.high %v861_v17, %v865_v18  ;;  %v10631_v32 = vcombine.low %v861_v17, %v865_v18  ;;  %v877_v33 = vld [vmem:[%s13186_s10 + $0x500] sm:$0xff] }
 0x176   : > { %v13319_v53 = vcombine.high %v13313_v15, %v13313_v15  ;;  %v881_v34 = vld [vmem:[%s13186_s10 + $0x520] sm:$0xff]  ;;  %v918_v17 = vld [vmem:[%s13186_s10 + $0x648] sm:$0xff] }
 0x177   : > { %3116 = vmatpush1.bf16.msra.mxu0 %v10559_v20  ;;  %3280 = vmatpush1.bf16.msra.mxu1 %v10561_v21  ;;  %v10624_v20 = vcombine.high %v853_v10, %v857_v11  ;;  %v10626_v21 = vcombine.high %v854_v13, %v858_v14  ;;  %v885_v41 = vld [vmem:[%s13186_s10 + $0x540] sm:$0xff]  ;;  %v10647_v48 = vcombine.low %v877_v33, %v881_v34 }
 0x178   : > { %3117 = vmatprep.subr.bf16.mxu0 %v10568_v22  ;;  %3281 = vmatprep.subr.bf16.mxu1 %v10570_v23  ;;  %v862_v22 = vld [vmem:[%s13186_s10 + $0x488] sm:$0xff]  ;;  %v889_v42 = vld [vmem:[%s13186_s10 + $0x560] sm:$0xff] }
 0x179   : > { %v866_v23 = vld [vmem:[%s13186_s10 + $0x4a8] sm:$0xff]  ;;  %v10656_v50 = vcombine.high %v885_v41, %v889_v42  ;;  %v893_v51 = vld [vmem:[%s13186_s10 + $0x580] sm:$0xff]  ;;  %v10655_v58 = vcombine.low %v885_v41, %v889_v42 }
 0x17a   : > { %v10634_v27 = vcombine.high %v862_v22, %v866_v23  ;;  %v10633_v35 = vcombine.low %v862_v22, %v866_v23  ;;  %v901_v61 = vld [vmem:[%s13186_s10 + $0x5c0] sm:$0xff]  ;;  %v942_v41 = vld [vmem:[%s13186_s10 + $0x708] sm:$0xff] }
 0x17b   : > { %3118 = vmatpush1.bf16.msra.mxu0 %v10567_v28  ;;  %3282 = vmatpush1.bf16.msra.mxu1 %v10569_v29  ;;  %v869_v28 = vld [vmem:[%s13186_s10 + $0x4c0] sm:$0xff] }
 0x17c   : > { %3119 = vmatprep.subr.bf16.mxu0 %v10576_v30  ;;  %3283 = vmatprep.subr.bf16.mxu1 %v10578_v31  ;;  %v873_v29 = vld [vmem:[%s13186_s10 + $0x4e0] sm:$0xff]  ;;  %v870_v30 = vld [vmem:[%s13186_s10 + $0x4c8] sm:$0xff] }
 0x17d   : > { %v874_v31 = vld [vmem:[%s13186_s10 + $0x4e8] sm:$0xff]  ;;  %v10639_v40 = vcombine.low %v869_v28, %v873_v29  ;;  %v909_v5 = vld [vmem:[%s13186_s10 + $0x600] sm:$0xff] }
 0x17e   : > { %v10641_v43 = vcombine.low %v870_v30, %v874_v31  ;;  %v917_v14 = vld [vmem:[%s13186_s10 + $0x640] sm:$0xff] }
 0x17f   : > { %3120 = vmatpush1.bf16.msra.mxu0 %v10575_v36  ;;  %3284 = vmatpush1.bf16.msra.mxu1 %v10577_v37  ;;  %v10640_v36 = vcombine.high %v869_v28, %v873_v29  ;;  %v878_v37 = vld [vmem:[%s13186_s10 + $0x508] sm:$0xff]  ;;  %v925_v23 = vld [vmem:[%s13186_s10 + $0x680] sm:$0xff] }
 0x180   : > { %3121 = vmatprep.subr.bf16.mxu0 %v10584_v38  ;;  %3285 = vmatprep.subr.bf16.mxu1 %v10586_v39  ;;  %v882_v38 = vld [vmem:[%s13186_s10 + $0x528] sm:$0xff]  ;;  %v10642_v39 = vcombine.high %v870_v30, %v874_v31  ;;  %v933_v31 = vld [vmem:[%s13186_s10 + $0x6c0] sm:$0xff] }
 0x181   : > { %v10649_v49 = vcombine.low %v878_v37, %v882_v38 }
 0x183   : > { %3122 = vmatpush1.bf16.msra.mxu0 %v10583_v44  ;;  %3286 = vmatpush1.bf16.msra.mxu1 %v10585_v45  ;;  %v10648_v44 = vcombine.high %v877_v33, %v881_v34  ;;  %v886_v45 = vld [vmem:[%s13186_s10 + $0x548] sm:$0xff] }
 0x184   : > { %3123 = vmatprep.subr.bf16.mxu0 %v10592_v46  ;;  %3287 = vmatprep.subr.bf16.mxu1 %v10594_v47  ;;  %v890_v46 = vld [vmem:[%s13186_s10 + $0x568] sm:$0xff]  ;;  %v10650_v47 = vcombine.high %v878_v37, %v882_v38 }
 0x185   : > { %v10657_v59 = vcombine.low %v886_v45, %v890_v46  ;;  %v934_v33 = vld [vmem:[%s13186_s10 + $0x6c8] sm:$0xff] }
 0x187   : > { %3124 = vmatpush1.bf16.msra.mxu0 %v10591_v52  ;;  %3288 = vmatpush1.bf16.msra.mxu1 %v10593_v54  ;;  %v897_v52 = vld [vmem:[%s13186_s10 + $0x5a0] sm:$0xff]  ;;  %v894_v54 = vld [vmem:[%s13186_s10 + $0x588] sm:$0xff] }
 0x188   : > { %3125 = vmatprep.subr.bf16.mxu0 %v10600_v55  ;;  %3289 = vmatprep.subr.bf16.mxu1 %v10602_v56  ;;  %v10658_v55 = vcombine.high %v886_v45, %v890_v46  ;;  %v898_v56 = vld [vmem:[%s13186_s10 + $0x5a8] sm:$0xff]  ;;  %v10664_v60 = vcombine.high %v893_v51, %v897_v52  ;;  %v10663_v2 = vcombine.low %v893_v51, %v897_v52 }
 0x189   : > { %v10665_v3 = vcombine.low %v894_v54, %v898_v56  ;;  %v954_v51 = vld [vmem:[%s13186_s10 + $0x768] sm:$0xff] }
 0x18b   : > { %3126 = vmatpush1.bf16.msra.mxu0 %v10599_v62  ;;  %3290 = vmatpush1.bf16.msra.mxu1 %v10601_v63  ;;  %v905_v62 = vld [vmem:[%s13186_s10 + $0x5e0] sm:$0xff]  ;;  %v902_v63 = vld [vmem:[%s13186_s10 + $0x5c8] sm:$0xff] }
 0x18c   : > { %3127 = vmatprep.subr.bf16.mxu0 %v10608_v0  ;;  %3291 = vmatprep.subr.bf16.mxu1 %v10610_v1  ;;  %v10666_v0 = vcombine.high %v894_v54, %v898_v56  ;;  %v906_v1 = vld [vmem:[%s13186_s10 + $0x5e8] sm:$0xff]  ;;  %v10672_v4 = vcombine.high %v901_v61, %v905_v62  ;;  %v10671_v10 = vcombine.low %v901_v61, %v905_v62  ;;  %v957_v56 = vld [vmem:[%s13186_s10 + $0x780] sm:$0xff] }
 0x18d   : > { %v10673_v11 = vcombine.low %v902_v63, %v906_v1  ;;  %v962_v61 = vld [vmem:[%s13186_s10 + $0x7a8] sm:$0xff] }
 0x18f   : > { %3128 = vmatpush1.bf16.msra.mxu0 %v10607_v6  ;;  %3292 = vmatpush1.bf16.msra.mxu1 %v10609_v7  ;;  %v913_v6 = vld [vmem:[%s13186_s10 + $0x620] sm:$0xff]  ;;  %v910_v7 = vld [vmem:[%s13186_s10 + $0x608] sm:$0xff] }
 0x190   : > { %3138 = vmatprep.subr.bf16.mxu0 %v10616_v8  ;;  %3302 = vmatprep.subr.bf16.mxu1 %v10618_v9  ;;  %v10674_v8 = vcombine.high %v902_v63, %v906_v1  ;;  %v914_v9 = vld [vmem:[%s13186_s10 + $0x628] sm:$0xff]  ;;  %v10680_v13 = vcombine.high %v909_v5, %v913_v6  ;;  %v965_v1 = vld [vmem:[%s13186_s10 + $0x7c0] sm:$0xff] }
 0x191   : > { %v10682_v18 = vcombine.high %v910_v7, %v914_v9 }
 0x192   : > { %3130 = vmatmul.mubr.bf16.vlgmr.msra.gmra.mrb[0].mxu0 %v13308_v12  ;;  %3294 = vmatmul.mubr.bf16.vlgmr.msra.gmra.mrb[0].mxu1 %v13308_v12 }
 0x193   : > { %3139 = vmatpush1.bf16.msra.mxu0 %v10615_v16  ;;  %3303 = vmatpush1.bf16.msra.mxu1 %v10617_v19  ;;  %v921_v16 = vld [vmem:[%s13186_s10 + $0x660] sm:$0xff]  ;;  %v922_v19 = vld [vmem:[%s13186_s10 + $0x668] sm:$0xff] }
 0x194   : > { %3140 = vmatprep.subr.bf16.mxu0 %v10624_v20  ;;  %3304 = vmatprep.subr.bf16.mxu1 %v10626_v21  ;;  %v10679_v20 = vcombine.low %v909_v5, %v913_v6  ;;  %v10681_v21 = vcombine.low %v910_v7, %v914_v9  ;;  %v10688_v22 = vcombine.high %v917_v14, %v921_v16  ;;  %v970_v5 = vld [vmem:[%s13186_s10 + $0x7e8] sm:$0xff]  ;;  %v973_v9 = vld [vmem:[%s13186_s10 + $0x800] sm:$0xff] }
 0x195   : > { %3170 = vmatprep.mubr.bf16.mxu0 %v13319_v53  ;;  %3334 = vmatprep.mubr.bf16.mxu1 %v13319_v53  ;;  %v10687_v28 = vcombine.low %v917_v14, %v921_v16  ;;  %v10689_v29 = vcombine.low %v918_v17, %v922_v19  ;;  %v978_v14 = vld [vmem:[%s13186_s10 + $0x828] sm:$0xff] }
 0x197   : > { %3141 = vmatpush1.bf16.msra.mxu0 %v10623_v24  ;;  %3305 = vmatpush1.bf16.msra.mxu1 %v10625_v25  ;;  %v929_v24 = vld [vmem:[%s13186_s10 + $0x6a0] sm:$0xff]  ;;  %v926_v25 = vld [vmem:[%s13186_s10 + $0x688] sm:$0xff] }
 0x198   : > { %3142 = vmatprep.subr.bf16.mxu0 %v10632_v26  ;;  %3306 = vmatprep.subr.bf16.mxu1 %v10634_v27  ;;  %v10690_v26 = vcombine.high %v918_v17, %v922_v19  ;;  %v930_v27 = vld [vmem:[%s13186_s10 + $0x6a8] sm:$0xff]  ;;  %v10696_v30 = vcombine.high %v925_v23, %v929_v24  ;;  %v981_v17 = vld [vmem:[%s13186_s10 + $0x840] sm:$0xff] }
 0x199   : > { %v10698_v34 = vcombine.high %v926_v25, %v930_v27  ;;  %v10697_v37 = vcombine.low %v926_v25, %v930_v27  ;;  %v13392_v25 = vcombine.low %v13313_v15, %v13313_v15 }
 0x19b   : > { %3143 = vmatpush1.bf16.msra.mxu0 %v10631_v32  ;;  %3307 = vmatpush1.bf16.msra.mxu1 %v10633_v35  ;;  %v937_v32 = vld [vmem:[%s13186_s10 + $0x6e0] sm:$0xff]  ;;  %v938_v35 = vld [vmem:[%s13186_s10 + $0x6e8] sm:$0xff] }
 0x19c   : > { %3144 = vmatprep.subr.bf16.mxu0 %v10640_v36  ;;  %3308 = vmatprep.subr.bf16.mxu1 %v10642_v39  ;;  %v10695_v36 = vcombine.low %v925_v23, %v929_v24  ;;  %v10704_v38 = vcombine.high %v933_v31, %v937_v32  ;;  %v941_v39 = vld [vmem:[%s13186_s10 + $0x700] sm:$0xff]  ;;  %v10706_v42 = vcombine.high %v934_v33, %v938_v35  ;;  %v13388_v24 = vld [vmem:[%s13178_s7 + $0x10] sm:$0xff] }
 0x19d   : > { %v10705_v45 = vcombine.low %v934_v33, %v938_v35  ;;  %v994_v33 = vld [vmem:[%s13186_s10 + $0x8a8] sm:$0xff]  ;;  %v13400_v15 = vcombine.high %v13388_v24, %v13388_v24 }
 0x19f   : > { %3145 = vmatpush1.bf16.msra.mxu0 %v10639_v40  ;;  %3309 = vmatpush1.bf16.msra.mxu1 %v10641_v43  ;;  %v945_v40 = vld [vmem:[%s13186_s10 + $0x720] sm:$0xff]  ;;  %v946_v43 = vld [vmem:[%s13186_s10 + $0x728] sm:$0xff] }
 0x1a0   : > { %3146 = vmatprep.subr.bf16.mxu0 %v10648_v44  ;;  %3310 = vmatprep.subr.bf16.mxu1 %v10650_v47  ;;  %v10703_v44 = vcombine.low %v933_v31, %v937_v32  ;;  %v10712_v46 = vcombine.high %v941_v39, %v945_v40  ;;  %v949_v47 = vld [vmem:[%s13186_s10 + $0x740] sm:$0xff]  ;;  %v10711_v52 = vcombine.low %v941_v39, %v945_v40  ;;  %v990_v31 = vld [vmem:[%s13186_s10 + $0x888] sm:$0xff] }
 0x1a1   : > { %v10713_v54 = vcombine.low %v942_v41, %v946_v43  ;;  %v998_v39 = vld [vmem:[%s13186_s10 + $0x8c8] sm:$0xff]  ;;  %v10762_v40 = vcombine.high %v990_v31, %v994_v33 }
 0x1a3   : > { %3147 = vmatpush1.bf16.msra.mxu0 %v10647_v48  ;;  %3311 = vmatpush1.bf16.msra.mxu1 %v10649_v49  ;;  %v953_v48 = vld [vmem:[%s13186_s10 + $0x760] sm:$0xff]  ;;  %v950_v49 = vld [vmem:[%s13186_s10 + $0x748] sm:$0xff] }
 0x1a4   : > { %3148 = vmatprep.subr.bf16.mxu0 %v10656_v50  ;;  %3312 = vmatprep.subr.bf16.mxu1 %v10658_v55  ;;  %v10714_v50 = vcombine.high %v942_v41, %v946_v43  ;;  %v10720_v55 = vcombine.high %v949_v47, %v953_v48  ;;  %v10719_v62 = vcombine.low %v949_v47, %v953_v48  ;;  %v1002_v41 = vld [vmem:[%s13186_s10 + $0x8e8] sm:$0xff] }
 0x1a5   : > { %v10721_v63 = vcombine.low %v950_v49, %v954_v51  ;;  %v10761_v43 = vcombine.low %v990_v31, %v994_v33  ;;  %v1006_v47 = vld [vmem:[%s13186_s10 + $0x908] sm:$0xff]  ;;  %v10770_v48 = vcombine.high %v998_v39, %v1002_v41 }
 0x1a6   : > { %v1050_v31 = vld [vmem:[%s13186_s10 + $0xa68] sm:$0xff] }
 0x1a7   : > { %3149 = vmatpush1.bf16.msra.mxu0 %v10655_v58  ;;  %3313 = vmatpush1.bf16.msra.mxu1 %v10657_v59  ;;  %v961_v58 = vld [vmem:[%s13186_s10 + $0x7a0] sm:$0xff]  ;;  %v958_v59 = vld [vmem:[%s13186_s10 + $0x788] sm:$0xff] }
 0x1a8   : > { %3150 = vmatprep.subr.bf16.mxu0 %v10664_v60  ;;  %3314 = vmatprep.subr.bf16.mxu1 %v10666_v0  ;;  %v10722_v60 = vcombine.high %v950_v49, %v954_v51  ;;  %v10728_v0 = vcombine.high %v957_v56, %v961_v58  ;;  %v10727_v6 = vcombine.low %v957_v56, %v961_v58  ;;  %v1010_v49 = vld [vmem:[%s13186_s10 + $0x928] sm:$0xff] }
 0x1a9   : > { %v10729_v7 = vcombine.low %v958_v59, %v962_v61  ;;  %v10769_v51 = vcombine.low %v998_v39, %v1002_v41  ;;  %v1014_v56 = vld [vmem:[%s13186_s10 + $0x948] sm:$0xff]  ;;  %v10778_v58 = vcombine.high %v1006_v47, %v1010_v49 }
 0x1aa   : > { %v1058_v39 = vld [vmem:[%s13186_s10 + $0xaa8] sm:$0xff] }
 0x1ab   : > { %3151 = vmatpush1.bf16.msra.mxu0 %v10663_v2  ;;  %3315 = vmatpush1.bf16.msra.mxu1 %v10665_v3  ;;  %v969_v2 = vld [vmem:[%s13186_s10 + $0x7e0] sm:$0xff]  ;;  %v966_v3 = vld [vmem:[%s13186_s10 + $0x7c8] sm:$0xff] }
 0x1ac   : > { %3152 = vmatprep.subr.bf16.mxu0 %v10672_v4  ;;  %3316 = vmatprep.subr.bf16.mxu1 %v10674_v8  ;;  %v10730_v4 = vcombine.high %v958_v59, %v962_v61  ;;  %v10736_v8 = vcombine.high %v965_v1, %v969_v2  ;;  %v10735_v16 = vcombine.low %v965_v1, %v969_v2  ;;  %v1018_v59 = vld [vmem:[%s13186_s10 + $0x968] sm:$0xff] }
 0x1ad   : > { %v10777_v61 = vcombine.low %v1006_v47, %v1010_v49  ;;  %v1022_v1 = vld [vmem:[%s13186_s10 + $0x988] sm:$0xff]  ;;  %v10786_v2 = vcombine.high %v1014_v56, %v1018_v59 }
 0x1ae   : > { %v1066_v47 = vld [vmem:[%s13186_s10 + $0xae8] sm:$0xff] }
 0x1af   : > { %3153 = vmatpush1.bf16.msra.mxu0 %v10671_v10  ;;  %3317 = vmatpush1.bf16.msra.mxu1 %v10673_v11  ;;  %v977_v10 = vld [vmem:[%s13186_s10 + $0x820] sm:$0xff]  ;;  %v974_v11 = vld [vmem:[%s13186_s10 + $0x808] sm:$0xff] }
 0x1b0   : > { %3154 = vmatprep.subr.bf16.mxu0 %v10680_v13  ;;  %3318 = vmatprep.subr.bf16.mxu1 %v10682_v18  ;;  %v10738_v13 = vcombine.high %v966_v3, %v970_v5  ;;  %v10737_v18 = vcombine.low %v966_v3, %v970_v5  ;;  %v10744_v19 = vcombine.high %v973_v9, %v977_v10  ;;  %v1026_v3 = vld [vmem:[%s13186_s10 + $0x9a8] sm:$0xff] }
 0x1b1   : > { %v10746_v23 = vcombine.high %v974_v11, %v978_v14  ;;  %v10745_v27 = vcombine.low %v974_v11, %v978_v14  ;;  %v10785_v5 = vcombine.low %v1014_v56, %v1018_v59  ;;  %v1034_v11 = vld [vmem:[%s13186_s10 + $0x9e8] sm:$0xff]  ;;  %v10793_v14 = vcombine.low %v1022_v1, %v1026_v3 }
 0x1b2   : > { %v1074_v56 = vld [vmem:[%s13186_s10 + $0xb28] sm:$0xff] }
 0x1b3   : > { %3155 = vmatpush1.bf16.msra.mxu0 %v10679_v20  ;;  %3319 = vmatpush1.bf16.msra.mxu1 %v10681_v21  ;;  %v985_v20 = vld [vmem:[%s13186_s10 + $0x860] sm:$0xff]  ;;  %v982_v21 = vld [vmem:[%s13186_s10 + $0x848] sm:$0xff] }
 0x1b4   : > { %3156 = vmatprep.subr.bf16.mxu0 %v10688_v22  ;;  %3320 = vmatprep.subr.bf16.mxu1 %v10690_v26  ;;  %v986_v22 = vld [vmem:[%s13186_s10 + $0x868] sm:$0xff]  ;;  %v10743_v26 = vcombine.low %v973_v9, %v977_v10  ;;  %v10794_v10 = vcombine.high %v1022_v1, %v1026_v3 }
 0x1b5   : > { %v10754_v32 = vcombine.high %v982_v21, %v986_v22  ;;  %v10753_v35 = vcombine.low %v982_v21, %v986_v22  ;;  %v1030_v9 = vld [vmem:[%s13186_s10 + $0x9c8] sm:$0xff] }
 0x1b6   : > { %v1042_v21 = vld [vmem:[%s13186_s10 + $0xa28] sm:$0xff] }
 0x1b7   : > { %3157 = vmatpush1.bf16.msra.mxu0 %v10687_v28  ;;  %3321 = vmatpush1.bf16.msra.mxu1 %v10689_v29  ;;  %v10752_v28 = vcombine.high %v981_v17, %v985_v20  ;;  %v989_v29 = vld [vmem:[%s13186_s10 + $0x880] sm:$0xff]  ;;  %v1082_v1 = vld [vmem:[%s13186_s10 + $0xb68] sm:$0xff] }
 0x1b8   : > { %3158 = vmatprep.subr.bf16.mxu0 %v10696_v30  ;;  %3322 = vmatprep.subr.bf16.mxu1 %v10698_v34  ;;  %v993_v30 = vld [vmem:[%s13186_s10 + $0x8a0] sm:$0xff]  ;;  %v10751_v34 = vcombine.low %v981_v17, %v985_v20  ;;  %v10802_v20 = vcombine.high %v1030_v9, %v1034_v11 }
 0x1b9   : > { %v1037_v17 = vld [vmem:[%s13186_s10 + $0xa00] sm:$0xff] }
 0x1bb   : > { %3159 = vmatpush1.bf16.msra.mxu0 %v10695_v36  ;;  %3323 = vmatpush1.bf16.msra.mxu1 %v10697_v37  ;;  %v10760_v36 = vcombine.high %v989_v29, %v993_v30  ;;  %v997_v37 = vld [vmem:[%s13186_s10 + $0x8c0] sm:$0xff] }
 0x1bc   : > { %3160 = vmatprep.subr.bf16.mxu0 %v10704_v38  ;;  %3324 = vmatprep.subr.bf16.mxu1 %v10706_v42  ;;  %v1001_v38 = vld [vmem:[%s13186_s10 + $0x8e0] sm:$0xff]  ;;  %v10759_v42 = vcombine.low %v989_v29, %v993_v30  ;;  %v1046_v29 = vld [vmem:[%s13186_s10 + $0xa48] sm:$0xff] }
 0x1bd   : > { %v10817_v41 = vcombine.low %v1046_v29, %v1050_v31 }
 0x1bf   : > { %3161 = vmatpush1.bf16.msra.mxu0 %v10703_v44  ;;  %3325 = vmatpush1.bf16.msra.mxu1 %v10705_v45  ;;  %v10768_v44 = vcombine.high %v997_v37, %v1001_v38  ;;  %v1005_v45 = vld [vmem:[%s13186_s10 + $0x900] sm:$0xff] }
 0x1c0   : > { %3162 = vmatprep.subr.bf16.mxu0 %v10712_v46  ;;  %3326 = vmatprep.subr.bf16.mxu1 %v10714_v50  ;;  %v1009_v46 = vld [vmem:[%s13186_s10 + $0x920] sm:$0xff]  ;;  %v10767_v50 = vcombine.low %v997_v37, %v1001_v38  ;;  %v1054_v37 = vld [vmem:[%s13186_s10 + $0xa88] sm:$0xff]  ;;  %v10818_v38 = vcombine.high %v1046_v29, %v1050_v31 }
 0x1c1   : > { %v10825_v49 = vcombine.low %v1054_v37, %v1058_v39  ;;  %v1106_v29 = vld [vmem:[%s13186_s10 + $0xc28] sm:$0xff] }
 0x1c3   : > { %3163 = vmatpush1.bf16.msra.mxu0 %v10711_v52  ;;  %3327 = vmatpush1.bf16.msra.mxu1 %v10713_v54  ;;  %v10776_v52 = vcombine.high %v1005_v45, %v1009_v46  ;;  %v1013_v54 = vld [vmem:[%s13186_s10 + $0x940] sm:$0xff] }
 0x1c4   : > { %3164 = vmatprep.subr.bf16.mxu0 %v10720_v55  ;;  %3328 = vmatprep.subr.bf16.mxu1 %v10722_v60  ;;  %v1017_v55 = vld [vmem:[%s13186_s10 + $0x960] sm:$0xff]  ;;  %v10775_v60 = vcombine.low %v1005_v45, %v1009_v46  ;;  %v1062_v45 = vld [vmem:[%s13186_s10 + $0xac8] sm:$0xff]  ;;  %v10826_v46 = vcombine.high %v1054_v37, %v1058_v39  ;;  %v724_v39 = vld [vmem:[%s13186_s10 + $0x38] sm:$0xff] }
 0x1c5   : > { %v10833_v59 = vcombine.low %v1062_v45, %v1066_v47 }
 0x1c7   : > { %3165 = vmatpush1.bf16.msra.mxu0 %v10719_v62  ;;  %3329 = vmatpush1.bf16.msra.mxu1 %v10721_v63  ;;  %v10784_v62 = vcombine.high %v1013_v54, %v1017_v55  ;;  %v1021_v63 = vld [vmem:[%s13186_s10 + $0x980] sm:$0xff] }
 0x1c8   : > { %3166 = vmatprep.subr.bf16.mxu0 %v10728_v0  ;;  %3330 = vmatprep.subr.bf16.mxu1 %v10730_v4  ;;  %v1025_v0 = vld [vmem:[%s13186_s10 + $0x9a0] sm:$0xff]  ;;  %v10783_v4 = vcombine.low %v1013_v54, %v1017_v55  ;;  %v1070_v54 = vld [vmem:[%s13186_s10 + $0xb08] sm:$0xff]  ;;  %v10834_v55 = vcombine.high %v1062_v45, %v1066_v47  ;;  %v732_v47 = vld [vmem:[%s13186_s10 + $0x78] sm:$0xff] }
 0x1c9   : > { %v10841_v3 = vcombine.low %v1070_v54, %v1074_v56  ;;  %v11894_v45 = vld [vmem:[%s13178_s7 + $0x18] ss:$0 sps:$4 sm:$0xff]  }
 0x1cb   : > { %3167 = vmatpush1.bf16.msra.mxu0 %v10727_v6  ;;  %3331 = vmatpush1.bf16.msra.mxu1 %v10729_v7  ;;  %v10792_v6 = vcombine.high %v1021_v63, %v1025_v0  ;;  %v1029_v7 = vld [vmem:[%s13186_s10 + $0x9c0] sm:$0xff] }
 0x1cc   : > { %3168 = vmatprep.subr.bf16.mxu0 %v10736_v8  ;;  %3332 = vmatprep.subr.bf16.mxu1 %v10738_v13  ;;  %v1033_v8 = vld [vmem:[%s13186_s10 + $0x9e0] sm:$0xff]  ;;  %v10791_v13 = vcombine.low %v1021_v63, %v1025_v0  ;;  %v1078_v63 = vld [vmem:[%s13186_s10 + $0xb48] sm:$0xff]  ;;  %v10842_v0 = vcombine.high %v1070_v54, %v1074_v56  ;;  %v739_v54 = vld [vmem:[%s13186_s10 + $0xb0] sm:$0xff] }
 0x1cd   : > { %v10799_v22 = vcombine.low %v1029_v7, %v1033_v8  ;;  %v740_v56 = vld [vmem:[%s13186_s10 + $0xb8] sm:$0xff] }
 0x1cf   : > { %3169 = vmatpush1.bf16.msra.mxu0 %v10735_v16  ;;  %3333 = vmatpush1.bf16.msra.mxu1 %v10737_v18  ;;  %v10800_v16 = vcombine.high %v1029_v7, %v1033_v8  ;;  %v1041_v18 = vld [vmem:[%s13186_s10 + $0xa20] sm:$0xff]  ;;  %v1086_v7 = vld [vmem:[%s13186_s10 + $0xb88] sm:$0xff]  ;;  %v10850_v8 = vcombine.high %v1078_v63, %v1082_v1 }
 0x1d0   : > { %3179 = vmatprep.subr.bf16.mxu0 %v10744_v19  ;;  %3343 = vmatprep.subr.bf16.mxu1 %v10746_v23  ;;  %v1038_v19 = vld [vmem:[%s13186_s10 + $0xa08] sm:$0xff]  ;;  %v10801_v23 = vcombine.low %v1030_v9, %v1034_v11  ;;  %v10849_v11 = vcombine.low %v1078_v63, %v1082_v1  ;;  %v747_v63 = vld [vmem:[%s13186_s10 + $0xf0] sm:$0xff]  ;;  %v748_v1 = vld [vmem:[%s13186_s10 + $0xf8] sm:$0xff] }
 0x1d1   : > { %v10810_v30 = vcombine.high %v1038_v19, %v1042_v21  ;;  %v10809_v33 = vcombine.low %v1038_v19, %v1042_v21  ;;  %v1090_v9 = vld [vmem:[%s13186_s10 + $0xba8] sm:$0xff] }
 0x1d2   : > { %3171 = vmatmul.mubr.bf16.vlgmr.msra.gmra.mrb[0].mxu0 %v13392_v25  ;;  %3335 = vmatmul.mubr.bf16.vlgmr.msra.gmra.mrb[0].mxu1 %v13392_v25  ;;  %v1098_v19 = vld [vmem:[%s13186_s10 + $0xbe8] sm:$0xff]  ;;  %v10857_v21 = vcombine.low %v1086_v7, %v1090_v9 }
 0x1d3   : > { %3180 = vmatpush1.bf16.msra.mxu0 %v10743_v26  ;;  %3344 = vmatpush1.bf16.msra.mxu1 %v10745_v27  ;;  %v10808_v26 = vcombine.high %v1037_v17, %v1041_v18  ;;  %v1045_v27 = vld [vmem:[%s13186_s10 + $0xa40] sm:$0xff] }
 0x1d4   : > { %3181 = vmatprep.subr.bf16.mxu0 %v10752_v28  ;;  %3345 = vmatprep.subr.bf16.mxu1 %v10754_v32  ;;  %v1049_v28 = vld [vmem:[%s13186_s10 + $0xa60] sm:$0xff]  ;;  %v10807_v32 = vcombine.low %v1037_v17, %v1041_v18  ;;  %v1094_v17 = vld [vmem:[%s13186_s10 + $0xbc8] sm:$0xff]  ;;  %v10858_v18 = vcombine.high %v1086_v7, %v1090_v9  ;;  %v755_v7 = vld [vmem:[%s13186_s10 + $0x130] sm:$0xff] }
 0x1d5   : > { %3211 = vmatprep.mubr.bf16.mxu0 %v13400_v15  ;;  %3375 = vmatprep.mubr.bf16.mxu1 %v13400_v15  ;;  %v10865_v31 = vcombine.low %v1094_v17, %v1098_v19  ;;  %v756_v9 = vld [vmem:[%s13186_s10 + $0x138] sm:$0xff] }
 0x1d7   : > { %3182 = vmatpush1.bf16.msra.mxu0 %v10751_v34  ;;  %3346 = vmatpush1.bf16.msra.mxu1 %v10753_v35  ;;  %v10816_v34 = vcombine.high %v1045_v27, %v1049_v28  ;;  %v1053_v35 = vld [vmem:[%s13186_s10 + $0xa80] sm:$0xff] }
 0x1d8   : > { %3183 = vmatprep.subr.bf16.mxu0 %v10760_v36  ;;  %3347 = vmatprep.subr.bf16.mxu1 %v10762_v40  ;;  %v1057_v36 = vld [vmem:[%s13186_s10 + $0xaa0] sm:$0xff]  ;;  %v10815_v40 = vcombine.low %v1045_v27, %v1049_v28  ;;  %v1102_v27 = vld [vmem:[%s13186_s10 + $0xc08] sm:$0xff]  ;;  %v10866_v28 = vcombine.high %v1094_v17, %v1098_v19  ;;  %v760_v17 = vld [vmem:[%s13186_s10 + $0x158] sm:$0xff] }
 0x1db   : > { %3184 = vmatpush1.bf16.msra.mxu0 %v10759_v42  ;;  %3348 = vmatpush1.bf16.msra.mxu1 %v10761_v43  ;;  %v10824_v42 = vcombine.high %v1053_v35, %v1057_v36  ;;  %v1061_v43 = vld [vmem:[%s13186_s10 + $0xac0] sm:$0xff] }
 0x1dc   : > { %3185 = vmatprep.subr.bf16.mxu0 %v10768_v44  ;;  %3349 = vmatprep.subr.bf16.mxu1 %v10770_v48  ;;  %v1065_v44 = vld [vmem:[%s13186_s10 + $0xae0] sm:$0xff]  ;;  %v10823_v48 = vcombine.low %v1053_v35, %v1057_v36  ;;  %v719_v35 = vld [vmem:[%s13186_s10 + $0x10] sm:$0xff] }
 0x1dd   : > { %v723_v36 = vld [vmem:[%s13186_s10 + $0x30] sm:$0xff] }
 0x1df   : > { %3186 = vmatpush1.bf16.msra.mxu0 %v10767_v50  ;;  %3350 = vmatpush1.bf16.msra.mxu1 %v10769_v51  ;;  %v10832_v50 = vcombine.high %v1061_v43, %v1065_v44  ;;  %v1069_v51 = vld [vmem:[%s13186_s10 + $0xb00] sm:$0xff] }
 0x1e0   : > { %3187 = vmatprep.subr.bf16.mxu0 %v10776_v52  ;;  %3351 = vmatprep.subr.bf16.mxu1 %v10778_v58  ;;  %v1073_v52 = vld [vmem:[%s13186_s10 + $0xb20] sm:$0xff]  ;;  %v10831_v58 = vcombine.low %v1061_v43, %v1065_v44  ;;  %v727_v43 = vld [vmem:[%s13186_s10 + $0x50] sm:$0xff] }
 0x1e1   : > { %v731_v44 = vld [vmem:[%s13186_s10 + $0x70] sm:$0xff] }
 0x1e3   : > { %3188 = vmatpush1.bf16.msra.mxu0 %v10775_v60  ;;  %3352 = vmatpush1.bf16.msra.mxu1 %v10777_v61  ;;  %v10840_v60 = vcombine.high %v1069_v51, %v1073_v52  ;;  %v1077_v61 = vld [vmem:[%s13186_s10 + $0xb40] sm:$0xff] }
 0x1e4   : > { %3189 = vmatprep.subr.bf16.mxu0 %v10784_v62  ;;  %3353 = vmatprep.subr.bf16.mxu1 %v10786_v2  ;;  %v1081_v62 = vld [vmem:[%s13186_s10 + $0xb60] sm:$0xff]  ;;  %v10839_v2 = vcombine.low %v1069_v51, %v1073_v52  ;;  %v735_v52 = vld [vmem:[%s13186_s10 + $0x90] sm:$0xff] }
 0x1e7   : > { %3190 = vmatpush1.bf16.msra.mxu0 %v10783_v4  ;;  %3354 = vmatpush1.bf16.msra.mxu1 %v10785_v5  ;;  %v10848_v4 = vcombine.high %v1077_v61, %v1081_v62  ;;  %v1085_v5 = vld [vmem:[%s13186_s10 + $0xb80] sm:$0xff] }
 0x1e8   : > { %3191 = vmatprep.subr.bf16.mxu0 %v10792_v6  ;;  %3355 = vmatprep.subr.bf16.mxu1 %v10794_v10  ;;  %v1089_v6 = vld [vmem:[%s13186_s10 + $0xba0] sm:$0xff]  ;;  %v10847_v10 = vcombine.low %v1077_v61, %v1081_v62  ;;  %v743_v62 = vld [vmem:[%s13186_s10 + $0xd0] sm:$0xff] }
 0x1eb   : > { %3192 = vmatpush1.bf16.msra.mxu0 %v10791_v13  ;;  %3356 = vmatpush1.bf16.msra.mxu1 %v10793_v14  ;;  %v10856_v13 = vcombine.high %v1085_v5, %v1089_v6  ;;  %v1093_v14 = vld [vmem:[%s13186_s10 + $0xbc0] sm:$0xff] }
 0x1ec   : > { %3193 = vmatprep.subr.bf16.mxu0 %v10800_v16  ;;  %3357 = vmatprep.subr.bf16.mxu1 %v10802_v20  ;;  %v1097_v16 = vld [vmem:[%s13186_s10 + $0xbe0] sm:$0xff]  ;;  %v10855_v20 = vcombine.low %v1085_v5, %v1089_v6  ;;  %v751_v6 = vld [vmem:[%s13186_s10 + $0x110] sm:$0xff] }
 0x1ed   : > { %v10523_v19 = vcombine.low %v751_v6, %v755_v7 }
 0x1ef   : > { %3194 = vmatpush1.bf16.msra.mxu0 %v10799_v22  ;;  %3358 = vmatpush1.bf16.msra.mxu1 %v10801_v23  ;;  %v10864_v22 = vcombine.high %v1093_v14, %v1097_v16  ;;  %v1101_v23 = vld [vmem:[%s13186_s10 + $0xc00] sm:$0xff] }
 0x1f0   : > { %3195 = vmatprep.subr.bf16.mxu0 %v10808_v26  ;;  %3359 = vmatprep.subr.bf16.mxu1 %v10810_v30  ;;  %v1105_v26 = vld [vmem:[%s13186_s10 + $0xc20] sm:$0xff]  ;;  %v10863_v30 = vcombine.low %v1093_v14, %v1097_v16  ;;  %v759_v14 = vld [vmem:[%s13186_s10 + $0x150] sm:$0xff] }
 0x1f1   : > { %v10871_v37 = vcombine.low %v1101_v23, %v1105_v26  ;;  %v763_v16 = vld [vmem:[%s13186_s10 + $0x170] sm:$0xff] }
 0x1f3   : > { %3196 = vmatpush1.bf16.msra.mxu0 %v10807_v32  ;;  %3360 = vmatpush1.bf16.msra.mxu1 %v10809_v33  ;;  %v10872_v32 = vcombine.high %v1101_v23, %v1105_v26  ;;  %v10874_v33 = vcombine.high %v1102_v27, %v1106_v29  ;;  %v767_v23 = vld [vmem:[%s13186_s10 + $0x190] sm:$0xff] }
 0x1f4   : > { %3197 = vmatprep.subr.bf16.mxu0 %v10816_v34  ;;  %3361 = vmatprep.subr.bf16.mxu1 %v10818_v38  ;;  %v13464_v34 = vcombine.low %v13388_v24, %v13388_v24  ;;  %v720_v38 = vld [vmem:[%s13186_s10 + $0x18] sm:$0xff]  ;;  %v771_v26 = vld [vmem:[%s13186_s10 + $0x1b0] sm:$0xff] }
 0x1f5   : > { %v10494_v24 = vcombine.high %v720_v38, %v724_v39 }
 0x1f7   : > { %3198 = vmatpush1.bf16.msra.mxu0 %v10815_v40  ;;  %3362 = vmatpush1.bf16.msra.mxu1 %v10817_v41  ;;  %v10873_v40 = vcombine.low %v1102_v27, %v1106_v29  ;;  %v10492_v41 = vcombine.high %v719_v35, %v723_v36  ;;  %v768_v27 = vld [vmem:[%s13186_s10 + $0x198] sm:$0xff]  ;;  %v10531_v29 = vcombine.low %v759_v14, %v763_v16 }
 0x1f8   : > { %3199 = vmatprep.subr.bf16.mxu0 %v10824_v42  ;;  %3363 = vmatprep.subr.bf16.mxu1 %v10826_v46  ;;  %v12724_v42 = vmov 0   ;;  %v728_v46 = vld [vmem:[%s13186_s10 + $0x58] sm:$0xff] }
 0x1f9   : > { %v10502_v51 = vcombine.high %v728_v46, %v732_v47 }
 0x1fb   : > { %3200 = vmatpush1.bf16.msra.mxu0 %v10823_v48  ;;  %3364 = vmatpush1.bf16.msra.mxu1 %v10825_v49  ;;  %v10491_v48 = vcombine.low %v719_v35, %v723_v36  ;;  %v10493_v49 = vcombine.low %v720_v38, %v724_v39  ;;  %v779_v35 = vld [vmem:[%s13186_s10 + $0x1f0] sm:$0xff]  ;;  %v776_v36 = vld [vmem:[%s13186_s10 + $0x1d8] sm:$0xff]  ;;  %v10539_v38 = vcombine.low %v767_v23, %v771_v26 }
 0x1fc   : > { %3201 = vmatprep.subr.bf16.mxu0 %v10832_v50  ;;  %3365 = vmatprep.subr.bf16.mxu1 %v10834_v55  ;;  %v10500_v50 = vcombine.high %v727_v43, %v731_v44  ;;  %v736_v55 = vld [vmem:[%s13186_s10 + $0x98] sm:$0xff] }
 0x1fd   : > { %v10510_v61 = vcombine.high %v736_v55, %v740_v56 }
 0x1ff   : > { %3202 = vmatpush1.bf16.msra.mxu0 %v10831_v58  ;;  %3366 = vmatpush1.bf16.msra.mxu1 %v10833_v59  ;;  %v10499_v58 = vcombine.low %v727_v43, %v731_v44  ;;  %v10501_v59 = vcombine.low %v728_v46, %v732_v47  ;;  %v787_v43 = vld [vmem:[%s13186_s10 + $0x230] sm:$0xff]  ;;  %v784_v44 = vld [vmem:[%s13186_s10 + $0x218] sm:$0xff] }
 0x200   : > { %3203 = vmatprep.subr.bf16.mxu0 %v10840_v60  ;;  %3367 = vmatprep.subr.bf16.mxu1 %v10842_v0  ;;  %v10508_v60 = vcombine.high %v735_v52, %v739_v54  ;;  %v744_v0 = vld [vmem:[%s13186_s10 + $0xd8] sm:$0xff] }
 0x201   : > { %v10518_v5 = vcombine.high %v744_v0, %v748_v1 }
 0x203   : > { %3204 = vmatpush1.bf16.msra.mxu0 %v10839_v2  ;;  %3368 = vmatpush1.bf16.msra.mxu1 %v10841_v3  ;;  %v10507_v2 = vcombine.low %v735_v52, %v739_v54  ;;  %v10509_v3 = vcombine.low %v736_v55, %v740_v56  ;;  %v792_v52 = vld [vmem:[%s13186_s10 + $0x258] sm:$0xff] }
 0x204   : > { %3205 = vmatprep.subr.bf16.mxu0 %v10848_v4  ;;  %3369 = vmatprep.subr.bf16.mxu1 %v10850_v8  ;;  %v10516_v4 = vcombine.high %v743_v62, %v747_v63  ;;  %v752_v8 = vld [vmem:[%s13186_s10 + $0x118] sm:$0xff] }
 0x205   : > { %v796_v54 = vld [vmem:[%s13186_s10 + $0x278] sm:$0xff] }
 0x207   : > { %3206 = vmatpush1.bf16.msra.mxu0 %v10847_v10  ;;  %3370 = vmatpush1.bf16.msra.mxu1 %v10849_v11  ;;  %v10515_v10 = vcombine.low %v743_v62, %v747_v63  ;;  %v10524_v11 = vcombine.high %v751_v6, %v755_v7  ;;  %v800_v62 = vld [vmem:[%s13186_s10 + $0x298] sm:$0xff] }
 0x208   : > { %3207 = vmatprep.subr.bf16.mxu0 %v10856_v13  ;;  %3371 = vmatprep.subr.bf16.mxu1 %v10858_v18  ;;  %v10526_v13 = vcombine.high %v752_v8, %v756_v9  ;;  %v764_v18 = vld [vmem:[%s13186_s10 + $0x178] sm:$0xff] }
 0x209   : > { %v804_v63 = vld [vmem:[%s13186_s10 + $0x2b8] sm:$0xff] }
 0x20a   : > { %v808_v6 = vld [vmem:[%s13186_s10 + $0x2d8] sm:$0xff] }
 0x20b   : > { %3208 = vmatpush1.bf16.msra.mxu0 %v10855_v20  ;;  %3372 = vmatpush1.bf16.msra.mxu1 %v10857_v21  ;;  %v10525_v20 = vcombine.low %v752_v8, %v756_v9  ;;  %v10532_v21 = vcombine.high %v759_v14, %v763_v16  ;;  %v812_v7 = vld [vmem:[%s13186_s10 + $0x2f8] sm:$0xff]  ;;  %v10573_v9 = vcombine.low %v800_v62, %v804_v63 }
 0x20c   : > { %3209 = vmatprep.subr.bf16.mxu0 %v10864_v22  ;;  %3373 = vmatprep.subr.bf16.mxu1 %v10866_v28  ;;  %v10534_v22 = vcombine.high %v760_v17, %v764_v18  ;;  %v772_v28 = vld [vmem:[%s13186_s10 + $0x1b8] sm:$0xff] }
 0x20d   : > { %v10541_v39 = vcombine.low %v768_v27, %v772_v28  ;;  %v816_v14 = vld [vmem:[%s13186_s10 + $0x318] sm:$0xff] }
 0x20e   : > { %v820_v16 = vld [vmem:[%s13186_s10 + $0x338] sm:$0xff] }
 0x20f   : > { %3210 = vmatpush1.bf16.msra.mxu0 %v10863_v30  ;;  %3374 = vmatpush1.bf16.msra.mxu1 %v10865_v31  ;;  %v10533_v30 = vcombine.low %v760_v17, %v764_v18  ;;  %v10540_v31 = vcombine.high %v767_v23, %v771_v26  ;;  %v10581_v18 = vcombine.low %v808_v6, %v812_v7  ;;  %v824_v23 = vld [vmem:[%s13186_s10 + $0x358] sm:$0xff] }
 0x210   : > { %3220 = vmatprep.subr.bf16.mxu0 %v10872_v32  ;;  %3384 = vmatprep.subr.bf16.mxu1 %v10874_v33  ;;  %v10542_v32 = vcombine.high %v768_v27, %v772_v28  ;;  %v775_v33 = vld [vmem:[%s13186_s10 + $0x1d0] sm:$0xff]  ;;  %v828_v26 = vld [vmem:[%s13186_s10 + $0x378] sm:$0xff]  ;;  %v10589_v28 = vcombine.low %v816_v14, %v820_v16 }
 0x211   : > { %v10547_v46 = vcombine.low %v775_v33, %v779_v35 }
 0x212   : > { %3212 = vmatmul.mubr.bf16.vlgmr.msra.gmra.mrb[0].mxu0 %v13464_v34  ;;  %3376 = vmatmul.mubr.bf16.vlgmr.msra.gmra.mrb[0].mxu1 %v13464_v34 }
 0x213   : > { %3221 = vmatpush1.bf16.msra.mxu0 %v10871_v37  ;;  %3385 = vmatpush1.bf16.msra.mxu1 %v10873_v40  ;;  %v780_v37 = vld [vmem:[%s13186_s10 + $0x1f8] sm:$0xff]  ;;  %v10548_v40 = vcombine.high %v775_v33, %v779_v35 }
 0x214   : > { %3252 = vmatprep.mubr.bf16.mxu0 %v12724_v42  ;;  %3416 = vmatprep.mubr.bf16.mxu1 %v12724_v42  ;;  %v10549_v47 = vcombine.low %v776_v36, %v780_v37  ;;  %v832_v33 = vld [vmem:[%s13186_s10 + $0x398] sm:$0xff] }
 0x215   : > { %3425 = vmatprep.subr.bf16.mxu0 %v10492_v41  ;;  %3589 = vmatprep.subr.bf16.mxu1 %v10494_v24  ;;  %v10550_v41 = vcombine.high %v776_v36, %v780_v37  ;;  %v783_v24 = vld [vmem:[%s13186_s10 + $0x210] sm:$0xff]  ;;  %v836_v35 = vld [vmem:[%s13186_s10 + $0x3b8] sm:$0xff]  ;;  %v10597_v37 = vcombine.low %v824_v23, %v828_v26 }
 0x216   : > { %v10555_v55 = vcombine.low %v783_v24, %v787_v43 }
 0x21e   : > { %10879 = vmatmul.mubr.msk.bf16.vlgmr.msra.gmra.mrb[0].mxu0 %vm3093_vm0, %v11894_v45  ;;  %10880 = vmatmul.mubr.msk.bf16.vlgmr.msra.gmra.mrb[0].mxu1 %vm3093_vm0, %v11894_v45  ;;  %v788_v45 = vld [vmem:[%s13186_s10 + $0x238] sm:$0xff] }
 0x21f   : > { %3426 = vmatpush1.bf16.msra.mxu0 %v10491_v48  ;;  %3590 = vmatpush1.bf16.msra.mxu1 %v10493_v49  ;;  %v10556_v48 = vcombine.high %v783_v24, %v787_v43  ;;  %v10558_v49 = vcombine.high %v784_v44, %v788_v45  ;;  %v10557_v56 = vcombine.low %v784_v44, %v788_v45  ;;  %v840_v24 = vld [vmem:[%s13186_s10 + $0x3d8] sm:$0xff] }
 0x220   : > { %3427 = vmatprep.subr.bf16.mxu0 %v10500_v50  ;;  %3591 = vmatprep.subr.bf16.mxu1 %v10502_v51  ;;  %v791_v50 = vld [vmem:[%s13186_s10 + $0x250] sm:$0xff]  ;;  %v844_v43 = vld [vmem:[%s13186_s10 + $0x3f8] sm:$0xff]  ;;  %v10605_v45 = vcombine.low %v832_v33, %v836_v35 }
 0x221   : > { %3457 = vmatprep.mubr.bf16.mxu0 %v13262_v57  ;;  %3621 = vmatprep.mubr.bf16.mxu1 %v13262_v57  ;;  %v10517_v57 = vcombine.low %v744_v0, %v748_v1  ;;  %v795_v51 = vld [vmem:[%s13186_s10 + $0x270] sm:$0xff]  ;;  %v10565_v1 = vcombine.low %v792_v52, %v796_v54 }
 0x222   : > { %v10563_v0 = vcombine.low %v791_v50, %v795_v51 }
 0x223   : > { %3428 = vmatpush1.bf16.msra.mxu0 %v10499_v58  ;;  %3592 = vmatpush1.bf16.msra.mxu1 %v10501_v59  ;;  %v10564_v58 = vcombine.high %v791_v50, %v795_v51  ;;  %v10566_v59 = vcombine.high %v792_v52, %v796_v54  ;;  %v848_v50 = vld [vmem:[%s13186_s10 + $0x418] sm:$0xff]  ;;  %v10613_v54 = vcombine.low %v840_v24, %v844_v43 }
 0x224   : > { %3429 = vmatprep.subr.bf16.mxu0 %v10508_v60  ;;  %3593 = vmatprep.subr.bf16.mxu1 %v10510_v61  ;;  %v799_v60 = vld [vmem:[%s13186_s10 + $0x290] sm:$0xff]  ;;  %v852_v51 = vld [vmem:[%s13186_s10 + $0x438] sm:$0xff] }
 0x225   : > { %v803_v61 = vld [vmem:[%s13186_s10 + $0x2b0] sm:$0xff] }
 0x226   : > { %v10571_v8 = vcombine.low %v799_v60, %v803_v61 }
 0x227   : > { %3430 = vmatpush1.bf16.msra.mxu0 %v10507_v2  ;;  %3594 = vmatpush1.bf16.msra.mxu1 %v10509_v3  ;;  %v10572_v2 = vcombine.high %v799_v60, %v803_v61  ;;  %v10574_v3 = vcombine.high %v800_v62, %v804_v63  ;;  %v856_v60 = vld [vmem:[%s13186_s10 + $0x458] sm:$0xff]  ;;  %v10621_v63 = vcombine.low %v848_v50, %v852_v51 }
 0x228   : > { %3431 = vmatprep.subr.bf16.mxu0 %v10516_v4  ;;  %3595 = vmatprep.subr.bf16.mxu1 %v10518_v5  ;;  %v807_v4 = vld [vmem:[%s13186_s10 + $0x2d0] sm:$0xff]  ;;  %v860_v61 = vld [vmem:[%s13186_s10 + $0x478] sm:$0xff] }
 0x229   : > { %v811_v5 = vld [vmem:[%s13186_s10 + $0x2f0] sm:$0xff] }
 0x22a   : > { %v10579_v17 = vcombine.low %v807_v4, %v811_v5 }
 0x22b   : > { %3432 = vmatpush1.bf16.msra.mxu0 %v10515_v10  ;;  %3596 = vmatpush1.bf16.msra.mxu1 %v10517_v57  ;;  %v10580_v10 = vcombine.high %v807_v4, %v811_v5  ;;  %v10582_v57 = vcombine.high %v808_v6, %v812_v7  ;;  %v864_v4 = vld [vmem:[%s13186_s10 + $0x498] sm:$0xff]  ;;  %v10629_v7 = vcombine.low %v856_v60, %v860_v61 }
 0x22c   : > { %3433 = vmatprep.subr.bf16.mxu0 %v10524_v11  ;;  %3597 = vmatprep.subr.bf16.mxu1 %v10526_v13  ;;  %v815_v11 = vld [vmem:[%s13186_s10 + $0x310] sm:$0xff]  ;;  %v868_v5 = vld [vmem:[%s13186_s10 + $0x4b8] sm:$0xff] }
 0x22d   : > { %v819_v13 = vld [vmem:[%s13186_s10 + $0x330] sm:$0xff] }
 0x22e   : > { %v10587_v27 = vcombine.low %v815_v11, %v819_v13 }
 0x22f   : > { %3434 = vmatpush1.bf16.msra.mxu0 %v10523_v19  ;;  %3598 = vmatpush1.bf16.msra.mxu1 %v10525_v20  ;;  %v10588_v19 = vcombine.high %v815_v11, %v819_v13  ;;  %v10590_v20 = vcombine.high %v816_v14, %v820_v16  ;;  %v872_v11 = vld [vmem:[%s13186_s10 + $0x4d8] sm:$0xff]  ;;  %v10637_v14 = vcombine.low %v864_v4, %v868_v5 }
 0x230   : > { %3435 = vmatprep.subr.bf16.mxu0 %v10532_v21  ;;  %3599 = vmatprep.subr.bf16.mxu1 %v10534_v22  ;;  %v823_v21 = vld [vmem:[%s13186_s10 + $0x350] sm:$0xff]  ;;  %v876_v13 = vld [vmem:[%s13186_s10 + $0x4f8] sm:$0xff] }
 0x231   : > { %v827_v22 = vld [vmem:[%s13186_s10 + $0x370] sm:$0xff] }
 0x232   : > { %v10595_v36 = vcombine.low %v823_v21, %v827_v22 }
 0x233   : > { %3436 = vmatpush1.bf16.msra.mxu0 %v10531_v29  ;;  %3600 = vmatpush1.bf16.msra.mxu1 %v10533_v30  ;;  %v10596_v29 = vcombine.high %v823_v21, %v827_v22  ;;  %v10598_v30 = vcombine.high %v824_v23, %v828_v26  ;;  %v884_v21 = vld [vmem:[%s13186_s10 + $0x538] sm:$0xff] }
 0x234   : > { %3437 = vmatprep.subr.bf16.mxu0 %v10540_v31  ;;  %3601 = vmatprep.subr.bf16.mxu1 %v10542_v32  ;;  %v831_v31 = vld [vmem:[%s13186_s10 + $0x390] sm:$0xff] }
 0x235   : > { %v835_v32 = vld [vmem:[%s13186_s10 + $0x3b0] sm:$0xff] }
 0x236   : > { %v10603_v44 = vcombine.low %v831_v31, %v835_v32 }
 0x237   : > { %3438 = vmatpush1.bf16.msra.mxu0 %v10539_v38  ;;  %3602 = vmatpush1.bf16.msra.mxu1 %v10541_v39  ;;  %v10604_v38 = vcombine.high %v831_v31, %v835_v32  ;;  %v10606_v39 = vcombine.high %v832_v33, %v836_v35 }
 0x238   : > { %3439 = vmatprep.subr.bf16.mxu0 %v10548_v40  ;;  %3603 = vmatprep.subr.bf16.mxu1 %v10550_v41  ;;  %v839_v40 = vld [vmem:[%s13186_s10 + $0x3d0] sm:$0xff] }
 0x239   : > { %v843_v41 = vld [vmem:[%s13186_s10 + $0x3f0] sm:$0xff] }
 0x23a   : > { %v10611_v52 = vcombine.low %v839_v40, %v843_v41 }
 0x23b   : > { %3440 = vmatpush1.bf16.msra.mxu0 %v10547_v46  ;;  %3604 = vmatpush1.bf16.msra.mxu1 %v10549_v47  ;;  %v10612_v46 = vcombine.high %v839_v40, %v843_v41  ;;  %v10614_v47 = vcombine.high %v840_v24, %v844_v43 }
 0x23c   : > { %3441 = vmatprep.subr.bf16.mxu0 %v10556_v48  ;;  %3605 = vmatprep.subr.bf16.mxu1 %v10558_v49  ;;  %v847_v48 = vld [vmem:[%s13186_s10 + $0x410] sm:$0xff] }
 0x23d   : > { %v851_v49 = vld [vmem:[%s13186_s10 + $0x430] sm:$0xff] }
 0x23e   : > { %v10619_v62 = vcombine.low %v847_v48, %v851_v49 }
 0x23f   : > { %3442 = vmatpush1.bf16.msra.mxu0 %v10555_v55  ;;  %3606 = vmatpush1.bf16.msra.mxu1 %v10557_v56  ;;  %v10620_v55 = vcombine.high %v847_v48, %v851_v49  ;;  %v10622_v56 = vcombine.high %v848_v50, %v852_v51 }
 0x240   : > { %3443 = vmatprep.subr.bf16.mxu0 %v10564_v58  ;;  %3607 = vmatprep.subr.bf16.mxu1 %v10566_v59  ;;  %v855_v58 = vld [vmem:[%s13186_s10 + $0x450] sm:$0xff] }
 0x241   : > { %v859_v59 = vld [vmem:[%s13186_s10 + $0x470] sm:$0xff] }
 0x242   : > { %v10627_v6 = vcombine.low %v855_v58, %v859_v59 }
 0x243   : > { %3444 = vmatpush1.bf16.msra.mxu0 %v10563_v0  ;;  %3608 = vmatpush1.bf16.msra.mxu1 %v10565_v1  ;;  %v10628_v0 = vcombine.high %v855_v58, %v859_v59  ;;  %v10630_v1 = vcombine.high %v856_v60, %v860_v61 }
 0x244   : > { %3445 = vmatprep.subr.bf16.mxu0 %v10572_v2  ;;  %3609 = vmatprep.subr.bf16.mxu1 %v10574_v3  ;;  %v863_v2 = vld [vmem:[%s13186_s10 + $0x490] sm:$0xff] }
 0x245   : > { %v867_v3 = vld [vmem:[%s13186_s10 + $0x4b0] sm:$0xff] }
 0x247   : > { %3446 = vmatpush1.bf16.msra.mxu0 %v10571_v8  ;;  %3610 = vmatpush1.bf16.msra.mxu1 %v10573_v9  ;;  %v10636_v8 = vcombine.high %v863_v2, %v867_v3  ;;  %v10638_v9 = vcombine.high %v864_v4, %v868_v5 }
 0x248   : > { %3447 = vmatprep.subr.bf16.mxu0 %v10580_v10  ;;  %3611 = vmatprep.subr.bf16.mxu1 %v10582_v57  ;;  %v871_v10 = vld [vmem:[%s13186_s10 + $0x4d0] sm:$0xff] }
 0x249   : > { %v875_v57 = vld [vmem:[%s13186_s10 + $0x4f0] sm:$0xff] }
 0x24a   : > { %v10644_v16 = vcombine.high %v871_v10, %v875_v57  ;;  %v10643_v22 = vcombine.low %v871_v10, %v875_v57 }
 0x24b   : > { %3448 = vmatpush1.bf16.msra.mxu0 %v10579_v17  ;;  %3612 = vmatpush1.bf16.msra.mxu1 %v10581_v18  ;;  %v10646_v17 = vcombine.high %v872_v11, %v876_v13  ;;  %v879_v18 = vld [vmem:[%s13186_s10 + $0x510] sm:$0xff] }
 0x24c   : > { %3449 = vmatprep.subr.bf16.mxu0 %v10588_v19  ;;  %3613 = vmatprep.subr.bf16.mxu1 %v10590_v20  ;;  %v883_v19 = vld [vmem:[%s13186_s10 + $0x530] sm:$0xff]  ;;  %v880_v20 = vld [vmem:[%s13186_s10 + $0x518] sm:$0xff] }
 0x24d   : > { %v10652_v23 = vcombine.high %v879_v18, %v883_v19  ;;  %v10654_v26 = vcombine.high %v880_v20, %v884_v21  ;;  %v10651_v31 = vcombine.low %v879_v18, %v883_v19  ;;  %v10653_v32 = vcombine.low %v880_v20, %v884_v21 }
 0x24f   : > { %3450 = vmatpush1.bf16.msra.mxu0 %v10587_v27  ;;  %3614 = vmatpush1.bf16.msra.mxu1 %v10589_v28  ;;  %v887_v27 = vld [vmem:[%s13186_s10 + $0x550] sm:$0xff] }
 0x250   : > { %3451 = vmatprep.subr.bf16.mxu0 %v10596_v29  ;;  %3615 = vmatprep.subr.bf16.mxu1 %v10598_v30  ;;  %v891_v28 = vld [vmem:[%s13186_s10 + $0x570] sm:$0xff]  ;;  %v888_v29 = vld [vmem:[%s13186_s10 + $0x558] sm:$0xff] }
 0x251   : > { %v892_v30 = vld [vmem:[%s13186_s10 + $0x578] sm:$0xff]  ;;  %v10660_v33 = vcombine.high %v887_v27, %v891_v28  ;;  %v10659_v40 = vcombine.low %v887_v27, %v891_v28 }
 0x252   : > { %v10662_v35 = vcombine.high %v888_v29, %v892_v30  ;;  %v10661_v41 = vcombine.low %v888_v29, %v892_v30 }
 0x253   : > { %3452 = vmatpush1.bf16.msra.mxu0 %v10595_v36  ;;  %3616 = vmatpush1.bf16.msra.mxu1 %v10597_v37  ;;  %v895_v36 = vld [vmem:[%s13186_s10 + $0x590] sm:$0xff] }
 0x254   : > { %3453 = vmatprep.subr.bf16.mxu0 %v10604_v38  ;;  %3617 = vmatprep.subr.bf16.mxu1 %v10606_v39  ;;  %v899_v37 = vld [vmem:[%s13186_s10 + $0x5b0] sm:$0xff]  ;;  %v896_v38 = vld [vmem:[%s13186_s10 + $0x598] sm:$0xff] }
 0x255   : > { %v900_v39 = vld [vmem:[%s13186_s10 + $0x5b8] sm:$0xff]  ;;  %v10668_v24 = vcombine.high %v895_v36, %v899_v37  ;;  %v10667_v48 = vcombine.low %v895_v36, %v899_v37 }
 0x256   : > { %v10670_v43 = vcombine.high %v896_v38, %v900_v39  ;;  %v10669_v49 = vcombine.low %v896_v38, %v900_v39 }
 0x257   : > { %3454 = vmatpush1.bf16.msra.mxu0 %v10603_v44  ;;  %3618 = vmatpush1.bf16.msra.mxu1 %v10605_v45  ;;  %v903_v44 = vld [vmem:[%s13186_s10 + $0x5d0] sm:$0xff] }
 0x258   : > { %3455 = vmatprep.subr.bf16.mxu0 %v10612_v46  ;;  %3619 = vmatprep.subr.bf16.mxu1 %v10614_v47  ;;  %v907_v45 = vld [vmem:[%s13186_s10 + $0x5f0] sm:$0xff]  ;;  %v904_v46 = vld [vmem:[%s13186_s10 + $0x5d8] sm:$0xff] }
 0x259   : > { %v908_v47 = vld [vmem:[%s13186_s10 + $0x5f8] sm:$0xff]  ;;  %v10676_v50 = vcombine.high %v903_v44, %v907_v45  ;;  %v10675_v58 = vcombine.low %v903_v44, %v907_v45 }
 0x25a   : > { %v10678_v51 = vcombine.high %v904_v46, %v908_v47  ;;  %v10677_v59 = vcombine.low %v904_v46, %v908_v47 }
 0x25b   : > { %3456 = vmatpush1.bf16.msra.mxu0 %v10611_v52  ;;  %3620 = vmatpush1.bf16.msra.mxu1 %v10613_v54  ;;  %v911_v52 = vld [vmem:[%s13186_s10 + $0x610] sm:$0xff] }
 0x25c   : > { %3466 = vmatprep.subr.bf16.mxu0 %v10620_v55  ;;  %3630 = vmatprep.subr.bf16.mxu1 %v10622_v56  ;;  %v915_v54 = vld [vmem:[%s13186_s10 + $0x630] sm:$0xff]  ;;  %v912_v55 = vld [vmem:[%s13186_s10 + $0x618] sm:$0xff] }
 0x25d   : > { %v916_v56 = vld [vmem:[%s13186_s10 + $0x638] sm:$0xff]  ;;  %v10684_v60 = vcombine.high %v911_v52, %v915_v54 }
 0x25e   : > { %3458 = vmatmul.mubr.bf16.vlgmr.msra.gmra.mrb[4].mxu0 %v13308_v12  ;;  %3622 = vmatmul.mubr.bf16.vlgmr.msra.gmra.mrb[4].mxu1 %v13308_v12  ;;  %v10635_v12 = vcombine.low %v863_v2, %v867_v3  ;;  %v10686_v61 = vcombine.high %v912_v55, %v916_v56  ;;  %v10683_v2 = vcombine.low %v911_v52, %v915_v54 }
 0x25f   : > { %3467 = vmatpush1.bf16.msra.mxu0 %v10619_v62  ;;  %3631 = vmatpush1.bf16.msra.mxu1 %v10621_v63  ;;  %v919_v62 = vld [vmem:[%s13186_s10 + $0x650] sm:$0xff]  ;;  %v10685_v3 = vcombine.low %v912_v55, %v916_v56 }
 0x260   : > { %3468 = vmatprep.subr.bf16.mxu0 %v10628_v0  ;;  %3632 = vmatprep.subr.bf16.mxu1 %v10630_v1  ;;  %v923_v63 = vld [vmem:[%s13186_s10 + $0x670] sm:$0xff]  ;;  %v920_v0 = vld [vmem:[%s13186_s10 + $0x658] sm:$0xff] }
 0x261   : > { %3498 = vmatprep.mubr.bf16.mxu0 %v13319_v53  ;;  %3662 = vmatprep.mubr.bf16.mxu1 %v13319_v53  ;;  %v10645_v53 = vcombine.low %v872_v11, %v876_v13  ;;  %v924_v1 = vld [vmem:[%s13186_s10 + $0x678] sm:$0xff]  ;;  %v10692_v4 = vcombine.high %v919_v62, %v923_v63  ;;  %v10691_v10 = vcombine.low %v919_v62, %v923_v63 }
 0x262   : > { %v10694_v5 = vcombine.high %v920_v0, %v924_v1  ;;  %v10693_v57 = vcombine.low %v920_v0, %v924_v1 }
 0x263   : > { %3469 = vmatpush1.bf16.msra.mxu0 %v10627_v6  ;;  %3633 = vmatpush1.bf16.msra.mxu1 %v10629_v7  ;;  %v927_v6 = vld [vmem:[%s13186_s10 + $0x690] sm:$0xff] }
 0x264   : > { %3470 = vmatprep.subr.bf16.mxu0 %v10636_v8  ;;  %3634 = vmatprep.subr.bf16.mxu1 %v10638_v9  ;;  %v931_v7 = vld [vmem:[%s13186_s10 + $0x6b0] sm:$0xff]  ;;  %v928_v8 = vld [vmem:[%s13186_s10 + $0x698] sm:$0xff] }
 0x265   : > { %v932_v9 = vld [vmem:[%s13186_s10 + $0x6b8] sm:$0xff]  ;;  %v10700_v11 = vcombine.high %v927_v6, %v931_v7  ;;  %v10699_v18 = vcombine.low %v927_v6, %v931_v7 }
 0x266   : > { %v10702_v13 = vcombine.high %v928_v8, %v932_v9  ;;  %v10701_v19 = vcombine.low %v928_v8, %v932_v9 }
 0x267   : > { %3471 = vmatpush1.bf16.msra.mxu0 %v10635_v12  ;;  %3635 = vmatpush1.bf16.msra.mxu1 %v10637_v14  ;;  %v935_v12 = vld [vmem:[%s13186_s10 + $0x6d0] sm:$0xff] }
 0x268   : > { %3472 = vmatprep.subr.bf16.mxu0 %v10644_v16  ;;  %3636 = vmatprep.subr.bf16.mxu1 %v10646_v17  ;;  %v939_v14 = vld [vmem:[%s13186_s10 + $0x6f0] sm:$0xff]  ;;  %v936_v16 = vld [vmem:[%s13186_s10 + $0x6d8] sm:$0xff] }
 0x269   : > { %v940_v17 = vld [vmem:[%s13186_s10 + $0x6f8] sm:$0xff]  ;;  %v10708_v20 = vcombine.high %v935_v12, %v939_v14  ;;  %v10707_v27 = vcombine.low %v935_v12, %v939_v14 }
 0x26a   : > { %v10710_v21 = vcombine.high %v936_v16, %v940_v17  ;;  %v10709_v28 = vcombine.low %v936_v16, %v940_v17 }
 0x26b   : > { %3473 = vmatpush1.bf16.msra.mxu0 %v10643_v22  ;;  %3637 = vmatpush1.bf16.msra.mxu1 %v10645_v53  ;;  %v943_v22 = vld [vmem:[%s13186_s10 + $0x710] sm:$0xff] }
 0x26c   : > { %3474 = vmatprep.subr.bf16.mxu0 %v10652_v23  ;;  %3638 = vmatprep.subr.bf16.mxu1 %v10654_v26  ;;  %v947_v53 = vld [vmem:[%s13186_s10 + $0x730] sm:$0xff]  ;;  %v944_v23 = vld [vmem:[%s13186_s10 + $0x718] sm:$0xff] }
 0x26d   : > { %v948_v26 = vld [vmem:[%s13186_s10 + $0x738] sm:$0xff]  ;;  %v10716_v29 = vcombine.high %v943_v22, %v947_v53  ;;  %v10715_v36 = vcombine.low %v943_v22, %v947_v53 }
 0x26e   : > { %v10718_v30 = vcombine.high %v944_v23, %v948_v26  ;;  %v10717_v37 = vcombine.low %v944_v23, %v948_v26  ;;  %v1007_v26 = vld [vmem:[%s13186_s10 + $0x910] sm:$0xff] }
 0x26f   : > { %3475 = vmatpush1.bf16.msra.mxu0 %v10651_v31  ;;  %3639 = vmatpush1.bf16.msra.mxu1 %v10653_v32  ;;  %v951_v31 = vld [vmem:[%s13186_s10 + $0x750] sm:$0xff] }
 0x270   : > { %3476 = vmatprep.subr.bf16.mxu0 %v10660_v33  ;;  %3640 = vmatprep.subr.bf16.mxu1 %v10662_v35  ;;  %v955_v32 = vld [vmem:[%s13186_s10 + $0x770] sm:$0xff]  ;;  %v952_v33 = vld [vmem:[%s13186_s10 + $0x758] sm:$0xff] }
 0x271   : > { %v956_v35 = vld [vmem:[%s13186_s10 + $0x778] sm:$0xff]  ;;  %v10724_v38 = vcombine.high %v951_v31, %v955_v32  ;;  %v10723_v44 = vcombine.low %v951_v31, %v955_v32 }
 0x272   : > { %v10726_v39 = vcombine.high %v952_v33, %v956_v35  ;;  %v10725_v45 = vcombine.low %v952_v33, %v956_v35  ;;  %v1015_v33 = vld [vmem:[%s13186_s10 + $0x950] sm:$0xff] }
 0x273   : > { %3477 = vmatpush1.bf16.msra.mxu0 %v10659_v40  ;;  %3641 = vmatpush1.bf16.msra.mxu1 %v10661_v41  ;;  %v959_v40 = vld [vmem:[%s13186_s10 + $0x790] sm:$0xff] }
 0x274   : > { %3478 = vmatprep.subr.bf16.mxu0 %v10668_v24  ;;  %3642 = vmatprep.subr.bf16.mxu1 %v10670_v43  ;;  %v963_v41 = vld [vmem:[%s13186_s10 + $0x7b0] sm:$0xff]  ;;  %v960_v24 = vld [vmem:[%s13186_s10 + $0x798] sm:$0xff] }
 0x275   : > { %v964_v43 = vld [vmem:[%s13186_s10 + $0x7b8] sm:$0xff]  ;;  %v10732_v46 = vcombine.high %v959_v40, %v963_v41  ;;  %v10731_v52 = vcombine.low %v959_v40, %v963_v41  ;;  %v1019_v35 = vld [vmem:[%s13186_s10 + $0x970] sm:$0xff] }
 0x276   : > { %v10734_v47 = vcombine.high %v960_v24, %v964_v43  ;;  %v10733_v54 = vcombine.low %v960_v24, %v964_v43  ;;  %v10788_v40 = vcombine.high %v1015_v33, %v1019_v35  ;;  %v1023_v24 = vld [vmem:[%s13186_s10 + $0x990] sm:$0xff] }
 0x277   : > { %3479 = vmatpush1.bf16.msra.mxu0 %v10667_v48  ;;  %3643 = vmatpush1.bf16.msra.mxu1 %v10669_v49  ;;  %v967_v48 = vld [vmem:[%s13186_s10 + $0x7d0] sm:$0xff] }
 0x278   : > { %3480 = vmatprep.subr.bf16.mxu0 %v10676_v50  ;;  %3644 = vmatprep.subr.bf16.mxu1 %v10678_v51  ;;  %v971_v49 = vld [vmem:[%s13186_s10 + $0x7f0] sm:$0xff]  ;;  %v968_v50 = vld [vmem:[%s13186_s10 + $0x7d8] sm:$0xff] }
 0x279   : > { %v972_v51 = vld [vmem:[%s13186_s10 + $0x7f8] sm:$0xff]  ;;  %v10740_v55 = vcombine.high %v967_v48, %v971_v49  ;;  %v10739_v62 = vcombine.low %v967_v48, %v971_v49  ;;  %v1027_v43 = vld [vmem:[%s13186_s10 + $0x9b0] sm:$0xff] }
 0x27a   : > { %v10742_v56 = vcombine.high %v968_v50, %v972_v51  ;;  %v10741_v63 = vcombine.low %v968_v50, %v972_v51  ;;  %v10796_v48 = vcombine.high %v1023_v24, %v1027_v43  ;;  %v1031_v50 = vld [vmem:[%s13186_s10 + $0x9d0] sm:$0xff] }
 0x27b   : > { %3481 = vmatpush1.bf16.msra.mxu0 %v10675_v58  ;;  %3645 = vmatpush1.bf16.msra.mxu1 %v10677_v59  ;;  %v975_v58 = vld [vmem:[%s13186_s10 + $0x810] sm:$0xff] }
 0x27c   : > { %3482 = vmatprep.subr.bf16.mxu0 %v10684_v60  ;;  %3646 = vmatprep.subr.bf16.mxu1 %v10686_v61  ;;  %v979_v59 = vld [vmem:[%s13186_s10 + $0x830] sm:$0xff]  ;;  %v976_v60 = vld [vmem:[%s13186_s10 + $0x818] sm:$0xff] }
 0x27d   : > { %v980_v61 = vld [vmem:[%s13186_s10 + $0x838] sm:$0xff]  ;;  %v10748_v0 = vcombine.high %v975_v58, %v979_v59  ;;  %v10747_v6 = vcombine.low %v975_v58, %v979_v59  ;;  %v1035_v51 = vld [vmem:[%s13186_s10 + $0x9f0] sm:$0xff] }
 0x27e   : > { %v10750_v1 = vcombine.high %v976_v60, %v980_v61  ;;  %v10749_v7 = vcombine.low %v976_v60, %v980_v61  ;;  %v10804_v58 = vcombine.high %v1031_v50, %v1035_v51  ;;  %v1039_v60 = vld [vmem:[%s13186_s10 + $0xa10] sm:$0xff] }
 0x27f   : > { %3483 = vmatpush1.bf16.msra.mxu0 %v10683_v2  ;;  %3647 = vmatpush1.bf16.msra.mxu1 %v10685_v3  ;;  %v983_v2 = vld [vmem:[%s13186_s10 + $0x850] sm:$0xff] }
 0x280   : > { %3484 = vmatprep.subr.bf16.mxu0 %v10692_v4  ;;  %3648 = vmatprep.subr.bf16.mxu1 %v10694_v5  ;;  %v987_v3 = vld [vmem:[%s13186_s10 + $0x870] sm:$0xff]  ;;  %v984_v4 = vld [vmem:[%s13186_s10 + $0x858] sm:$0xff] }
 0x281   : > { %v988_v5 = vld [vmem:[%s13186_s10 + $0x878] sm:$0xff]  ;;  %v10756_v8 = vcombine.high %v983_v2, %v987_v3  ;;  %v10755_v12 = vcombine.low %v983_v2, %v987_v3  ;;  %v1043_v61 = vld [vmem:[%s13186_s10 + $0xa30] sm:$0xff] }
 0x282   : > { %v10758_v9 = vcombine.high %v984_v4, %v988_v5  ;;  %v10757_v14 = vcombine.low %v984_v4, %v988_v5  ;;  %v10812_v2 = vcombine.high %v1039_v60, %v1043_v61  ;;  %v1047_v4 = vld [vmem:[%s13186_s10 + $0xa50] sm:$0xff] }
 0x283   : > { %3485 = vmatpush1.bf16.msra.mxu0 %v10691_v10  ;;  %3649 = vmatpush1.bf16.msra.mxu1 %v10693_v57  ;;  %v991_v10 = vld [vmem:[%s13186_s10 + $0x890] sm:$0xff] }
 0x284   : > { %3486 = vmatprep.subr.bf16.mxu0 %v10700_v11  ;;  %3650 = vmatprep.subr.bf16.mxu1 %v10702_v13  ;;  %v995_v57 = vld [vmem:[%s13186_s10 + $0x8b0] sm:$0xff]  ;;  %v992_v11 = vld [vmem:[%s13186_s10 + $0x898] sm:$0xff] }
 0x285   : > { %v996_v13 = vld [vmem:[%s13186_s10 + $0x8b8] sm:$0xff]  ;;  %v10764_v16 = vcombine.high %v991_v10, %v995_v57  ;;  %v1051_v5 = vld [vmem:[%s13186_s10 + $0xa70] sm:$0xff] }
 0x286   : > { %v10766_v17 = vcombine.high %v992_v11, %v996_v13  ;;  %v10765_v22 = vcombine.low %v992_v11, %v996_v13  ;;  %v1055_v11 = vld [vmem:[%s13186_s10 + $0xa90] sm:$0xff] }
 0x287   : > { %3487 = vmatpush1.bf16.msra.mxu0 %v10699_v18  ;;  %3651 = vmatpush1.bf16.msra.mxu1 %v10701_v19  ;;  %v999_v18 = vld [vmem:[%s13186_s10 + $0x8d0] sm:$0xff] }
 0x288   : > { %3488 = vmatprep.subr.bf16.mxu0 %v10708_v20  ;;  %3652 = vmatprep.subr.bf16.mxu1 %v10710_v21  ;;  %v1003_v19 = vld [vmem:[%s13186_s10 + $0x8f0] sm:$0xff]  ;;  %v1000_v20 = vld [vmem:[%s13186_s10 + $0x8d8] sm:$0xff] }
 0x289   : > { %v1004_v21 = vld [vmem:[%s13186_s10 + $0x8f8] sm:$0xff]  ;;  %v10772_v53 = vcombine.high %v999_v18, %v1003_v19  ;;  %v1059_v13 = vld [vmem:[%s13186_s10 + $0xab0] sm:$0xff] }
 0x28a   : > { %v10774_v23 = vcombine.high %v1000_v20, %v1004_v21 }
 0x28b   : > { %3489 = vmatpush1.bf16.msra.mxu0 %v10707_v27  ;;  %3653 = vmatpush1.bf16.msra.mxu1 %v10709_v28  ;;  %v1011_v27 = vld [vmem:[%s13186_s10 + $0x930] sm:$0xff]  ;;  %v1008_v28 = vld [vmem:[%s13186_s10 + $0x918] sm:$0xff] }
 0x28c   : > { %3490 = vmatprep.subr.bf16.mxu0 %v10716_v29  ;;  %3654 = vmatprep.subr.bf16.mxu1 %v10718_v30  ;;  %v1012_v29 = vld [vmem:[%s13186_s10 + $0x938] sm:$0xff]  ;;  %v10771_v30 = vcombine.low %v999_v18, %v1003_v19  ;;  %v10780_v31 = vcombine.high %v1007_v26, %v1011_v27  ;;  %v10828_v18 = vcombine.high %v1055_v11, %v1059_v13 }
 0x28d   : > { %v10782_v32 = vcombine.high %v1008_v28, %v1012_v29 }
 0x28f   : > { %3491 = vmatpush1.bf16.msra.mxu0 %v10715_v36  ;;  %3655 = vmatpush1.bf16.msra.mxu1 %v10717_v37  ;;  %v1016_v36 = vld [vmem:[%s13186_s10 + $0x958] sm:$0xff] }
 0x290   : > { %3492 = vmatprep.subr.bf16.mxu0 %v10724_v38  ;;  %3656 = vmatprep.subr.bf16.mxu1 %v10726_v39  ;;  %v1020_v37 = vld [vmem:[%s13186_s10 + $0x978] sm:$0xff]  ;;  %v10779_v38 = vcombine.low %v1007_v26, %v1011_v27  ;;  %v10781_v39 = vcombine.low %v1008_v28, %v1012_v29  ;;  %v1071_v28 = vld [vmem:[%s13186_s10 + $0xb10] sm:$0xff] }
 0x291   : > { %v10790_v41 = vcombine.high %v1016_v36, %v1020_v37  ;;  %v1075_v29 = vld [vmem:[%s13186_s10 + $0xb30] sm:$0xff] }
 0x293   : > { %3493 = vmatpush1.bf16.msra.mxu0 %v10723_v44  ;;  %3657 = vmatpush1.bf16.msra.mxu1 %v10725_v45  ;;  %v1024_v44 = vld [vmem:[%s13186_s10 + $0x998] sm:$0xff] }
 0x294   : > { %3494 = vmatprep.subr.bf16.mxu0 %v10732_v46  ;;  %3658 = vmatprep.subr.bf16.mxu1 %v10734_v47  ;;  %v1028_v45 = vld [vmem:[%s13186_s10 + $0x9b8] sm:$0xff]  ;;  %v10787_v46 = vcombine.low %v1015_v33, %v1019_v35  ;;  %v10789_v47 = vcombine.low %v1016_v36, %v1020_v37  ;;  %v10844_v33 = vcombine.high %v1071_v28, %v1075_v29  ;;  %v1079_v36 = vld [vmem:[%s13186_s10 + $0xb50] sm:$0xff] }
 0x295   : > { %v10798_v49 = vcombine.high %v1024_v44, %v1028_v45  ;;  %v1083_v37 = vld [vmem:[%s13186_s10 + $0xb70] sm:$0xff] }
 0x297   : > { %3495 = vmatpush1.bf16.msra.mxu0 %v10731_v52  ;;  %3659 = vmatpush1.bf16.msra.mxu1 %v10733_v54  ;;  %v1032_v52 = vld [vmem:[%s13186_s10 + $0x9d8] sm:$0xff] }
 0x298   : > { %3496 = vmatprep.subr.bf16.mxu0 %v10740_v55  ;;  %3660 = vmatprep.subr.bf16.mxu1 %v10742_v56  ;;  %v1036_v54 = vld [vmem:[%s13186_s10 + $0x9f8] sm:$0xff]  ;;  %v10795_v55 = vcombine.low %v1023_v24, %v1027_v43  ;;  %v10797_v56 = vcombine.low %v1024_v44, %v1028_v45  ;;  %v10852_v24 = vcombine.high %v1079_v36, %v1083_v37  ;;  %v1087_v44 = vld [vmem:[%s13186_s10 + $0xb90] sm:$0xff] }
 0x299   : > { %v10806_v59 = vcombine.high %v1032_v52, %v1036_v54  ;;  %v1091_v45 = vld [vmem:[%s13186_s10 + $0xbb0] sm:$0xff] }
 0x29b   : > { %3497 = vmatpush1.bf16.msra.mxu0 %v10739_v62  ;;  %3661 = vmatpush1.bf16.msra.mxu1 %v10741_v63  ;;  %v1040_v62 = vld [vmem:[%s13186_s10 + $0xa18] sm:$0xff] }
 0x29c   : > { %3507 = vmatprep.subr.bf16.mxu0 %v10748_v0  ;;  %3671 = vmatprep.subr.bf16.mxu1 %v10750_v1  ;;  %v1044_v63 = vld [vmem:[%s13186_s10 + $0xa38] sm:$0xff]  ;;  %v10803_v0 = vcombine.low %v1031_v50, %v1035_v51  ;;  %v10805_v1 = vcombine.low %v1032_v52, %v1036_v54  ;;  %v10860_v50 = vcombine.high %v1087_v44, %v1091_v45  ;;  %v1095_v52 = vld [vmem:[%s13186_s10 + $0xbd0] sm:$0xff] }
 0x29d   : > { %v10814_v3 = vcombine.high %v1040_v62, %v1044_v63  ;;  %v1099_v54 = vld [vmem:[%s13186_s10 + $0xbf0] sm:$0xff] }
 0x29e   : > { %3499 = vmatmul.mubr.bf16.vlgmr.msra.gmra.mrb[4].mxu0 %v13392_v25  ;;  %3663 = vmatmul.mubr.bf16.vlgmr.msra.gmra.mrb[4].mxu1 %v13392_v25  ;;  %v10763_v25 = vcombine.low %v991_v10, %v995_v57  ;;  %v10820_v10 = vcombine.high %v1047_v4, %v1051_v5 }
 0x29f   : > { %3508 = vmatpush1.bf16.msra.mxu0 %v10747_v6  ;;  %3672 = vmatpush1.bf16.msra.mxu1 %v10749_v7  ;;  %v1048_v6 = vld [vmem:[%s13186_s10 + $0xa58] sm:$0xff] }
 0x2a0   : > { %3509 = vmatprep.subr.bf16.mxu0 %v10756_v8  ;;  %3673 = vmatprep.subr.bf16.mxu1 %v10758_v9  ;;  %v1052_v7 = vld [vmem:[%s13186_s10 + $0xa78] sm:$0xff]  ;;  %v10811_v8 = vcombine.low %v1039_v60, %v1043_v61  ;;  %v10813_v9 = vcombine.low %v1040_v62, %v1044_v63  ;;  %v10868_v60 = vcombine.high %v1095_v52, %v1099_v54  ;;  %v1103_v62 = vld [vmem:[%s13186_s10 + $0xc10] sm:$0xff] }
 0x2a1   : > { %3539 = vmatprep.mubr.bf16.mxu0 %v13400_v15  ;;  %3703 = vmatprep.mubr.bf16.mxu1 %v13400_v15  ;;  %v10773_v15 = vcombine.low %v1000_v20, %v1004_v21  ;;  %v10822_v57 = vcombine.high %v1048_v6, %v1052_v7  ;;  %v1063_v20 = vld [vmem:[%s13186_s10 + $0xad0] sm:$0xff] }
 0x2a2   : > { %v1067_v21 = vld [vmem:[%s13186_s10 + $0xaf0] sm:$0xff] }
 0x2a3   : > { %3510 = vmatpush1.bf16.msra.mxu0 %v10755_v12  ;;  %3674 = vmatpush1.bf16.msra.mxu1 %v10757_v14  ;;  %v1056_v12 = vld [vmem:[%s13186_s10 + $0xa98] sm:$0xff]  ;;  %v10836_v26 = vcombine.high %v1063_v20, %v1067_v21  ;;  %v1107_v63 = vld [vmem:[%s13186_s10 + $0xc30] sm:$0xff] }
 0x2a4   : > { %3511 = vmatprep.subr.bf16.mxu0 %v10764_v16  ;;  %3675 = vmatprep.subr.bf16.mxu1 %v10766_v17  ;;  %v1060_v14 = vld [vmem:[%s13186_s10 + $0xab8] sm:$0xff]  ;;  %v10819_v16 = vcombine.low %v1047_v4, %v1051_v5  ;;  %v10821_v17 = vcombine.low %v1048_v6, %v1052_v7  ;;  %v10876_v4 = vcombine.high %v1103_v62, %v1107_v63 }
 0x2a5   : > { %v10830_v19 = vcombine.high %v1056_v12, %v1060_v14  ;;  %v10875_v6 = vcombine.low %v1103_v62, %v1107_v63 }
 0x2a7   : > { %3512 = vmatpush1.bf16.msra.mxu0 %v10763_v25  ;;  %3676 = vmatpush1.bf16.msra.mxu1 %v10765_v22  ;;  %v1064_v25 = vld [vmem:[%s13186_s10 + $0xad8] sm:$0xff] }
 0x2a8   : > { %3513 = vmatprep.subr.bf16.mxu0 %v10772_v53  ;;  %3677 = vmatprep.subr.bf16.mxu1 %v10774_v23  ;;  %v1068_v22 = vld [vmem:[%s13186_s10 + $0xaf8] sm:$0xff]  ;;  %v10827_v53 = vcombine.low %v1055_v11, %v1059_v13  ;;  %v10829_v23 = vcombine.low %v1056_v12, %v1060_v14 }
 0x2a9   : > { %v10838_v27 = vcombine.high %v1064_v25, %v1068_v22 }
 0x2ab   : > { %3514 = vmatpush1.bf16.msra.mxu0 %v10771_v30  ;;  %3678 = vmatpush1.bf16.msra.mxu1 %v10773_v15  ;;  %v1072_v30 = vld [vmem:[%s13186_s10 + $0xb18] sm:$0xff] }
 0x2ac   : > { %3515 = vmatprep.subr.bf16.mxu0 %v10780_v31  ;;  %3679 = vmatprep.subr.bf16.mxu1 %v10782_v32  ;;  %v1076_v15 = vld [vmem:[%s13186_s10 + $0xb38] sm:$0xff]  ;;  %v10835_v31 = vcombine.low %v1063_v20, %v1067_v21  ;;  %v10837_v32 = vcombine.low %v1064_v25, %v1068_v22 }
 0x2ad   : > { %v10846_v35 = vcombine.high %v1072_v30, %v1076_v15 }
 0x2af   : > { %3516 = vmatpush1.bf16.msra.mxu0 %v10779_v38  ;;  %3680 = vmatpush1.bf16.msra.mxu1 %v10781_v39  ;;  %v1080_v38 = vld [vmem:[%s13186_s10 + $0xb58] sm:$0xff] }
 0x2b0   : > { %3517 = vmatprep.subr.bf16.mxu0 %v10788_v40  ;;  %3681 = vmatprep.subr.bf16.mxu1 %v10790_v41  ;;  %v1084_v39 = vld [vmem:[%s13186_s10 + $0xb78] sm:$0xff]  ;;  %v10843_v40 = vcombine.low %v1071_v28, %v1075_v29  ;;  %v10845_v41 = vcombine.low %v1072_v30, %v1076_v15 }
 0x2b1   : > { %v10854_v43 = vcombine.high %v1080_v38, %v1084_v39 }
 0x2b3   : > { %3518 = vmatpush1.bf16.msra.mxu0 %v10787_v46  ;;  %3682 = vmatpush1.bf16.msra.mxu1 %v10789_v47  ;;  %v1088_v46 = vld [vmem:[%s13186_s10 + $0xb98] sm:$0xff] }
 0x2b4   : > { %3519 = vmatprep.subr.bf16.mxu0 %v10796_v48  ;;  %3683 = vmatprep.subr.bf16.mxu1 %v10798_v49  ;;  %v1092_v47 = vld [vmem:[%s13186_s10 + $0xbb8] sm:$0xff]  ;;  %v10851_v48 = vcombine.low %v1079_v36, %v1083_v37  ;;  %v10853_v49 = vcombine.low %v1080_v38, %v1084_v39 }
 0x2b5   : > { %v10862_v51 = vcombine.high %v1088_v46, %v1092_v47 }
 0x2b7   : > { %3520 = vmatpush1.bf16.msra.mxu0 %v10795_v55  ;;  %3684 = vmatpush1.bf16.msra.mxu1 %v10797_v56  ;;  %v1096_v55 = vld [vmem:[%s13186_s10 + $0xbd8] sm:$0xff] }
 0x2b8   : > { %3521 = vmatprep.subr.bf16.mxu0 %v10804_v58  ;;  %3685 = vmatprep.subr.bf16.mxu1 %v10806_v59  ;;  %v1100_v56 = vld [vmem:[%s13186_s10 + $0xbf8] sm:$0xff]  ;;  %v10859_v58 = vcombine.low %v1087_v44, %v1091_v45  ;;  %v10861_v59 = vcombine.low %v1088_v46, %v1092_v47 }
 0x2b9   : > { %v10870_v61 = vcombine.high %v1096_v55, %v1100_v56 }
 0x2bb   : > { %3522 = vmatpush1.bf16.msra.mxu0 %v10803_v0  ;;  %3686 = vmatpush1.bf16.msra.mxu1 %v10805_v1  ;;  %v1104_v0 = vld [vmem:[%s13186_s10 + $0xc18] sm:$0xff] }
 0x2bc   : > { %3523 = vmatprep.subr.bf16.mxu0 %v10812_v2  ;;  %3687 = vmatprep.subr.bf16.mxu1 %v10814_v3  ;;  %v1108_v1 = vld [vmem:[%s13186_s10 + $0xc38] sm:$0xff]  ;;  %v10867_v2 = vcombine.low %v1095_v52, %v1099_v54  ;;  %v10869_v3 = vcombine.low %v1096_v55, %v1100_v56  ;;  %s10176_s10 = sshll.u32 %s711_s30, 4  ;;  %s14798_s10 = int_to_ptr.vmem [resolvable:$true] %s10176_s10 }
 0x2bd   : > { %v10878_v5 = vcombine.high %v1104_v0, %v1108_v1  ;;  %v10877_v7 = vcombine.low %v1104_v0, %v1108_v1  ;;  %s12622_s15 = scalar_lea.vmem %s14798_s10, 512 }
 0x2be   : > { %p12623_p4 = scmp.ne.s32.totalorder %s14798_s10, %s12622_s15 }
 0x2bf   : > { %3524 = vmatpush1.bf16.msra.mxu0 %v10811_v8  ;;  %3688 = vmatpush1.bf16.msra.mxu1 %v10813_v9  ;;  %v12321_v8 = vld [vmem:[%s13178_s7 + $0x18] ss:$0 sps:$4 sm:$0xff]   ;;  %s11664_s7 = sshll.u32 %s14909_s27, 9  ;;  %s10162_s27 = scalar_lea.sflag [#allocation4], %s13174_s5 }
 0x2c0   : > { %3525 = vmatprep.subr.bf16.mxu0 %v10820_v10  ;;  %3689 = vmatprep.subr.bf16.mxu1 %v10822_v57  ;;  %p12624_p6 = pnand %p12623_p4, %p14912_p7 }
 0x2c2   : > { %p12625_p12 = pneg %p12624_p6 }
 0x2c3   : > { %3526 = vmatpush1.bf16.msra.mxu0 %v10819_v16  ;;  %3690 = vmatpush1.bf16.msra.mxu1 %v10821_v17 }
 0x2c4   : > { %3527 = vmatprep.subr.bf16.mxu0 %v10828_v18  ;;  %3691 = vmatprep.subr.bf16.mxu1 %v10830_v19 }
 0x2c7   : > { %3528 = vmatpush1.bf16.msra.mxu0 %v10827_v53  ;;  %3692 = vmatpush1.bf16.msra.mxu1 %v10829_v23 }
 0x2c8   : > { %3529 = vmatprep.subr.bf16.mxu0 %v10836_v26  ;;  %3693 = vmatprep.subr.bf16.mxu1 %v10838_v27 }
 0x2cb   : > { %3530 = vmatpush1.bf16.msra.mxu0 %v10835_v31  ;;  %3694 = vmatpush1.bf16.msra.mxu1 %v10837_v32 }
 0x2cc   : > { %3531 = vmatprep.subr.bf16.mxu0 %v10844_v33  ;;  %3695 = vmatprep.subr.bf16.mxu1 %v10846_v35 }
 0x2cf   : > { %3532 = vmatpush1.bf16.msra.mxu0 %v10843_v40  ;;  %3696 = vmatpush1.bf16.msra.mxu1 %v10845_v41 }
 0x2d0   : > { %3533 = vmatprep.subr.bf16.mxu0 %v10852_v24  ;;  %3697 = vmatprep.subr.bf16.mxu1 %v10854_v43 }
 0x2d3   : > { %3534 = vmatpush1.bf16.msra.mxu0 %v10851_v48  ;;  %3698 = vmatpush1.bf16.msra.mxu1 %v10853_v49 }
 0x2d4   : > { %3535 = vmatprep.subr.bf16.mxu0 %v10860_v50  ;;  %3699 = vmatprep.subr.bf16.mxu1 %v10862_v51 }
 0x2d7   : > { %3536 = vmatpush1.bf16.msra.mxu0 %v10859_v58  ;;  %3700 = vmatpush1.bf16.msra.mxu1 %v10861_v59 }
 0x2d8   : > { %3537 = vmatprep.subr.bf16.mxu0 %v10868_v60  ;;  %3701 = vmatprep.subr.bf16.mxu1 %v10870_v61 }
 0x2db   : > { %3538 = vmatpush1.bf16.msra.mxu0 %v10867_v2  ;;  %3702 = vmatpush1.bf16.msra.mxu1 %v10869_v3 }
 0x2dc   : > { %3548 = vmatprep.subr.bf16.mxu0 %v10876_v4  ;;  %3712 = vmatprep.subr.bf16.mxu1 %v10878_v5 }
 0x2de   : > { %3540 = vmatmul.mubr.bf16.vlgmr.msra.gmra.mrb[4].mxu0 %v13464_v34  ;;  %3704 = vmatmul.mubr.bf16.vlgmr.msra.gmra.mrb[4].mxu1 %v13464_v34 }
 0x2df   : > { %3549 = vmatpush1.bf16.msra.mxu0 %v10875_v6  ;;  %3713 = vmatpush1.bf16.msra.mxu1 %v10877_v7 }
 0x2e0   : > { %3580 = vmatprep.mubr.bf16.mxu0 %v12724_v42  ;;  %3744 = vmatprep.mubr.bf16.mxu1 %v12724_v42 }
 0x2ea   : > { %10881 = vmatmul.mubr.msk.bf16.vlgmr.msra.gmra.mrb[4].mxu0 %vm3093_vm0, %v12321_v8  ;;  %10882 = vmatmul.mubr.msk.bf16.vlgmr.msra.gmra.mrb[4].mxu1 %vm3093_vm0, %v12321_v8 }
 0x2f1   : > { %v3254_v9 = vpop.f32.mrb[0].mxu0  ;;  %v3418_v57 = vpop.f32.mrb[0].mxu1 }
 0x2f2   : > { %v3753_v10 = vrot.slane %v3254_v9, 4  ;;  %v3256_v11 = vpop.f32.mrb[1].mxu0  ;;  %v3765_v13 = vrot.slane %v3418_v57, 4  ;;  %v3420_v14 = vpop.f32.mrb[1].mxu1 }
 0x2f3   : > { %v3759_v12 = vrot.slane %v3256_v11, 4  ;;  %v3258_v16 = vpop.f32.mrb[2].mxu0  ;;  %v3771_v17 = vrot.slane %v3420_v14, 4  ;;  %v3422_v18 = vpop.f32.mrb[2].mxu1 }
 0x2f4   : > { %v3754_v34 = vadd.f32 %v3753_v10, %v3254_v9  ;;  %v3259_v19 = vpop.f32.mrb[3].mxu0  ;;  %v3766_v20 = vadd.f32 %v3765_v13, %v3418_v57  ;;  %v3423_v42 = vpop.f32.mrb[3].mxu1 }
 0x2f5   : > { %v3760_v21 = vadd.f32 %v3759_v12, %v3256_v11  ;;  %v3772_v22 = vadd.f32 %v3771_v17, %v3420_v14  ;;  %v3914_v42 = vlaneseq }
 0x2f6   : > { %v3755_v25 = vrot.slane %v3754_v34, 2  ;;  %v3767_v53 = vrot.slane %v3766_v20, 2 }
 0x2f7   : > { %v3761_v23 = vrot.slane %v3760_v21, 2  ;;  %v3773_v27 = vrot.slane %v3772_v22, 2 }
 0x2f8   : > { %v3756_v26 = vadd.f32 %v3755_v25, %v3754_v34  ;;  %v3768_v28 = vadd.f32 %v3767_v53, %v3766_v20  ;;  %v12725_v20 = vmov 1966171168  }
 0x2f9   : > { %v3762_v29 = vadd.f32 %v3761_v23, %v3760_v21  ;;  %v3774_v15 = vadd.f32 %v3773_v27, %v3772_v22  ;;  %v3912_v21 = vunpack.c.l.s4 %v12725_v20  ;;  %v13702_v22 = vshrl.u32 %v3914_v42, 7 }
 0x2fa   : > { %v3757_v30 = vrot.slane %v3756_v26, 1  ;;  %v3769_v31 = vrot.slane %v3768_v28, 1 }
 0x2fb   : > { %v3763_v32 = vrot.slane %v3762_v29, 1  ;;  %v3775_v35 = vrot.slane %v3774_v15, 1  ;;  %v3913_v25 = vunpack.c.0.s8 %v3912_v21 }
 0x2fc   : > { %v3758_v33 = vadd.f32 %v3757_v30, %v3756_v26  ;;  %v3770_v36 = vadd.f32 %v3769_v31, %v3768_v28 }
 0x2fd   : > { %v3764_v37 = vadd.f32 %v3763_v32, %v3762_v29  ;;  %v3776_v39 = vadd.f32 %v3775_v35, %v3774_v15  ;;  %v13705_v26 = vsub.s32 %v3913_v25, %v13702_v22  ;;  %v4077_v35 = vld [vmem:[%s13202_s12 + $0x20] sm:$0xff] }
 0x2fe   : > { %v3802_v38 = vmul.f32 0.125, %v3758_v33  ;;  %v3804_v40 = vmul.f32 0.125, %v3770_v36  ;;  %v4073_v33 = vld [vmem:[%s13202_s12] sm:$0xff]  ;;  %v4074_v36 = vld [vmem:[%s13202_s12 + $0x8] sm:$0xff] }
 0x2ff   : > { %v3803_v41 = vmul.f32 0.125, %v3764_v37  ;;  %v3805_v43 = vmul.f32 0.125, %v3776_v39  ;;  %v10884_v37 = vcombine.high %v4073_v33, %v4077_v35  ;;  %v10883_v39 = vcombine.low %v4073_v33, %v4077_v35  ;;  %v4121_v25 = vld [vmem:[%s13202_s12 + $0x180] sm:$0xff] }
 0x300   : > { %v13686_v24 = vsub.f32 %v3254_v9, %v3802_v38  ;;  %v13688_v44 = vsub.f32 %v3418_v57, %v3804_v40  ;;  %v4078_v38 = vld [vmem:[%s13202_s12 + $0x28] sm:$0xff]  ;;  %v4129_v35 = vld [vmem:[%s13202_s12 + $0x1c0] sm:$0xff] }
 0x301   : > { %v13690_v45 = vsub.f32 %v3256_v11, %v3803_v41  ;;  %v13694_v47 = vsub.f32 %v3420_v14, %v3805_v43  ;;  %v10885_v40 = vcombine.low %v4074_v36, %v4078_v38  ;;  %v10886_v41 = vcombine.high %v4074_v36, %v4078_v38  ;;  %7145 = vmatprep.subr.bf16.mxu0 %v10884_v37  ;;  %v4081_v43 = vld [vmem:[%s13202_s12 + $0x40] sm:$0xff]  ;;  %v4130_v37 = vld [vmem:[%s13202_s12 + $0x1c8] sm:$0xff] }
 0x302   : > { %v3818_v46 = vmul.f32 %v13686_v24, %v13686_v24  ;;  %v3820_v48 = vmul.f32 %v13688_v44, %v13688_v44  ;;  %7146 = vmatpush1.bf16.msra.mxu0 %v10883_v39  ;;  %v4133_v36 = vld [vmem:[%s13202_s12 + $0x1e0] sm:$0xff]  ;;  %v4134_v39 = vld [vmem:[%s13202_s12 + $0x1e8] sm:$0xff] }
 0x303   : > { %v3819_v49 = vmul.f32 %v13690_v45, %v13690_v45  ;;  %v3821_v51 = vmul.f32 %v13694_v47, %v13694_v47  ;;  %7309 = vmatprep.subr.bf16.mxu1 %v10886_v41  ;;  %v10940_v38 = vcombine.high %v4129_v35, %v4133_v36  ;;  %v10941_v41 = vcombine.low %v4130_v37, %v4134_v39 }
 0x304   : > { %v3826_v50 = vrot.slane %v3818_v46, 4  ;;  %v3838_v52 = vrot.slane %v3820_v48, 4  ;;  %7310 = vmatpush1.bf16.msra.mxu1 %v10885_v40  ;;  %v10939_v40 = vcombine.low %v4129_v35, %v4133_v36  ;;  %v4185_v36 = vld [vmem:[%s13202_s12 + $0x380] sm:$0xff] }
 0x305   : > { %v3832_v54 = vrot.slane %v3819_v49, 4  ;;  %v3844_v56 = vrot.slane %v3821_v51, 4 }
 0x306   : > { %v3827_v55 = vadd.f32 %v3826_v50, %v3818_v46  ;;  %v3839_v58 = vadd.f32 %v3838_v52, %v3820_v48  ;;  %v4085_v46 = vld [vmem:[%s13202_s12 + $0x60] sm:$0xff]  ;;  %v4082_v48 = vld [vmem:[%s13202_s12 + $0x48] sm:$0xff] }
 0x307   : > { %v3833_v59 = vadd.f32 %v3832_v54, %v3819_v49  ;;  %v3845_v61 = vadd.f32 %v3844_v56, %v3821_v51  ;;  %v10892_v49 = vcombine.high %v4081_v43, %v4085_v46  ;;  %v4086_v50 = vld [vmem:[%s13202_s12 + $0x68] sm:$0xff]  ;;  %v10891_v51 = vcombine.low %v4081_v43, %v4085_v46  ;;  %v4093_v56 = vld [vmem:[%s13202_s12 + $0xa0] sm:$0xff] }
 0x308   : > { %v3828_v60 = vrot.slane %v3827_v55, 2  ;;  %v3840_v62 = vrot.slane %v3839_v58, 2  ;;  %v10893_v52 = vcombine.low %v4082_v48, %v4086_v50  ;;  %v10894_v54 = vcombine.high %v4082_v48, %v4086_v50  ;;  %v4137_v46 = vld [vmem:[%s13202_s12 + $0x200] sm:$0xff] }
 0x309   : > { %v3834_v63 = vrot.slane %v3833_v59, 2  ;;  %v3846_v1 = vrot.slane %v3845_v61, 2  ;;  %7147 = vmatprep.subr.bf16.mxu0 %v10892_v49  ;;  %v10942_v43 = vcombine.high %v4130_v37, %v4134_v39  ;;  %v4141_v48 = vld [vmem:[%s13202_s12 + $0x220] sm:$0xff]  ;;  %v4138_v49 = vld [vmem:[%s13202_s12 + $0x208] sm:$0xff] }
 0x30a   : > { %v3829_v0 = vadd.f32 %v3828_v60, %v3827_v55  ;;  %v3841_v2 = vadd.f32 %v3840_v62, %v3839_v58  ;;  %7311 = vmatprep.subr.bf16.mxu1 %v10894_v54  ;;  %7148 = vmatpush1.bf16.msra.mxu0 %v10891_v51  ;;  %v4089_v55 = vld [vmem:[%s13202_s12 + $0x80] sm:$0xff]  ;;  %v4090_v58 = vld [vmem:[%s13202_s12 + $0x88] sm:$0xff]  ;;  %v10948_v50 = vcombine.high %v4137_v46, %v4141_v48 }
 0x30b   : > { %v3835_v3 = vadd.f32 %v3834_v63, %v3833_v59  ;;  %v3847_v5 = vadd.f32 %v3846_v1, %v3845_v61  ;;  %7312 = vmatpush1.bf16.msra.mxu1 %v10893_v52  ;;  %v10900_v59 = vcombine.high %v4089_v55, %v4093_v56  ;;  %v4094_v60 = vld [vmem:[%s13202_s12 + $0xa8] sm:$0xff]  ;;  %v10899_v61 = vcombine.low %v4089_v55, %v4093_v56  ;;  %v4101_v1 = vld [vmem:[%s13202_s12 + $0xe0] sm:$0xff] }
 0x30c   : > { %v3830_v4 = vrot.slane %v3829_v0, 1  ;;  %v3842_v6 = vrot.slane %v3841_v2, 1  ;;  %v10901_v62 = vcombine.low %v4090_v58, %v4094_v60  ;;  %v10902_v63 = vcombine.high %v4090_v58, %v4094_v60  ;;  %v4142_v51 = vld [vmem:[%s13202_s12 + $0x228] sm:$0xff]  ;;  %v4145_v56 = vld [vmem:[%s13202_s12 + $0x240] sm:$0xff] }
 0x30d   : > { %v3836_v7 = vrot.slane %v3835_v3, 1  ;;  %v3848_v9 = vrot.slane %v3847_v5, 1  ;;  %7149 = vmatprep.subr.bf16.mxu0 %v10900_v59  ;;  %v10947_v52 = vcombine.low %v4137_v46, %v4141_v48  ;;  %v10949_v54 = vcombine.low %v4138_v49, %v4142_v51  ;;  %v4149_v58 = vld [vmem:[%s13202_s12 + $0x260] sm:$0xff]  ;;  %v4146_v59 = vld [vmem:[%s13202_s12 + $0x248] sm:$0xff] }
 0x30e   : > { %v3831_v8 = vadd.f32 %v3830_v4, %v3829_v0  ;;  %v3843_v10 = vadd.f32 %v3842_v6, %v3841_v2  ;;  %7313 = vmatprep.subr.bf16.mxu1 %v10902_v63  ;;  %7150 = vmatpush1.bf16.msra.mxu0 %v10899_v61  ;;  %v4097_v0 = vld [vmem:[%s13202_s12 + $0xc0] sm:$0xff]  ;;  %v4098_v2 = vld [vmem:[%s13202_s12 + $0xc8] sm:$0xff]  ;;  %v10950_v55 = vcombine.high %v4138_v49, %v4142_v51 }
 0x30f   : > { %v3837_v57 = vadd.f32 %v3836_v7, %v3835_v3  ;;  %v3849_v13 = vadd.f32 %v3848_v9, %v3847_v5  ;;  %7314 = vmatpush1.bf16.msra.mxu1 %v10901_v62  ;;  %v10908_v3 = vcombine.high %v4097_v0, %v4101_v1  ;;  %v4102_v4 = vld [vmem:[%s13202_s12 + $0xe8] sm:$0xff]  ;;  %v10907_v5 = vcombine.low %v4097_v0, %v4101_v1  ;;  %v4109_v9 = vld [vmem:[%s13202_s12 + $0x120] sm:$0xff] }
 0x310   : > { %v3874_v11 = vmul.f32 0.125, %v3831_v8  ;;  %v3876_v12 = vmul.f32 0.125, %v3843_v10  ;;  %v10909_v6 = vcombine.low %v4098_v2, %v4102_v4  ;;  %v10910_v7 = vcombine.high %v4098_v2, %v4102_v4  ;;  %v4105_v8 = vld [vmem:[%s13202_s12 + $0x100] sm:$0xff]  ;;  %v4106_v10 = vld [vmem:[%s13202_s12 + $0x108] sm:$0xff] }
 0x311   : > { %v3875_v14 = vmul.f32 0.125, %v3837_v57  ;;  %v3877_v34 = vmul.f32 0.125, %v3849_v13  ;;  %7151 = vmatprep.subr.bf16.mxu0 %v10908_v3  ;;  %v10916_v57 = vcombine.high %v4105_v8, %v4109_v9  ;;  %v10915_v13 = vcombine.low %v4105_v8, %v4109_v9  ;;  %v4150_v61 = vld [vmem:[%s13202_s12 + $0x268] sm:$0xff]  ;;  %v4153_v1 = vld [vmem:[%s13202_s12 + $0x280] sm:$0xff] }
 0x312   : > { %v3883_v16 = vadd.f32 1e-05, %v3874_v11  ;;  %v3885_v17 = vadd.f32 1e-05, %v3876_v12  ;;  %7315 = vmatprep.subr.bf16.mxu1 %v10910_v7  ;;  %7152 = vmatpush1.bf16.msra.mxu0 %v10907_v5  ;;  %v4110_v11 = vld [vmem:[%s13202_s12 + $0x128] sm:$0xff]  ;;  %v10956_v60 = vcombine.high %v4145_v56, %v4149_v58  ;;  %v10955_v62 = vcombine.low %v4145_v56, %v4149_v58  ;;  %v4157_v2 = vld [vmem:[%s13202_s12 + $0x2a0] sm:$0xff] }
 0x313   : > { %v3884_v18 = vadd.f32 1e-05, %v3875_v14  ;;  %v3886_v19 = vadd.f32 1e-05, %v3877_v34  ;;  %7316 = vmatpush1.bf16.msra.mxu1 %v10909_v6  ;;  %v10917_v12 = vcombine.low %v4106_v10, %v4110_v11  ;;  %v10918_v14 = vcombine.high %v4106_v10, %v4110_v11  ;;  %7153 = vmatprep.subr.bf16.mxu0 %v10916_v57  ;;  %v4117_v34 = vld [vmem:[%s13202_s12 + $0x160] sm:$0xff]  ;;  %v4154_v3 = vld [vmem:[%s13202_s12 + $0x288] sm:$0xff] }
 0x314   : > { %12279 = vrsqrt.f32 %v3883_v16  ;;  %v4113_v16 = vld [vmem:[%s13202_s12 + $0x140] sm:$0xff]  ;;  %v10957_v63 = vcombine.low %v4146_v59, %v4150_v61  ;;  %v10958_v0 = vcombine.high %v4146_v59, %v4150_v61  ;;  %v10964_v4 = vcombine.high %v4153_v1, %v4157_v2  ;;  %v4158_v5 = vld [vmem:[%s13202_s12 + $0x2a8] sm:$0xff] }
 0x315   : > { %12281 = vrsqrt.f32 %v3885_v17  ;;  %7317 = vmatprep.subr.bf16.mxu1 %v10918_v14  ;;  %v4114_v17 = vld [vmem:[%s13202_s12 + $0x148] sm:$0xff]  ;;  %v10923_v20 = vcombine.low %v4113_v16, %v4117_v34  ;;  %v10963_v6 = vcombine.low %v4153_v1, %v4157_v2  ;;  %v10965_v7 = vcombine.low %v4154_v3, %v4158_v5  ;;  %v4161_v9 = vld [vmem:[%s13202_s12 + $0x2c0] sm:$0xff] }
 0x316   : > { %12283 = vrsqrt.f32 %v3884_v18  ;;  %7154 = vmatpush1.bf16.msra.mxu0 %v10915_v13  ;;  %v10924_v18 = vcombine.high %v4113_v16, %v4117_v34  ;;  %v10966_v8 = vcombine.high %v4154_v3, %v4158_v5  ;;  %v4165_v10 = vld [vmem:[%s13202_s12 + $0x2e0] sm:$0xff]  ;;  %v4162_v57 = vld [vmem:[%s13202_s12 + $0x2c8] sm:$0xff] }
 0x317   : > { %12285 = vrsqrt.f32 %v3886_v19  ;;  %7318 = vmatpush1.bf16.msra.mxu1 %v10917_v12  ;;  %v4118_v19 = vld [vmem:[%s13202_s12 + $0x168] sm:$0xff]  ;;  %v10972_v11 = vcombine.high %v4161_v9, %v4165_v10  ;;  %v10971_v12 = vcombine.low %v4161_v9, %v4165_v10  ;;  %v4169_v34 = vld [vmem:[%s13202_s12 + $0x300] sm:$0xff] }
 0x318   : > { %v10925_v21 = vcombine.low %v4114_v17, %v4118_v19  ;;  %v10926_v42 = vcombine.high %v4114_v17, %v4118_v19  ;;  %7155 = vmatprep.subr.bf16.mxu0 %v10924_v18  ;;  %v4166_v13 = vld [vmem:[%s13202_s12 + $0x2e8] sm:$0xff]  ;;  %v4173_v17 = vld [vmem:[%s13202_s12 + $0x320] sm:$0xff] }
 0x319   : > { %v10973_v14 = vcombine.low %v4162_v57, %v4166_v13  ;;  %v10974_v16 = vcombine.high %v4162_v57, %v4166_v13  ;;  %v4170_v18 = vld [vmem:[%s13202_s12 + $0x308] sm:$0xff]  ;;  %v10980_v19 = vcombine.high %v4169_v34, %v4173_v17  ;;  %v4189_v37 = vld [vmem:[%s13202_s12 + $0x3a0] sm:$0xff] }
 0x31a   : > { %7319 = vmatprep.subr.bf16.mxu1 %v10926_v42  ;;  %7156 = vmatpush1.bf16.msra.mxu0 %v10923_v20  ;;  %v4174_v20 = vld [vmem:[%s13202_s12 + $0x328] sm:$0xff]  ;;  %v10996_v39 = vcombine.high %v4185_v36, %v4189_v37  ;;  %v4193_v48 = vld [vmem:[%s13202_s12 + $0x3c0] sm:$0xff] }
 0x31b   : > { %7320 = vmatpush1.bf16.msra.mxu1 %v10925_v21  ;;  %v10979_v21 = vcombine.low %v4169_v34, %v4173_v17  ;;  %v10981_v42 = vcombine.low %v4170_v18, %v4174_v20  ;;  %v4197_v49 = vld [vmem:[%s13202_s12 + $0x3e0] sm:$0xff] }
 0x31c   : > { %v11003_v51 = vcombine.low %v4193_v48, %v4197_v49  ;;  %v13780_v58 = vld [vmem:[%s13202_s12 + $0x400] sm:$0xff] }
 0x31d   : > { %v13783_v59 = vld [vmem:[%s13202_s12 + $0x420] sm:$0xff] }
 0x31e   : > { %v12280_v53 = vpop.eup %12279  ;;  %v11012_v61 = vcombine.high %v13780_v58, %v13783_v59 }
 0x31f   : > { %v12282_v23 = vpop.eup %12281 }
 0x320   : > { %v12284_v27 = vpop.eup %12283 }
 0x321   : > { %v12286_v28 = vpop.eup %12285  ;;  %v3907_v29 = vcombine.low %v12280_v53, %v12284_v27  ;;  %v4125_v53 = vld [vmem:[%s13202_s12 + $0x1a0] sm:$0xff] }
 0x322   : > { %v3908_v30 = vcombine.low %v12282_v23, %v12286_v28  ;;  %v4122_v23 = vld [vmem:[%s13202_s12 + $0x188] sm:$0xff]  ;;  %v10932_v27 = vcombine.high %v4121_v25, %v4125_v53 }
 0x323   : > { %v13708_v15 = vrot.slane %v3907_v29, %v13705_v26  ;;  %v4126_v28 = vld [vmem:[%s13202_s12 + $0x1a8] sm:$0xff]  ;;  %v10931_v29 = vcombine.low %v4121_v25, %v4125_v53  ;;  %v10982_v25 = vcombine.high %v4170_v18, %v4174_v20  ;;  %v4177_v53 = vld [vmem:[%s13202_s12 + $0x340] sm:$0xff] }
 0x324   : > { %v13711_v31 = vrot.slane %v3908_v30, %v13705_v26  ;;  %v10933_v30 = vcombine.low %v4122_v23, %v4126_v28  ;;  %v10934_v33 = vcombine.high %v4122_v23, %v4126_v28  ;;  %7157 = vmatprep.subr.bf16.mxu0 %v10932_v27  ;;  %v4181_v23 = vld [vmem:[%s13202_s12 + $0x360] sm:$0xff]  ;;  %v4178_v27 = vld [vmem:[%s13202_s12 + $0x348] sm:$0xff] }
 0x325   : > { %7158 = vmatpush1.bf16.msra.mxu0 %v10931_v29  ;;  %v10988_v28 = vcombine.high %v4177_v53, %v4181_v23  ;;  %v4182_v29 = vld [vmem:[%s13202_s12 + $0x368] sm:$0xff] }
 0x326   : > { %v3939_v32 = vcombine.low %v13708_v15, %v13711_v31  ;;  %7321 = vmatprep.subr.bf16.mxu1 %v10934_v33  ;;  %7159 = vmatprep.subr.bf16.mxu0 %v10940_v38  ;;  %v10989_v33 = vcombine.low %v4178_v27, %v4182_v29  ;;  %v10990_v35 = vcombine.high %v4178_v27, %v4182_v29  ;;  %v4186_v38 = vld [vmem:[%s13202_s12 + $0x388] sm:$0xff]  ;;  %v13838_v15 = vsub.s32 3, %v13702_v22 }
 0x327   : > { %7322 = vmatpush1.bf16.msra.mxu1 %v10933_v30  ;;  %v10987_v30 = vcombine.low %v4177_v53, %v4181_v23  ;;  %v13841_v31 = vsub.s32 2, %v13702_v22 }
 0x328   : > { %7323 = vmatprep.subr.bf16.mxu1 %v10942_v43 }
 0x329   : > { %7160 = vmatpush1.bf16.msra.mxu0 %v10939_v40  ;;  %v4190_v40 = vld [vmem:[%s13202_s12 + $0x3a8] sm:$0xff] }
 0x32a   : > { %7161 = vmatprep.subr.bf16.mxu0 %v10948_v50  ;;  %v10997_v43 = vcombine.low %v4186_v38, %v4190_v40  ;;  %v10998_v46 = vcombine.high %v4186_v38, %v4190_v40  ;;  %v4194_v50 = vld [vmem:[%s13202_s12 + $0x3c8] sm:$0xff] }
 0x32b   : > { %7324 = vmatpush1.bf16.msra.mxu1 %v10941_v41  ;;  %v10995_v41 = vcombine.low %v4185_v36, %v4189_v37 }
 0x32c   : > { %7325 = vmatprep.subr.bf16.mxu1 %v10950_v55 }
 0x32d   : > { %7162 = vmatpush1.bf16.msra.mxu0 %v10947_v52  ;;  %v11004_v52 = vcombine.high %v4193_v48, %v4197_v49 }
 0x32e   : > { %7163 = vmatprep.subr.bf16.mxu0 %v10956_v60  ;;  %v13786_v60 = vld [vmem:[%s13202_s12 + $0x408] sm:$0xff] }
 0x32f   : > { %7326 = vmatpush1.bf16.msra.mxu1 %v10949_v54  ;;  %v4198_v54 = vld [vmem:[%s13202_s12 + $0x3e8] sm:$0xff] }
 0x330   : > { %7327 = vmatprep.subr.bf16.mxu1 %v10958_v0  ;;  %v11005_v55 = vcombine.low %v4194_v50, %v4198_v54  ;;  %v11006_v56 = vcombine.high %v4194_v50, %v4198_v54 }
 0x331   : > { %7164 = vmatpush1.bf16.msra.mxu0 %v10955_v62  ;;  %v13791_v62 = vld [vmem:[%s13202_s12 + $0x428] sm:$0xff] }
 0x332   : > { %7165 = vmatprep.subr.bf16.mxu0 %v10964_v4  ;;  %v11013_v0 = vcombine.low %v13786_v60, %v13791_v62  ;;  %v11014_v1 = vcombine.high %v13786_v60, %v13791_v62  ;;  %v4230_v60 = vld [vmem:[%s13202_s12 + $0x4e8] sm:$0xff] }
 0x333   : > { %7328 = vmatpush1.bf16.msra.mxu1 %v10957_v63  ;;  %v11011_v63 = vcombine.low %v13780_v58, %v13783_v59  ;;  %v4229_v58 = vld [vmem:[%s13202_s12 + $0x4e0] sm:$0xff]  ;;  %v4226_v59 = vld [vmem:[%s13202_s12 + $0x4c8] sm:$0xff] }
 0x334   : > { %7329 = vmatprep.subr.bf16.mxu1 %v10966_v8 }
 0x335   : > { %7166 = vmatpush1.bf16.msra.mxu0 %v10963_v6 }
 0x336   : > { %7167 = vmatprep.subr.bf16.mxu0 %v10972_v11 }
 0x337   : > { %7330 = vmatpush1.bf16.msra.mxu1 %v10965_v7 }
 0x338   : > { %7331 = vmatprep.subr.bf16.mxu1 %v10974_v16 }
 0x339   : > { %7168 = vmatpush1.bf16.msra.mxu0 %v10971_v12 }
 0x33a   : > { %7169 = vmatprep.subr.bf16.mxu0 %v10980_v19 }
 0x33b   : > { %7332 = vmatpush1.bf16.msra.mxu1 %v10973_v14 }
 0x33c   : > { %7333 = vmatprep.subr.bf16.mxu1 %v10982_v25 }
 0x33d   : > { %7170 = vmatpush1.bf16.msra.mxu0 %v10979_v21 }
 0x33e   : > { %7171 = vmatprep.subr.bf16.mxu0 %v10988_v28 }
 0x33f   : > { %7334 = vmatpush1.bf16.msra.mxu1 %v10981_v42 }
 0x340   : > { %7335 = vmatprep.subr.bf16.mxu1 %v10990_v35 }
 0x341   : > { %7172 = vmatpush1.bf16.msra.mxu0 %v10987_v30 }
 0x342   : > { %7173 = vmatprep.subr.bf16.mxu0 %v10996_v39 }
 0x343   : > { %7336 = vmatpush1.bf16.msra.mxu1 %v10989_v33 }
 0x344   : > { %7337 = vmatprep.subr.bf16.mxu1 %v10998_v46 }
 0x345   : > { %7174 = vmatpush1.bf16.msra.mxu0 %v10995_v41 }
 0x346   : > { %7175 = vmatprep.subr.bf16.mxu0 %v11004_v52 }
 0x347   : > { %7338 = vmatpush1.bf16.msra.mxu1 %v10997_v43 }
 0x348   : > { %7339 = vmatprep.subr.bf16.mxu1 %v11006_v56 }
 0x349   : > { %7176 = vmatpush1.bf16.msra.mxu0 %v11003_v51 }
 0x34a   : > { %7186 = vmatprep.subr.bf16.mxu0 %v11012_v61 }
 0x34b   : > { %7340 = vmatpush1.bf16.msra.mxu1 %v11005_v55 }
 0x34c   : > { %7350 = vmatprep.subr.bf16.mxu1 %v11014_v1 }
 0x3bd   : > { %v3582_v2 = vpop.f32.mrb[4].mxu0  ;;  %v3746_v4 = vpop.f32.mrb[4].mxu1 }
 0x3be   : > { %v3777_v3 = vrot.slane %v3582_v2, 4  ;;  %v3584_v5 = vpop.f32.mrb[5].mxu0  ;;  %v3789_v6 = vrot.slane %v3746_v4, 4  ;;  %v3748_v8 = vpop.f32.mrb[5].mxu1 }
 0x3bf   : > { %v3783_v7 = vrot.slane %v3584_v5, 4  ;;  %v3586_v9 = vpop.f32.mrb[6].mxu0  ;;  %v3795_v57 = vrot.slane %v3748_v8, 4  ;;  %v3750_v11 = vpop.f32.mrb[6].mxu1 }
 0x3c0   : > { %v3778_v10 = vadd.f32 %v3777_v3, %v3582_v2  ;;  %v3587_v13 = vpop.f32.mrb[7].mxu0  ;;  %v3790_v12 = vadd.f32 %v3789_v6, %v3746_v4  ;;  %v3751_v16 = vpop.f32.mrb[7].mxu1 }
 0x3c1   : > { %v3784_v14 = vadd.f32 %v3783_v7, %v3584_v5  ;;  %v3796_v17 = vadd.f32 %v3795_v57, %v3748_v8 }
 0x3c2   : > { %v3779_v34 = vrot.slane %v3778_v10, 2  ;;  %v3791_v18 = vrot.slane %v3790_v12, 2 }
 0x3c3   : > { %v3785_v19 = vrot.slane %v3784_v14, 2  ;;  %v3797_v21 = vrot.slane %v3796_v17, 2 }
 0x3c4   : > { %v3780_v20 = vadd.f32 %v3779_v34, %v3778_v10  ;;  %v3792_v42 = vadd.f32 %v3791_v18, %v3790_v12 }
 0x3c5   : > { %v3786_v25 = vadd.f32 %v3785_v19, %v3784_v14  ;;  %v3798_v23 = vadd.f32 %v3797_v21, %v3796_v17 }
 0x3c6   : > { %v3781_v53 = vrot.slane %v3780_v20, 1  ;;  %v3793_v27 = vrot.slane %v3792_v42, 1 }
 0x3c7   : > { %v3787_v28 = vrot.slane %v3786_v25, 1  ;;  %v3799_v30 = vrot.slane %v3798_v23, 1 }
 0x3c8   : > { %v3782_v29 = vadd.f32 %v3781_v53, %v3780_v20  ;;  %v3794_v33 = vadd.f32 %v3793_v27, %v3792_v42 }
 0x3c9   : > { %v3788_v35 = vadd.f32 %v3787_v28, %v3786_v25  ;;  %v3800_v37 = vadd.f32 %v3799_v30, %v3798_v23 }
 0x3ca   : > { %v3806_v36 = vmul.f32 0.125, %v3782_v29  ;;  %v3808_v38 = vmul.f32 0.125, %v3794_v33 }
 0x3cb   : > { %v3807_v39 = vmul.f32 0.125, %v3788_v35  ;;  %v3809_v41 = vmul.f32 0.125, %v3800_v37 }
 0x3cc   : > { %v13799_v40 = vsub.f32 %v3582_v2, %v3806_v36  ;;  %v13801_v43 = vsub.f32 %v3746_v4, %v3808_v38 }
 0x3cd   : > { %v13803_v46 = vsub.f32 %v3584_v5, %v3807_v39  ;;  %v13807_v49 = vsub.f32 %v3748_v8, %v3809_v41 }
 0x3ce   : > { %v3822_v48 = vmul.f32 %v13799_v40, %v13799_v40  ;;  %v3824_v50 = vmul.f32 %v13801_v43, %v13801_v43 }
 0x3cf   : > { %v3823_v51 = vmul.f32 %v13803_v46, %v13803_v46  ;;  %v3825_v54 = vmul.f32 %v13807_v49, %v13807_v49 }
 0x3d0   : > { %v3850_v52 = vrot.slane %v3822_v48, 4  ;;  %v3862_v55 = vrot.slane %v3824_v50, 4 }
 0x3d1   : > { %v3856_v56 = vrot.slane %v3823_v51, 4  ;;  %v3868_v1 = vrot.slane %v3825_v54, 4 }
 0x3d2   : > { %v3851_v61 = vadd.f32 %v3850_v52, %v3822_v48  ;;  %v3863_v2 = vadd.f32 %v3862_v55, %v3824_v50  ;;  %v3947_v48 = vrot.slane %v3939_v32, %v13705_v26  ;;  %v13825_v52 = vsub.s32 7, %v13702_v22 }
 0x3d3   : > { %v3857_v3 = vadd.f32 %v3856_v56, %v3823_v51  ;;  %v3869_v5 = vadd.f32 %v3868_v1, %v3825_v54  ;;  %v3882_v51 = vld [vmem:[%s567_s24] sm:$0xff]  ;;  %v13829_v54 = vld [vmem:[%s576_s3] sm:$0xff]  ;;  %v13832_v56 = vsub.s32 1, %v13702_v22  ;;  %v13844_v32 = vsub.s32 5, %v13702_v22  ;;  %s14796_s3 = scalar_lea.hbm %s14911_s28, %s11664_s7 }
 0x3d4   : > { %v3852_v4 = vrot.slane %v3851_v61, 2  ;;  %v3864_v6 = vrot.slane %v3863_v2, 2 }
 0x3d5   : > { %v3858_v7 = vrot.slane %v3857_v3, 2  ;;  %v3870_v9 = vrot.slane %v3869_v5, 2 }
 0x3d6   : > { %v3853_v8 = vadd.f32 %v3852_v4, %v3851_v61  ;;  %v3865_v10 = vadd.f32 %v3864_v6, %v3863_v2  ;;  %v13835_v61 = vsub.s32 0, %v13702_v22  ;;  %v4040_v2 = vrot.slane %v13829_v54, %v13825_v52 }
 0x3d7   : > { %v3859_v57 = vadd.f32 %v3858_v7, %v3857_v3  ;;  %v3871_v13 = vadd.f32 %v3870_v9, %v3869_v5  ;;  %v13849_v3 = vsub.s32 4, %v13702_v22  ;;  %v4016_v4 = vrot.slane %v13829_v54, %v13832_v56 }
 0x3d8   : > { %v3854_v11 = vrot.slane %v3853_v8, 1  ;;  %v3866_v12 = vrot.slane %v3865_v10, 1  ;;  %v4012_v5 = vrot.slane %v13829_v54, %v13835_v61  ;;  %v4024_v6 = vrot.slane %v13829_v54, %v13838_v15 }
 0x3d9   : > { %v3860_v14 = vrot.slane %v3859_v57, 1  ;;  %v3872_v34 = vrot.slane %v3871_v13, 1  ;;  %v4020_v7 = vrot.slane %v13829_v54, %v13841_v31 }
 0x3da   : > { %v3855_v16 = vadd.f32 %v3854_v11, %v3853_v8  ;;  %v3867_v17 = vadd.f32 %v3866_v12, %v3865_v10  ;;  %v4032_v12 = vrot.slane %v13829_v54, %v13844_v32 }
 0x3db   : > { %v3861_v18 = vadd.f32 %v3860_v14, %v3859_v57  ;;  %v3873_v20 = vadd.f32 %v3872_v34, %v3871_v13  ;;  %v13868_v14 = vsub.s32 6, %v13702_v22 }
 0x3dc   : > { %v3878_v19 = vmul.f32 0.125, %v3855_v16  ;;  %v3880_v21 = vmul.f32 0.125, %v3867_v17 }
 0x3dd   : > { %v3879_v42 = vmul.f32 0.125, %v3861_v18  ;;  %v3881_v53 = vmul.f32 0.125, %v3873_v20 }
 0x3de   : > { %v3887_v25 = vadd.f32 1e-05, %v3878_v19  ;;  %v3889_v23 = vadd.f32 1e-05, %v3880_v21 }
 0x3df   : > { %v3888_v27 = vadd.f32 1e-05, %v3879_v42  ;;  %v3890_v28 = vadd.f32 1e-05, %v3881_v53 }
 0x3e0   : > { %12287 = vrsqrt.f32 %v3887_v25 }
 0x3e1   : > { %12289 = vrsqrt.f32 %v3889_v23  ;;  %v4209_v23 = vld [vmem:[%s13202_s12 + $0x440] sm:$0xff] }
 0x3e2   : > { %12291 = vrsqrt.f32 %v3888_v27  ;;  %v4213_v27 = vld [vmem:[%s13202_s12 + $0x460] sm:$0xff] }
 0x3e3   : > { %12293 = vrsqrt.f32 %v3890_v28  ;;  %v4210_v28 = vld [vmem:[%s13202_s12 + $0x448] sm:$0xff] }
 0x3ea   : > { %v12288_v29 = vpop.eup %12287 }
 0x3eb   : > { %v12290_v30 = vpop.eup %12289 }
 0x3ec   : > { %v12292_v33 = vpop.eup %12291 }
 0x3ed   : > { %v12294_v35 = vpop.eup %12293  ;;  %v3909_v36 = vcombine.low %v12288_v29, %v12292_v33  ;;  %v4214_v29 = vld [vmem:[%s13202_s12 + $0x468] sm:$0xff] }
 0x3ee   : > { %v3910_v37 = vcombine.low %v12290_v30, %v12294_v35  ;;  %v4028_v30 = vrot.slane %v13829_v54, %v13849_v3 }
 0x3ef   : > { %v3931_v38 = vrot.slane %v3909_v36, %v13705_v26  ;;  %v4036_v36 = vrot.slane %v13829_v54, %v13868_v14 }
 0x3f0   : > { %v3938_v39 = vrot.slane %v3910_v37, %v13705_v26  ;;  %v4217_v37 = vld [vmem:[%s13202_s12 + $0x480] sm:$0xff] }
 0x3f2   : > { %v3940_v41 = vcombine.low %v3931_v38, %v3938_v39  ;;  %v11020_v39 = vcombine.high %v4209_v23, %v4213_v27 }
 0x3f4   : > { %v3954_v50 = vrot.slane %v3940_v41, %v13705_v26  ;;  %v11022_v41 = vcombine.high %v4210_v28, %v4214_v29 }
 0x3f6   : > { %v3955_v55 = vcombine.low %v3947_v48, %v3954_v50  ;;  %v4221_v48 = vld [vmem:[%s13202_s12 + $0x4a0] sm:$0xff]  ;;  %v4218_v50 = vld [vmem:[%s13202_s12 + $0x488] sm:$0xff] }
 0x3f7   : > { %v11027_v62 = vcombine.low %v4217_v37, %v4221_v48 }
 0x3f8   : > { %v3957_v1 = vmul.f32 %v3955_v55, %v3882_v51  ;;  %v4222_v51 = vld [vmem:[%s13202_s12 + $0x4a8] sm:$0xff] }
 0x3fa   : > { %v3990_v8 = vrot.slane %v3957_v1, %v13825_v52  ;;  %v3966_v9 = vrot.slane %v3957_v1, %v13832_v56  ;;  %v3962_v10 = vrot.slane %v3957_v1, %v13835_v61  ;;  %v3974_v57 = vrot.slane %v3957_v1, %v13838_v15 }
 0x3fb   : > { %v3970_v11 = vrot.slane %v3957_v1, %v13841_v31  ;;  %v3982_v13 = vrot.slane %v3957_v1, %v13844_v32 }
 0x3fc   : > { %v4006_v16 = vmul.f32 %v3990_v8, %v13807_v49  ;;  %v4000_v34 = vmul.f32 %v3966_v9, %v13690_v45  ;;  %v3999_v17 = vmul.f32 %v3962_v10, %v13686_v24  ;;  %v4002_v18 = vmul.f32 %v3974_v57, %v13694_v47  ;;  %v4233_v8 = vld [vmem:[%s13202_s12 + $0x500] sm:$0xff]  ;;  %v4234_v10 = vld [vmem:[%s13202_s12 + $0x508] sm:$0xff] }
 0x3fd   : > { %v4001_v19 = vmul.f32 %v3970_v11, %v13688_v44  ;;  %v4004_v20 = vmul.f32 %v3982_v13, %v13803_v46  ;;  %v3978_v24 = vrot.slane %v3957_v1, %v13849_v3  ;;  %v3986_v44 = vrot.slane %v3957_v1, %v13868_v14  ;;  %v4237_v9 = vld [vmem:[%s13202_s12 + $0x520] sm:$0xff]  ;;  %v4238_v57 = vld [vmem:[%s13202_s12 + $0x528] sm:$0xff] }
 0x3fe   : > { %v13876_v21 = vadd.f32 %v4040_v2, %v4006_v16  ;;  %v4050_v22 = vadd.f32 %v4016_v4, %v4000_v34  ;;  %v4049_v42 = vadd.f32 %v4012_v5, %v3999_v17  ;;  %v4052_v25 = vadd.f32 %v4024_v6, %v4002_v18  ;;  %v4225_v6 = vld [vmem:[%s13202_s12 + $0x4c0] sm:$0xff]  ;;  %v4242_v18 = vld [vmem:[%s13202_s12 + $0x548] sm:$0xff] }
 0x3ff   : > { %v13878_v49 = vadd.f32 %v4020_v7, %v4001_v19  ;;  %v13880_v45 = vadd.f32 %v4032_v12, %v4004_v20  ;;  %v4003_v38 = vmul.f32 %v3978_v24, %v13799_v40  ;;  %v4005_v55 = vmul.f32 %v3986_v44, %v13801_v43  ;;  %v4241_v34 = vld [vmem:[%s13202_s12 + $0x540] sm:$0xff]  ;;  %v4246_v19 = vld [vmem:[%s13202_s12 + $0x568] sm:$0xff] }
 0x400   : > { %v4058_v53 = vmax.f32 %v4050_v22, 0.0  ;;  %v4057_v47 = vmax.f32 %v4049_v42, 0.0  ;;  %v4060_v46 = vmax.f32 %v4052_v25, 0.0  ;;  %v11019_v43 = vcombine.low %v4209_v23, %v4213_v27  ;;  %v4245_v17 = vld [vmem:[%s13202_s12 + $0x560] sm:$0xff]  ;;  %v4254_v23 = vld [vmem:[%s13202_s12 + $0x5a8] sm:$0xff] }
 0x401   : > { %v13908_v40 = vadd.f32 %v4028_v30, %v4003_v38  ;;  %v11021_v1 = vcombine.low %v4210_v28, %v4214_v29  ;;  %v13916_v2 = vadd.f32 %v4036_v36, %v4005_v55  ;;  %v11028_v4 = vcombine.high %v4217_v37, %v4221_v48  ;;  %v4249_v24 = vld [vmem:[%s13202_s12 + $0x580] sm:$0xff]  ;;  %v4258_v36 = vld [vmem:[%s13202_s12 + $0x5c8] sm:$0xff] }
 0x402   : > { %v13890_v33 = vpack.c.bf16 %v4058_v53, %v4058_v53  ;;  %v13892_v35 = vpack.c.bf16 %v4057_v47, %v4057_v47  ;;  %v13906_v54 = vpack.c.bf16 %v4060_v46, %v4060_v46  ;;  %v11030_v5 = vcombine.high %v4218_v50, %v4222_v51  ;;  %v4253_v53 = vld [vmem:[%s13202_s12 + $0x5a0] sm:$0xff]  ;;  %v4250_v47 = vld [vmem:[%s13202_s12 + $0x588] sm:$0xff] }
 0x403   : > { %v11038_v7 = vcombine.high %v4226_v59, %v4230_v60  ;;  %v11035_v11 = vcombine.low %v4225_v6, %v4229_v58  ;;  %v11037_v13 = vcombine.low %v4226_v59, %v4230_v60  ;;  %v11044_v12 = vcombine.high %v4233_v8, %v4237_v9  ;;  %v4257_v29 = vld [vmem:[%s13202_s12 + $0x5c0] sm:$0xff]  ;;  %v4262_v37 = vld [vmem:[%s13202_s12 + $0x5e8] sm:$0xff] }
 0x404   : > { %7177 = vmatprep.mubr.bf16.mxu0 %v13890_v33  ;;  %7341 = vmatprep.mubr.bf16.mxu1 %v13890_v33  ;;  %v11046_v16 = vcombine.high %v4234_v10, %v4238_v57  ;;  %v11043_v20 = vcombine.low %v4233_v8, %v4237_v9  ;;  %v11045_v22 = vcombine.low %v4234_v10, %v4238_v57  ;;  %v4261_v30 = vld [vmem:[%s13202_s12 + $0x5e0] sm:$0xff]  ;;  %v4266_v55 = vld [vmem:[%s13202_s12 + $0x608] sm:$0xff] }
 0x405   : > { %7178 = vmatmul.mubr.bf16.vlgmr.msra.gmra.mrb[8].mxu0 %v13892_v35  ;;  %7342 = vmatmul.mubr.bf16.vlgmr.msra.gmra.mrb[8].mxu1 %v13892_v35  ;;  %v11052_v42 = vcombine.high %v4241_v34, %v4245_v17  ;;  %v11054_v25 = vcombine.high %v4242_v18, %v4246_v19  ;;  %v11051_v44 = vcombine.low %v4241_v34, %v4245_v17  ;;  %v4277_v59 = vld [vmem:[%s13202_s12 + $0x660] sm:$0xff]  ;;  %v4274_v60 = vld [vmem:[%s13202_s12 + $0x648] sm:$0xff] }
 0x406   : > { %7187 = vmatpush1.bf16.msra.mxu0 %v11011_v63  ;;  %7351 = vmatpush1.bf16.msra.mxu1 %v11013_v0  ;;  %v11029_v63 = vcombine.low %v4218_v50, %v4222_v51  ;;  %v11036_v0 = vcombine.high %v4225_v6, %v4229_v58  ;;  %v11053_v46 = vcombine.low %v4242_v18, %v4246_v19  ;;  %v4265_v50 = vld [vmem:[%s13202_s12 + $0x600] sm:$0xff]  ;;  %v4282_v57 = vld [vmem:[%s13202_s12 + $0x688] sm:$0xff] }
 0x407   : > { %7218 = vmatprep.mubr.bf16.mxu0 %v13906_v54  ;;  %7382 = vmatprep.mubr.bf16.mxu1 %v13906_v54  ;;  %v11060_v27 = vcombine.high %v4249_v24, %v4253_v53  ;;  %v11062_v28 = vcombine.high %v4250_v47, %v4254_v23  ;;  %v11059_v38 = vcombine.low %v4249_v24, %v4253_v53  ;;  %v4269_v51 = vld [vmem:[%s13202_s12 + $0x620] sm:$0xff]  ;;  %v4290_v19 = vld [vmem:[%s13202_s12 + $0x6c8] sm:$0xff] }
 0x408   : > { %7188 = vmatprep.subr.bf16.mxu0 %v11020_v39  ;;  %7352 = vmatprep.subr.bf16.mxu1 %v11022_v41  ;;  %v11061_v39 = vcombine.low %v4250_v47, %v4254_v23  ;;  %v11068_v41 = vcombine.high %v4257_v29, %v4261_v30  ;;  %v11070_v48 = vcombine.high %v4258_v36, %v4262_v37  ;;  %v4273_v58 = vld [vmem:[%s13202_s12 + $0x640] sm:$0xff]  ;;  %v4298_v23 = vld [vmem:[%s13202_s12 + $0x708] sm:$0xff] }
 0x409   : > { %v4281_v9 = vld [vmem:[%s13202_s12 + $0x680] sm:$0xff] }
 0x40a   : > { %7189 = vmatpush1.bf16.msra.mxu0 %v11019_v43  ;;  %7353 = vmatpush1.bf16.msra.mxu1 %v11021_v1  ;;  %v4270_v43 = vld [vmem:[%s13202_s12 + $0x628] sm:$0xff]  ;;  %v11067_v1 = vcombine.low %v4257_v29, %v4261_v30  ;;  %v4285_v10 = vld [vmem:[%s13202_s12 + $0x6a0] sm:$0xff] }
 0x40b   : > { %7190 = vmatprep.subr.bf16.mxu0 %v11028_v4  ;;  %7354 = vmatprep.subr.bf16.mxu1 %v11030_v5  ;;  %v11069_v4 = vcombine.low %v4258_v36, %v4262_v37  ;;  %v11076_v5 = vcombine.high %v4265_v50, %v4269_v51  ;;  %v11078_v6 = vcombine.high %v4266_v55, %v4270_v43  ;;  %v4289_v17 = vld [vmem:[%s13202_s12 + $0x6c0] sm:$0xff]  ;;  %v4306_v37 = vld [vmem:[%s13202_s12 + $0x748] sm:$0xff] }
 0x40c   : > { %v4293_v18 = vld [vmem:[%s13202_s12 + $0x6e0] sm:$0xff] }
 0x40d   : > { %v4297_v53 = vld [vmem:[%s13202_s12 + $0x700] sm:$0xff] }
 0x40e   : > { %7191 = vmatpush1.bf16.msra.mxu0 %v11027_v62  ;;  %7355 = vmatpush1.bf16.msra.mxu1 %v11029_v63  ;;  %v4278_v62 = vld [vmem:[%s13202_s12 + $0x668] sm:$0xff]  ;;  %v11075_v63 = vcombine.low %v4265_v50, %v4269_v51  ;;  %v4301_v47 = vld [vmem:[%s13202_s12 + $0x720] sm:$0xff] }
 0x40f   : > { %7192 = vmatprep.subr.bf16.mxu0 %v11036_v0  ;;  %7356 = vmatprep.subr.bf16.mxu1 %v11038_v7  ;;  %v11077_v0 = vcombine.low %v4266_v55, %v4270_v43  ;;  %v11084_v7 = vcombine.high %v4273_v58, %v4277_v59  ;;  %v11086_v8 = vcombine.high %v4274_v60, %v4278_v62  ;;  %v4305_v30 = vld [vmem:[%s13202_s12 + $0x740] sm:$0xff]  ;;  %v4314_v43 = vld [vmem:[%s13202_s12 + $0x788] sm:$0xff] }
 0x410   : > { %v4309_v36 = vld [vmem:[%s13202_s12 + $0x760] sm:$0xff] }
 0x411   : > { %v4313_v51 = vld [vmem:[%s13202_s12 + $0x780] sm:$0xff] }
 0x412   : > { %7193 = vmatpush1.bf16.msra.mxu0 %v11035_v11  ;;  %7357 = vmatpush1.bf16.msra.mxu1 %v11037_v13  ;;  %v4286_v11 = vld [vmem:[%s13202_s12 + $0x6a8] sm:$0xff]  ;;  %v11083_v13 = vcombine.low %v4273_v58, %v4277_v59  ;;  %v4317_v55 = vld [vmem:[%s13202_s12 + $0x7a0] sm:$0xff] }
 0x413   : > { %7194 = vmatprep.subr.bf16.mxu0 %v11044_v12  ;;  %7358 = vmatprep.subr.bf16.mxu1 %v11046_v16  ;;  %v11085_v12 = vcombine.low %v4274_v60, %v4278_v62  ;;  %v11092_v16 = vcombine.high %v4281_v9, %v4285_v10  ;;  %v11094_v34 = vcombine.high %v4282_v57, %v4286_v11  ;;  %v4321_v59 = vld [vmem:[%s13202_s12 + $0x7c0] sm:$0xff]  ;;  %v4322_v62 = vld [vmem:[%s13202_s12 + $0x7c8] sm:$0xff] }
 0x414   : > { %v4325_v60 = vld [vmem:[%s13202_s12 + $0x7e0] sm:$0xff] }
 0x416   : > { %7195 = vmatpush1.bf16.msra.mxu0 %v11043_v20  ;;  %7359 = vmatpush1.bf16.msra.mxu1 %v11045_v22  ;;  %v4294_v20 = vld [vmem:[%s13202_s12 + $0x6e8] sm:$0xff]  ;;  %v11091_v22 = vcombine.low %v4281_v9, %v4285_v10  ;;  %v4329_v10 = vld [vmem:[%s13202_s12 + $0x800] sm:$0xff] }
 0x417   : > { %7196 = vmatprep.subr.bf16.mxu0 %v11052_v42  ;;  %7360 = vmatprep.subr.bf16.mxu1 %v11054_v25  ;;  %v11093_v42 = vcombine.low %v4282_v57, %v4286_v11  ;;  %v11100_v25 = vcombine.high %v4289_v17, %v4293_v18  ;;  %v11102_v24 = vcombine.high %v4290_v19, %v4294_v20  ;;  %v4333_v57 = vld [vmem:[%s13202_s12 + $0x820] sm:$0xff]  ;;  %v4330_v11 = vld [vmem:[%s13202_s12 + $0x808] sm:$0xff] }
 0x41a   : > { %7197 = vmatpush1.bf16.msra.mxu0 %v11051_v44  ;;  %7361 = vmatpush1.bf16.msra.mxu1 %v11053_v46  ;;  %v4302_v44 = vld [vmem:[%s13202_s12 + $0x728] sm:$0xff]  ;;  %v11099_v46 = vcombine.low %v4289_v17, %v4293_v18  ;;  %v11140_v17 = vcombine.high %v4329_v10, %v4333_v57 }
 0x41b   : > { %7198 = vmatprep.subr.bf16.mxu0 %v11060_v27  ;;  %7362 = vmatprep.subr.bf16.mxu1 %v11062_v28  ;;  %v11101_v27 = vcombine.low %v4290_v19, %v4294_v20  ;;  %v11108_v28 = vcombine.high %v4297_v53, %v4301_v47  ;;  %v11110_v29 = vcombine.high %v4298_v23, %v4302_v44  ;;  %v4062_v19 = vmax.f32 %v13880_v45, 0.0  ;;  %v4337_v20 = vld [vmem:[%s13202_s12 + $0x840] sm:$0xff] }
 0x41c   : > { %v4345_v45 = vld [vmem:[%s13202_s12 + $0x880] sm:$0xff] }
 0x41e   : > { %7199 = vmatpush1.bf16.msra.mxu0 %v11059_v38  ;;  %7363 = vmatpush1.bf16.msra.mxu1 %v11061_v39  ;;  %v4310_v38 = vld [vmem:[%s13202_s12 + $0x768] sm:$0xff]  ;;  %v11107_v39 = vcombine.low %v4297_v53, %v4301_v47 }
 0x41f   : > { %7200 = vmatprep.subr.bf16.mxu0 %v11068_v41  ;;  %7364 = vmatprep.subr.bf16.mxu1 %v11070_v48  ;;  %v11109_v41 = vcombine.low %v4298_v23, %v4302_v44  ;;  %v11116_v48 = vcombine.high %v4305_v30, %v4309_v36  ;;  %v11118_v50 = vcombine.high %v4306_v37, %v4310_v38 }
 0x422   : > { %7201 = vmatpush1.bf16.msra.mxu0 %v11067_v1  ;;  %7365 = vmatpush1.bf16.msra.mxu1 %v11069_v4  ;;  %v4318_v1 = vld [vmem:[%s13202_s12 + $0x7a8] sm:$0xff]  ;;  %v11115_v4 = vcombine.low %v4305_v30, %v4309_v36 }
 0x423   : > { %7202 = vmatprep.subr.bf16.mxu0 %v11076_v5  ;;  %7366 = vmatprep.subr.bf16.mxu1 %v11078_v6  ;;  %v11117_v5 = vcombine.low %v4306_v37, %v4310_v38  ;;  %v11124_v6 = vcombine.high %v4313_v51, %v4317_v55  ;;  %v11126_v58 = vcombine.high %v4314_v43, %v4318_v1  ;;  %v4353_v38 = vld [vmem:[%s13202_s12 + $0x8c0] sm:$0xff] }
 0x426   : > { %7203 = vmatpush1.bf16.msra.mxu0 %v11075_v63  ;;  %7367 = vmatpush1.bf16.msra.mxu1 %v11077_v0  ;;  %v4326_v63 = vld [vmem:[%s13202_s12 + $0x7e8] sm:$0xff]  ;;  %v11123_v0 = vcombine.low %v4313_v51, %v4317_v55 }
 0x427   : > { %7204 = vmatprep.subr.bf16.mxu0 %v11084_v7  ;;  %7368 = vmatprep.subr.bf16.mxu1 %v11086_v8  ;;  %v11125_v7 = vcombine.low %v4314_v43, %v4318_v1  ;;  %v11132_v8 = vcombine.high %v4321_v59, %v4325_v60  ;;  %v11134_v9 = vcombine.high %v4322_v62, %v4326_v63  ;;  %v4361_v1 = vld [vmem:[%s13202_s12 + $0x900] sm:$0xff] }
 0x42a   : > { %7205 = vmatpush1.bf16.msra.mxu0 %v11083_v13  ;;  %7369 = vmatpush1.bf16.msra.mxu1 %v11085_v12  ;;  %v4334_v13 = vld [vmem:[%s13202_s12 + $0x828] sm:$0xff]  ;;  %v11131_v12 = vcombine.low %v4321_v59, %v4325_v60 }
 0x42b   : > { %7206 = vmatprep.subr.bf16.mxu0 %v11092_v16  ;;  %7370 = vmatprep.subr.bf16.mxu1 %v11094_v34  ;;  %v11133_v16 = vcombine.low %v4322_v62, %v4326_v63  ;;  %v4059_v34 = vmax.f32 %v13878_v49, 0.0  ;;  %v11142_v18 = vcombine.high %v4330_v11, %v4334_v13  ;;  %v11141_v47 = vcombine.low %v4330_v11, %v4334_v13  ;;  %v4369_v63 = vld [vmem:[%s13202_s12 + $0x940] sm:$0xff] }
 0x42c   : > { %v13984_v49 = vpack.c.bf16 %v4062_v19, %v4062_v19  ;;  %v4377_v13 = vld [vmem:[%s13202_s12 + $0x980] sm:$0xff] }
 0x42d   : > { %v13982_v53 = vpack.c.bf16 %v4059_v34, %v4059_v34  ;;  %v4382_v34 = vld [vmem:[%s13202_s12 + $0x9a8] sm:$0xff] }
 0x42e   : > { %7207 = vmatpush1.bf16.msra.mxu0 %v11091_v22  ;;  %7371 = vmatpush1.bf16.msra.mxu1 %v11093_v42  ;;  %v4341_v22 = vld [vmem:[%s13202_s12 + $0x860] sm:$0xff]  ;;  %v4338_v42 = vld [vmem:[%s13202_s12 + $0x848] sm:$0xff] }
 0x42f   : > { %7208 = vmatprep.subr.bf16.mxu0 %v11100_v25  ;;  %7372 = vmatprep.subr.bf16.mxu1 %v11102_v24  ;;  %v4342_v25 = vld [vmem:[%s13202_s12 + $0x868] sm:$0xff]  ;;  %v11139_v24 = vcombine.low %v4329_v10, %v4333_v57  ;;  %v11148_v23 = vcombine.high %v4337_v20, %v4341_v22 }
 0x430   : > { %v11150_v44 = vcombine.high %v4338_v42, %v4342_v25  ;;  %v11149_v30 = vcombine.low %v4338_v42, %v4342_v25  ;;  %v4389_v42 = vld [vmem:[%s13202_s12 + $0x9e0] sm:$0xff]  ;;  %v4386_v25 = vld [vmem:[%s13202_s12 + $0x9c8] sm:$0xff] }
 0x432   : > { %7209 = vmatpush1.bf16.msra.mxu0 %v11099_v46  ;;  %7373 = vmatpush1.bf16.msra.mxu1 %v11101_v27  ;;  %v4349_v46 = vld [vmem:[%s13202_s12 + $0x8a0] sm:$0xff]  ;;  %v4346_v27 = vld [vmem:[%s13202_s12 + $0x888] sm:$0xff] }
 0x433   : > { %7210 = vmatprep.subr.bf16.mxu0 %v11108_v28  ;;  %7374 = vmatprep.subr.bf16.mxu1 %v11110_v29  ;;  %v4350_v28 = vld [vmem:[%s13202_s12 + $0x8a8] sm:$0xff]  ;;  %v11147_v29 = vcombine.low %v4337_v20, %v4341_v22  ;;  %v11156_v36 = vcombine.high %v4345_v45, %v4349_v46  ;;  %v4385_v22 = vld [vmem:[%s13202_s12 + $0x9c0] sm:$0xff] }
 0x434   : > { %v11158_v37 = vcombine.high %v4346_v27, %v4350_v28  ;;  %v11157_v51 = vcombine.low %v4346_v27, %v4350_v28  ;;  %v4397_v27 = vld [vmem:[%s13202_s12 + $0xa20] sm:$0xff]  ;;  %v4394_v28 = vld [vmem:[%s13202_s12 + $0xa08] sm:$0xff] }
 0x436   : > { %7211 = vmatpush1.bf16.msra.mxu0 %v11107_v39  ;;  %7375 = vmatpush1.bf16.msra.mxu1 %v11109_v41  ;;  %v4357_v39 = vld [vmem:[%s13202_s12 + $0x8e0] sm:$0xff]  ;;  %v4354_v41 = vld [vmem:[%s13202_s12 + $0x8c8] sm:$0xff] }
 0x437   : > { %7212 = vmatprep.subr.bf16.mxu0 %v11116_v48  ;;  %7376 = vmatprep.subr.bf16.mxu1 %v11118_v50  ;;  %v4358_v48 = vld [vmem:[%s13202_s12 + $0x8e8] sm:$0xff]  ;;  %v11155_v50 = vcombine.low %v4345_v45, %v4349_v46  ;;  %v11164_v55 = vcombine.high %v4353_v38, %v4357_v39  ;;  %v4393_v46 = vld [vmem:[%s13202_s12 + $0xa00] sm:$0xff] }
 0x438   : > { %v11166_v43 = vcombine.high %v4354_v41, %v4358_v48  ;;  %v11165_v59 = vcombine.low %v4354_v41, %v4358_v48  ;;  %v4405_v41 = vld [vmem:[%s13202_s12 + $0xa60] sm:$0xff]  ;;  %v4402_v48 = vld [vmem:[%s13202_s12 + $0xa48] sm:$0xff] }
 0x43a   : > { %7213 = vmatpush1.bf16.msra.mxu0 %v11115_v4  ;;  %7377 = vmatpush1.bf16.msra.mxu1 %v11117_v5  ;;  %v4365_v4 = vld [vmem:[%s13202_s12 + $0x920] sm:$0xff]  ;;  %v4362_v5 = vld [vmem:[%s13202_s12 + $0x908] sm:$0xff] }
 0x43b   : > { %7214 = vmatprep.subr.bf16.mxu0 %v11124_v6  ;;  %7378 = vmatprep.subr.bf16.mxu1 %v11126_v58  ;;  %v4366_v6 = vld [vmem:[%s13202_s12 + $0x928] sm:$0xff]  ;;  %v11163_v58 = vcombine.low %v4353_v38, %v4357_v39  ;;  %v11172_v60 = vcombine.high %v4361_v1, %v4365_v4  ;;  %v4401_v39 = vld [vmem:[%s13202_s12 + $0xa40] sm:$0xff] }
 0x43c   : > { %v11174_v62 = vcombine.high %v4362_v5, %v4366_v6  ;;  %v11173_v10 = vcombine.low %v4362_v5, %v4366_v6  ;;  %v4413_v5 = vld [vmem:[%s13202_s12 + $0xaa0] sm:$0xff]  ;;  %v4410_v6 = vld [vmem:[%s13202_s12 + $0xa88] sm:$0xff] }
 0x43e   : > { %7215 = vmatpush1.bf16.msra.mxu0 %v11123_v0  ;;  %7379 = vmatpush1.bf16.msra.mxu1 %v11125_v7  ;;  %v4373_v0 = vld [vmem:[%s13202_s12 + $0x960] sm:$0xff]  ;;  %v4370_v7 = vld [vmem:[%s13202_s12 + $0x948] sm:$0xff] }
 0x43f   : > { %7216 = vmatprep.subr.bf16.mxu0 %v11132_v8  ;;  %7380 = vmatprep.subr.bf16.mxu1 %v11134_v9  ;;  %v4374_v8 = vld [vmem:[%s13202_s12 + $0x968] sm:$0xff]  ;;  %v11171_v9 = vcombine.low %v4361_v1, %v4365_v4  ;;  %v11180_v57 = vcombine.high %v4369_v63, %v4373_v0  ;;  %v4409_v4 = vld [vmem:[%s13202_s12 + $0xa80] sm:$0xff] }
 0x440   : > { %v11182_v11 = vcombine.high %v4370_v7, %v4374_v8 }
 0x442   : > { %7217 = vmatpush1.bf16.msra.mxu0 %v11131_v12  ;;  %7381 = vmatpush1.bf16.msra.mxu1 %v11133_v16  ;;  %v4381_v12 = vld [vmem:[%s13202_s12 + $0x9a0] sm:$0xff]  ;;  %v4378_v16 = vld [vmem:[%s13202_s12 + $0x988] sm:$0xff] }
 0x443   : > { %7227 = vmatprep.subr.bf16.mxu0 %v11140_v17  ;;  %7391 = vmatprep.subr.bf16.mxu1 %v11142_v18  ;;  %v11179_v17 = vcombine.low %v4369_v63, %v4373_v0  ;;  %v11181_v18 = vcombine.low %v4370_v7, %v4374_v8  ;;  %v11188_v19 = vcombine.high %v4377_v13, %v4381_v12  ;;  %v4417_v0 = vld [vmem:[%s13202_s12 + $0xac0] sm:$0xff]  ;;  %v4418_v8 = vld [vmem:[%s13202_s12 + $0xac8] sm:$0xff] }
 0x444   : > { %v11190_v20 = vcombine.high %v4378_v16, %v4382_v34  ;;  %v4421_v7 = vld [vmem:[%s13202_s12 + $0xae0] sm:$0xff] }
 0x445   : > { %7219 = vmatmul.mubr.bf16.vlgmr.msra.gmra.mrb[8].mxu0 %v13982_v53  ;;  %7383 = vmatmul.mubr.bf16.vlgmr.msra.gmra.mrb[8].mxu1 %v13982_v53 }
 0x446   : > { %7228 = vmatpush1.bf16.msra.mxu0 %v11139_v24  ;;  %7259 = vmatprep.mubr.bf16.mxu0 %v13984_v49  ;;  %v4390_v24 = vld [vmem:[%s13202_s12 + $0x9e8] sm:$0xff] }
 0x447   : > { %7392 = vmatpush1.bf16.msra.mxu1 %v11141_v47  ;;  %7423 = vmatprep.mubr.bf16.mxu1 %v13984_v49  ;;  %v11187_v47 = vcombine.low %v4377_v13, %v4381_v12  ;;  %v11198_v45 = vcombine.high %v4386_v25, %v4390_v24  ;;  %v4425_v12 = vld [vmem:[%s13202_s12 + $0xb00] sm:$0xff] }
 0x448   : > { %7229 = vmatprep.subr.bf16.mxu0 %v11148_v23  ;;  %7393 = vmatprep.subr.bf16.mxu1 %v11150_v44  ;;  %v11189_v23 = vcombine.low %v4378_v16, %v4382_v34  ;;  %v11196_v44 = vcombine.high %v4385_v22, %v4389_v42  ;;  %v4429_v16 = vld [vmem:[%s13202_s12 + $0xb20] sm:$0xff]  ;;  %v4426_v34 = vld [vmem:[%s13202_s12 + $0xb08] sm:$0xff] }
 0x44a   : > { %7230 = vmatpush1.bf16.msra.mxu0 %v11147_v29  ;;  %v4398_v29 = vld [vmem:[%s13202_s12 + $0xa28] sm:$0xff] }
 0x44b   : > { %7394 = vmatpush1.bf16.msra.mxu1 %v11149_v30  ;;  %7231 = vmatprep.subr.bf16.mxu0 %v11156_v36  ;;  %v11195_v30 = vcombine.low %v4385_v22, %v4389_v42  ;;  %v11197_v36 = vcombine.low %v4386_v25, %v4390_v24  ;;  %v11206_v38 = vcombine.high %v4394_v28, %v4398_v29  ;;  %v4433_v42 = vld [vmem:[%s13202_s12 + $0xb40] sm:$0xff]  ;;  %v4434_v24 = vld [vmem:[%s13202_s12 + $0xb48] sm:$0xff] }
 0x44c   : > { %7395 = vmatprep.subr.bf16.mxu1 %v11158_v37  ;;  %v11204_v37 = vcombine.high %v4393_v46, %v4397_v27  ;;  %v4437_v25 = vld [vmem:[%s13202_s12 + $0xb60] sm:$0xff] }
 0x44e   : > { %7232 = vmatpush1.bf16.msra.mxu0 %v11155_v50  ;;  %v4406_v50 = vld [vmem:[%s13202_s12 + $0xa68] sm:$0xff] }
 0x44f   : > { %7396 = vmatpush1.bf16.msra.mxu1 %v11157_v51  ;;  %7233 = vmatprep.subr.bf16.mxu0 %v11164_v55  ;;  %v11203_v51 = vcombine.low %v4393_v46, %v4397_v27  ;;  %v11205_v55 = vcombine.low %v4394_v28, %v4398_v29  ;;  %v11214_v1 = vcombine.high %v4402_v48, %v4406_v50  ;;  %v4441_v27 = vld [vmem:[%s13202_s12 + $0xb80] sm:$0xff]  ;;  %v4442_v29 = vld [vmem:[%s13202_s12 + $0xb88] sm:$0xff] }
 0x450   : > { %7397 = vmatprep.subr.bf16.mxu1 %v11166_v43  ;;  %v11212_v43 = vcombine.high %v4401_v39, %v4405_v41  ;;  %v4445_v28 = vld [vmem:[%s13202_s12 + $0xba0] sm:$0xff] }
 0x452   : > { %7234 = vmatpush1.bf16.msra.mxu0 %v11163_v58  ;;  %v4414_v58 = vld [vmem:[%s13202_s12 + $0xaa8] sm:$0xff] }
 0x453   : > { %7398 = vmatpush1.bf16.msra.mxu1 %v11165_v59  ;;  %7235 = vmatprep.subr.bf16.mxu0 %v11172_v60  ;;  %v11211_v59 = vcombine.low %v4401_v39, %v4405_v41  ;;  %v11213_v60 = vcombine.low %v4402_v48, %v4406_v50  ;;  %v11222_v63 = vcombine.high %v4410_v6, %v4414_v58  ;;  %v4449_v41 = vld [vmem:[%s13202_s12 + $0xbc0] sm:$0xff]  ;;  %v4450_v50 = vld [vmem:[%s13202_s12 + $0xbc8] sm:$0xff] }
 0x454   : > { %7399 = vmatprep.subr.bf16.mxu1 %v11174_v62  ;;  %v11220_v62 = vcombine.high %v4409_v4, %v4413_v5  ;;  %v4453_v48 = vld [vmem:[%s13202_s12 + $0xbe0] sm:$0xff] }
 0x456   : > { %7236 = vmatpush1.bf16.msra.mxu0 %v11171_v9  ;;  %v4422_v9 = vld [vmem:[%s13202_s12 + $0xae8] sm:$0xff] }
 0x457   : > { %7400 = vmatpush1.bf16.msra.mxu1 %v11173_v10  ;;  %7237 = vmatprep.subr.bf16.mxu0 %v11180_v57  ;;  %v11219_v10 = vcombine.low %v4409_v4, %v4413_v5  ;;  %v11221_v57 = vcombine.low %v4410_v6, %v4414_v58  ;;  %v11230_v13 = vcombine.high %v4418_v8, %v4422_v9  ;;  %v4457_v5 = vld [vmem:[%s13202_s12 + $0xc00] sm:$0xff]  ;;  %v4458_v58 = vld [vmem:[%s13202_s12 + $0xc08] sm:$0xff] }
 0x458   : > { %7401 = vmatprep.subr.bf16.mxu1 %v11182_v11  ;;  %v11228_v11 = vcombine.high %v4417_v0, %v4421_v7  ;;  %v4461_v6 = vld [vmem:[%s13202_s12 + $0xc20] sm:$0xff] }
 0x45a   : > { %7238 = vmatpush1.bf16.msra.mxu0 %v11179_v17  ;;  %v4430_v17 = vld [vmem:[%s13202_s12 + $0xb28] sm:$0xff] }
 0x45b   : > { %7402 = vmatpush1.bf16.msra.mxu1 %v11181_v18  ;;  %7239 = vmatprep.subr.bf16.mxu0 %v11188_v19  ;;  %v11227_v18 = vcombine.low %v4417_v0, %v4421_v7  ;;  %v11229_v19 = vcombine.low %v4418_v8, %v4422_v9  ;;  %v11238_v22 = vcombine.high %v4426_v34, %v4430_v17  ;;  %v4064_v8 = vmax.f32 %v13876_v21, 0.0  ;;  %v4465_v9 = vld [vmem:[%s13202_s12 + $0xc40] sm:$0xff] }
 0x45c   : > { %7403 = vmatprep.subr.bf16.mxu1 %v11190_v20  ;;  %v11236_v20 = vcombine.high %v4425_v12, %v4429_v16  ;;  %v11268_v0 = vcombine.high %v4457_v5, %v4461_v6 }
 0x45d   : > { %v14061_v21 = vpack.c.bf16 %v4064_v8, %v4064_v8 }
 0x45e   : > { %7240 = vmatpush1.bf16.msra.mxu0 %v11187_v47  ;;  %v4438_v47 = vld [vmem:[%s13202_s12 + $0xb68] sm:$0xff] }
 0x45f   : > { %7404 = vmatpush1.bf16.msra.mxu1 %v11189_v23  ;;  %7241 = vmatprep.subr.bf16.mxu0 %v11196_v44  ;;  %v11235_v23 = vcombine.low %v4425_v12, %v4429_v16  ;;  %v11237_v44 = vcombine.low %v4426_v34, %v4430_v17  ;;  %v11246_v46 = vcombine.high %v4434_v24, %v4438_v47  ;;  %v4473_v34 = vld [vmem:[%s13202_s12 + $0xc80] sm:$0xff] }
 0x460   : > { %7405 = vmatprep.subr.bf16.mxu1 %v11198_v45  ;;  %v11244_v45 = vcombine.high %v4433_v42, %v4437_v25  ;;  %v4477_v17 = vld [vmem:[%s13202_s12 + $0xca0] sm:$0xff] }
 0x462   : > { %7242 = vmatpush1.bf16.msra.mxu0 %v11195_v30  ;;  %v4446_v30 = vld [vmem:[%s13202_s12 + $0xba8] sm:$0xff] }
 0x463   : > { %7406 = vmatpush1.bf16.msra.mxu1 %v11197_v36  ;;  %7243 = vmatprep.subr.bf16.mxu0 %v11204_v37  ;;  %v11243_v36 = vcombine.low %v4433_v42, %v4437_v25  ;;  %v11245_v37 = vcombine.low %v4434_v24, %v4438_v47  ;;  %v11254_v39 = vcombine.high %v4442_v29, %v4446_v30  ;;  %v4481_v47 = vld [vmem:[%s13202_s12 + $0xcc0] sm:$0xff] }
 0x464   : > { %7407 = vmatprep.subr.bf16.mxu1 %v11206_v38  ;;  %v11252_v38 = vcombine.high %v4441_v27, %v4445_v28  ;;  %v11284_v25 = vcombine.high %v4473_v34, %v4477_v17 }
 0x466   : > { %7244 = vmatpush1.bf16.msra.mxu0 %v11203_v51  ;;  %v4454_v51 = vld [vmem:[%s13202_s12 + $0xbe8] sm:$0xff] }
 0x467   : > { %7408 = vmatpush1.bf16.msra.mxu1 %v11205_v55  ;;  %7245 = vmatprep.subr.bf16.mxu0 %v11212_v43  ;;  %v11251_v55 = vcombine.low %v4441_v27, %v4445_v28  ;;  %v11253_v43 = vcombine.low %v4442_v29, %v4446_v30  ;;  %v11262_v4 = vcombine.high %v4450_v50, %v4454_v51  ;;  %v4489_v30 = vld [vmem:[%s13202_s12 + $0xd00] sm:$0xff] }
 0x468   : > { %7409 = vmatprep.subr.bf16.mxu1 %v11214_v1  ;;  %v11260_v1 = vcombine.high %v4449_v41, %v4453_v48 }
 0x46a   : > { %7246 = vmatpush1.bf16.msra.mxu0 %v11211_v59  ;;  %v4462_v59 = vld [vmem:[%s13202_s12 + $0xc28] sm:$0xff] }
 0x46b   : > { %7410 = vmatpush1.bf16.msra.mxu1 %v11213_v60  ;;  %7247 = vmatprep.subr.bf16.mxu0 %v11220_v62  ;;  %v11259_v60 = vcombine.low %v4449_v41, %v4453_v48  ;;  %v11261_v62 = vcombine.low %v4450_v50, %v4454_v51  ;;  %v11270_v7 = vcombine.high %v4458_v58, %v4462_v59  ;;  %v4497_v51 = vld [vmem:[%s13202_s12 + $0xd40] sm:$0xff] }
 0x46c   : > { %7411 = vmatprep.subr.bf16.mxu1 %v11222_v63  ;;  %v4061_v63 = vmax.f32 %v13908_v40, 0.0  ;;  %v11269_v40 = vcombine.low %v4458_v58, %v4462_v59  ;;  %v4505_v59 = vld [vmem:[%s13202_s12 + $0xd80] sm:$0xff] }
 0x46e   : > { %7248 = vmatpush1.bf16.msra.mxu0 %v11219_v10  ;;  %v4469_v10 = vld [vmem:[%s13202_s12 + $0xc60] sm:$0xff]  ;;  %v14056_v12 = vpack.c.bf16 %v4061_v63, %v4061_v63  ;;  %v4510_v63 = vld [vmem:[%s13202_s12 + $0xda8] sm:$0xff] }
 0x46f   : > { %7412 = vmatpush1.bf16.msra.mxu1 %v11221_v57  ;;  %7249 = vmatprep.subr.bf16.mxu0 %v11228_v11  ;;  %v11267_v57 = vcombine.low %v4457_v5, %v4461_v6  ;;  %v4466_v11 = vld [vmem:[%s13202_s12 + $0xc48] sm:$0xff]  ;;  %v11276_v16 = vcombine.high %v4465_v9, %v4469_v10 }
 0x470   : > { %7413 = vmatprep.subr.bf16.mxu1 %v11230_v13  ;;  %v4470_v13 = vld [vmem:[%s13202_s12 + $0xc68] sm:$0xff] }
 0x471   : > { %v11277_v42 = vcombine.low %v4466_v11, %v4470_v13 }
 0x472   : > { %7250 = vmatpush1.bf16.msra.mxu0 %v11227_v18  ;;  %v11278_v18 = vcombine.high %v4466_v11, %v4470_v13  ;;  %v4514_v11 = vld [vmem:[%s13202_s12 + $0xdc8] sm:$0xff] }
 0x473   : > { %7414 = vmatpush1.bf16.msra.mxu1 %v11229_v19  ;;  %7251 = vmatprep.subr.bf16.mxu0 %v11236_v20  ;;  %v4474_v19 = vld [vmem:[%s13202_s12 + $0xc88] sm:$0xff] }
 0x474   : > { %7415 = vmatprep.subr.bf16.mxu1 %v11238_v22  ;;  %v4478_v20 = vld [vmem:[%s13202_s12 + $0xca8] sm:$0xff]  ;;  %v11275_v22 = vcombine.low %v4465_v9, %v4469_v10  ;;  %v4513_v10 = vld [vmem:[%s13202_s12 + $0xdc0] sm:$0xff] }
 0x475   : > { %v11286_v24 = vcombine.high %v4474_v19, %v4478_v20  ;;  %v11285_v27 = vcombine.low %v4474_v19, %v4478_v20  ;;  %v4518_v13 = vld [vmem:[%s13202_s12 + $0xde8] sm:$0xff]  ;;  %v4525_v19 = vld [vmem:[%s13202_s12 + $0xe20] sm:$0xff] }
 0x476   : > { %7252 = vmatpush1.bf16.msra.mxu0 %v11235_v23  ;;  %v4485_v23 = vld [vmem:[%s13202_s12 + $0xce0] sm:$0xff]  ;;  %v4522_v20 = vld [vmem:[%s13202_s12 + $0xe08] sm:$0xff] }
 0x477   : > { %7416 = vmatpush1.bf16.msra.mxu1 %v11237_v44  ;;  %7253 = vmatprep.subr.bf16.mxu0 %v11244_v45  ;;  %v4482_v44 = vld [vmem:[%s13202_s12 + $0xcc8] sm:$0xff]  ;;  %v11292_v28 = vcombine.high %v4481_v47, %v4485_v23 }
 0x478   : > { %7417 = vmatprep.subr.bf16.mxu1 %v11246_v46  ;;  %v4486_v45 = vld [vmem:[%s13202_s12 + $0xce8] sm:$0xff]  ;;  %v11283_v46 = vcombine.low %v4473_v34, %v4477_v17  ;;  %v11326_v17 = vcombine.high %v4514_v11, %v4518_v13 }
 0x479   : > { %v11294_v29 = vcombine.high %v4482_v44, %v4486_v45  ;;  %v11293_v41 = vcombine.low %v4482_v44, %v4486_v45  ;;  %v4533_v44 = vld [vmem:[%s13202_s12 + $0xe60] sm:$0xff]  ;;  %v4530_v45 = vld [vmem:[%s13202_s12 + $0xe48] sm:$0xff] }
 0x47a   : > { %7254 = vmatpush1.bf16.msra.mxu0 %v11243_v36  ;;  %v4493_v36 = vld [vmem:[%s13202_s12 + $0xd20] sm:$0xff] }
 0x47b   : > { %7418 = vmatpush1.bf16.msra.mxu1 %v11245_v37  ;;  %7255 = vmatprep.subr.bf16.mxu0 %v11252_v38  ;;  %v4490_v37 = vld [vmem:[%s13202_s12 + $0xd08] sm:$0xff]  ;;  %v11300_v48 = vcombine.high %v4489_v30, %v4493_v36 }
 0x47c   : > { %7419 = vmatprep.subr.bf16.mxu1 %v11254_v39  ;;  %v4494_v38 = vld [vmem:[%s13202_s12 + $0xd28] sm:$0xff]  ;;  %v11291_v39 = vcombine.low %v4481_v47, %v4485_v23  ;;  %v4529_v23 = vld [vmem:[%s13202_s12 + $0xe40] sm:$0xff] }
 0x47d   : > { %v11302_v50 = vcombine.high %v4490_v37, %v4494_v38  ;;  %v11301_v5 = vcombine.low %v4490_v37, %v4494_v38  ;;  %v4541_v37 = vld [vmem:[%s13202_s12 + $0xea0] sm:$0xff]  ;;  %v4538_v38 = vld [vmem:[%s13202_s12 + $0xe88] sm:$0xff] }
 0x47e   : > { %7256 = vmatpush1.bf16.msra.mxu0 %v11251_v55  ;;  %v4501_v55 = vld [vmem:[%s13202_s12 + $0xd60] sm:$0xff] }
 0x47f   : > { %7420 = vmatpush1.bf16.msra.mxu1 %v11253_v43  ;;  %7257 = vmatprep.subr.bf16.mxu0 %v11260_v1  ;;  %v4498_v43 = vld [vmem:[%s13202_s12 + $0xd48] sm:$0xff]  ;;  %v11308_v6 = vcombine.high %v4497_v51, %v4501_v55 }
 0x480   : > { %7421 = vmatprep.subr.bf16.mxu1 %v11262_v4  ;;  %v4502_v1 = vld [vmem:[%s13202_s12 + $0xd68] sm:$0xff]  ;;  %v11299_v4 = vcombine.low %v4489_v30, %v4493_v36  ;;  %v4537_v36 = vld [vmem:[%s13202_s12 + $0xe80] sm:$0xff] }
 0x481   : > { %v11310_v58 = vcombine.high %v4498_v43, %v4502_v1 }
 0x482   : > { %7258 = vmatpush1.bf16.msra.mxu0 %v11259_v60  ;;  %v4509_v60 = vld [vmem:[%s13202_s12 + $0xda0] sm:$0xff] }
 0x483   : > { %7422 = vmatpush1.bf16.msra.mxu1 %v11261_v62  ;;  %7268 = vmatprep.subr.bf16.mxu0 %v11268_v0  ;;  %v4506_v62 = vld [vmem:[%s13202_s12 + $0xd88] sm:$0xff]  ;;  %v11307_v0 = vcombine.low %v4497_v51, %v4501_v55  ;;  %v11316_v8 = vcombine.high %v4505_v59, %v4509_v60  ;;  %v4545_v55 = vld [vmem:[%s13202_s12 + $0xec0] sm:$0xff] }
 0x484   : > { %7432 = vmatprep.subr.bf16.mxu1 %v11270_v7  ;;  %v11309_v7 = vcombine.low %v4498_v43, %v4502_v1  ;;  %v11318_v9 = vcombine.high %v4506_v62, %v4510_v63  ;;  %v4549_v43 = vld [vmem:[%s13202_s12 + $0xee0] sm:$0xff]  ;;  %v4546_v1 = vld [vmem:[%s13202_s12 + $0xec8] sm:$0xff] }
 0x485   : > { %7260 = vmatmul.mubr.bf16.vlgmr.msra.gmra.mrb[8].mxu0 %v14056_v12 }
 0x486   : > { %7424 = vmatmul.mubr.bf16.vlgmr.msra.gmra.mrb[8].mxu1 %v14056_v12  ;;  %7269 = vmatpush1.bf16.msra.mxu0 %v11267_v57  ;;  %v4517_v57 = vld [vmem:[%s13202_s12 + $0xde0] sm:$0xff] }
 0x487   : > { %7300 = vmatprep.mubr.bf16.mxu0 %v14061_v21  ;;  %7433 = vmatpush1.bf16.msra.mxu1 %v11269_v40  ;;  %v11315_v40 = vcombine.low %v4505_v59, %v4509_v60  ;;  %v11324_v34 = vcombine.high %v4513_v10, %v4517_v57  ;;  %v4553_v60 = vld [vmem:[%s13202_s12 + $0xf00] sm:$0xff] }
 0x488   : > { %7464 = vmatprep.mubr.bf16.mxu1 %v14061_v21  ;;  %7270 = vmatprep.subr.bf16.mxu0 %v11276_v16  ;;  %v11317_v16 = vcombine.low %v4506_v62, %v4510_v63  ;;  %v4557_v62 = vld [vmem:[%s13202_s12 + $0xf20] sm:$0xff]  ;;  %v4554_v63 = vld [vmem:[%s13202_s12 + $0xf08] sm:$0xff] }
 0x489   : > { %7434 = vmatprep.subr.bf16.mxu1 %v11278_v18  ;;  %v4521_v18 = vld [vmem:[%s13202_s12 + $0xe00] sm:$0xff] }
 0x48a   : > { %7271 = vmatpush1.bf16.msra.mxu0 %v11275_v22  ;;  %v4526_v22 = vld [vmem:[%s13202_s12 + $0xe28] sm:$0xff] }
 0x48b   : > { %7435 = vmatpush1.bf16.msra.mxu1 %v11277_v42  ;;  %7272 = vmatprep.subr.bf16.mxu0 %v11284_v25  ;;  %v11323_v42 = vcombine.low %v4513_v10, %v4517_v57  ;;  %v11325_v25 = vcombine.low %v4514_v11, %v4518_v13  ;;  %v11334_v47 = vcombine.high %v4522_v20, %v4526_v22  ;;  %v4561_v57 = vld [vmem:[%s13202_s12 + $0xf40] sm:$0xff]  ;;  %v4562_v13 = vld [vmem:[%s13202_s12 + $0xf48] sm:$0xff] }
 0x48c   : > { %7436 = vmatprep.subr.bf16.mxu1 %v11286_v24  ;;  %v11332_v24 = vcombine.high %v4521_v18, %v4525_v19  ;;  %v4565_v11 = vld [vmem:[%s13202_s12 + $0xf60] sm:$0xff] }
 0x48e   : > { %7273 = vmatpush1.bf16.msra.mxu0 %v11283_v46  ;;  %v4534_v46 = vld [vmem:[%s13202_s12 + $0xe68] sm:$0xff] }
 0x48f   : > { %7437 = vmatpush1.bf16.msra.mxu1 %v11285_v27  ;;  %7274 = vmatprep.subr.bf16.mxu0 %v11292_v28  ;;  %v11331_v27 = vcombine.low %v4521_v18, %v4525_v19  ;;  %v11333_v28 = vcombine.low %v4522_v20, %v4526_v22  ;;  %v11342_v30 = vcombine.high %v4530_v45, %v4534_v46  ;;  %v4569_v19 = vld [vmem:[%s13202_s12 + $0xf80] sm:$0xff]  ;;  %v4570_v22 = vld [vmem:[%s13202_s12 + $0xf88] sm:$0xff] }
 0x490   : > { %7438 = vmatprep.subr.bf16.mxu1 %v11294_v29  ;;  %v11340_v29 = vcombine.high %v4529_v23, %v4533_v44  ;;  %v4573_v20 = vld [vmem:[%s13202_s12 + $0xfa0] sm:$0xff] }
 0x492   : > { %7275 = vmatpush1.bf16.msra.mxu0 %v11291_v39  ;;  %v4542_v39 = vld [vmem:[%s13202_s12 + $0xea8] sm:$0xff] }
 0x493   : > { %7439 = vmatpush1.bf16.msra.mxu1 %v11293_v41  ;;  %7276 = vmatprep.subr.bf16.mxu0 %v11300_v48  ;;  %v11339_v41 = vcombine.low %v4529_v23, %v4533_v44  ;;  %v11341_v48 = vcombine.low %v4530_v45, %v4534_v46  ;;  %v11350_v51 = vcombine.high %v4538_v38, %v4542_v39  ;;  %v4577_v44 = vld [vmem:[%s13202_s12 + $0xfc0] sm:$0xff]  ;;  %v4578_v46 = vld [vmem:[%s13202_s12 + $0xfc8] sm:$0xff] }
 0x494   : > { %7440 = vmatprep.subr.bf16.mxu1 %v11302_v50  ;;  %v11348_v50 = vcombine.high %v4537_v36, %v4541_v37  ;;  %v4581_v45 = vld [vmem:[%s13202_s12 + $0xfe0] sm:$0xff] }
 0x496   : > { %7277 = vmatpush1.bf16.msra.mxu0 %v11299_v4  ;;  %v4550_v4 = vld [vmem:[%s13202_s12 + $0xee8] sm:$0xff] }
 0x497   : > { %7441 = vmatpush1.bf16.msra.mxu1 %v11301_v5  ;;  %7278 = vmatprep.subr.bf16.mxu0 %v11308_v6  ;;  %v11347_v5 = vcombine.low %v4537_v36, %v4541_v37  ;;  %v11349_v6 = vcombine.low %v4538_v38, %v4542_v39  ;;  %v11358_v59 = vcombine.high %v4546_v1, %v4550_v4  ;;  %v4075_v37 = vld [vmem:[%s13202_s12 + $0x10] sm:$0xff]  ;;  %v4076_v39 = vld [vmem:[%s13202_s12 + $0x18] sm:$0xff] }
 0x498   : > { %7442 = vmatprep.subr.bf16.mxu1 %v11310_v58  ;;  %v11356_v58 = vcombine.high %v4545_v55, %v4549_v43  ;;  %v4079_v38 = vld [vmem:[%s13202_s12 + $0x30] sm:$0xff] }
 0x49a   : > { %7279 = vmatpush1.bf16.msra.mxu0 %v11307_v0  ;;  %v4558_v0 = vld [vmem:[%s13202_s12 + $0xf28] sm:$0xff] }
 0x49b   : > { %7443 = vmatpush1.bf16.msra.mxu1 %v11309_v7  ;;  %7280 = vmatprep.subr.bf16.mxu0 %v11316_v8  ;;  %v11355_v7 = vcombine.low %v4545_v55, %v4549_v43  ;;  %v11357_v8 = vcombine.low %v4546_v1, %v4550_v4  ;;  %v11366_v10 = vcombine.high %v4554_v63, %v4558_v0  ;;  %v4083_v1 = vld [vmem:[%s13202_s12 + $0x50] sm:$0xff] }
 0x49c   : > { %7444 = vmatprep.subr.bf16.mxu1 %v11318_v9  ;;  %v11364_v9 = vcombine.high %v4553_v60, %v4557_v62  ;;  %v10888_v55 = vcombine.high %v4075_v37, %v4079_v38  ;;  %v4087_v4 = vld [vmem:[%s13202_s12 + $0x70] sm:$0xff] }
 0x49e   : > { %7281 = vmatpush1.bf16.msra.mxu0 %v11315_v40  ;;  %v4566_v40 = vld [vmem:[%s13202_s12 + $0xf68] sm:$0xff] }
 0x49f   : > { %7445 = vmatpush1.bf16.msra.mxu1 %v11317_v16  ;;  %7282 = vmatprep.subr.bf16.mxu0 %v11324_v34  ;;  %v11363_v16 = vcombine.low %v4553_v60, %v4557_v62  ;;  %v11365_v34 = vcombine.low %v4554_v63, %v4558_v0  ;;  %v11374_v18 = vcombine.high %v4562_v13, %v4566_v40  ;;  %v4091_v62 = vld [vmem:[%s13202_s12 + $0x90] sm:$0xff] }
 0x4a0   : > { %7446 = vmatprep.subr.bf16.mxu1 %v11326_v17  ;;  %v11372_v17 = vcombine.high %v4561_v57, %v4565_v11  ;;  %v4095_v63 = vld [vmem:[%s13202_s12 + $0xb0] sm:$0xff] }
 0x4a2   : > { %7283 = vmatpush1.bf16.msra.mxu0 %v11323_v42  ;;  %v4574_v42 = vld [vmem:[%s13202_s12 + $0xfa8] sm:$0xff] }
 0x4a3   : > { %7447 = vmatpush1.bf16.msra.mxu1 %v11325_v25  ;;  %7284 = vmatprep.subr.bf16.mxu0 %v11332_v24  ;;  %v11371_v25 = vcombine.low %v4561_v57, %v4565_v11  ;;  %v11373_v24 = vcombine.low %v4562_v13, %v4566_v40  ;;  %v11382_v23 = vcombine.high %v4570_v22, %v4574_v42  ;;  %v4099_v13 = vld [vmem:[%s13202_s12 + $0xd0] sm:$0xff] }
 0x4a4   : > { %7448 = vmatprep.subr.bf16.mxu1 %v11334_v47  ;;  %v11380_v47 = vcombine.high %v4569_v19, %v4573_v20  ;;  %v10904_v57 = vcombine.high %v4091_v62, %v4095_v63  ;;  %v4103_v40 = vld [vmem:[%s13202_s12 + $0xf0] sm:$0xff] }
 0x4a6   : > { %7285 = vmatpush1.bf16.msra.mxu0 %v11331_v27  ;;  %v4582_v27 = vld [vmem:[%s13202_s12 + $0xfe8] sm:$0xff] }
 0x4a7   : > { %7449 = vmatpush1.bf16.msra.mxu1 %v11333_v28  ;;  %7286 = vmatprep.subr.bf16.mxu0 %v11340_v29  ;;  %v11379_v28 = vcombine.low %v4569_v19, %v4573_v20  ;;  %v11381_v29 = vcombine.low %v4570_v22, %v4574_v42  ;;  %v11390_v36 = vcombine.high %v4578_v46, %v4582_v27  ;;  %v4107_v20 = vld [vmem:[%s13202_s12 + $0x110] sm:$0xff]  ;;  %v4108_v42 = vld [vmem:[%s13202_s12 + $0x118] sm:$0xff] }
 0x4a8   : > { %7450 = vmatprep.subr.bf16.mxu1 %v11342_v30  ;;  %v11388_v30 = vcombine.high %v4577_v44, %v4581_v45  ;;  %v10912_v19 = vcombine.high %v4099_v13, %v4103_v40  ;;  %v4111_v22 = vld [vmem:[%s13202_s12 + $0x130] sm:$0xff] }
 0x4aa   : > { %7287 = vmatpush1.bf16.msra.mxu0 %v11339_v41  ;;  %v4080_v41 = vld [vmem:[%s13202_s12 + $0x38] sm:$0xff] }
 0x4ab   : > { %7451 = vmatpush1.bf16.msra.mxu1 %v11341_v48  ;;  %7288 = vmatprep.subr.bf16.mxu0 %v11348_v50  ;;  %v11387_v48 = vcombine.low %v4577_v44, %v4581_v45  ;;  %v11389_v50 = vcombine.low %v4578_v46, %v4582_v27  ;;  %v10890_v43 = vcombine.high %v4076_v39, %v4080_v41  ;;  %v4115_v45 = vld [vmem:[%s13202_s12 + $0x150] sm:$0xff]  ;;  %v4116_v27 = vld [vmem:[%s13202_s12 + $0x158] sm:$0xff] }
 0x4ac   : > { %7452 = vmatprep.subr.bf16.mxu1 %v11350_v51  ;;  %v4063_v51 = vmax.f32 %v13916_v2, 0.0  ;;  %v10889_v60 = vcombine.low %v4076_v39, %v4080_v41  ;;  %v10896_v2 = vcombine.high %v4083_v1, %v4087_v4  ;;  %v4119_v46 = vld [vmem:[%s13202_s12 + $0x170] sm:$0xff]  ;;  %v4124_v41 = vld [vmem:[%s13202_s12 + $0x198] sm:$0xff] }
 0x4ad   : > { %v4127_v39 = vld [vmem:[%s13202_s12 + $0x1b0] sm:$0xff] }
 0x4ae   : > { %7289 = vmatpush1.bf16.msra.mxu0 %v11347_v5  ;;  %v10887_v5 = vcombine.low %v4075_v37, %v4079_v38  ;;  %v4123_v38 = vld [vmem:[%s13202_s12 + $0x190] sm:$0xff] }
 0x4af   : > { %7453 = vmatpush1.bf16.msra.mxu1 %v11349_v6  ;;  %7290 = vmatprep.subr.bf16.mxu0 %v11356_v58  ;;  %v4084_v6 = vld [vmem:[%s13202_s12 + $0x58] sm:$0xff] }
 0x4b0   : > { %7454 = vmatprep.subr.bf16.mxu1 %v11358_v59  ;;  %v4088_v58 = vld [vmem:[%s13202_s12 + $0x78] sm:$0xff]  ;;  %v14129_v59 = vpack.c.bf16 %v4063_v51, %v4063_v51 }
 0x4b1   : > { %v10898_v0 = vcombine.high %v4084_v6, %v4088_v58 }
 0x4b2   : > { %7291 = vmatpush1.bf16.msra.mxu0 %v11355_v7  ;;  %v4092_v7 = vld [vmem:[%s13202_s12 + $0x98] sm:$0xff] }
 0x4b3   : > { %7455 = vmatpush1.bf16.msra.mxu1 %v11357_v8  ;;  %7292 = vmatprep.subr.bf16.mxu0 %v11364_v9  ;;  %v4096_v8 = vld [vmem:[%s13202_s12 + $0xb8] sm:$0xff]  ;;  %v10895_v9 = vcombine.low %v4083_v1, %v4087_v4  ;;  %v4131_v1 = vld [vmem:[%s13202_s12 + $0x1d0] sm:$0xff] }
 0x4b4   : > { %7456 = vmatprep.subr.bf16.mxu1 %v11366_v10  ;;  %v10897_v10 = vcombine.low %v4084_v6, %v4088_v58  ;;  %v10906_v11 = vcombine.high %v4092_v7, %v4096_v8  ;;  %v4135_v4 = vld [vmem:[%s13202_s12 + $0x1f0] sm:$0xff]  ;;  %v4136_v6 = vld [vmem:[%s13202_s12 + $0x1f8] sm:$0xff]  ;;  %v10935_v58 = vcombine.low %v4123_v38, %v4127_v39 }
 0x4b6   : > { %7293 = vmatpush1.bf16.msra.mxu0 %v11363_v16  ;;  %v4100_v16 = vld [vmem:[%s13202_s12 + $0xd8] sm:$0xff] }
 0x4b7   : > { %7457 = vmatpush1.bf16.msra.mxu1 %v11365_v34  ;;  %7294 = vmatprep.subr.bf16.mxu0 %v11372_v17  ;;  %v4104_v34 = vld [vmem:[%s13202_s12 + $0xf8] sm:$0xff]  ;;  %v10903_v17 = vcombine.low %v4091_v62, %v4095_v63  ;;  %v4139_v63 = vld [vmem:[%s13202_s12 + $0x210] sm:$0xff] }
 0x4b8   : > { %7458 = vmatprep.subr.bf16.mxu1 %v11374_v18  ;;  %v10905_v18 = vcombine.low %v4092_v7, %v4096_v8  ;;  %v4140_v7 = vld [vmem:[%s13202_s12 + $0x218] sm:$0xff] }
 0x4b9   : > { %v4144_v8 = vld [vmem:[%s13202_s12 + $0x238] sm:$0xff] }
 0x4ba   : > { %7295 = vmatpush1.bf16.msra.mxu0 %v11371_v25  ;;  %v4112_v25 = vld [vmem:[%s13202_s12 + $0x138] sm:$0xff] }
 0x4bb   : > { %7459 = vmatpush1.bf16.msra.mxu1 %v11373_v24  ;;  %7296 = vmatprep.subr.bf16.mxu0 %v11380_v47  ;;  %v10911_v24 = vcombine.low %v4099_v13, %v4103_v40  ;;  %v10913_v47 = vcombine.low %v4100_v16, %v4104_v34  ;;  %v10922_v44 = vcombine.high %v4108_v42, %v4112_v25  ;;  %v4147_v13 = vld [vmem:[%s13202_s12 + $0x250] sm:$0xff] }
 0x4bc   : > { %7460 = vmatprep.subr.bf16.mxu1 %v11382_v23  ;;  %v10920_v23 = vcombine.high %v4107_v20, %v4111_v22  ;;  %v4151_v40 = vld [vmem:[%s13202_s12 + $0x270] sm:$0xff] }
 0x4be   : > { %7297 = vmatpush1.bf16.msra.mxu0 %v11379_v28  ;;  %v4120_v28 = vld [vmem:[%s13202_s12 + $0x178] sm:$0xff] }
 0x4bf   : > { %7461 = vmatpush1.bf16.msra.mxu1 %v11381_v29  ;;  %7298 = vmatprep.subr.bf16.mxu0 %v11388_v30  ;;  %v10919_v29 = vcombine.low %v4107_v20, %v4111_v22  ;;  %v10921_v30 = vcombine.low %v4108_v42, %v4112_v25  ;;  %v10930_v37 = vcombine.high %v4116_v27, %v4120_v28  ;;  %v4155_v20 = vld [vmem:[%s13202_s12 + $0x290] sm:$0xff]  ;;  %v4156_v42 = vld [vmem:[%s13202_s12 + $0x298] sm:$0xff] }
 0x4c0   : > { %7462 = vmatprep.subr.bf16.mxu1 %v11390_v36  ;;  %v10928_v36 = vcombine.high %v4115_v45, %v4119_v46  ;;  %v10929_v51 = vcombine.low %v4116_v27, %v4120_v28  ;;  %v4159_v22 = vld [vmem:[%s13202_s12 + $0x2b0] sm:$0xff]  ;;  %v4160_v25 = vld [vmem:[%s13202_s12 + $0x2b8] sm:$0xff] }
 0x4c1   : > { %v4164_v27 = vld [vmem:[%s13202_s12 + $0x2d8] sm:$0xff] }
 0x4c2   : > { %7299 = vmatpush1.bf16.msra.mxu0 %v11387_v48  ;;  %v4128_v48 = vld [vmem:[%s13202_s12 + $0x1b8] sm:$0xff] }
 0x4c3   : > { %7463 = vmatpush1.bf16.msra.mxu1 %v11389_v50  ;;  %7473 = vmatprep.subr.bf16.mxu0 %v10888_v55  ;;  %v10927_v50 = vcombine.low %v4115_v45, %v4119_v46  ;;  %v10936_v55 = vcombine.high %v4123_v38, %v4127_v39  ;;  %v4163_v45 = vld [vmem:[%s13202_s12 + $0x2d0] sm:$0xff]  ;;  %v4168_v28 = vld [vmem:[%s13202_s12 + $0x2f8] sm:$0xff] }
 0x4c4   : > { %7637 = vmatprep.subr.bf16.mxu1 %v10890_v43  ;;  %v10938_v43 = vcombine.high %v4124_v41, %v4128_v48  ;;  %v4167_v46 = vld [vmem:[%s13202_s12 + $0x2f0] sm:$0xff] }
 0x4c5   : > { %7301 = vmatmul.mubr.bf16.vlgmr.msra.gmra.mrb[8].mxu0 %v14129_v59  ;;  %v4171_v38 = vld [vmem:[%s13202_s12 + $0x310] sm:$0xff] }
 0x4c6   : > { %7465 = vmatmul.mubr.bf16.vlgmr.msra.gmra.mrb[8].mxu1 %v14129_v59  ;;  %7474 = vmatpush1.bf16.msra.mxu0 %v10887_v5  ;;  %v4132_v5 = vld [vmem:[%s13202_s12 + $0x1d8] sm:$0xff]  ;;  %v4175_v39 = vld [vmem:[%s13202_s12 + $0x330] sm:$0xff] }
 0x4c7   : > { %7505 = vmatprep.mubr.bf16.mxu0 %v13890_v33  ;;  %7638 = vmatpush1.bf16.msra.mxu1 %v10889_v60  ;;  %v10937_v60 = vcombine.low %v4124_v41, %v4128_v48  ;;  %v10946_v62 = vcombine.high %v4132_v5, %v4136_v6  ;;  %v4172_v41 = vld [vmem:[%s13202_s12 + $0x318] sm:$0xff] }
 0x4c8   : > { %7669 = vmatprep.mubr.bf16.mxu1 %v13890_v33  ;;  %7475 = vmatprep.subr.bf16.mxu0 %v10896_v2  ;;  %v10914_v33 = vcombine.high %v4100_v16, %v4104_v34  ;;  %v10944_v2 = vcombine.high %v4131_v1, %v4135_v4  ;;  %v4148_v16 = vld [vmem:[%s13202_s12 + $0x258] sm:$0xff] }
 0x4c9   : > { %7639 = vmatprep.subr.bf16.mxu1 %v10898_v0  ;;  %v4143_v0 = vld [vmem:[%s13202_s12 + $0x230] sm:$0xff]  ;;  %v4152_v34 = vld [vmem:[%s13202_s12 + $0x278] sm:$0xff] }
 0x4ca   : > { %7476 = vmatpush1.bf16.msra.mxu0 %v10895_v9  ;;  %v10943_v9 = vcombine.low %v4131_v1, %v4135_v4  ;;  %v4176_v48 = vld [vmem:[%s13202_s12 + $0x338] sm:$0xff]  ;;  %v4179_v1 = vld [vmem:[%s13202_s12 + $0x350] sm:$0xff] }
 0x4cb   : > { %7640 = vmatpush1.bf16.msra.mxu1 %v10897_v10  ;;  %7477 = vmatprep.subr.bf16.mxu0 %v10904_v57  ;;  %v10945_v10 = vcombine.low %v4132_v5, %v4136_v6  ;;  %v10952_v57 = vcombine.high %v4139_v63, %v4143_v0  ;;  %v4183_v4 = vld [vmem:[%s13202_s12 + $0x370] sm:$0xff]  ;;  %v4180_v5 = vld [vmem:[%s13202_s12 + $0x358] sm:$0xff] }
 0x4cc   : > { %7641 = vmatprep.subr.bf16.mxu1 %v10906_v11  ;;  %v10954_v11 = vcombine.high %v4140_v7, %v4144_v8  ;;  %v4184_v6 = vld [vmem:[%s13202_s12 + $0x378] sm:$0xff] }
 0x4ce   : > { %7478 = vmatpush1.bf16.msra.mxu0 %v10903_v17  ;;  %v10951_v17 = vcombine.low %v4139_v63, %v4143_v0  ;;  %v4187_v63 = vld [vmem:[%s13202_s12 + $0x390] sm:$0xff] }
 0x4cf   : > { %7642 = vmatpush1.bf16.msra.mxu1 %v10905_v18  ;;  %7479 = vmatprep.subr.bf16.mxu0 %v10912_v19  ;;  %v10953_v18 = vcombine.low %v4140_v7, %v4144_v8  ;;  %v10960_v19 = vcombine.high %v4147_v13, %v4151_v40  ;;  %v4191_v0 = vld [vmem:[%s13202_s12 + $0x3b0] sm:$0xff]  ;;  %v4188_v7 = vld [vmem:[%s13202_s12 + $0x398] sm:$0xff] }
 0x4d0   : > { %7643 = vmatprep.subr.bf16.mxu1 %v10914_v33  ;;  %v10962_v33 = vcombine.high %v4148_v16, %v4152_v34  ;;  %v4192_v8 = vld [vmem:[%s13202_s12 + $0x3b8] sm:$0xff] }
 0x4d2   : > { %7480 = vmatpush1.bf16.msra.mxu0 %v10911_v24  ;;  %v10959_v24 = vcombine.low %v4147_v13, %v4151_v40  ;;  %v4195_v13 = vld [vmem:[%s13202_s12 + $0x3d0] sm:$0xff] }
 0x4d3   : > { %7644 = vmatpush1.bf16.msra.mxu1 %v10913_v47  ;;  %7481 = vmatprep.subr.bf16.mxu0 %v10920_v23  ;;  %v10961_v47 = vcombine.low %v4148_v16, %v4152_v34  ;;  %v10968_v23 = vcombine.high %v4155_v20, %v4159_v22  ;;  %v4199_v40 = vld [vmem:[%s13202_s12 + $0x3f0] sm:$0xff]  ;;  %v4196_v16 = vld [vmem:[%s13202_s12 + $0x3d8] sm:$0xff] }
 0x4d4   : > { %7645 = vmatprep.subr.bf16.mxu1 %v10922_v44  ;;  %v10970_v44 = vcombine.high %v4156_v42, %v4160_v25  ;;  %v4200_v34 = vld [vmem:[%s13202_s12 + $0x3f8] sm:$0xff] }
 0x4d6   : > { %7482 = vmatpush1.bf16.msra.mxu0 %v10919_v29  ;;  %v10967_v29 = vcombine.low %v4155_v20, %v4159_v22  ;;  %v4203_v20 = vld [vmem:[%s13202_s12 + $0x410] sm:$0xff] }
 0x4d7   : > { %7646 = vmatpush1.bf16.msra.mxu1 %v10921_v30  ;;  %7483 = vmatprep.subr.bf16.mxu0 %v10928_v36  ;;  %v10969_v30 = vcombine.low %v4156_v42, %v4160_v25  ;;  %v10976_v36 = vcombine.high %v4163_v45, %v4167_v46  ;;  %v4207_v22 = vld [vmem:[%s13202_s12 + $0x430] sm:$0xff]  ;;  %v4204_v42 = vld [vmem:[%s13202_s12 + $0x418] sm:$0xff] }
 0x4d8   : > { %7647 = vmatprep.subr.bf16.mxu1 %v10930_v37  ;;  %v10978_v37 = vcombine.high %v4164_v27, %v4168_v28  ;;  %v4208_v25 = vld [vmem:[%s13202_s12 + $0x438] sm:$0xff] }
 0x4da   : > { %7484 = vmatpush1.bf16.msra.mxu0 %v10927_v50  ;;  %v10975_v50 = vcombine.low %v4163_v45, %v4167_v46  ;;  %v4211_v45 = vld [vmem:[%s13202_s12 + $0x450] sm:$0xff] }
 0x4db   : > { %7648 = vmatpush1.bf16.msra.mxu1 %v10929_v51  ;;  %7485 = vmatprep.subr.bf16.mxu0 %v10936_v55  ;;  %v10977_v51 = vcombine.low %v4164_v27, %v4168_v28  ;;  %v10984_v55 = vcombine.high %v4171_v38, %v4175_v39  ;;  %v4215_v46 = vld [vmem:[%s13202_s12 + $0x470] sm:$0xff]  ;;  %v11015_v27 = vcombine.low %v4203_v20, %v4207_v22  ;;  %v4212_v28 = vld [vmem:[%s13202_s12 + $0x458] sm:$0xff] }
 0x4dc   : > { %7649 = vmatprep.subr.bf16.mxu1 %v10938_v43  ;;  %v10986_v43 = vcombine.high %v4172_v41, %v4176_v48 }
 0x4de   : > { %7486 = vmatpush1.bf16.msra.mxu0 %v10935_v58  ;;  %v10983_v58 = vcombine.low %v4171_v38, %v4175_v39  ;;  %v4223_v38 = vld [vmem:[%s13202_s12 + $0x4b0] sm:$0xff] }
 0x4df   : > { %7650 = vmatpush1.bf16.msra.mxu1 %v10937_v60  ;;  %7487 = vmatprep.subr.bf16.mxu0 %v10944_v2  ;;  %v10985_v60 = vcombine.low %v4172_v41, %v4176_v48  ;;  %v10992_v2 = vcombine.high %v4179_v1, %v4183_v4  ;;  %v4220_v41 = vld [vmem:[%s13202_s12 + $0x498] sm:$0xff] }
 0x4e0   : > { %7651 = vmatprep.subr.bf16.mxu1 %v10946_v62  ;;  %v10994_v62 = vcombine.high %v4180_v5, %v4184_v6  ;;  %v4224_v48 = vld [vmem:[%s13202_s12 + $0x4b8] sm:$0xff] }
 0x4e2   : > { %7488 = vmatpush1.bf16.msra.mxu0 %v10943_v9  ;;  %v10991_v9 = vcombine.low %v4179_v1, %v4183_v4  ;;  %v4227_v1 = vld [vmem:[%s13202_s12 + $0x4d0] sm:$0xff] }
 0x4e3   : > { %7652 = vmatpush1.bf16.msra.mxu1 %v10945_v10  ;;  %7489 = vmatprep.subr.bf16.mxu0 %v10952_v57  ;;  %v10993_v10 = vcombine.low %v4180_v5, %v4184_v6  ;;  %v11000_v57 = vcombine.high %v4187_v63, %v4191_v0  ;;  %v4231_v4 = vld [vmem:[%s13202_s12 + $0x4f0] sm:$0xff]  ;;  %v4228_v5 = vld [vmem:[%s13202_s12 + $0x4d8] sm:$0xff] }
 0x4e4   : > { %7653 = vmatprep.subr.bf16.mxu1 %v10954_v11  ;;  %v11002_v11 = vcombine.high %v4188_v7, %v4192_v8 }
 0x4e6   : > { %7490 = vmatpush1.bf16.msra.mxu0 %v10951_v17  ;;  %v10999_v17 = vcombine.low %v4187_v63, %v4191_v0  ;;  %v4236_v63 = vld [vmem:[%s13202_s12 + $0x518] sm:$0xff] }
 0x4e7   : > { %7654 = vmatpush1.bf16.msra.mxu1 %v10953_v18  ;;  %7491 = vmatprep.subr.bf16.mxu0 %v10960_v19  ;;  %v11001_v18 = vcombine.low %v4188_v7, %v4192_v8  ;;  %v11008_v19 = vcombine.high %v4195_v13, %v4199_v40  ;;  %v4240_v0 = vld [vmem:[%s13202_s12 + $0x538] sm:$0xff]  ;;  %v11039_v7 = vcombine.low %v4227_v1, %v4231_v4 }
 0x4e8   : > { %7655 = vmatprep.subr.bf16.mxu1 %v10962_v33  ;;  %v11010_v33 = vcombine.high %v4196_v16, %v4200_v34 }
 0x4ea   : > { %7492 = vmatpush1.bf16.msra.mxu0 %v10959_v24  ;;  %v11007_v24 = vcombine.low %v4195_v13, %v4199_v40  ;;  %v4244_v13 = vld [vmem:[%s13202_s12 + $0x558] sm:$0xff] }
 0x4eb   : > { %7656 = vmatpush1.bf16.msra.mxu1 %v10961_v47  ;;  %7493 = vmatprep.subr.bf16.mxu0 %v10968_v23  ;;  %v11009_v47 = vcombine.low %v4196_v16, %v4200_v34  ;;  %v11016_v23 = vcombine.high %v4203_v20, %v4207_v22  ;;  %v4248_v40 = vld [vmem:[%s13202_s12 + $0x578] sm:$0xff]  ;;  %v11049_v34 = vcombine.low %v4236_v63, %v4240_v0 }
 0x4ec   : > { %7657 = vmatprep.subr.bf16.mxu1 %v10970_v44  ;;  %v11018_v44 = vcombine.high %v4204_v42, %v4208_v25  ;;  %v4252_v20 = vld [vmem:[%s13202_s12 + $0x598] sm:$0xff] }
 0x4ed   : > { %v4256_v22 = vld [vmem:[%s13202_s12 + $0x5b8] sm:$0xff] }
 0x4ee   : > { %7494 = vmatpush1.bf16.msra.mxu0 %v10967_v29  ;;  %v4216_v29 = vld [vmem:[%s13202_s12 + $0x478] sm:$0xff] }
 0x4ef   : > { %7658 = vmatpush1.bf16.msra.mxu1 %v10969_v30  ;;  %7495 = vmatprep.subr.bf16.mxu0 %v10976_v36  ;;  %v11017_v30 = vcombine.low %v4204_v42, %v4208_v25  ;;  %v11024_v36 = vcombine.high %v4211_v45, %v4215_v46  ;;  %v11026_v39 = vcombine.high %v4212_v28, %v4216_v29 }
 0x4f0   : > { %7659 = vmatprep.subr.bf16.mxu1 %v10978_v37  ;;  %v4219_v37 = vld [vmem:[%s13202_s12 + $0x490] sm:$0xff]  ;;  %v11057_v25 = vcombine.low %v4244_v13, %v4248_v40 }
 0x4f1   : > { %v11031_v6 = vcombine.low %v4219_v37, %v4223_v38 }
 0x4f2   : > { %7496 = vmatpush1.bf16.msra.mxu0 %v10975_v50  ;;  %v11023_v50 = vcombine.low %v4211_v45, %v4215_v46  ;;  %v4260_v45 = vld [vmem:[%s13202_s12 + $0x5d8] sm:$0xff] }
 0x4f3   : > { %7660 = vmatpush1.bf16.msra.mxu1 %v10977_v51  ;;  %7497 = vmatprep.subr.bf16.mxu0 %v10984_v55  ;;  %v11025_v51 = vcombine.low %v4212_v28, %v4216_v29  ;;  %v11032_v55 = vcombine.high %v4219_v37, %v4223_v38  ;;  %v4264_v46 = vld [vmem:[%s13202_s12 + $0x5f8] sm:$0xff]  ;;  %v11065_v28 = vcombine.low %v4252_v20, %v4256_v22  ;;  %v4271_v37 = vld [vmem:[%s13202_s12 + $0x630] sm:$0xff] }
 0x4f4   : > { %7661 = vmatprep.subr.bf16.mxu1 %v10986_v43  ;;  %v11034_v43 = vcombine.high %v4220_v41, %v4224_v48  ;;  %v4268_v38 = vld [vmem:[%s13202_s12 + $0x618] sm:$0xff] }
 0x4f6   : > { %7498 = vmatpush1.bf16.msra.mxu0 %v10983_v58  ;;  %v11033_v58 = vcombine.low %v4220_v41, %v4224_v48  ;;  %v11073_v48 = vcombine.low %v4260_v45, %v4264_v46 }
 0x4f7   : > { %7662 = vmatpush1.bf16.msra.mxu1 %v10985_v60  ;;  %7499 = vmatprep.subr.bf16.mxu0 %v10992_v2  ;;  %v11040_v60 = vcombine.high %v4227_v1, %v4231_v4  ;;  %v4235_v2 = vld [vmem:[%s13202_s12 + $0x510] sm:$0xff]  ;;  %v4276_v1 = vld [vmem:[%s13202_s12 + $0x658] sm:$0xff] }
 0x4f8   : > { %7663 = vmatprep.subr.bf16.mxu1 %v10994_v62  ;;  %v4239_v62 = vld [vmem:[%s13202_s12 + $0x530] sm:$0xff]  ;;  %v4280_v4 = vld [vmem:[%s13202_s12 + $0x678] sm:$0xff] }
 0x4f9   : > { %v11047_v16 = vcombine.low %v4235_v2, %v4239_v62 }
 0x4fa   : > { %7500 = vmatpush1.bf16.msra.mxu0 %v10991_v9  ;;  %v11048_v9 = vcombine.high %v4235_v2, %v4239_v62  ;;  %v4284_v2 = vld [vmem:[%s13202_s12 + $0x698] sm:$0xff] }
 0x4fb   : > { %7664 = vmatpush1.bf16.msra.mxu1 %v10993_v10  ;;  %7501 = vmatprep.subr.bf16.mxu0 %v11000_v57  ;;  %v11050_v10 = vcombine.high %v4236_v63, %v4240_v0  ;;  %v4243_v57 = vld [vmem:[%s13202_s12 + $0x550] sm:$0xff]  ;;  %v4288_v62 = vld [vmem:[%s13202_s12 + $0x6b8] sm:$0xff]  ;;  %v11089_v0 = vcombine.low %v4276_v1, %v4280_v4 }
 0x4fc   : > { %7665 = vmatprep.subr.bf16.mxu1 %v11002_v11  ;;  %v4247_v11 = vld [vmem:[%s13202_s12 + $0x570] sm:$0xff] }
 0x4fd   : > { %v11055_v42 = vcombine.low %v4243_v57, %v4247_v11 }
 0x4fe   : > { %7502 = vmatpush1.bf16.msra.mxu0 %v10999_v17  ;;  %v11056_v17 = vcombine.high %v4243_v57, %v4247_v11  ;;  %v4292_v57 = vld [vmem:[%s13202_s12 + $0x6d8] sm:$0xff] }
 0x4ff   : > { %7666 = vmatpush1.bf16.msra.mxu1 %v11001_v18  ;;  %7503 = vmatprep.subr.bf16.mxu0 %v11008_v19  ;;  %v11058_v18 = vcombine.high %v4244_v13, %v4248_v40  ;;  %v4251_v19 = vld [vmem:[%s13202_s12 + $0x590] sm:$0xff]  ;;  %v4296_v11 = vld [vmem:[%s13202_s12 + $0x6f8] sm:$0xff]  ;;  %v11097_v40 = vcombine.low %v4284_v2, %v4288_v62 }
 0x500   : > { %7667 = vmatprep.subr.bf16.mxu1 %v11010_v33  ;;  %v4255_v33 = vld [vmem:[%s13202_s12 + $0x5b0] sm:$0xff] }
 0x502   : > { %7504 = vmatpush1.bf16.msra.mxu0 %v11007_v24  ;;  %v11064_v24 = vcombine.high %v4251_v19, %v4255_v33 }
 0x503   : > { %7668 = vmatpush1.bf16.msra.mxu1 %v11009_v47  ;;  %7514 = vmatprep.subr.bf16.mxu0 %v11016_v23  ;;  %v11066_v47 = vcombine.high %v4252_v20, %v4256_v22  ;;  %v4259_v23 = vld [vmem:[%s13202_s12 + $0x5d0] sm:$0xff]  ;;  %v11105_v22 = vcombine.low %v4292_v57, %v4296_v11 }
 0x504   : > { %7678 = vmatprep.subr.bf16.mxu1 %v11018_v44  ;;  %v4263_v44 = vld [vmem:[%s13202_s12 + $0x5f0] sm:$0xff] }
 0x505   : > { %7506 = vmatmul.mubr.bf16.vlgmr.msra.gmra.mrb[12].mxu0 %v13892_v35  ;;  %v11072_v29 = vcombine.high %v4259_v23, %v4263_v44  ;;  %v11071_v41 = vcombine.low %v4259_v23, %v4263_v44  ;;  %v4308_v23 = vld [vmem:[%s13202_s12 + $0x758] sm:$0xff] }
 0x506   : > { %7670 = vmatmul.mubr.bf16.vlgmr.msra.gmra.mrb[12].mxu1 %v13892_v35  ;;  %7515 = vmatpush1.bf16.msra.mxu0 %v11015_v27  ;;  %v4232_v35 = vld [vmem:[%s13202_s12 + $0x4f8] sm:$0xff]  ;;  %v11063_v27 = vcombine.low %v4251_v19, %v4255_v33 }
 0x507   : > { %7546 = vmatprep.mubr.bf16.mxu0 %v13906_v54  ;;  %7679 = vmatpush1.bf16.msra.mxu1 %v11017_v30  ;;  %v11041_v8 = vcombine.low %v4228_v5, %v4232_v35  ;;  %v11074_v30 = vcombine.high %v4260_v45, %v4264_v46  ;;  %v4300_v19 = vld [vmem:[%s13202_s12 + $0x718] sm:$0xff] }
 0x508   : > { %7710 = vmatprep.mubr.bf16.mxu1 %v13906_v54  ;;  %7516 = vmatprep.subr.bf16.mxu0 %v11024_v36  ;;  %v11042_v54 = vcombine.high %v4228_v5, %v4232_v35  ;;  %v4267_v36 = vld [vmem:[%s13202_s12 + $0x610] sm:$0xff]  ;;  %v4304_v33 = vld [vmem:[%s13202_s12 + $0x738] sm:$0xff] }
 0x509   : > { %7680 = vmatprep.subr.bf16.mxu1 %v11026_v39  ;;  %v4272_v39 = vld [vmem:[%s13202_s12 + $0x638] sm:$0xff]  ;;  %v11079_v5 = vcombine.low %v4267_v36, %v4271_v37  ;;  %v11113_v46 = vcombine.low %v4300_v19, %v4304_v33 }
 0x50a   : > { %7517 = vmatpush1.bf16.msra.mxu0 %v11023_v50  ;;  %v11080_v50 = vcombine.high %v4267_v36, %v4271_v37  ;;  %v11081_v35 = vcombine.low %v4268_v38, %v4272_v39  ;;  %v4312_v44 = vld [vmem:[%s13202_s12 + $0x778] sm:$0xff] }
 0x50b   : > { %7681 = vmatpush1.bf16.msra.mxu1 %v11025_v51  ;;  %7518 = vmatprep.subr.bf16.mxu0 %v11032_v55  ;;  %v11082_v51 = vcombine.high %v4268_v38, %v4272_v39  ;;  %v4275_v55 = vld [vmem:[%s13202_s12 + $0x650] sm:$0xff]  ;;  %v4316_v36 = vld [vmem:[%s13202_s12 + $0x798] sm:$0xff]  ;;  %v11121_v39 = vcombine.low %v4308_v23, %v4312_v44 }
 0x50c   : > { %7682 = vmatprep.subr.bf16.mxu1 %v11034_v43  ;;  %v4279_v43 = vld [vmem:[%s13202_s12 + $0x670] sm:$0xff]  ;;  %v4320_v37 = vld [vmem:[%s13202_s12 + $0x7b8] sm:$0xff] }
 0x50d   : > { %v11087_v63 = vcombine.low %v4275_v55, %v4279_v43 }
 0x50e   : > { %7519 = vmatpush1.bf16.msra.mxu0 %v11031_v6  ;;  %v11088_v6 = vcombine.high %v4275_v55, %v4279_v43  ;;  %v4324_v55 = vld [vmem:[%s13202_s12 + $0x7d8] sm:$0xff] }
 0x50f   : > { %7683 = vmatpush1.bf16.msra.mxu1 %v11033_v58  ;;  %7520 = vmatprep.subr.bf16.mxu0 %v11040_v60  ;;  %v11090_v58 = vcombine.high %v4276_v1, %v4280_v4  ;;  %v4283_v60 = vld [vmem:[%s13202_s12 + $0x690] sm:$0xff]  ;;  %v4328_v43 = vld [vmem:[%s13202_s12 + $0x7f8] sm:$0xff]  ;;  %v11129_v4 = vcombine.low %v4316_v36, %v4320_v37 }
 0x510   : > { %7684 = vmatprep.subr.bf16.mxu1 %v11042_v54  ;;  %v4287_v54 = vld [vmem:[%s13202_s12 + $0x6b0] sm:$0xff] }
 0x511   : > { %v11095_v13 = vcombine.low %v4283_v60, %v4287_v54 }
 0x512   : > { %7521 = vmatpush1.bf16.msra.mxu0 %v11039_v7  ;;  %v11096_v7 = vcombine.high %v4283_v60, %v4287_v54  ;;  %v4332_v60 = vld [vmem:[%s13202_s12 + $0x818] sm:$0xff] }
 0x513   : > { %7685 = vmatpush1.bf16.msra.mxu1 %v11041_v8  ;;  %7522 = vmatprep.subr.bf16.mxu0 %v11048_v9  ;;  %v11098_v8 = vcombine.high %v4284_v2, %v4288_v62  ;;  %v4291_v9 = vld [vmem:[%s13202_s12 + $0x6d0] sm:$0xff]  ;;  %v4336_v54 = vld [vmem:[%s13202_s12 + $0x838] sm:$0xff]  ;;  %v11137_v62 = vcombine.low %v4324_v55, %v4328_v43 }
 0x514   : > { %7686 = vmatprep.subr.bf16.mxu1 %v11050_v10  ;;  %v4295_v10 = vld [vmem:[%s13202_s12 + $0x6f0] sm:$0xff] }
 0x515   : > { %v11103_v20 = vcombine.low %v4291_v9, %v4295_v10 }
 0x516   : > { %7523 = vmatpush1.bf16.msra.mxu0 %v11047_v16  ;;  %v11104_v16 = vcombine.high %v4291_v9, %v4295_v10  ;;  %v4340_v10 = vld [vmem:[%s13202_s12 + $0x858] sm:$0xff] }
 0x517   : > { %7687 = vmatpush1.bf16.msra.mxu1 %v11049_v34  ;;  %7524 = vmatprep.subr.bf16.mxu0 %v11056_v17  ;;  %v11106_v34 = vcombine.high %v4292_v57, %v4296_v11  ;;  %v4299_v17 = vld [vmem:[%s13202_s12 + $0x710] sm:$0xff]  ;;  %v4344_v57 = vld [vmem:[%s13202_s12 + $0x878] sm:$0xff]  ;;  %v11145_v11 = vcombine.low %v4332_v60, %v4336_v54 }
 0x518   : > { %7688 = vmatprep.subr.bf16.mxu1 %v11058_v18  ;;  %v4303_v18 = vld [vmem:[%s13202_s12 + $0x730] sm:$0xff] }
 0x519   : > { %v11111_v45 = vcombine.low %v4299_v17, %v4303_v18 }
 0x51a   : > { %7525 = vmatpush1.bf16.msra.mxu0 %v11055_v42  ;;  %v11112_v42 = vcombine.high %v4299_v17, %v4303_v18  ;;  %v4348_v17 = vld [vmem:[%s13202_s12 + $0x898] sm:$0xff] }
 0x51b   : > { %7689 = vmatpush1.bf16.msra.mxu1 %v11057_v25  ;;  %7526 = vmatprep.subr.bf16.mxu0 %v11064_v24  ;;  %v11114_v25 = vcombine.high %v4300_v19, %v4304_v33  ;;  %v4307_v24 = vld [vmem:[%s13202_s12 + $0x750] sm:$0xff]  ;;  %v4352_v18 = vld [vmem:[%s13202_s12 + $0x8b8] sm:$0xff]  ;;  %v11153_v33 = vcombine.low %v4340_v10, %v4344_v57 }
 0x51c   : > { %7690 = vmatprep.subr.bf16.mxu1 %v11066_v47  ;;  %v4311_v47 = vld [vmem:[%s13202_s12 + $0x770] sm:$0xff] }
 0x51d   : > { %v11119_v38 = vcombine.low %v4307_v24, %v4311_v47 }
 0x51e   : > { %7527 = vmatpush1.bf16.msra.mxu0 %v11063_v27  ;;  %v11120_v27 = vcombine.high %v4307_v24, %v4311_v47  ;;  %v4356_v24 = vld [vmem:[%s13202_s12 + $0x8d8] sm:$0xff] }
 0x51f   : > { %7691 = vmatpush1.bf16.msra.mxu1 %v11065_v28  ;;  %7528 = vmatprep.subr.bf16.mxu0 %v11072_v29  ;;  %v11122_v28 = vcombine.high %v4308_v23, %v4312_v44  ;;  %v4315_v29 = vld [vmem:[%s13202_s12 + $0x790] sm:$0xff]  ;;  %v11161_v23 = vcombine.low %v4348_v17, %v4352_v18 }
 0x520   : > { %7692 = vmatprep.subr.bf16.mxu1 %v11074_v30  ;;  %v4319_v30 = vld [vmem:[%s13202_s12 + $0x7b0] sm:$0xff] }
 0x521   : > { %v11127_v1 = vcombine.low %v4315_v29, %v4319_v30 }
 0x522   : > { %7529 = vmatpush1.bf16.msra.mxu0 %v11071_v41  ;;  %v11128_v41 = vcombine.high %v4315_v29, %v4319_v30 }
 0x523   : > { %7693 = vmatpush1.bf16.msra.mxu1 %v11073_v48  ;;  %7530 = vmatprep.subr.bf16.mxu0 %v11080_v50  ;;  %v11130_v48 = vcombine.high %v4316_v36, %v4320_v37  ;;  %v4323_v50 = vld [vmem:[%s13202_s12 + $0x7d0] sm:$0xff] }
 0x524   : > { %7694 = vmatprep.subr.bf16.mxu1 %v11082_v51  ;;  %v4327_v51 = vld [vmem:[%s13202_s12 + $0x7f0] sm:$0xff] }
 0x525   : > { %v11135_v2 = vcombine.low %v4323_v50, %v4327_v51 }
 0x526   : > { %7531 = vmatpush1.bf16.msra.mxu0 %v11079_v5  ;;  %v11136_v5 = vcombine.high %v4323_v50, %v4327_v51 }
 0x527   : > { %7695 = vmatpush1.bf16.msra.mxu1 %v11081_v35  ;;  %7532 = vmatprep.subr.bf16.mxu0 %v11088_v6  ;;  %v11138_v35 = vcombine.high %v4324_v55, %v4328_v43  ;;  %v4331_v6 = vld [vmem:[%s13202_s12 + $0x810] sm:$0xff] }
 0x528   : > { %7696 = vmatprep.subr.bf16.mxu1 %v11090_v58  ;;  %v4335_v58 = vld [vmem:[%s13202_s12 + $0x830] sm:$0xff] }
 0x529   : > { %v11143_v9 = vcombine.low %v4331_v6, %v4335_v58 }
 0x52a   : > { %7533 = vmatpush1.bf16.msra.mxu0 %v11087_v63  ;;  %v11144_v63 = vcombine.high %v4331_v6, %v4335_v58 }
 0x52b   : > { %7697 = vmatpush1.bf16.msra.mxu1 %v11089_v0  ;;  %7534 = vmatprep.subr.bf16.mxu0 %v11096_v7  ;;  %v11146_v0 = vcombine.high %v4332_v60, %v4336_v54  ;;  %v4339_v7 = vld [vmem:[%s13202_s12 + $0x850] sm:$0xff] }
 0x52c   : > { %7698 = vmatprep.subr.bf16.mxu1 %v11098_v8  ;;  %v4343_v8 = vld [vmem:[%s13202_s12 + $0x870] sm:$0xff] }
 0x52d   : > { %v11151_v19 = vcombine.low %v4339_v7, %v4343_v8 }
 0x52e   : > { %7535 = vmatpush1.bf16.msra.mxu0 %v11095_v13  ;;  %v11152_v13 = vcombine.high %v4339_v7, %v4343_v8 }
 0x52f   : > { %7699 = vmatpush1.bf16.msra.mxu1 %v11097_v40  ;;  %7536 = vmatprep.subr.bf16.mxu0 %v11104_v16  ;;  %v4347_v40 = vld [vmem:[%s13202_s12 + $0x890] sm:$0xff] }
 0x530   : > { %7700 = vmatprep.subr.bf16.mxu1 %v11106_v34  ;;  %v4351_v16 = vld [vmem:[%s13202_s12 + $0x8b0] sm:$0xff]  ;;  %v11154_v34 = vcombine.high %v4340_v10, %v4344_v57 }
 0x531   : > { %v11159_v47 = vcombine.low %v4347_v40, %v4351_v16  ;;  %v4395_v57 = vld [vmem:[%s13202_s12 + $0xa10] sm:$0xff] }
 0x532   : > { %7537 = vmatpush1.bf16.msra.mxu0 %v11103_v20  ;;  %v11160_v20 = vcombine.high %v4347_v40, %v4351_v16  ;;  %v4400_v40 = vld [vmem:[%s13202_s12 + $0xa38] sm:$0xff] }
 0x533   : > { %7701 = vmatpush1.bf16.msra.mxu1 %v11105_v22  ;;  %7538 = vmatprep.subr.bf16.mxu0 %v11112_v42  ;;  %v11162_v22 = vcombine.high %v4348_v17, %v4352_v18  ;;  %v4355_v42 = vld [vmem:[%s13202_s12 + $0x8d0] sm:$0xff] }
 0x534   : > { %7702 = vmatprep.subr.bf16.mxu1 %v11114_v25  ;;  %v4359_v25 = vld [vmem:[%s13202_s12 + $0x8f0] sm:$0xff] }
 0x535   : > { %v11168_v44 = vcombine.high %v4355_v42, %v4359_v25  ;;  %v11167_v29 = vcombine.low %v4355_v42, %v4359_v25 }
 0x536   : > { %7539 = vmatpush1.bf16.msra.mxu0 %v11111_v45  ;;  %v4363_v45 = vld [vmem:[%s13202_s12 + $0x910] sm:$0xff] }
 0x537   : > { %7703 = vmatpush1.bf16.msra.mxu1 %v11113_v46  ;;  %7540 = vmatprep.subr.bf16.mxu0 %v11120_v27  ;;  %v4367_v46 = vld [vmem:[%s13202_s12 + $0x930] sm:$0xff]  ;;  %v4364_v27 = vld [vmem:[%s13202_s12 + $0x918] sm:$0xff] }
 0x538   : > { %7704 = vmatprep.subr.bf16.mxu1 %v11122_v28  ;;  %v4368_v28 = vld [vmem:[%s13202_s12 + $0x938] sm:$0xff]  ;;  %v11176_v36 = vcombine.high %v4363_v45, %v4367_v46  ;;  %v11175_v50 = vcombine.low %v4363_v45, %v4367_v46 }
 0x539   : > { %v11178_v37 = vcombine.high %v4364_v27, %v4368_v28  ;;  %v11177_v51 = vcombine.low %v4364_v27, %v4368_v28 }
 0x53a   : > { %7541 = vmatpush1.bf16.msra.mxu0 %v11119_v38  ;;  %v4371_v38 = vld [vmem:[%s13202_s12 + $0x950] sm:$0xff] }
 0x53b   : > { %7705 = vmatpush1.bf16.msra.mxu1 %v11121_v39  ;;  %7542 = vmatprep.subr.bf16.mxu0 %v11128_v41  ;;  %v4375_v39 = vld [vmem:[%s13202_s12 + $0x970] sm:$0xff]  ;;  %v4372_v41 = vld [vmem:[%s13202_s12 + $0x958] sm:$0xff] }
 0x53c   : > { %7706 = vmatprep.subr.bf16.mxu1 %v11130_v48  ;;  %v4376_v48 = vld [vmem:[%s13202_s12 + $0x978] sm:$0xff]  ;;  %v11184_v55 = vcombine.high %v4371_v38, %v4375_v39  ;;  %v11183_v6 = vcombine.low %v4371_v38, %v4375_v39 }
 0x53d   : > { %v11186_v43 = vcombine.high %v4372_v41, %v4376_v48  ;;  %v11185_v58 = vcombine.low %v4372_v41, %v4376_v48 }
 0x53e   : > { %7543 = vmatpush1.bf16.msra.mxu0 %v11127_v1  ;;  %v4379_v1 = vld [vmem:[%s13202_s12 + $0x990] sm:$0xff] }
 0x53f   : > { %7707 = vmatpush1.bf16.msra.mxu1 %v11129_v4  ;;  %7544 = vmatprep.subr.bf16.mxu0 %v11136_v5  ;;  %v4383_v4 = vld [vmem:[%s13202_s12 + $0x9b0] sm:$0xff]  ;;  %v4380_v5 = vld [vmem:[%s13202_s12 + $0x998] sm:$0xff] }
 0x540   : > { %7708 = vmatprep.subr.bf16.mxu1 %v11138_v35  ;;  %v4384_v35 = vld [vmem:[%s13202_s12 + $0x9b8] sm:$0xff]  ;;  %v11192_v60 = vcombine.high %v4379_v1, %v4383_v4  ;;  %v11191_v7 = vcombine.low %v4379_v1, %v4383_v4 }
 0x541   : > { %v11194_v54 = vcombine.high %v4380_v5, %v4384_v35  ;;  %v11193_v8 = vcombine.low %v4380_v5, %v4384_v35 }
 0x542   : > { %7545 = vmatpush1.bf16.msra.mxu0 %v11135_v2  ;;  %v4387_v2 = vld [vmem:[%s13202_s12 + $0x9d0] sm:$0xff] }
 0x543   : > { %7709 = vmatpush1.bf16.msra.mxu1 %v11137_v62  ;;  %7555 = vmatprep.subr.bf16.mxu0 %v11144_v63  ;;  %v4391_v62 = vld [vmem:[%s13202_s12 + $0x9f0] sm:$0xff]  ;;  %v4388_v63 = vld [vmem:[%s13202_s12 + $0x9d8] sm:$0xff] }
 0x544   : > { %7719 = vmatprep.subr.bf16.mxu1 %v11146_v0  ;;  %v4392_v0 = vld [vmem:[%s13202_s12 + $0x9f8] sm:$0xff]  ;;  %v11199_v16 = vcombine.low %v4387_v2, %v4391_v62 }
 0x545   : > { %7547 = vmatmul.mubr.bf16.vlgmr.msra.gmra.mrb[12].mxu0 %v13982_v53  ;;  %v11202_v10 = vcombine.high %v4388_v63, %v4392_v0 }
 0x546   : > { %7711 = vmatmul.mubr.bf16.vlgmr.msra.gmra.mrb[12].mxu1 %v13982_v53  ;;  %7556 = vmatpush1.bf16.msra.mxu0 %v11143_v9  ;;  %v4360_v53 = vld [vmem:[%s13202_s12 + $0x8f8] sm:$0xff]  ;;  %v11200_v9 = vcombine.high %v4387_v2, %v4391_v62 }
 0x547   : > { %7587 = vmatprep.mubr.bf16.mxu0 %v13984_v49  ;;  %7720 = vmatpush1.bf16.msra.mxu1 %v11145_v11  ;;  %v11169_v30 = vcombine.low %v4356_v24, %v4360_v53  ;;  %v4399_v11 = vld [vmem:[%s13202_s12 + $0xa30] sm:$0xff] }
 0x548   : > { %7751 = vmatprep.mubr.bf16.mxu1 %v13984_v49  ;;  %7557 = vmatprep.subr.bf16.mxu0 %v11152_v13  ;;  %v11170_v49 = vcombine.high %v4356_v24, %v4360_v53  ;;  %v4396_v13 = vld [vmem:[%s13202_s12 + $0xa18] sm:$0xff]  ;;  %v11208_v17 = vcombine.high %v4395_v57, %v4399_v11  ;;  %v11207_v42 = vcombine.low %v4395_v57, %v4399_v11 }
 0x549   : > { %7721 = vmatprep.subr.bf16.mxu1 %v11154_v34  ;;  %v11201_v34 = vcombine.low %v4388_v63, %v4392_v0  ;;  %v11210_v18 = vcombine.high %v4396_v13, %v4400_v40  ;;  %v11209_v25 = vcombine.low %v4396_v13, %v4400_v40 }
 0x54a   : > { %7558 = vmatpush1.bf16.msra.mxu0 %v11151_v19  ;;  %v4403_v19 = vld [vmem:[%s13202_s12 + $0xa50] sm:$0xff] }
 0x54b   : > { %7722 = vmatpush1.bf16.msra.mxu1 %v11153_v33  ;;  %7559 = vmatprep.subr.bf16.mxu0 %v11160_v20  ;;  %v4407_v33 = vld [vmem:[%s13202_s12 + $0xa70] sm:$0xff]  ;;  %v4404_v20 = vld [vmem:[%s13202_s12 + $0xa58] sm:$0xff] }
 0x54c   : > { %7723 = vmatprep.subr.bf16.mxu1 %v11162_v22  ;;  %v4408_v22 = vld [vmem:[%s13202_s12 + $0xa78] sm:$0xff]  ;;  %v11216_v24 = vcombine.high %v4403_v19, %v4407_v33  ;;  %v11215_v45 = vcombine.low %v4403_v19, %v4407_v33 }
 0x54d   : > { %v11218_v53 = vcombine.high %v4404_v20, %v4408_v22  ;;  %v11217_v46 = vcombine.low %v4404_v20, %v4408_v22 }
 0x54e   : > { %7560 = vmatpush1.bf16.msra.mxu0 %v11159_v47  ;;  %v4411_v47 = vld [vmem:[%s13202_s12 + $0xa90] sm:$0xff] }
 0x54f   : > { %7724 = vmatpush1.bf16.msra.mxu1 %v11161_v23  ;;  %7561 = vmatprep.subr.bf16.mxu0 %v11168_v44  ;;  %v4415_v23 = vld [vmem:[%s13202_s12 + $0xab0] sm:$0xff]  ;;  %v4412_v44 = vld [vmem:[%s13202_s12 + $0xa98] sm:$0xff] }
 0x550   : > { %7725 = vmatprep.subr.bf16.mxu1 %v11170_v49  ;;  %v4416_v49 = vld [vmem:[%s13202_s12 + $0xab8] sm:$0xff]  ;;  %v11224_v27 = vcombine.high %v4411_v47, %v4415_v23  ;;  %v11223_v38 = vcombine.low %v4411_v47, %v4415_v23 }
 0x551   : > { %v11226_v28 = vcombine.high %v4412_v44, %v4416_v49  ;;  %v11225_v39 = vcombine.low %v4412_v44, %v4416_v49 }
 0x552   : > { %7562 = vmatpush1.bf16.msra.mxu0 %v11167_v29  ;;  %v4419_v29 = vld [vmem:[%s13202_s12 + $0xad0] sm:$0xff] }
 0x553   : > { %7726 = vmatpush1.bf16.msra.mxu1 %v11169_v30  ;;  %7563 = vmatprep.subr.bf16.mxu0 %v11176_v36  ;;  %v4423_v30 = vld [vmem:[%s13202_s12 + $0xaf0] sm:$0xff]  ;;  %v4420_v36 = vld [vmem:[%s13202_s12 + $0xad8] sm:$0xff] }
 0x554   : > { %7727 = vmatprep.subr.bf16.mxu1 %v11178_v37  ;;  %v4424_v37 = vld [vmem:[%s13202_s12 + $0xaf8] sm:$0xff]  ;;  %v11232_v41 = vcombine.high %v4419_v29, %v4423_v30  ;;  %v11231_v1 = vcombine.low %v4419_v29, %v4423_v30 }
 0x555   : > { %v11234_v48 = vcombine.high %v4420_v36, %v4424_v37  ;;  %v11233_v4 = vcombine.low %v4420_v36, %v4424_v37  ;;  %v4472_v29 = vld [vmem:[%s13202_s12 + $0xc78] sm:$0xff]  ;;  %v4475_v37 = vld [vmem:[%s13202_s12 + $0xc90] sm:$0xff] }
 0x556   : > { %7564 = vmatpush1.bf16.msra.mxu0 %v11175_v50  ;;  %v4427_v50 = vld [vmem:[%s13202_s12 + $0xb10] sm:$0xff] }
 0x557   : > { %7728 = vmatpush1.bf16.msra.mxu1 %v11177_v51  ;;  %7565 = vmatprep.subr.bf16.mxu0 %v11184_v55  ;;  %v4431_v51 = vld [vmem:[%s13202_s12 + $0xb30] sm:$0xff]  ;;  %v4428_v55 = vld [vmem:[%s13202_s12 + $0xb18] sm:$0xff] }
 0x558   : > { %7729 = vmatprep.subr.bf16.mxu1 %v11186_v43  ;;  %v4432_v43 = vld [vmem:[%s13202_s12 + $0xb38] sm:$0xff]  ;;  %v11240_v5 = vcombine.high %v4427_v50, %v4431_v51  ;;  %v11239_v2 = vcombine.low %v4427_v50, %v4431_v51 }
 0x559   : > { %v11242_v35 = vcombine.high %v4428_v55, %v4432_v43  ;;  %v11241_v62 = vcombine.low %v4428_v55, %v4432_v43 }
 0x55a   : > { %7566 = vmatpush1.bf16.msra.mxu0 %v11183_v6  ;;  %v4435_v6 = vld [vmem:[%s13202_s12 + $0xb50] sm:$0xff] }
 0x55b   : > { %7730 = vmatpush1.bf16.msra.mxu1 %v11185_v58  ;;  %7567 = vmatprep.subr.bf16.mxu0 %v11192_v60  ;;  %v4439_v58 = vld [vmem:[%s13202_s12 + $0xb70] sm:$0xff]  ;;  %v4436_v60 = vld [vmem:[%s13202_s12 + $0xb58] sm:$0xff] }
 0x55c   : > { %7731 = vmatprep.subr.bf16.mxu1 %v11194_v54  ;;  %v4440_v54 = vld [vmem:[%s13202_s12 + $0xb78] sm:$0xff]  ;;  %v11248_v63 = vcombine.high %v4435_v6, %v4439_v58  ;;  %v11247_v57 = vcombine.low %v4435_v6, %v4439_v58 }
 0x55d   : > { %v11250_v0 = vcombine.high %v4436_v60, %v4440_v54  ;;  %v11249_v11 = vcombine.low %v4436_v60, %v4440_v54  ;;  %v4491_v60 = vld [vmem:[%s13202_s12 + $0xd10] sm:$0xff] }
 0x55e   : > { %7568 = vmatpush1.bf16.msra.mxu0 %v11191_v7  ;;  %v4443_v7 = vld [vmem:[%s13202_s12 + $0xb90] sm:$0xff] }
 0x55f   : > { %7732 = vmatpush1.bf16.msra.mxu1 %v11193_v8  ;;  %7569 = vmatprep.subr.bf16.mxu0 %v11200_v9  ;;  %v4447_v8 = vld [vmem:[%s13202_s12 + $0xbb0] sm:$0xff]  ;;  %v4444_v9 = vld [vmem:[%s13202_s12 + $0xb98] sm:$0xff] }
 0x560   : > { %7733 = vmatprep.subr.bf16.mxu1 %v11202_v10  ;;  %v4448_v10 = vld [vmem:[%s13202_s12 + $0xbb8] sm:$0xff]  ;;  %v11256_v13 = vcombine.high %v4443_v7, %v4447_v8  ;;  %v11255_v19 = vcombine.low %v4443_v7, %v4447_v8  ;;  %v4495_v54 = vld [vmem:[%s13202_s12 + $0xd30] sm:$0xff] }
 0x561   : > { %v11258_v40 = vcombine.high %v4444_v9, %v4448_v10  ;;  %v11257_v33 = vcombine.low %v4444_v9, %v4448_v10  ;;  %v11304_v7 = vcombine.high %v4491_v60, %v4495_v54  ;;  %v4499_v9 = vld [vmem:[%s13202_s12 + $0xd50] sm:$0xff] }
 0x562   : > { %7570 = vmatpush1.bf16.msra.mxu0 %v11199_v16  ;;  %v4451_v16 = vld [vmem:[%s13202_s12 + $0xbd0] sm:$0xff] }
 0x563   : > { %7734 = vmatpush1.bf16.msra.mxu1 %v11201_v34  ;;  %7571 = vmatprep.subr.bf16.mxu0 %v11208_v17  ;;  %v4455_v34 = vld [vmem:[%s13202_s12 + $0xbf0] sm:$0xff]  ;;  %v4452_v17 = vld [vmem:[%s13202_s12 + $0xbd8] sm:$0xff] }
 0x564   : > { %7735 = vmatprep.subr.bf16.mxu1 %v11210_v18  ;;  %v4456_v18 = vld [vmem:[%s13202_s12 + $0xbf8] sm:$0xff]  ;;  %v11264_v20 = vcombine.high %v4451_v16, %v4455_v34  ;;  %v11263_v47 = vcombine.low %v4451_v16, %v4455_v34  ;;  %v4503_v10 = vld [vmem:[%s13202_s12 + $0xd70] sm:$0xff] }
 0x565   : > { %v11266_v22 = vcombine.high %v4452_v17, %v4456_v18  ;;  %v11265_v23 = vcombine.low %v4452_v17, %v4456_v18  ;;  %v11312_v16 = vcombine.high %v4499_v9, %v4503_v10  ;;  %v4507_v17 = vld [vmem:[%s13202_s12 + $0xd90] sm:$0xff] }
 0x566   : > { %7572 = vmatpush1.bf16.msra.mxu0 %v11207_v42  ;;  %v4459_v42 = vld [vmem:[%s13202_s12 + $0xc10] sm:$0xff] }
 0x567   : > { %7736 = vmatpush1.bf16.msra.mxu1 %v11209_v25  ;;  %7573 = vmatprep.subr.bf16.mxu0 %v11216_v24  ;;  %v4463_v25 = vld [vmem:[%s13202_s12 + $0xc30] sm:$0xff]  ;;  %v4460_v24 = vld [vmem:[%s13202_s12 + $0xc18] sm:$0xff] }
 0x568   : > { %7737 = vmatprep.subr.bf16.mxu1 %v11218_v53  ;;  %v4464_v53 = vld [vmem:[%s13202_s12 + $0xc38] sm:$0xff]  ;;  %v11272_v44 = vcombine.high %v4459_v42, %v4463_v25  ;;  %v4511_v18 = vld [vmem:[%s13202_s12 + $0xdb0] sm:$0xff] }
 0x569   : > { %v11274_v49 = vcombine.high %v4460_v24, %v4464_v53  ;;  %v11273_v30 = vcombine.low %v4460_v24, %v4464_v53  ;;  %v4515_v53 = vld [vmem:[%s13202_s12 + $0xdd0] sm:$0xff] }
 0x56a   : > { %7574 = vmatpush1.bf16.msra.mxu0 %v11215_v45  ;;  %v4467_v45 = vld [vmem:[%s13202_s12 + $0xc50] sm:$0xff] }
 0x56b   : > { %7738 = vmatpush1.bf16.msra.mxu1 %v11217_v46  ;;  %7575 = vmatprep.subr.bf16.mxu0 %v11224_v27  ;;  %v4471_v46 = vld [vmem:[%s13202_s12 + $0xc70] sm:$0xff]  ;;  %v11271_v27 = vcombine.low %v4459_v42, %v4463_v25  ;;  %v11320_v42 = vcombine.high %v4507_v17, %v4511_v18 }
 0x56c   : > { %7739 = vmatprep.subr.bf16.mxu1 %v11226_v28  ;;  %v4468_v28 = vld [vmem:[%s13202_s12 + $0xc58] sm:$0xff]  ;;  %v11280_v36 = vcombine.high %v4467_v45, %v4471_v46  ;;  %v11279_v50 = vcombine.low %v4467_v45, %v4471_v46 }
 0x56d   : > { %v11281_v51 = vcombine.low %v4468_v28, %v4472_v29  ;;  %v4516_v45 = vld [vmem:[%s13202_s12 + $0xdd8] sm:$0xff] }
 0x56e   : > { %7576 = vmatpush1.bf16.msra.mxu0 %v11223_v38  ;;  %v4479_v38 = vld [vmem:[%s13202_s12 + $0xcb0] sm:$0xff]  ;;  %v4520_v46 = vld [vmem:[%s13202_s12 + $0xdf8] sm:$0xff] }
 0x56f   : > { %7740 = vmatpush1.bf16.msra.mxu1 %v11225_v39  ;;  %7577 = vmatprep.subr.bf16.mxu0 %v11232_v41  ;;  %v11282_v39 = vcombine.high %v4468_v28, %v4472_v29  ;;  %v4476_v41 = vld [vmem:[%s13202_s12 + $0xc98] sm:$0xff]  ;;  %v11288_v55 = vcombine.high %v4475_v37, %v4479_v38 }
 0x570   : > { %7741 = vmatprep.subr.bf16.mxu1 %v11234_v48  ;;  %v4480_v48 = vld [vmem:[%s13202_s12 + $0xcb8] sm:$0xff] }
 0x571   : > { %v11290_v43 = vcombine.high %v4476_v41, %v4480_v48  ;;  %v11289_v6 = vcombine.low %v4476_v41, %v4480_v48 }
 0x572   : > { %7578 = vmatpush1.bf16.msra.mxu0 %v11231_v1  ;;  %v4483_v1 = vld [vmem:[%s13202_s12 + $0xcd0] sm:$0xff] }
 0x573   : > { %7742 = vmatpush1.bf16.msra.mxu1 %v11233_v4  ;;  %7579 = vmatprep.subr.bf16.mxu0 %v11240_v5  ;;  %v4487_v4 = vld [vmem:[%s13202_s12 + $0xcf0] sm:$0xff]  ;;  %v4484_v5 = vld [vmem:[%s13202_s12 + $0xcd8] sm:$0xff] }
 0x574   : > { %7743 = vmatprep.subr.bf16.mxu1 %v11242_v35  ;;  %v11287_v35 = vcombine.low %v4475_v37, %v4479_v38  ;;  %v11296_v58 = vcombine.high %v4483_v1, %v4487_v4 }
 0x576   : > { %7580 = vmatpush1.bf16.msra.mxu0 %v11239_v2  ;;  %v4492_v2 = vld [vmem:[%s13202_s12 + $0xd18] sm:$0xff] }
 0x577   : > { %7744 = vmatpush1.bf16.msra.mxu1 %v11241_v62  ;;  %7581 = vmatprep.subr.bf16.mxu0 %v11248_v63  ;;  %v4496_v62 = vld [vmem:[%s13202_s12 + $0xd38] sm:$0xff]  ;;  %v11295_v63 = vcombine.low %v4483_v1, %v4487_v4  ;;  %v11330_v1 = vcombine.high %v4516_v45, %v4520_v46  ;;  %v4523_v4 = vld [vmem:[%s13202_s12 + $0xe10] sm:$0xff] }
 0x578   : > { %7745 = vmatprep.subr.bf16.mxu1 %v11250_v0  ;;  %v11306_v8 = vcombine.high %v4492_v2, %v4496_v62 }
 0x57a   : > { %7582 = vmatpush1.bf16.msra.mxu0 %v11247_v57  ;;  %v4500_v57 = vld [vmem:[%s13202_s12 + $0xd58] sm:$0xff] }
 0x57b   : > { %7746 = vmatpush1.bf16.msra.mxu1 %v11249_v11  ;;  %7583 = vmatprep.subr.bf16.mxu0 %v11256_v13  ;;  %v4504_v11 = vld [vmem:[%s13202_s12 + $0xd78] sm:$0xff]  ;;  %v11303_v13 = vcombine.low %v4491_v60, %v4495_v54 }
 0x57c   : > { %7747 = vmatprep.subr.bf16.mxu1 %v11258_v40  ;;  %v11305_v40 = vcombine.low %v4492_v2, %v4496_v62  ;;  %v11314_v34 = vcombine.high %v4500_v57, %v4504_v11 }
 0x57e   : > { %7584 = vmatpush1.bf16.msra.mxu0 %v11255_v19  ;;  %v4508_v19 = vld [vmem:[%s13202_s12 + $0xd98] sm:$0xff] }
 0x57f   : > { %7748 = vmatpush1.bf16.msra.mxu1 %v11257_v33  ;;  %7585 = vmatprep.subr.bf16.mxu0 %v11264_v20  ;;  %v4512_v33 = vld [vmem:[%s13202_s12 + $0xdb8] sm:$0xff]  ;;  %v11311_v20 = vcombine.low %v4499_v9, %v4503_v10  ;;  %v4531_v10 = vld [vmem:[%s13202_s12 + $0xe50] sm:$0xff] }
 0x580   : > { %7749 = vmatprep.subr.bf16.mxu1 %v11266_v22  ;;  %v11313_v22 = vcombine.low %v4500_v57, %v4504_v11  ;;  %v11322_v24 = vcombine.high %v4508_v19, %v4512_v33  ;;  %v11321_v48 = vcombine.low %v4508_v19, %v4512_v33  ;;  %v4535_v57 = vld [vmem:[%s13202_s12 + $0xe70] sm:$0xff] }
 0x582   : > { %7586 = vmatpush1.bf16.msra.mxu0 %v11263_v47  ;;  %v4519_v47 = vld [vmem:[%s13202_s12 + $0xdf0] sm:$0xff] }
 0x583   : > { %7750 = vmatpush1.bf16.msra.mxu1 %v11265_v23  ;;  %7596 = vmatprep.subr.bf16.mxu0 %v11272_v44  ;;  %v11327_v54 = vcombine.low %v4515_v53, %v4519_v47 }
 0x584   : > { %7760 = vmatprep.subr.bf16.mxu1 %v11274_v49 }
 0x585   : > { %7588 = vmatmul.mubr.bf16.vlgmr.msra.gmra.mrb[12].mxu0 %v14056_v12 }
 0x586   : > { %7752 = vmatmul.mubr.bf16.vlgmr.msra.gmra.mrb[12].mxu1 %v14056_v12  ;;  %7597 = vmatpush1.bf16.msra.mxu0 %v11271_v27  ;;  %v4488_v12 = vld [vmem:[%s13202_s12 + $0xcf8] sm:$0xff] }
 0x587   : > { %7628 = vmatprep.mubr.bf16.mxu0 %v14061_v21  ;;  %7761 = vmatpush1.bf16.msra.mxu1 %v11273_v30  ;;  %v11297_v0 = vcombine.low %v4484_v5, %v4488_v12 }
 0x588   : > { %7792 = vmatprep.mubr.bf16.mxu1 %v14061_v21  ;;  %7598 = vmatprep.subr.bf16.mxu0 %v11280_v36  ;;  %v11298_v21 = vcombine.high %v4484_v5, %v4488_v12  ;;  %v11319_v36 = vcombine.low %v4507_v17, %v4511_v18  ;;  %v4527_v5 = vld [vmem:[%s13202_s12 + $0xe30] sm:$0xff] }
 0x589   : > { %7762 = vmatprep.subr.bf16.mxu1 %v11282_v39  ;;  %v11335_v18 = vcombine.low %v4523_v4, %v4527_v5 }
 0x58a   : > { %7599 = vmatpush1.bf16.msra.mxu0 %v11279_v50  ;;  %v11328_v50 = vcombine.high %v4515_v53, %v4519_v47  ;;  %v4539_v47 = vld [vmem:[%s13202_s12 + $0xe90] sm:$0xff] }
 0x58b   : > { %7763 = vmatpush1.bf16.msra.mxu1 %v11281_v51  ;;  %7600 = vmatprep.subr.bf16.mxu0 %v11288_v55 }
 0x58c   : > { %7764 = vmatprep.subr.bf16.mxu1 %v11290_v43 }
 0x58e   : > { %7601 = vmatpush1.bf16.msra.mxu0 %v11287_v35 }
 0x58f   : > { %7765 = vmatpush1.bf16.msra.mxu1 %v11289_v6  ;;  %7602 = vmatprep.subr.bf16.mxu0 %v11296_v58  ;;  %v4524_v6 = vld [vmem:[%s13202_s12 + $0xe18] sm:$0xff] }
 0x590   : > { %7766 = vmatprep.subr.bf16.mxu1 %v11298_v21  ;;  %v4528_v58 = vld [vmem:[%s13202_s12 + $0xe38] sm:$0xff] }
 0x591   : > { %v11338_v9 = vcombine.high %v4524_v6, %v4528_v58 }
 0x592   : > { %7603 = vmatpush1.bf16.msra.mxu0 %v11295_v63  ;;  %v11329_v63 = vcombine.low %v4516_v45, %v4520_v46 }
 0x593   : > { %7767 = vmatpush1.bf16.msra.mxu1 %v11297_v0  ;;  %7604 = vmatprep.subr.bf16.mxu0 %v11304_v7  ;;  %v11336_v0 = vcombine.high %v4523_v4, %v4527_v5  ;;  %v4548_v5 = vld [vmem:[%s13202_s12 + $0xed8] sm:$0xff] }
 0x594   : > { %7768 = vmatprep.subr.bf16.mxu1 %v11306_v8 }
 0x596   : > { %7605 = vmatpush1.bf16.msra.mxu0 %v11303_v13 }
 0x597   : > { %7769 = vmatpush1.bf16.msra.mxu1 %v11305_v40  ;;  %7606 = vmatprep.subr.bf16.mxu0 %v11312_v16  ;;  %v4532_v40 = vld [vmem:[%s13202_s12 + $0xe58] sm:$0xff] }
 0x598   : > { %v14359_v25 = vpop.f32.mrb[8].mxu0  ;;  %7770 = vmatprep.subr.bf16.mxu1 %v11314_v34  ;;  %v4536_v16 = vld [vmem:[%s13202_s12 + $0xe78] sm:$0xff] }
 0x599   : > { %v7801_v23 = vrot.slane %v14359_v25, 4  ;;  %v14364_v44 = vpop.f32.mrb[8].mxu1  ;;  %v14366_v49 = vpop.f32.mrb[9].mxu0  ;;  %v11346_v53 = vcombine.high %v4532_v40, %v4536_v16 }
 0x59a   : > { %v7813_v27 = vrot.slane %v14364_v44, 4  ;;  %v7807_v28 = vrot.slane %v14366_v49, 4  ;;  %v14372_v29 = vpop.f32.mrb[9].mxu1  ;;  %v7306_v30 = vpop.f32.mrb[10].mxu0  ;;  %7607 = vmatpush1.bf16.msra.mxu0 %v11311_v20  ;;  %v11337_v20 = vcombine.low %v4524_v6, %v4528_v58 }
 0x59b   : > { %v7802_v37 = vadd.f32 %v7801_v23, %v14359_v25  ;;  %v7819_v38 = vrot.slane %v14372_v29, 4  ;;  %v7470_v39 = vpop.f32.mrb[10].mxu1  ;;  %7771 = vmatpush1.bf16.msra.mxu1 %v11313_v22  ;;  %v7307_v41 = vpop.f32.mrb[11].mxu0  ;;  %7608 = vmatprep.subr.bf16.mxu0 %v11320_v42  ;;  %v11344_v22 = vcombine.high %v4531_v10, %v4535_v57  ;;  %v4543_v23 = vld [vmem:[%s13202_s12 + $0xeb0] sm:$0xff] }
 0x59c   : > { %v7814_v51 = vadd.f32 %v7813_v27, %v14364_v44  ;;  %v7808_v55 = vadd.f32 %v7807_v28, %v14366_v49  ;;  %v7471_v43 = vpop.f32.mrb[11].mxu1  ;;  %7772 = vmatprep.subr.bf16.mxu1 %v11322_v24  ;;  %v4540_v27 = vld [vmem:[%s13202_s12 + $0xe98] sm:$0xff]  ;;  %v11345_v41 = vcombine.low %v4532_v40, %v4536_v16 }
 0x59d   : > { %v7803_v12 = vrot.slane %v7802_v37, 2  ;;  %v7820_v35 = vadd.f32 %v7819_v38, %v14372_v29  ;;  %v4544_v28 = vld [vmem:[%s13202_s12 + $0xeb8] sm:$0xff]  ;;  %v4547_v43 = vld [vmem:[%s13202_s12 + $0xed0] sm:$0xff] }
 0x59e   : > { %v7815_v21 = vrot.slane %v7814_v51, 2  ;;  %v7809_v60 = vrot.slane %v7808_v55, 2  ;;  %7609 = vmatpush1.bf16.msra.mxu0 %v11319_v36 }
 0x59f   : > { %v7804_v2 = vadd.f32 %v7803_v12, %v7802_v37  ;;  %v7821_v62 = vrot.slane %v7820_v35, 2  ;;  %7773 = vmatpush1.bf16.msra.mxu1 %v11321_v48  ;;  %7610 = vmatprep.subr.bf16.mxu0 %v11328_v50  ;;  %v11343_v37 = vcombine.low %v4531_v10, %v4535_v57  ;;  %v11352_v48 = vcombine.high %v4539_v47, %v4543_v23  ;;  %v4552_v12 = vld [vmem:[%s13202_s12 + $0xef8] sm:$0xff] }
 0x5a0   : > { %v7816_v7 = vadd.f32 %v7815_v21, %v7814_v51  ;;  %v7810_v8 = vadd.f32 %v7809_v60, %v7808_v55  ;;  %7774 = vmatprep.subr.bf16.mxu1 %v11330_v1  ;;  %v11354_v55 = vcombine.high %v4540_v27, %v4544_v28  ;;  %v4551_v1 = vld [vmem:[%s13202_s12 + $0xef0] sm:$0xff]  ;;  %v11361_v16 = vcombine.low %v4548_v5, %v4552_v12 }
 0x5a1   : > { %v7805_v11 = vrot.slane %v7804_v2, 1  ;;  %v7822_v13 = vadd.f32 %v7821_v62, %v7820_v35  ;;  %v11351_v35 = vcombine.low %v4539_v47, %v4543_v23  ;;  %v11360_v21 = vcombine.high %v4547_v43, %v4551_v1  ;;  %v4555_v62 = vld [vmem:[%s13202_s12 + $0xf10] sm:$0xff] }
 0x5a2   : > { %v7817_v34 = vrot.slane %v7816_v7, 1  ;;  %v7811_v17 = vrot.slane %v7810_v8, 1  ;;  %7611 = vmatpush1.bf16.msra.mxu0 %v11327_v54 }
 0x5a3   : > { %v7806_v19 = vadd.f32 %v7805_v11, %v7804_v2  ;;  %v7823_v33 = vrot.slane %v7822_v13, 1  ;;  %7775 = vmatpush1.bf16.msra.mxu1 %v11329_v63  ;;  %7612 = vmatprep.subr.bf16.mxu0 %v11336_v0  ;;  %v11362_v2 = vcombine.high %v4548_v5, %v4552_v12  ;;  %v4559_v63 = vld [vmem:[%s13202_s12 + $0xf30] sm:$0xff]  ;;  %v11359_v11 = vcombine.low %v4547_v43, %v4551_v1  ;;  %v4572_v1 = vld [vmem:[%s13202_s12 + $0xf98] sm:$0xff] }
 0x5a4   : > { %v7818_v42 = vadd.f32 %v7817_v34, %v7816_v7  ;;  %v7812_v24 = vadd.f32 %v7811_v17, %v7810_v8  ;;  %7776 = vmatprep.subr.bf16.mxu1 %v11338_v9  ;;  %v4556_v8 = vld [vmem:[%s13202_s12 + $0xf18] sm:$0xff]  ;;  %v11368_v34 = vcombine.high %v4555_v62, %v4559_v63 }
 0x5a5   : > { %v7849_v45 = vmul.f32 0.125, %v7806_v19  ;;  %v7824_v46 = vadd.f32 %v7823_v33, %v7822_v13  ;;  %v4560_v9 = vld [vmem:[%s13202_s12 + $0xf38] sm:$0xff]  ;;  %v4563_v33 = vld [vmem:[%s13202_s12 + $0xf50] sm:$0xff] }
 0x5a6   : > { %v7851_v30 = vmul.f32 0.125, %v7818_v42  ;;  %v7850_v36 = vmul.f32 0.125, %v7812_v24  ;;  %7613 = vmatpush1.bf16.msra.mxu0 %v11335_v18  ;;  %v11370_v19 = vcombine.high %v4556_v8, %v4560_v9  ;;  %v4564_v24 = vld [vmem:[%s13202_s12 + $0xf58] sm:$0xff] }
 0x5a7   : > { %v14392_v38 = vsub.f32 %v14359_v25, %v7849_v45  ;;  %v7852_v39 = vmul.f32 0.125, %v7824_v46  ;;  %7777 = vmatpush1.bf16.msra.mxu1 %v11337_v20  ;;  %7614 = vmatprep.subr.bf16.mxu0 %v11344_v22  ;;  %v4567_v20 = vld [vmem:[%s13202_s12 + $0xf70] sm:$0xff]  ;;  %v11367_v45 = vcombine.low %v4555_v62, %v4559_v63 }
 0x5a8   : > { %v14395_v50 = vsub.f32 %v14364_v44, %v7851_v30  ;;  %v14398_v51 = vsub.f32 %v14366_v49, %v7850_v36  ;;  %7778 = vmatprep.subr.bf16.mxu1 %v11346_v53  ;;  %v4568_v53 = vld [vmem:[%s13202_s12 + $0xf78] sm:$0xff]  ;;  %v11376_v30 = vcombine.high %v4563_v33, %v4567_v20 }
 0x5a9   : > { %v7865_v4 = vmul.f32 %v14392_v38, %v14392_v38  ;;  %v14405_v25 = vsub.f32 %v14372_v29, %v7852_v39  ;;  %v11353_v29 = vcombine.low %v4540_v27, %v4544_v28  ;;  %v11369_v28 = vcombine.low %v4556_v8, %v4560_v9 }
 0x5aa   : > { %v7867_v44 = vmul.f32 %v14395_v50, %v14395_v50  ;;  %v7866_v49 = vmul.f32 %v14398_v51, %v14398_v51  ;;  %7615 = vmatpush1.bf16.msra.mxu0 %v11343_v37  ;;  %v11378_v39 = vcombine.high %v4564_v24, %v4568_v53 }
 0x5ab   : > { %v7873_v6 = vrot.slane %v7865_v4, 4  ;;  %v7868_v58 = vmul.f32 %v14405_v25, %v14405_v25  ;;  %7779 = vmatpush1.bf16.msra.mxu1 %v11345_v41  ;;  %7616 = vmatprep.subr.bf16.mxu0 %v11352_v48  ;;  %v4571_v41 = vld [vmem:[%s13202_s12 + $0xf90] sm:$0xff] }
 0x5ac   : > { %v7885_v60 = vrot.slane %v7867_v44, 4  ;;  %v7879_v54 = vrot.slane %v7866_v49, 4  ;;  %7780 = vmatprep.subr.bf16.mxu1 %v11354_v55  ;;  %v4575_v48 = vld [vmem:[%s13202_s12 + $0xfb0] sm:$0xff] }
 0x5ad   : > { %v7874_v0 = vadd.f32 %v7873_v6, %v7865_v4  ;;  %v7891_v7 = vrot.slane %v7868_v58, 4  ;;  %v4576_v4 = vld [vmem:[%s13202_s12 + $0xfb8] sm:$0xff]  ;;  %v11377_v6 = vcombine.low %v4564_v24, %v4568_v53 }
 0x5ae   : > { %v7886_v10 = vadd.f32 %v7885_v60, %v7867_v44  ;;  %v7880_v57 = vadd.f32 %v7879_v54, %v7866_v49  ;;  %7617 = vmatpush1.bf16.msra.mxu0 %v11351_v35  ;;  %v11375_v44 = vcombine.low %v4563_v33, %v4567_v20  ;;  %v11386_v60 = vcombine.high %v4572_v1, %v4576_v4  ;;  %v4579_v54 = vld [vmem:[%s13202_s12 + $0xfd0] sm:$0xff] }
 0x5af   : > { %v7875_v13 = vrot.slane %v7874_v0, 2  ;;  %v7892_v40 = vadd.f32 %v7891_v7, %v7868_v58  ;;  %7781 = vmatpush1.bf16.msra.mxu1 %v11353_v29  ;;  %7618 = vmatprep.subr.bf16.mxu0 %v11360_v21  ;;  %v11384_v58 = vcombine.high %v4571_v41, %v4575_v48  ;;  %v4584_v7 = vld [vmem:[%s13202_s12 + $0xff8] sm:$0xff] }
 0x5b0   : > { %v7887_v17 = vrot.slane %v7886_v10, 2  ;;  %v7881_v18 = vrot.slane %v7880_v57, 2  ;;  %7782 = vmatprep.subr.bf16.mxu1 %v11362_v2  ;;  %v4583_v2 = vld [vmem:[%s13202_s12 + $0xff0] sm:$0xff] }
 0x5b1   : > { %v7876_v22 = vadd.f32 %v7875_v13, %v7874_v0  ;;  %v7893_v42 = vrot.slane %v7892_v40, 2  ;;  %v4580_v0 = vld [vmem:[%s13202_s12 + $0xfd8] sm:$0xff]  ;;  %v11392_v13 = vcombine.high %v4579_v54, %v4583_v2  ;;  %s12726_s12 = smov [#allocation19]  }
 0x5b2   : > { %v7888_v47 = vadd.f32 %v7887_v17, %v7886_v10  ;;  %v7882_v23 = vadd.f32 %v7881_v18, %v7880_v57  ;;  %7619 = vmatpush1.bf16.msra.mxu0 %v11359_v11  ;;  %v11383_v10 = vcombine.low %v4571_v41, %v4575_v48  ;;  %v11385_v11 = vcombine.low %v4572_v1, %v4576_v4  ;;  %v11910_v41 = vld [vmem:[%s13211_s25 + $0x48] ss:$16 sps:$4 sm:$0xff]   ;;  %v11915_v48 = vld [vmem:[%s13211_s25 + $0x64] ss:$16 sps:$4 sm:$0xff]   ;;  %s12626_s1 = sshll.u32 %s12726_s12, 4  ;;  %s12627_s1 = int_to_ptr.vmem [resolvable:$false] %s12626_s1 }
 0x5b3   : > { %v7877_v46 = vrot.slane %v7876_v22, 1  ;;  %v7894_v27 = vadd.f32 %v7893_v42, %v7892_v40  ;;  %7783 = vmatpush1.bf16.msra.mxu1 %v11361_v16  ;;  %7620 = vmatprep.subr.bf16.mxu0 %v11368_v34  ;;  %v11394_v40 = vcombine.high %v4580_v0, %v4584_v7  ;;  %v11391_v16 = vcombine.low %v4579_v54, %v4583_v2  ;;  %v11916_v1 = vld [vmem:[%s13211_s25 + $0x68] ss:$16 sps:$4 sm:$0xff]   ;;  %v11921_v4 = vld [vmem:[%s13211_s25 + $0x84] ss:$16 sps:$4 sm:$0xff]   ;;  %p12629_p0 = scmp.lt.s32.totalorder %s14798_s10, %s12627_s1 }
 0x5b4   : > { %v7889_v36 = vrot.slane %v7888_v47, 1  ;;  %v7883_v37 = vrot.slane %v7882_v23, 1  ;;  %7784 = vmatprep.subr.bf16.mxu1 %v11370_v19  ;;  %v11393_v34 = vcombine.low %v4580_v0, %v4584_v7  ;;  %v11934_v54 = vld [vmem:[%s13211_s25 + $0xc8] ss:$16 sps:$4 sm:$0xff]   ;;  %v11939_v2 = vld [vmem:[%s13211_s25 + $0xe4] ss:$16 sps:$4 sm:$0xff]  }
 0x5b5   : > { %v7878_v55 = vadd.f32 %v7877_v46, %v7876_v22  ;;  %v7895_v43 = vrot.slane %v7894_v27, 1  ;;  %v11903_v46 = vld [vmem:[%s13211_s25 + $0x24] ss:$16 sps:$4 sm:$0xff]   ;;  %v11940_v0 = vld [vmem:[%s13211_s25 + $0xe8] ss:$16 sps:$4 sm:$0xff]  }
 0x5b6   : > { %v7890_v5 = vadd.f32 %v7889_v36, %v7888_v47  ;;  %v7884_v12 = vadd.f32 %v7883_v37, %v7882_v23  ;;  %7621 = vmatpush1.bf16.msra.mxu0 %v11367_v45  ;;  %v11897_v47 = vld [vmem:[%s13211_s25 + $0x4] ss:$16 sps:$4 sm:$0xff]   ;;  %v11895_v23 = vld [vmem:[%s13211_s25] ss:$16 sps:$4 sm:$0xff]   ;;  %v11898_v45 = vld [vmem:[%s13211_s25 + $0x8] ss:$16 sps:$4 sm:$0xff]  }
 0x5b7   : > { %v7921_v49 = vmul.f32 0.125, %v7878_v55  ;;  %v7896_v35 = vadd.f32 %v7895_v43, %v7894_v27  ;;  %7785 = vmatpush1.bf16.msra.mxu1 %v11369_v28  ;;  %7622 = vmatprep.subr.bf16.mxu0 %v11376_v30  ;;  %v11906_v27 = vld [vmem:[%s13211_s25 + $0x2c] ss:$16 sps:$4 sm:$0xff]   ;;  %v11901_v28 = vld [vmem:[%s13211_s25 + $0x20] ss:$16 sps:$4 sm:$0xff]  }
 0x5b8   : > { %v7923_v29 = vmul.f32 0.125, %v7890_v5  ;;  %v7922_v21 = vmul.f32 0.125, %v7884_v12  ;;  %7786 = vmatprep.subr.bf16.mxu1 %v11378_v39  ;;  %v11904_v30 = vld [vmem:[%s13211_s25 + $0x28] ss:$16 sps:$4 sm:$0xff]   ;;  %v11909_v36 = vld [vmem:[%s13211_s25 + $0x44] ss:$16 sps:$4 sm:$0xff]  }
 0x5b9   : > { %v7930_v62 = vadd.f32 1e-05, %v7921_v49  ;;  %v7924_v63 = vmul.f32 0.125, %v7896_v35  ;;  %v11912_v37 = vld [vmem:[%s13211_s25 + $0x4c] ss:$16 sps:$4 sm:$0xff]  }
 0x5ba   : > { %v7932_v8 = vadd.f32 1e-05, %v7923_v29  ;;  %v7931_v9 = vadd.f32 1e-05, %v7922_v21  ;;  %7623 = vmatpush1.bf16.msra.mxu0 %v11375_v44  ;;  %v11907_v39 = vld [vmem:[%s13211_s25 + $0x40] ss:$16 sps:$4 sm:$0xff]  }
 0x5bb   : > { %12295 = vrsqrt.f32 %v7930_v62  ;;  %v7933_v57 = vadd.f32 1e-05, %v7924_v63  ;;  %7787 = vmatpush1.bf16.msra.mxu1 %v11377_v6  ;;  %7624 = vmatprep.subr.bf16.mxu0 %v11384_v58  ;;  %v11918_v55 = vld [vmem:[%s13211_s25 + $0x6c] ss:$16 sps:$4 sm:$0xff]   ;;  %v11913_v43 = vld [vmem:[%s13211_s25 + $0x60] ss:$16 sps:$4 sm:$0xff]  }
 0x5bc   : > { %12297 = vrsqrt.f32 %v7932_v8  ;;  %7788 = vmatprep.subr.bf16.mxu1 %v11386_v60  ;;  %v11924_v5 = vld [vmem:[%s13211_s25 + $0x8c] ss:$16 sps:$4 sm:$0xff]   ;;  %v11919_v12 = vld [vmem:[%s13211_s25 + $0x80] ss:$16 sps:$4 sm:$0xff]   ;;  %v11922_v44 = vld [vmem:[%s13211_s25 + $0x88] ss:$16 sps:$4 sm:$0xff]  }
 0x5bd   : > { %12299 = vrsqrt.f32 %v7931_v9  ;;  %v11927_v49 = vld [vmem:[%s13211_s25 + $0xa4] ss:$16 sps:$4 sm:$0xff]   ;;  %v11930_v35 = vld [vmem:[%s13211_s25 + $0xac] ss:$16 sps:$4 sm:$0xff]   ;;  %v11925_v6 = vld [vmem:[%s13211_s25 + $0xa0] ss:$16 sps:$4 sm:$0xff]  }
 0x5be   : > { %12301 = vrsqrt.f32 %v7933_v57  ;;  %7625 = vmatpush1.bf16.msra.mxu0 %v11383_v10  ;;  %v11928_v58 = vld [vmem:[%s13211_s25 + $0xa8] ss:$16 sps:$4 sm:$0xff]   ;;  %v11933_v29 = vld [vmem:[%s13211_s25 + $0xc4] ss:$16 sps:$4 sm:$0xff]   ;;  %v11936_v21 = vld [vmem:[%s13211_s25 + $0xcc] ss:$16 sps:$4 sm:$0xff]  }
 0x5bf   : > { %7789 = vmatpush1.bf16.msra.mxu1 %v11385_v11  ;;  %7626 = vmatprep.subr.bf16.mxu0 %v11392_v13  ;;  %v11931_v60 = vld [vmem:[%s13211_s25 + $0xc0] ss:$16 sps:$4 sm:$0xff]   ;;  %v11942_v62 = vld [vmem:[%s13211_s25 + $0xec] ss:$16 sps:$4 sm:$0xff]   ;;  %v11945_v7 = vld [vmem:[%s13211_s25 + $0x104] ss:$16 sps:$4 sm:$0xff]  }
 0x5c0   : > { %7790 = vmatprep.subr.bf16.mxu1 %v11394_v40  ;;  %v11937_v63 = vld [vmem:[%s13211_s25 + $0xe0] ss:$16 sps:$4 sm:$0xff]   ;;  %v11948_v8 = vld [vmem:[%s13211_s25 + $0x10c] ss:$16 sps:$4 sm:$0xff]   ;;  %v11946_v10 = vld [vmem:[%s13211_s25 + $0x108] ss:$16 sps:$4 sm:$0xff]  }
 0x5c1   : > { %v11943_v9 = vld [vmem:[%s13211_s25 + $0x100] ss:$16 sps:$4 sm:$0xff]   ;;  %v11951_v57 = vld [vmem:[%s13211_s25 + $0x124] ss:$16 sps:$4 sm:$0xff]   ;;  %v11954_v11 = vld [vmem:[%s13211_s25 + $0x12c] ss:$16 sps:$4 sm:$0xff]  }
 0x5c2   : > { %7627 = vmatpush1.bf16.msra.mxu0 %v11391_v16  ;;  %v11949_v13 = vld [vmem:[%s13211_s25 + $0x120] ss:$16 sps:$4 sm:$0xff]   ;;  %v11952_v40 = vld [vmem:[%s13211_s25 + $0x128] ss:$16 sps:$4 sm:$0xff]   ;;  %v11957_v16 = vld [vmem:[%s13211_s25 + $0x144] ss:$16 sps:$4 sm:$0xff]  }
 0x5c3   : > { %7791 = vmatpush1.bf16.msra.mxu1 %v11393_v34  ;;  %9656 = vmatprep.subr.bf16.mxu0 %v11897_v47  ;;  %v11960_v34 = vld [vmem:[%s13211_s25 + $0x14c] ss:$16 sps:$4 sm:$0xff]   ;;  %v11969_v47 = vld [vmem:[%s13211_s25 + $0x184] ss:$16 sps:$4 sm:$0xff]  }
 0x5c5   : > { %v12296_v17 = vpop.eup %12295  ;;  %7629 = vmatmul.mubr.bf16.vlgmr.msra.gmra.mrb[12].mxu0 %v14129_v59 }
 0x5c6   : > { %v12298_v18 = vpop.eup %12297  ;;  %7793 = vmatmul.mubr.bf16.vlgmr.msra.gmra.mrb[12].mxu1 %v14129_v59  ;;  %v11900_v59 = vld [vmem:[%s13211_s25 + $0xc] ss:$16 sps:$4 sm:$0xff]   ;;  %9657 = vmatpush1.bf16.msra.mxu0 %v11895_v23  ;;  %v11967_v23 = vld [vmem:[%s13211_s25 + $0x180] ss:$16 sps:$4 sm:$0xff]  }
 0x5c7   : > { %v12300_v19 = vpop.eup %12299  ;;  %9820 = vmatprep.subr.bf16.mxu1 %v11900_v59  ;;  %9658 = vmatprep.subr.bf16.mxu0 %v11903_v46  ;;  %v11972_v59 = vld [vmem:[%s13211_s25 + $0x18c] ss:$16 sps:$4 sm:$0xff]   ;;  %v11975_v46 = vld [vmem:[%s13211_s25 + $0x1a4] ss:$16 sps:$4 sm:$0xff]  }
 0x5c8   : > { %v12302_v33 = vpop.eup %12301  ;;  %v7954_v20 = vcombine.low %v12296_v17, %v12300_v19  ;;  %9821 = vmatpush1.bf16.msra.mxu1 %v11898_v45  ;;  %v11955_v17 = vld [vmem:[%s13211_s25 + $0x140] ss:$16 sps:$4 sm:$0xff]   ;;  %v11963_v19 = vld [vmem:[%s13211_s25 + $0x164] ss:$16 sps:$4 sm:$0xff]   ;;  %v11970_v45 = vld [vmem:[%s13211_s25 + $0x188] ss:$16 sps:$4 sm:$0xff]  }
 0x5c9   : > { %v7955_v22 = vcombine.low %v12298_v18, %v12302_v33  ;;  %9822 = vmatprep.subr.bf16.mxu1 %v11906_v27  ;;  %v11958_v18 = vld [vmem:[%s13211_s25 + $0x148] ss:$16 sps:$4 sm:$0xff]   ;;  %v11966_v33 = vld [vmem:[%s13211_s25 + $0x16c] ss:$16 sps:$4 sm:$0xff]  }
 0x5ca   : > { %v14434_v42 = vrot.slane %v7954_v20, %v13705_v26  ;;  %9659 = vmatpush1.bf16.msra.mxu0 %v11901_v28  ;;  %v11961_v20 = vld [vmem:[%s13211_s25 + $0x160] ss:$16 sps:$4 sm:$0xff]   ;;  %v11978_v27 = vld [vmem:[%s13211_s25 + $0x1ac] ss:$16 sps:$4 sm:$0xff]  }
 0x5cb   : > { %v14437_v24 = vrot.slane %v7955_v22, %v13705_v26  ;;  %9660 = vmatprep.subr.bf16.mxu0 %v11909_v36  ;;  %v11964_v22 = vld [vmem:[%s13211_s25 + $0x168] ss:$16 sps:$4 sm:$0xff]   ;;  %v11973_v28 = vld [vmem:[%s13211_s25 + $0x1a0] ss:$16 sps:$4 sm:$0xff]   ;;  %v11981_v36 = vld [vmem:[%s13211_s25 + $0x1c4] ss:$16 sps:$4 sm:$0xff]  }
 0x5cc   : > { %9823 = vmatpush1.bf16.msra.mxu1 %v11904_v30  ;;  %v11976_v30 = vld [vmem:[%s13211_s25 + $0x1a8] ss:$16 sps:$4 sm:$0xff]  }
 0x5cd   : > { %v7986_v53 = vcombine.low %v14434_v42, %v14437_v24  ;;  %9824 = vmatprep.subr.bf16.mxu1 %v11912_v37  ;;  %v11984_v37 = vld [vmem:[%s13211_s25 + $0x1cc] ss:$16 sps:$4 sm:$0xff]  }
 0x5ce   : > { %9661 = vmatpush1.bf16.msra.mxu0 %v11907_v39  ;;  %v11979_v39 = vld [vmem:[%s13211_s25 + $0x1c0] ss:$16 sps:$4 sm:$0xff]  }
 0x5cf   : > { %9662 = vmatprep.subr.bf16.mxu0 %v11915_v48  ;;  %v11987_v48 = vld [vmem:[%s13211_s25 + $0x1e4] ss:$16 sps:$4 sm:$0xff]  }
 0x5d0   : > { %9825 = vmatpush1.bf16.msra.mxu1 %v11910_v41  ;;  %v11982_v41 = vld [vmem:[%s13211_s25 + $0x1c8] ss:$16 sps:$4 sm:$0xff]  }
 0x5d1   : > { %9826 = vmatprep.subr.bf16.mxu1 %v11918_v55  ;;  %v11990_v55 = vld [vmem:[%s13211_s25 + $0x1ec] ss:$16 sps:$4 sm:$0xff]  }
 0x5d2   : > { %9663 = vmatpush1.bf16.msra.mxu0 %v11913_v43  ;;  %v11985_v43 = vld [vmem:[%s13211_s25 + $0x1e0] ss:$16 sps:$4 sm:$0xff]  }
 0x5d3   : > { %9664 = vmatprep.subr.bf16.mxu0 %v11921_v4  ;;  %v11993_v4 = vld [vmem:[%s13211_s25 + $0x204] ss:$16 sps:$4 sm:$0xff]  }
 0x5d4   : > { %9827 = vmatpush1.bf16.msra.mxu1 %v11916_v1  ;;  %v11988_v1 = vld [vmem:[%s13211_s25 + $0x1e8] ss:$16 sps:$4 sm:$0xff]  }
 0x5d5   : > { %9828 = vmatprep.subr.bf16.mxu1 %v11924_v5  ;;  %v11996_v5 = vld [vmem:[%s13211_s25 + $0x20c] ss:$16 sps:$4 sm:$0xff]  }
 0x5d6   : > { %9665 = vmatpush1.bf16.msra.mxu0 %v11919_v12 }
 0x5d7   : > { %9666 = vmatprep.subr.bf16.mxu0 %v11927_v49 }
 0x5d8   : > { %9829 = vmatpush1.bf16.msra.mxu1 %v11922_v44 }
 0x5d9   : > { %9830 = vmatprep.subr.bf16.mxu1 %v11930_v35 }
 0x5da   : > { %9667 = vmatpush1.bf16.msra.mxu0 %v11925_v6 }
 0x5db   : > { %9668 = vmatprep.subr.bf16.mxu0 %v11933_v29 }
 0x5dc   : > { %9831 = vmatpush1.bf16.msra.mxu1 %v11928_v58 }
 0x5dd   : > { %9832 = vmatprep.subr.bf16.mxu1 %v11936_v21 }
 0x5de   : > { %9669 = vmatpush1.bf16.msra.mxu0 %v11931_v60 }
 0x5df   : > { %9670 = vmatprep.subr.bf16.mxu0 %v11939_v2 }
 0x5e0   : > { %9833 = vmatpush1.bf16.msra.mxu1 %v11934_v54 }
 0x5e1   : > { %9834 = vmatprep.subr.bf16.mxu1 %v11942_v62 }
 0x5e2   : > { %9671 = vmatpush1.bf16.msra.mxu0 %v11937_v63 }
 0x5e3   : > { %9672 = vmatprep.subr.bf16.mxu0 %v11945_v7 }
 0x5e4   : > { %9835 = vmatpush1.bf16.msra.mxu1 %v11940_v0 }
 0x5e5   : > { %9836 = vmatprep.subr.bf16.mxu1 %v11948_v8 }
 0x5e6   : > { %9673 = vmatpush1.bf16.msra.mxu0 %v11943_v9 }
 0x5e7   : > { %9674 = vmatprep.subr.bf16.mxu0 %v11951_v57 }
 0x5e8   : > { %9837 = vmatpush1.bf16.msra.mxu1 %v11946_v10 }
 0x5e9   : > { %9838 = vmatprep.subr.bf16.mxu1 %v11954_v11 }
 0x5ea   : > { %9675 = vmatpush1.bf16.msra.mxu0 %v11949_v13 }
 0x5eb   : > { %9676 = vmatprep.subr.bf16.mxu0 %v11957_v16 }
 0x5ec   : > { %9839 = vmatpush1.bf16.msra.mxu1 %v11952_v40 }
 0x5ed   : > { %9840 = vmatprep.subr.bf16.mxu1 %v11960_v34 }
 0x5ee   : > { %9677 = vmatpush1.bf16.msra.mxu0 %v11955_v17 }
 0x5ef   : > { %9678 = vmatprep.subr.bf16.mxu0 %v11963_v19 }
 0x5f0   : > { %9841 = vmatpush1.bf16.msra.mxu1 %v11958_v18 }
 0x5f1   : > { %9842 = vmatprep.subr.bf16.mxu1 %v11966_v33 }
 0x5f2   : > { %9679 = vmatpush1.bf16.msra.mxu0 %v11961_v20 }
 0x5f3   : > { %9680 = vmatprep.subr.bf16.mxu0 %v11969_v47 }
 0x5f4   : > { %9843 = vmatpush1.bf16.msra.mxu1 %v11964_v22 }
 0x5f5   : > { %9844 = vmatprep.subr.bf16.mxu1 %v11972_v59 }
 0x5f6   : > { %9681 = vmatpush1.bf16.msra.mxu0 %v11967_v23 }
 0x5f7   : > { %9682 = vmatprep.subr.bf16.mxu0 %v11975_v46 }
 0x5f8   : > { %9845 = vmatpush1.bf16.msra.mxu1 %v11970_v45 }
 0x5f9   : > { %9846 = vmatprep.subr.bf16.mxu1 %v11978_v27 }
 0x5fa   : > { %9683 = vmatpush1.bf16.msra.mxu0 %v11973_v28 }
 0x5fb   : > { %9684 = vmatprep.subr.bf16.mxu0 %v11981_v36 }
 0x5fc   : > { %9847 = vmatpush1.bf16.msra.mxu1 %v11976_v30 }
 0x5fd   : > { %9848 = vmatprep.subr.bf16.mxu1 %v11984_v37 }
 0x5fe   : > { %9685 = vmatpush1.bf16.msra.mxu0 %v11979_v39 }
 0x5ff   : > { %9686 = vmatprep.subr.bf16.mxu0 %v11987_v48 }
 0x600   : > { %9849 = vmatpush1.bf16.msra.mxu1 %v11982_v41 }
 0x601   : > { %9850 = vmatprep.subr.bf16.mxu1 %v11990_v55 }
 0x602   : > { %9687 = vmatpush1.bf16.msra.mxu0 %v11985_v43 }
 0x603   : > { %9697 = vmatprep.subr.bf16.mxu0 %v11993_v4 }
 0x604   : > { %9851 = vmatpush1.bf16.msra.mxu1 %v11988_v1 }
 0x605   : > { %9861 = vmatprep.subr.bf16.mxu1 %v11996_v5 }
 0x698   : > { %v7630_v12 = vpop.f32.mrb[12].mxu0 }
 0x699   : > { %v7825_v44 = vrot.slane %v7630_v12, 4  ;;  %v7794_v49 = vpop.f32.mrb[12].mxu1  ;;  %v7632_v35 = vpop.f32.mrb[13].mxu0 }
 0x69a   : > { %v7837_v6 = vrot.slane %v7794_v49, 4  ;;  %v7831_v58 = vrot.slane %v7632_v35, 4  ;;  %v7796_v29 = vpop.f32.mrb[13].mxu1  ;;  %v7634_v21 = vpop.f32.mrb[14].mxu0 }
 0x69b   : > { %v7826_v60 = vadd.f32 %v7825_v44, %v7630_v12  ;;  %v7843_v54 = vrot.slane %v7796_v29, 4  ;;  %v7798_v2 = vpop.f32.mrb[14].mxu1  ;;  %v7635_v62 = vpop.f32.mrb[15].mxu0 }
 0x69c   : > { %v7838_v63 = vadd.f32 %v7837_v6, %v7794_v49  ;;  %v7832_v0 = vadd.f32 %v7831_v58, %v7632_v35  ;;  %v7799_v7 = vpop.f32.mrb[15].mxu1 }
 0x69d   : > { %v7827_v8 = vrot.slane %v7826_v60, 2  ;;  %v7844_v9 = vadd.f32 %v7843_v54, %v7796_v29 }
 0x69e   : > { %v7839_v10 = vrot.slane %v7838_v63, 2  ;;  %v7833_v57 = vrot.slane %v7832_v0, 2 }
 0x69f   : > { %v7828_v11 = vadd.f32 %v7827_v8, %v7826_v60  ;;  %v7845_v13 = vrot.slane %v7844_v9, 2 }
 0x6a0   : > { %v7840_v40 = vadd.f32 %v7839_v10, %v7838_v63  ;;  %v7834_v16 = vadd.f32 %v7833_v57, %v7832_v0 }
 0x6a1   : > { %v7829_v34 = vrot.slane %v7828_v11, 1  ;;  %v7846_v17 = vadd.f32 %v7845_v13, %v7844_v9 }
 0x6a2   : > { %v7841_v18 = vrot.slane %v7840_v40, 1  ;;  %v7835_v19 = vrot.slane %v7834_v16, 1 }
 0x6a3   : > { %v7830_v33 = vadd.f32 %v7829_v34, %v7828_v11  ;;  %v7847_v20 = vrot.slane %v7846_v17, 1 }
 0x6a4   : > { %v7842_v22 = vadd.f32 %v7841_v18, %v7840_v40  ;;  %v7836_v47 = vadd.f32 %v7835_v19, %v7834_v16 }
 0x6a5   : > { %v7853_v59 = vmul.f32 0.125, %v7830_v33  ;;  %v7848_v23 = vadd.f32 %v7847_v20, %v7846_v17 }
 0x6a6   : > { %v7855_v45 = vmul.f32 0.125, %v7842_v22  ;;  %v7854_v46 = vmul.f32 0.125, %v7836_v47 }
 0x6a7   : > { %v14507_v27 = vsub.f32 %v7630_v12, %v7853_v59  ;;  %v7856_v28 = vmul.f32 0.125, %v7848_v23 }
 0x6a8   : > { %v14509_v30 = vsub.f32 %v7794_v49, %v7855_v45  ;;  %v14511_v36 = vsub.f32 %v7632_v35, %v7854_v46 }
 0x6a9   : > { %v7869_v37 = vmul.f32 %v14507_v27, %v14507_v27  ;;  %v14515_v39 = vsub.f32 %v7796_v29, %v7856_v28 }
 0x6aa   : > { %v7871_v41 = vmul.f32 %v14509_v30, %v14509_v30  ;;  %v7870_v48 = vmul.f32 %v14511_v36, %v14511_v36 }
 0x6ab   : > { %v7897_v55 = vrot.slane %v7869_v37, 4  ;;  %v7872_v43 = vmul.f32 %v14515_v39, %v14515_v39 }
 0x6ac   : > { %v7909_v1 = vrot.slane %v7871_v41, 4  ;;  %v7903_v4 = vrot.slane %v7870_v48, 4 }
 0x6ad   : > { %v7898_v5 = vadd.f32 %v7897_v55, %v7869_v37  ;;  %v7915_v12 = vrot.slane %v7872_v43, 4  ;;  %v8054_v55 = vld [vmem:[%s603_s26] sm:$0xff] }
 0x6ae   : > { %v7910_v44 = vadd.f32 %v7909_v1, %v7871_v41  ;;  %v7904_v49 = vadd.f32 %v7903_v4, %v7870_v48  ;;  %v7994_v41 = vrot.slane %v7986_v53, %v13705_v26  ;;  %v8063_v4 = vrot.slane %v8054_v55, %v13832_v56 }
 0x6af   : > { %v7899_v35 = vrot.slane %v7898_v5, 2  ;;  %v7916_v6 = vadd.f32 %v7915_v12, %v7872_v43  ;;  %v7929_v43 = vld [vmem:[%s594_s18] sm:$0xff]  ;;  %v8059_v12 = vrot.slane %v8054_v55, %v13835_v61  ;;  %v8075_v42 = vrot.slane %v8054_v55, %v13849_v3  ;;  %s12628_s18 = scalar_lea.vmem %s12627_s1, 1024 }
 0x6b0   : > { %v7911_v58 = vrot.slane %v7910_v44, 2  ;;  %v7905_v29 = vrot.slane %v7904_v49, 2  ;;  %v8087_v24 = vrot.slane %v8054_v55, %v13825_v52  ;;  %v8083_v53 = vrot.slane %v8054_v55, %v13868_v14  ;;  %p12630_p10 = scmp.lt.s32.totalorder %s12628_s18, %s12622_s15 }
 0x6b1   : > { %v7900_v21 = vadd.f32 %v7899_v35, %v7898_v5  ;;  %v7917_v60 = vrot.slane %v7916_v6, 2  ;;  %v8079_v35 = vrot.slane %v8054_v55, %v13844_v32 }
 0x6b2   : > { %v7912_v54 = vadd.f32 %v7911_v58, %v7910_v44  ;;  %v7906_v2 = vadd.f32 %v7905_v29, %v7904_v49  ;;  %v8071_v44 = vrot.slane %v8054_v55, %v13838_v15  ;;  %v8067_v49 = vrot.slane %v8054_v55, %v13841_v31  ;;  %v12018_v55 = vld [vmem:[%s13211_s25 + $0x288] ss:$16 sps:$4 sm:$0xff]   ;;  %p12631_p8 = por %p12630_p10, %p12629_p0 }
 0x6b3   : > { %v7901_v62 = vrot.slane %v7900_v21, 1  ;;  %v7918_v63 = vadd.f32 %v7917_v60, %v7916_v6 }
 0x6b4   : > { %v7913_v0 = vrot.slane %v7912_v54, 1  ;;  %v7907_v7 = vrot.slane %v7906_v2, 1  ;;  %p12632_p3 = pnand %p12631_p8, %p12625_p12 }
 0x6b5   : > { %v7902_v8 = vadd.f32 %v7901_v62, %v7900_v21  ;;  %v7919_v9 = vrot.slane %v7918_v63, 1 }
 0x6b6   : > { %v7914_v10 = vadd.f32 %v7913_v0, %v7912_v54  ;;  %v7908_v57 = vadd.f32 %v7907_v7, %v7906_v2 }
 0x6b7   : > { %v7925_v11 = vmul.f32 0.125, %v7902_v8  ;;  %v7920_v13 = vadd.f32 %v7919_v9, %v7918_v63 }
 0x6b8   : > { %v7927_v40 = vmul.f32 0.125, %v7914_v10  ;;  %v7926_v16 = vmul.f32 0.125, %v7908_v57 }
 0x6b9   : > { %v7934_v34 = vadd.f32 1e-05, %v7925_v11  ;;  %v7928_v17 = vmul.f32 0.125, %v7920_v13  ;;  %v11991_v13 = vld [vmem:[%s13211_s25 + $0x200] ss:$16 sps:$4 sm:$0xff]  }
 0x6ba   : > { %v7936_v18 = vadd.f32 1e-05, %v7927_v40  ;;  %v7935_v19 = vadd.f32 1e-05, %v7926_v16  ;;  %v11994_v40 = vld [vmem:[%s13211_s25 + $0x208] ss:$16 sps:$4 sm:$0xff]  }
 0x6bb   : > { %12303 = vrsqrt.f32 %v7934_v34  ;;  %v7937_v33 = vadd.f32 1e-05, %v7928_v17  ;;  %v11999_v34 = vld [vmem:[%s13211_s25 + $0x224] ss:$16 sps:$4 sm:$0xff]   ;;  %v12002_v17 = vld [vmem:[%s13211_s25 + $0x22c] ss:$16 sps:$4 sm:$0xff]  }
 0x6bc   : > { %12305 = vrsqrt.f32 %v7936_v18 }
 0x6bd   : > { %12307 = vrsqrt.f32 %v7935_v19  ;;  %v11997_v19 = vld [vmem:[%s13211_s25 + $0x220] ss:$16 sps:$4 sm:$0xff]  }
 0x6be   : > { %12309 = vrsqrt.f32 %v7937_v33  ;;  %v12000_v33 = vld [vmem:[%s13211_s25 + $0x228] ss:$16 sps:$4 sm:$0xff]  }
 0x6c5   : > { %v12304_v20 = vpop.eup %12303 }
 0x6c6   : > { %v12306_v22 = vpop.eup %12305 }
 0x6c7   : > { %v12308_v47 = vpop.eup %12307 }
 0x6c8   : > { %v12310_v59 = vpop.eup %12309  ;;  %v7956_v23 = vcombine.low %v12304_v20, %v12308_v47  ;;  %v12005_v20 = vld [vmem:[%s13211_s25 + $0x244] ss:$16 sps:$4 sm:$0xff]   ;;  %v12003_v47 = vld [vmem:[%s13211_s25 + $0x240] ss:$16 sps:$4 sm:$0xff]  }
 0x6c9   : > { %v7957_v45 = vcombine.low %v12306_v22, %v12310_v59  ;;  %v12008_v22 = vld [vmem:[%s13211_s25 + $0x24c] ss:$16 sps:$4 sm:$0xff]   ;;  %v12006_v59 = vld [vmem:[%s13211_s25 + $0x248] ss:$16 sps:$4 sm:$0xff]  }
 0x6ca   : > { %v7978_v46 = vrot.slane %v7956_v23, %v13705_v26  ;;  %v12011_v23 = vld [vmem:[%s13211_s25 + $0x264] ss:$16 sps:$4 sm:$0xff]  }
 0x6cb   : > { %v7985_v28 = vrot.slane %v7957_v45, %v13705_v26  ;;  %v12014_v45 = vld [vmem:[%s13211_s25 + $0x26c] ss:$16 sps:$4 sm:$0xff]  }
 0x6cd   : > { %v7987_v37 = vcombine.low %v7978_v46, %v7985_v28  ;;  %v12009_v46 = vld [vmem:[%s13211_s25 + $0x260] ss:$16 sps:$4 sm:$0xff]   ;;  %v12012_v28 = vld [vmem:[%s13211_s25 + $0x268] ss:$16 sps:$4 sm:$0xff]  }
 0x6cf   : > { %v8001_v48 = vrot.slane %v7987_v37, %v13705_v26  ;;  %v12017_v37 = vld [vmem:[%s13211_s25 + $0x284] ss:$16 sps:$4 sm:$0xff]  }
 0x6d1   : > { %v8002_v1 = vcombine.low %v7994_v41, %v8001_v48  ;;  %v12020_v41 = vld [vmem:[%s13211_s25 + $0x28c] ss:$16 sps:$4 sm:$0xff]   ;;  %v12015_v48 = vld [vmem:[%s13211_s25 + $0x280] ss:$16 sps:$4 sm:$0xff]  }
 0x6d3   : > { %v8004_v5 = vmul.f32 %v8002_v1, %v7929_v43  ;;  %v12023_v43 = vld [vmem:[%s13211_s25 + $0x2a4] ss:$16 sps:$4 sm:$0xff]   ;;  %v12026_v1 = vld [vmem:[%s13211_s25 + $0x2ac] ss:$16 sps:$4 sm:$0xff]  }
 0x6d5   : > { %v8037_v6 = vrot.slane %v8004_v5, %v13825_v52  ;;  %v8013_v58 = vrot.slane %v8004_v5, %v13832_v56  ;;  %v8009_v29 = vrot.slane %v8004_v5, %v13835_v61  ;;  %v8021_v21 = vrot.slane %v8004_v5, %v13838_v15 }
 0x6d6   : > { %v8017_v60 = vrot.slane %v8004_v5, %v13841_v31  ;;  %v8029_v54 = vrot.slane %v8004_v5, %v13844_v32  ;;  %v8025_v2 = vrot.slane %v8004_v5, %v13849_v3  ;;  %v8033_v62 = vrot.slane %v8004_v5, %v13868_v14  ;;  %v12024_v5 = vld [vmem:[%s13211_s25 + $0x2a8] ss:$16 sps:$4 sm:$0xff]  }
 0x6d7   : > { %v8053_v63 = vmul.f32 %v8037_v6, %v14515_v39  ;;  %v8047_v0 = vmul.f32 %v8013_v58, %v14398_v51  ;;  %v8046_v52 = vmul.f32 %v8009_v29, %v14392_v38  ;;  %v8049_v7 = vmul.f32 %v8021_v21, %v14405_v25  ;;  %v12036_v6 = vld [vmem:[%s13211_s25 + $0x2e8] ss:$16 sps:$4 sm:$0xff]   ;;  %v12041_v58 = vld [vmem:[%s13211_s25 + $0x304] ss:$16 sps:$4 sm:$0xff]   ;;  %v12044_v29 = vld [vmem:[%s13211_s25 + $0x30c] ss:$16 sps:$4 sm:$0xff]  }
 0x6d8   : > { %v8048_v8 = vmul.f32 %v8017_v60, %v14395_v50  ;;  %v8051_v9 = vmul.f32 %v8029_v54, %v14511_v36  ;;  %v8050_v32 = vmul.f32 %v8025_v2, %v14507_v27  ;;  %v8052_v3 = vmul.f32 %v8033_v62, %v14509_v30  ;;  %v12039_v21 = vld [vmem:[%s13211_s25 + $0x300] ss:$16 sps:$4 sm:$0xff]   ;;  %v12042_v60 = vld [vmem:[%s13211_s25 + $0x308] ss:$16 sps:$4 sm:$0xff]   ;;  %v12047_v54 = vld [vmem:[%s13211_s25 + $0x324] ss:$16 sps:$4 sm:$0xff]  }
 0x6d9   : > { %v8097_v10 = vadd.f32 %v8063_v4, %v8047_v0  ;;  %v8096_v14 = vadd.f32 %v8059_v12, %v8046_v52  ;;  %v8099_v39 = vadd.f32 %v8071_v44, %v8049_v7  ;;  %v14558_v51 = vadd.f32 %v8087_v24, %v8053_v63  ;;  %v12021_v4 = vld [vmem:[%s13211_s25 + $0x2a0] ss:$16 sps:$4 sm:$0xff]   ;;  %v12029_v12 = vld [vmem:[%s13211_s25 + $0x2c4] ss:$16 sps:$4 sm:$0xff]   ;;  %v12032_v44 = vld [vmem:[%s13211_s25 + $0x2cc] ss:$16 sps:$4 sm:$0xff]  }
 0x6da   : > { %v14560_v38 = vadd.f32 %v8067_v49, %v8048_v8  ;;  %v14562_v25 = vadd.f32 %v8079_v35, %v8051_v9  ;;  %v14564_v50 = vadd.f32 %v8075_v42, %v8050_v32  ;;  %v14566_v57 = vadd.f32 %v8083_v53, %v8052_v3  ;;  %v12027_v49 = vld [vmem:[%s13211_s25 + $0x2c0] ss:$16 sps:$4 sm:$0xff]   ;;  %v12030_v35 = vld [vmem:[%s13211_s25 + $0x2c8] ss:$16 sps:$4 sm:$0xff]   ;;  %v12035_v42 = vld [vmem:[%s13211_s25 + $0x2e4] ss:$16 sps:$4 sm:$0xff]  }
 0x6db   : > { %v8105_v36 = vmax.f32 %v8097_v10, 0.0  ;;  %v8104_v27 = vmax.f32 %v8096_v14, 0.0  ;;  %v8107_v30 = vmax.f32 %v8099_v39, 0.0  ;;  %v12038_v24 = vld [vmem:[%s13211_s25 + $0x2ec] ss:$16 sps:$4 sm:$0xff]  }
 0x6dc   : > { %v12033_v53 = vld [vmem:[%s13211_s25 + $0x2e0] ss:$16 sps:$4 sm:$0xff]   ;;  %v12050_v2 = vld [vmem:[%s13211_s25 + $0x32c] ss:$16 sps:$4 sm:$0xff]   ;;  %v12048_v63 = vld [vmem:[%s13211_s25 + $0x328] ss:$16 sps:$4 sm:$0xff]  }
 0x6dd   : > { %v8113_v11 = vpack.c.bf16 %v8105_v36, %v8105_v36  ;;  %v8112_v16 = vpack.c.bf16 %v8104_v27, %v8104_v27  ;;  %v8115_v18 = vpack.c.bf16 %v8107_v30, %v8107_v30  ;;  %v12045_v62 = vld [vmem:[%s13211_s25 + $0x320] ss:$16 sps:$4 sm:$0xff]   ;;  %v12053_v0 = vld [vmem:[%s13211_s25 + $0x344] ss:$16 sps:$4 sm:$0xff]   ;;  %v12056_v52 = vld [vmem:[%s13211_s25 + $0x34c] ss:$16 sps:$4 sm:$0xff]  }
 0x6de   : > { %v12051_v7 = vld [vmem:[%s13211_s25 + $0x340] ss:$16 sps:$4 sm:$0xff]   ;;  %v12054_v8 = vld [vmem:[%s13211_s25 + $0x348] ss:$16 sps:$4 sm:$0xff]   ;;  %v12059_v9 = vld [vmem:[%s13211_s25 + $0x364] ss:$16 sps:$4 sm:$0xff]  }
 0x6df   : > { %9688 = vmatprep.mubr.bf16.mxu0 %v8113_v11  ;;  %9852 = vmatprep.mubr.bf16.mxu1 %v8113_v11  ;;  %v12062_v32 = vld [vmem:[%s13211_s25 + $0x36c] ss:$16 sps:$4 sm:$0xff]   ;;  %v12057_v3 = vld [vmem:[%s13211_s25 + $0x360] ss:$16 sps:$4 sm:$0xff]   ;;  %v12060_v10 = vld [vmem:[%s13211_s25 + $0x368] ss:$16 sps:$4 sm:$0xff]  }
 0x6e0   : > { %9689 = vmatmul.mubr.bf16.vlgmr.msra.gmra.mrb[16].mxu0 %v8112_v16  ;;  %9853 = vmatmul.mubr.bf16.vlgmr.msra.gmra.mrb[16].mxu1 %v8112_v16  ;;  %v12065_v14 = vld [vmem:[%s13211_s25 + $0x384] ss:$16 sps:$4 sm:$0xff]   ;;  %v12068_v39 = vld [vmem:[%s13211_s25 + $0x38c] ss:$16 sps:$4 sm:$0xff]   ;;  %v12063_v36 = vld [vmem:[%s13211_s25 + $0x380] ss:$16 sps:$4 sm:$0xff]  }
 0x6e1   : > { %9698 = vmatpush1.bf16.msra.mxu0 %v11991_v13  ;;  %9862 = vmatpush1.bf16.msra.mxu1 %v11994_v40  ;;  %v12066_v27 = vld [vmem:[%s13211_s25 + $0x388] ss:$16 sps:$4 sm:$0xff]   ;;  %v12071_v30 = vld [vmem:[%s13211_s25 + $0x3a4] ss:$16 sps:$4 sm:$0xff]   ;;  %v12074_v11 = vld [vmem:[%s13211_s25 + $0x3ac] ss:$16 sps:$4 sm:$0xff]  }
 0x6e2   : > { %9729 = vmatprep.mubr.bf16.mxu0 %v8115_v18  ;;  %9893 = vmatprep.mubr.bf16.mxu1 %v8115_v18  ;;  %v12069_v13 = vld [vmem:[%s13211_s25 + $0x3a0] ss:$16 sps:$4 sm:$0xff]   ;;  %v12072_v40 = vld [vmem:[%s13211_s25 + $0x3a8] ss:$16 sps:$4 sm:$0xff]   ;;  %v12077_v16 = vld [vmem:[%s13211_s25 + $0x3c4] ss:$16 sps:$4 sm:$0xff]  }
 0x6e3   : > { %9699 = vmatprep.subr.bf16.mxu0 %v11999_v34  ;;  %9863 = vmatprep.subr.bf16.mxu1 %v12002_v17  ;;  %v12080_v34 = vld [vmem:[%s13211_s25 + $0x3cc] ss:$16 sps:$4 sm:$0xff]   ;;  %v12075_v17 = vld [vmem:[%s13211_s25 + $0x3c0] ss:$16 sps:$4 sm:$0xff]   ;;  %v12078_v18 = vld [vmem:[%s13211_s25 + $0x3c8] ss:$16 sps:$4 sm:$0xff]  }
 0x6e5   : > { %9700 = vmatpush1.bf16.msra.mxu0 %v11997_v19  ;;  %9864 = vmatpush1.bf16.msra.mxu1 %v12000_v33  ;;  %v12083_v19 = vld [vmem:[%s13211_s25 + $0x3e4] ss:$16 sps:$4 sm:$0xff]   ;;  %v12086_v33 = vld [vmem:[%s13211_s25 + $0x3ec] ss:$16 sps:$4 sm:$0xff]  }
 0x6e6   : > { %9701 = vmatprep.subr.bf16.mxu0 %v12005_v20  ;;  %9865 = vmatprep.subr.bf16.mxu1 %v12008_v22  ;;  %v12081_v20 = vld [vmem:[%s13211_s25 + $0x3e0] ss:$16 sps:$4 sm:$0xff]   ;;  %v12084_v22 = vld [vmem:[%s13211_s25 + $0x3e8] ss:$16 sps:$4 sm:$0xff]  }
 0x6e9   : > { %9702 = vmatpush1.bf16.msra.mxu0 %v12003_v47  ;;  %9866 = vmatpush1.bf16.msra.mxu1 %v12006_v59  ;;  %v8106_v47 = vmax.f32 %v14560_v38, 0.0  ;;  %v12089_v59 = vld [vmem:[%s13211_s25 + $0x404] ss:$16 sps:$4 sm:$0xff]   ;;  %v12093_v38 = vld [vmem:[%s13211_s25 + $0x420] ss:$16 sps:$4 sm:$0xff]  }
 0x6ea   : > { %9703 = vmatprep.subr.bf16.mxu0 %v12011_v23  ;;  %9867 = vmatprep.subr.bf16.mxu1 %v12014_v45  ;;  %v12092_v23 = vld [vmem:[%s13211_s25 + $0x40c] ss:$16 sps:$4 sm:$0xff]   ;;  %v8109_v45 = vmax.f32 %v14562_v25, 0.0  ;;  %v12096_v25 = vld [vmem:[%s13211_s25 + $0x428] ss:$16 sps:$4 sm:$0xff]  }
 0x6ed   : > { %9704 = vmatpush1.bf16.msra.mxu0 %v12009_v46  ;;  %9868 = vmatpush1.bf16.msra.mxu1 %v12012_v28  ;;  %v12087_v46 = vld [vmem:[%s13211_s25 + $0x400] ss:$16 sps:$4 sm:$0xff]   ;;  %v8114_v28 = vpack.c.bf16 %v8106_v47, %v8106_v47  ;;  %v12167_v47 = vld [vmem:[%s13211_s25 + $0x5a4] ss:$16 sps:$4 sm:$0xff]  }
 0x6ee   : > { %9705 = vmatprep.subr.bf16.mxu0 %v12017_v37  ;;  %9869 = vmatprep.subr.bf16.mxu1 %v12020_v41  ;;  %v12090_v37 = vld [vmem:[%s13211_s25 + $0x408] ss:$16 sps:$4 sm:$0xff]   ;;  %v8117_v41 = vpack.c.bf16 %v8109_v45, %v8109_v45 }
 0x6ef   : > { %v12168_v45 = vld [vmem:[%s13211_s25 + $0x5a8] ss:$16 sps:$4 sm:$0xff]  }
 0x6f1   : > { %9706 = vmatpush1.bf16.msra.mxu0 %v12015_v48  ;;  %9870 = vmatpush1.bf16.msra.mxu1 %v12018_v55  ;;  %v12095_v48 = vld [vmem:[%s13211_s25 + $0x424] ss:$16 sps:$4 sm:$0xff]   ;;  %v12098_v55 = vld [vmem:[%s13211_s25 + $0x42c] ss:$16 sps:$4 sm:$0xff]  }
 0x6f2   : > { %9707 = vmatprep.subr.bf16.mxu0 %v12023_v43  ;;  %9871 = vmatprep.subr.bf16.mxu1 %v12026_v1  ;;  %v12101_v43 = vld [vmem:[%s13211_s25 + $0x444] ss:$16 sps:$4 sm:$0xff]   ;;  %v12104_v1 = vld [vmem:[%s13211_s25 + $0x44c] ss:$16 sps:$4 sm:$0xff]  }
 0x6f5   : > { %9708 = vmatpush1.bf16.msra.mxu0 %v12021_v4  ;;  %9872 = vmatpush1.bf16.msra.mxu1 %v12024_v5  ;;  %v12099_v4 = vld [vmem:[%s13211_s25 + $0x440] ss:$16 sps:$4 sm:$0xff]   ;;  %v12102_v5 = vld [vmem:[%s13211_s25 + $0x448] ss:$16 sps:$4 sm:$0xff]  }
 0x6f6   : > { %9709 = vmatprep.subr.bf16.mxu0 %v12029_v12  ;;  %9873 = vmatprep.subr.bf16.mxu1 %v12032_v44  ;;  %v12107_v12 = vld [vmem:[%s13211_s25 + $0x464] ss:$16 sps:$4 sm:$0xff]   ;;  %v12110_v44 = vld [vmem:[%s13211_s25 + $0x46c] ss:$16 sps:$4 sm:$0xff]  }
 0x6f9   : > { %9710 = vmatpush1.bf16.msra.mxu0 %v12027_v49  ;;  %9874 = vmatpush1.bf16.msra.mxu1 %v12030_v35  ;;  %v12105_v49 = vld [vmem:[%s13211_s25 + $0x460] ss:$16 sps:$4 sm:$0xff]   ;;  %v12108_v35 = vld [vmem:[%s13211_s25 + $0x468] ss:$16 sps:$4 sm:$0xff]  }
 0x6fa   : > { %9711 = vmatprep.subr.bf16.mxu0 %v12035_v42  ;;  %9875 = vmatprep.subr.bf16.mxu1 %v12038_v24  ;;  %v12113_v42 = vld [vmem:[%s13211_s25 + $0x484] ss:$16 sps:$4 sm:$0xff]   ;;  %v12116_v24 = vld [vmem:[%s13211_s25 + $0x48c] ss:$16 sps:$4 sm:$0xff]  }
 0x6fd   : > { %9712 = vmatpush1.bf16.msra.mxu0 %v12033_v53  ;;  %9876 = vmatpush1.bf16.msra.mxu1 %v12036_v6  ;;  %v12111_v53 = vld [vmem:[%s13211_s25 + $0x480] ss:$16 sps:$4 sm:$0xff]   ;;  %v12114_v6 = vld [vmem:[%s13211_s25 + $0x488] ss:$16 sps:$4 sm:$0xff]  }
 0x6fe   : > { %9713 = vmatprep.subr.bf16.mxu0 %v12041_v58  ;;  %9877 = vmatprep.subr.bf16.mxu1 %v12044_v29  ;;  %v12119_v58 = vld [vmem:[%s13211_s25 + $0x4a4] ss:$16 sps:$4 sm:$0xff]   ;;  %v12122_v29 = vld [vmem:[%s13211_s25 + $0x4ac] ss:$16 sps:$4 sm:$0xff]  }
 0x701   : > { %9714 = vmatpush1.bf16.msra.mxu0 %v12039_v21  ;;  %9878 = vmatpush1.bf16.msra.mxu1 %v12042_v60  ;;  %v12117_v21 = vld [vmem:[%s13211_s25 + $0x4a0] ss:$16 sps:$4 sm:$0xff]   ;;  %v12120_v60 = vld [vmem:[%s13211_s25 + $0x4a8] ss:$16 sps:$4 sm:$0xff]  }
 0x702   : > { %9715 = vmatprep.subr.bf16.mxu0 %v12047_v54  ;;  %9879 = vmatprep.subr.bf16.mxu1 %v12050_v2  ;;  %v12125_v54 = vld [vmem:[%s13211_s25 + $0x4c4] ss:$16 sps:$4 sm:$0xff]   ;;  %v12128_v2 = vld [vmem:[%s13211_s25 + $0x4cc] ss:$16 sps:$4 sm:$0xff]  }
 0x705   : > { %9716 = vmatpush1.bf16.msra.mxu0 %v12045_v62  ;;  %9880 = vmatpush1.bf16.msra.mxu1 %v12048_v63  ;;  %v12123_v62 = vld [vmem:[%s13211_s25 + $0x4c0] ss:$16 sps:$4 sm:$0xff]   ;;  %v12126_v63 = vld [vmem:[%s13211_s25 + $0x4c8] ss:$16 sps:$4 sm:$0xff]  }
 0x706   : > { %9717 = vmatprep.subr.bf16.mxu0 %v12053_v0  ;;  %9881 = vmatprep.subr.bf16.mxu1 %v12056_v52  ;;  %v12131_v0 = vld [vmem:[%s13211_s25 + $0x4e4] ss:$16 sps:$4 sm:$0xff]   ;;  %v12134_v52 = vld [vmem:[%s13211_s25 + $0x4ec] ss:$16 sps:$4 sm:$0xff]  }
 0x709   : > { %9718 = vmatpush1.bf16.msra.mxu0 %v12051_v7  ;;  %9882 = vmatpush1.bf16.msra.mxu1 %v12054_v8  ;;  %v12129_v7 = vld [vmem:[%s13211_s25 + $0x4e0] ss:$16 sps:$4 sm:$0xff]   ;;  %v12132_v8 = vld [vmem:[%s13211_s25 + $0x4e8] ss:$16 sps:$4 sm:$0xff]  }
 0x70a   : > { %9719 = vmatprep.subr.bf16.mxu0 %v12059_v9  ;;  %9883 = vmatprep.subr.bf16.mxu1 %v12062_v32  ;;  %v12137_v9 = vld [vmem:[%s13211_s25 + $0x504] ss:$16 sps:$4 sm:$0xff]   ;;  %v12140_v32 = vld [vmem:[%s13211_s25 + $0x50c] ss:$16 sps:$4 sm:$0xff]  }
 0x70d   : > { %9720 = vmatpush1.bf16.msra.mxu0 %v12057_v3  ;;  %9884 = vmatpush1.bf16.msra.mxu1 %v12060_v10  ;;  %v12135_v3 = vld [vmem:[%s13211_s25 + $0x500] ss:$16 sps:$4 sm:$0xff]   ;;  %v12138_v10 = vld [vmem:[%s13211_s25 + $0x508] ss:$16 sps:$4 sm:$0xff]  }
 0x70e   : > { %9721 = vmatprep.subr.bf16.mxu0 %v12065_v14  ;;  %9885 = vmatprep.subr.bf16.mxu1 %v12068_v39  ;;  %v12143_v14 = vld [vmem:[%s13211_s25 + $0x524] ss:$16 sps:$4 sm:$0xff]   ;;  %v12146_v39 = vld [vmem:[%s13211_s25 + $0x52c] ss:$16 sps:$4 sm:$0xff]  }
 0x711   : > { %9722 = vmatpush1.bf16.msra.mxu0 %v12063_v36  ;;  %9886 = vmatpush1.bf16.msra.mxu1 %v12066_v27  ;;  %v12141_v36 = vld [vmem:[%s13211_s25 + $0x520] ss:$16 sps:$4 sm:$0xff]   ;;  %v12144_v27 = vld [vmem:[%s13211_s25 + $0x528] ss:$16 sps:$4 sm:$0xff]  }
 0x712   : > { %9723 = vmatprep.subr.bf16.mxu0 %v12071_v30  ;;  %9887 = vmatprep.subr.bf16.mxu1 %v12074_v11  ;;  %v12149_v30 = vld [vmem:[%s13211_s25 + $0x544] ss:$16 sps:$4 sm:$0xff]   ;;  %v12152_v11 = vld [vmem:[%s13211_s25 + $0x54c] ss:$16 sps:$4 sm:$0xff]  }
 0x715   : > { %9724 = vmatpush1.bf16.msra.mxu0 %v12069_v13  ;;  %9888 = vmatpush1.bf16.msra.mxu1 %v12072_v40  ;;  %v12147_v13 = vld [vmem:[%s13211_s25 + $0x540] ss:$16 sps:$4 sm:$0xff]   ;;  %v12150_v40 = vld [vmem:[%s13211_s25 + $0x548] ss:$16 sps:$4 sm:$0xff]  }
 0x716   : > { %9725 = vmatprep.subr.bf16.mxu0 %v12077_v16  ;;  %9889 = vmatprep.subr.bf16.mxu1 %v12080_v34  ;;  %v12155_v16 = vld [vmem:[%s13211_s25 + $0x564] ss:$16 sps:$4 sm:$0xff]   ;;  %v12158_v34 = vld [vmem:[%s13211_s25 + $0x56c] ss:$16 sps:$4 sm:$0xff]  }
 0x719   : > { %9726 = vmatpush1.bf16.msra.mxu0 %v12075_v17  ;;  %9890 = vmatpush1.bf16.msra.mxu1 %v12078_v18  ;;  %v12153_v17 = vld [vmem:[%s13211_s25 + $0x560] ss:$16 sps:$4 sm:$0xff]   ;;  %v12156_v18 = vld [vmem:[%s13211_s25 + $0x568] ss:$16 sps:$4 sm:$0xff]  }
 0x71a   : > { %9727 = vmatprep.subr.bf16.mxu0 %v12083_v19  ;;  %9891 = vmatprep.subr.bf16.mxu1 %v12086_v33  ;;  %v12161_v19 = vld [vmem:[%s13211_s25 + $0x584] ss:$16 sps:$4 sm:$0xff]   ;;  %v12164_v33 = vld [vmem:[%s13211_s25 + $0x58c] ss:$16 sps:$4 sm:$0xff]  }
 0x71d   : > { %9728 = vmatpush1.bf16.msra.mxu0 %v12081_v20  ;;  %9892 = vmatpush1.bf16.msra.mxu1 %v12084_v22  ;;  %v12159_v20 = vld [vmem:[%s13211_s25 + $0x580] ss:$16 sps:$4 sm:$0xff]   ;;  %v12162_v22 = vld [vmem:[%s13211_s25 + $0x588] ss:$16 sps:$4 sm:$0xff]  }
 0x71e   : > { %9738 = vmatprep.subr.bf16.mxu0 %v12089_v59  ;;  %9902 = vmatprep.subr.bf16.mxu1 %v12092_v23  ;;  %v12170_v59 = vld [vmem:[%s13211_s25 + $0x5ac] ss:$16 sps:$4 sm:$0xff]   ;;  %v12165_v23 = vld [vmem:[%s13211_s25 + $0x5a0] ss:$16 sps:$4 sm:$0xff]  }
 0x720   : > { %9730 = vmatmul.mubr.bf16.vlgmr.msra.gmra.mrb[16].mxu0 %v8114_v28  ;;  %9894 = vmatmul.mubr.bf16.vlgmr.msra.gmra.mrb[16].mxu1 %v8114_v28  ;;  %v12176_v28 = vld [vmem:[%s13211_s25 + $0x5cc] ss:$16 sps:$4 sm:$0xff]  }
 0x721   : > { %9739 = vmatpush1.bf16.msra.mxu0 %v12087_v46  ;;  %9770 = vmatprep.mubr.bf16.mxu0 %v8117_v41  ;;  %v12173_v46 = vld [vmem:[%s13211_s25 + $0x5c4] ss:$16 sps:$4 sm:$0xff]  }
 0x722   : > { %9903 = vmatpush1.bf16.msra.mxu1 %v12090_v37  ;;  %9934 = vmatprep.mubr.bf16.mxu1 %v8117_v41  ;;  %v12171_v37 = vld [vmem:[%s13211_s25 + $0x5c0] ss:$16 sps:$4 sm:$0xff]   ;;  %v12174_v41 = vld [vmem:[%s13211_s25 + $0x5c8] ss:$16 sps:$4 sm:$0xff]  }
 0x723   : > { %9740 = vmatprep.subr.bf16.mxu0 %v12095_v48  ;;  %9904 = vmatprep.subr.bf16.mxu1 %v12098_v55  ;;  %v12179_v48 = vld [vmem:[%s13211_s25 + $0x5e4] ss:$16 sps:$4 sm:$0xff]   ;;  %v12182_v55 = vld [vmem:[%s13211_s25 + $0x5ec] ss:$16 sps:$4 sm:$0xff]  }
 0x725   : > { %9741 = vmatpush1.bf16.msra.mxu0 %v12093_v38  ;;  %v12177_v38 = vld [vmem:[%s13211_s25 + $0x5e0] ss:$16 sps:$4 sm:$0xff]  }
 0x726   : > { %9905 = vmatpush1.bf16.msra.mxu1 %v12096_v25  ;;  %9742 = vmatprep.subr.bf16.mxu0 %v12101_v43  ;;  %v12180_v25 = vld [vmem:[%s13211_s25 + $0x5e8] ss:$16 sps:$4 sm:$0xff]   ;;  %v8108_v43 = vmax.f32 %v14564_v50, 0.0 }
 0x727   : > { %9906 = vmatprep.subr.bf16.mxu1 %v12104_v1  ;;  %v12185_v1 = vld [vmem:[%s13211_s25 + $0x604] ss:$16 sps:$4 sm:$0xff]  }
 0x729   : > { %9743 = vmatpush1.bf16.msra.mxu0 %v12099_v4  ;;  %v12188_v4 = vld [vmem:[%s13211_s25 + $0x60c] ss:$16 sps:$4 sm:$0xff]  }
 0x72a   : > { %9907 = vmatpush1.bf16.msra.mxu1 %v12102_v5  ;;  %9744 = vmatprep.subr.bf16.mxu0 %v12107_v12  ;;  %v8111_v5 = vmax.f32 %v14558_v51, 0.0  ;;  %v12183_v12 = vld [vmem:[%s13211_s25 + $0x600] ss:$16 sps:$4 sm:$0xff]  }
 0x72b   : > { %9908 = vmatprep.subr.bf16.mxu1 %v12110_v44  ;;  %v8116_v44 = vpack.c.bf16 %v8108_v43, %v8108_v43  ;;  %v12189_v51 = vld [vmem:[%s13211_s25 + $0x620] ss:$16 sps:$4 sm:$0xff]  }
 0x72c   : > { %v8119_v50 = vpack.c.bf16 %v8111_v5, %v8111_v5  ;;  %v12261_v43 = vld [vmem:[%s13211_s25 + $0x7a0] ss:$16 sps:$4 sm:$0xff]   ;;  %v12272_v5 = vld [vmem:[%s13211_s25 + $0x7cc] ss:$16 sps:$4 sm:$0xff]  }
 0x72d   : > { %9745 = vmatpush1.bf16.msra.mxu0 %v12105_v49  ;;  %v12186_v49 = vld [vmem:[%s13211_s25 + $0x608] ss:$16 sps:$4 sm:$0xff]  }
 0x72e   : > { %9909 = vmatpush1.bf16.msra.mxu1 %v12108_v35  ;;  %9746 = vmatprep.subr.bf16.mxu0 %v12113_v42  ;;  %v12191_v35 = vld [vmem:[%s13211_s25 + $0x624] ss:$16 sps:$4 sm:$0xff]   ;;  %v12194_v42 = vld [vmem:[%s13211_s25 + $0x62c] ss:$16 sps:$4 sm:$0xff]  }
 0x72f   : > { %9910 = vmatprep.subr.bf16.mxu1 %v12116_v24  ;;  %v12192_v24 = vld [vmem:[%s13211_s25 + $0x628] ss:$16 sps:$4 sm:$0xff]  }
 0x731   : > { %9747 = vmatpush1.bf16.msra.mxu0 %v12111_v53  ;;  %v12197_v53 = vld [vmem:[%s13211_s25 + $0x644] ss:$16 sps:$4 sm:$0xff]  }
 0x732   : > { %9911 = vmatpush1.bf16.msra.mxu1 %v12114_v6  ;;  %9748 = vmatprep.subr.bf16.mxu0 %v12119_v58  ;;  %v12200_v6 = vld [vmem:[%s13211_s25 + $0x64c] ss:$16 sps:$4 sm:$0xff]   ;;  %v12195_v58 = vld [vmem:[%s13211_s25 + $0x640] ss:$16 sps:$4 sm:$0xff]  }
 0x733   : > { %9912 = vmatprep.subr.bf16.mxu1 %v12122_v29  ;;  %v12198_v29 = vld [vmem:[%s13211_s25 + $0x648] ss:$16 sps:$4 sm:$0xff]  }
 0x735   : > { %9749 = vmatpush1.bf16.msra.mxu0 %v12117_v21  ;;  %v12203_v21 = vld [vmem:[%s13211_s25 + $0x664] ss:$16 sps:$4 sm:$0xff]  }
 0x736   : > { %9913 = vmatpush1.bf16.msra.mxu1 %v12120_v60  ;;  %9750 = vmatprep.subr.bf16.mxu0 %v12125_v54  ;;  %v12206_v60 = vld [vmem:[%s13211_s25 + $0x66c] ss:$16 sps:$4 sm:$0xff]   ;;  %v12201_v54 = vld [vmem:[%s13211_s25 + $0x660] ss:$16 sps:$4 sm:$0xff]  }
 0x737   : > { %9914 = vmatprep.subr.bf16.mxu1 %v12128_v2  ;;  %v12204_v2 = vld [vmem:[%s13211_s25 + $0x668] ss:$16 sps:$4 sm:$0xff]  }
 0x739   : > { %9751 = vmatpush1.bf16.msra.mxu0 %v12123_v62  ;;  %v12209_v62 = vld [vmem:[%s13211_s25 + $0x684] ss:$16 sps:$4 sm:$0xff]  }
 0x73a   : > { %9915 = vmatpush1.bf16.msra.mxu1 %v12126_v63  ;;  %9752 = vmatprep.subr.bf16.mxu0 %v12131_v0  ;;  %v12212_v63 = vld [vmem:[%s13211_s25 + $0x68c] ss:$16 sps:$4 sm:$0xff]   ;;  %v12207_v0 = vld [vmem:[%s13211_s25 + $0x680] ss:$16 sps:$4 sm:$0xff]  }
 0x73b   : > { %9916 = vmatprep.subr.bf16.mxu1 %v12134_v52  ;;  %v12210_v52 = vld [vmem:[%s13211_s25 + $0x688] ss:$16 sps:$4 sm:$0xff]  }
 0x73d   : > { %9753 = vmatpush1.bf16.msra.mxu0 %v12129_v7  ;;  %v12215_v7 = vld [vmem:[%s13211_s25 + $0x6a4] ss:$16 sps:$4 sm:$0xff]  }
 0x73e   : > { %9917 = vmatpush1.bf16.msra.mxu1 %v12132_v8  ;;  %9754 = vmatprep.subr.bf16.mxu0 %v12137_v9  ;;  %v12218_v8 = vld [vmem:[%s13211_s25 + $0x6ac] ss:$16 sps:$4 sm:$0xff]   ;;  %v12213_v9 = vld [vmem:[%s13211_s25 + $0x6a0] ss:$16 sps:$4 sm:$0xff]  }
 0x73f   : > { %9918 = vmatprep.subr.bf16.mxu1 %v12140_v32  ;;  %v12216_v32 = vld [vmem:[%s13211_s25 + $0x6a8] ss:$16 sps:$4 sm:$0xff]  }
 0x741   : > { %9755 = vmatpush1.bf16.msra.mxu0 %v12135_v3  ;;  %v12221_v3 = vld [vmem:[%s13211_s25 + $0x6c4] ss:$16 sps:$4 sm:$0xff]  }
 0x742   : > { %9919 = vmatpush1.bf16.msra.mxu1 %v12138_v10  ;;  %9756 = vmatprep.subr.bf16.mxu0 %v12143_v14  ;;  %v12224_v10 = vld [vmem:[%s13211_s25 + $0x6cc] ss:$16 sps:$4 sm:$0xff]   ;;  %v12219_v14 = vld [vmem:[%s13211_s25 + $0x6c0] ss:$16 sps:$4 sm:$0xff]  }
 0x743   : > { %9920 = vmatprep.subr.bf16.mxu1 %v12146_v39  ;;  %v12222_v39 = vld [vmem:[%s13211_s25 + $0x6c8] ss:$16 sps:$4 sm:$0xff]  }
 0x745   : > { %9757 = vmatpush1.bf16.msra.mxu0 %v12141_v36  ;;  %v12227_v36 = vld [vmem:[%s13211_s25 + $0x6e4] ss:$16 sps:$4 sm:$0xff]  }
 0x746   : > { %9921 = vmatpush1.bf16.msra.mxu1 %v12144_v27  ;;  %9758 = vmatprep.subr.bf16.mxu0 %v12149_v30  ;;  %v12230_v27 = vld [vmem:[%s13211_s25 + $0x6ec] ss:$16 sps:$4 sm:$0xff]   ;;  %v12225_v30 = vld [vmem:[%s13211_s25 + $0x6e0] ss:$16 sps:$4 sm:$0xff]  }
 0x747   : > { %9922 = vmatprep.subr.bf16.mxu1 %v12152_v11  ;;  %v12228_v11 = vld [vmem:[%s13211_s25 + $0x6e8] ss:$16 sps:$4 sm:$0xff]  }
 0x749   : > { %9759 = vmatpush1.bf16.msra.mxu0 %v12147_v13  ;;  %v12233_v13 = vld [vmem:[%s13211_s25 + $0x704] ss:$16 sps:$4 sm:$0xff]  }
 0x74a   : > { %9923 = vmatpush1.bf16.msra.mxu1 %v12150_v40  ;;  %9760 = vmatprep.subr.bf16.mxu0 %v12155_v16  ;;  %v12236_v40 = vld [vmem:[%s13211_s25 + $0x70c] ss:$16 sps:$4 sm:$0xff]   ;;  %v12231_v16 = vld [vmem:[%s13211_s25 + $0x700] ss:$16 sps:$4 sm:$0xff]  }
 0x74b   : > { %9924 = vmatprep.subr.bf16.mxu1 %v12158_v34  ;;  %v12234_v34 = vld [vmem:[%s13211_s25 + $0x708] ss:$16 sps:$4 sm:$0xff]  }
 0x74d   : > { %9761 = vmatpush1.bf16.msra.mxu0 %v12153_v17  ;;  %v12239_v17 = vld [vmem:[%s13211_s25 + $0x724] ss:$16 sps:$4 sm:$0xff]  }
 0x74e   : > { %9925 = vmatpush1.bf16.msra.mxu1 %v12156_v18  ;;  %9762 = vmatprep.subr.bf16.mxu0 %v12161_v19  ;;  %v12242_v18 = vld [vmem:[%s13211_s25 + $0x72c] ss:$16 sps:$4 sm:$0xff]   ;;  %v12237_v19 = vld [vmem:[%s13211_s25 + $0x720] ss:$16 sps:$4 sm:$0xff]  }
 0x74f   : > { %9926 = vmatprep.subr.bf16.mxu1 %v12164_v33  ;;  %v12240_v33 = vld [vmem:[%s13211_s25 + $0x728] ss:$16 sps:$4 sm:$0xff]  }
 0x751   : > { %9763 = vmatpush1.bf16.msra.mxu0 %v12159_v20  ;;  %v12245_v20 = vld [vmem:[%s13211_s25 + $0x744] ss:$16 sps:$4 sm:$0xff]  }
 0x752   : > { %9927 = vmatpush1.bf16.msra.mxu1 %v12162_v22  ;;  %9764 = vmatprep.subr.bf16.mxu0 %v12167_v47  ;;  %v12248_v22 = vld [vmem:[%s13211_s25 + $0x74c] ss:$16 sps:$4 sm:$0xff]   ;;  %v12243_v47 = vld [vmem:[%s13211_s25 + $0x740] ss:$16 sps:$4 sm:$0xff]  }
 0x753   : > { %9928 = vmatprep.subr.bf16.mxu1 %v12170_v59  ;;  %v12246_v59 = vld [vmem:[%s13211_s25 + $0x748] ss:$16 sps:$4 sm:$0xff]  }
 0x755   : > { %9765 = vmatpush1.bf16.msra.mxu0 %v12165_v23  ;;  %v12251_v23 = vld [vmem:[%s13211_s25 + $0x764] ss:$16 sps:$4 sm:$0xff]  }
 0x756   : > { %9929 = vmatpush1.bf16.msra.mxu1 %v12168_v45  ;;  %9766 = vmatprep.subr.bf16.mxu0 %v12173_v46  ;;  %v12254_v45 = vld [vmem:[%s13211_s25 + $0x76c] ss:$16 sps:$4 sm:$0xff]   ;;  %v12249_v46 = vld [vmem:[%s13211_s25 + $0x760] ss:$16 sps:$4 sm:$0xff]  }
 0x757   : > { %9930 = vmatprep.subr.bf16.mxu1 %v12176_v28  ;;  %v12252_v28 = vld [vmem:[%s13211_s25 + $0x768] ss:$16 sps:$4 sm:$0xff]  }
 0x759   : > { %9767 = vmatpush1.bf16.msra.mxu0 %v12171_v37  ;;  %v12257_v37 = vld [vmem:[%s13211_s25 + $0x784] ss:$16 sps:$4 sm:$0xff]  }
 0x75a   : > { %9931 = vmatpush1.bf16.msra.mxu1 %v12174_v41  ;;  %9768 = vmatprep.subr.bf16.mxu0 %v12179_v48  ;;  %v12260_v41 = vld [vmem:[%s13211_s25 + $0x78c] ss:$16 sps:$4 sm:$0xff]   ;;  %v12255_v48 = vld [vmem:[%s13211_s25 + $0x780] ss:$16 sps:$4 sm:$0xff]  }
 0x75b   : > { %9932 = vmatprep.subr.bf16.mxu1 %v12182_v55  ;;  %v12258_v55 = vld [vmem:[%s13211_s25 + $0x788] ss:$16 sps:$4 sm:$0xff]  }
 0x75d   : > { %9769 = vmatpush1.bf16.msra.mxu0 %v12177_v38  ;;  %v12263_v38 = vld [vmem:[%s13211_s25 + $0x7a4] ss:$16 sps:$4 sm:$0xff]  }
 0x75e   : > { %9933 = vmatpush1.bf16.msra.mxu1 %v12180_v25  ;;  %9779 = vmatprep.subr.bf16.mxu0 %v12185_v1  ;;  %v12266_v25 = vld [vmem:[%s13211_s25 + $0x7ac] ss:$16 sps:$4 sm:$0xff]   ;;  %v12264_v1 = vld [vmem:[%s13211_s25 + $0x7a8] ss:$16 sps:$4 sm:$0xff]  }
 0x75f   : > { %9943 = vmatprep.subr.bf16.mxu1 %v12188_v4  ;;  %v12269_v4 = vld [vmem:[%s13211_s25 + $0x7c4] ss:$16 sps:$4 sm:$0xff]  }
 0x760   : > { %9771 = vmatmul.mubr.bf16.vlgmr.msra.gmra.mrb[16].mxu0 %v8116_v44 }
 0x761   : > { %9935 = vmatmul.mubr.bf16.vlgmr.msra.gmra.mrb[16].mxu1 %v8116_v44  ;;  %9780 = vmatpush1.bf16.msra.mxu0 %v12183_v12  ;;  %v12267_v12 = vld [vmem:[%s13211_s25 + $0x7c0] ss:$16 sps:$4 sm:$0xff]   ;;  %v12270_v44 = vld [vmem:[%s13211_s25 + $0x7c8] ss:$16 sps:$4 sm:$0xff]  }
 0x762   : > { %9811 = vmatprep.mubr.bf16.mxu0 %v8119_v50  ;;  %9944 = vmatpush1.bf16.msra.mxu1 %v12186_v49  ;;  %v12275_v49 = vld [vmem:[%s13211_s25 + $0x7e4] ss:$16 sps:$4 sm:$0xff]  }
 0x763   : > { %9975 = vmatprep.mubr.bf16.mxu1 %v8119_v50  ;;  %9781 = vmatprep.subr.bf16.mxu0 %v12191_v35  ;;  %v12278_v35 = vld [vmem:[%s13211_s25 + $0x7ec] ss:$16 sps:$4 sm:$0xff]   ;;  %v12273_v50 = vld [vmem:[%s13211_s25 + $0x7e0] ss:$16 sps:$4 sm:$0xff]  }
 0x764   : > { %9945 = vmatprep.subr.bf16.mxu1 %v12194_v42  ;;  %v12276_v42 = vld [vmem:[%s13211_s25 + $0x7e8] ss:$16 sps:$4 sm:$0xff]  }
 0x765   : > { %9782 = vmatpush1.bf16.msra.mxu0 %v12189_v51  ;;  %v8110_v51 = vmax.f32 %v14566_v57, 0.0 }
 0x766   : > { %9946 = vmatpush1.bf16.msra.mxu1 %v12192_v24  ;;  %9783 = vmatprep.subr.bf16.mxu0 %v12197_v53 }
 0x767   : > { %9947 = vmatprep.subr.bf16.mxu1 %v12200_v6  ;;  %v8118_v24 = vpack.c.bf16 %v8110_v51, %v8110_v51 }
 0x769   : > { %9784 = vmatpush1.bf16.msra.mxu0 %v12195_v58 }
 0x76a   : > { %9948 = vmatpush1.bf16.msra.mxu1 %v12198_v29  ;;  %9785 = vmatprep.subr.bf16.mxu0 %v12203_v21 }
 0x76b   : > { %9949 = vmatprep.subr.bf16.mxu1 %v12206_v60 }
 0x76d   : > { %9786 = vmatpush1.bf16.msra.mxu0 %v12201_v54 }
 0x76e   : > { %9950 = vmatpush1.bf16.msra.mxu1 %v12204_v2  ;;  %9787 = vmatprep.subr.bf16.mxu0 %v12209_v62 }
 0x76f   : > { %9951 = vmatprep.subr.bf16.mxu1 %v12212_v63 }
 0x771   : > { %9788 = vmatpush1.bf16.msra.mxu0 %v12207_v0 }
 0x772   : > { %9952 = vmatpush1.bf16.msra.mxu1 %v12210_v52  ;;  %9789 = vmatprep.subr.bf16.mxu0 %v12215_v7 }
 0x773   : > { %9953 = vmatprep.subr.bf16.mxu1 %v12218_v8 }
 0x775   : > { %9790 = vmatpush1.bf16.msra.mxu0 %v12213_v9 }
 0x776   : > { %9954 = vmatpush1.bf16.msra.mxu1 %v12216_v32  ;;  %9791 = vmatprep.subr.bf16.mxu0 %v12221_v3 }
 0x777   : > { %9955 = vmatprep.subr.bf16.mxu1 %v12224_v10 }
 0x779   : > { %9792 = vmatpush1.bf16.msra.mxu0 %v12219_v14 }
 0x77a   : > { %9956 = vmatpush1.bf16.msra.mxu1 %v12222_v39  ;;  %9793 = vmatprep.subr.bf16.mxu0 %v12227_v36 }
 0x77b   : > { %9957 = vmatprep.subr.bf16.mxu1 %v12230_v27 }
 0x77d   : > { %9794 = vmatpush1.bf16.msra.mxu0 %v12225_v30 }
 0x77e   : > { %9958 = vmatpush1.bf16.msra.mxu1 %v12228_v11  ;;  %9795 = vmatprep.subr.bf16.mxu0 %v12233_v13 }
 0x77f   : > { %9959 = vmatprep.subr.bf16.mxu1 %v12236_v40 }
 0x781   : > { %9796 = vmatpush1.bf16.msra.mxu0 %v12231_v16 }
 0x782   : > { %9960 = vmatpush1.bf16.msra.mxu1 %v12234_v34  ;;  %9797 = vmatprep.subr.bf16.mxu0 %v12239_v17 }
 0x783   : > { %9961 = vmatprep.subr.bf16.mxu1 %v12242_v18 }
 0x785   : > { %9798 = vmatpush1.bf16.msra.mxu0 %v12237_v19 }
 0x786   : > { %9962 = vmatpush1.bf16.msra.mxu1 %v12240_v33  ;;  %9799 = vmatprep.subr.bf16.mxu0 %v12245_v20 }
 0x787   : > { %9963 = vmatprep.subr.bf16.mxu1 %v12248_v22 }
 0x789   : > { %9800 = vmatpush1.bf16.msra.mxu0 %v12243_v47 }
 0x78a   : > { %9964 = vmatpush1.bf16.msra.mxu1 %v12246_v59  ;;  %9801 = vmatprep.subr.bf16.mxu0 %v12251_v23 }
 0x78b   : > { %9965 = vmatprep.subr.bf16.mxu1 %v12254_v45 }
 0x78d   : > { %9802 = vmatpush1.bf16.msra.mxu0 %v12249_v46 }
 0x78e   : > { %9966 = vmatpush1.bf16.msra.mxu1 %v12252_v28  ;;  %9803 = vmatprep.subr.bf16.mxu0 %v12257_v37 }
 0x78f   : > { %9967 = vmatprep.subr.bf16.mxu1 %v12260_v41 }
 0x791   : > { %9804 = vmatpush1.bf16.msra.mxu0 %v12255_v48 }
 0x792   : > { %9968 = vmatpush1.bf16.msra.mxu1 %v12258_v55  ;;  %9805 = vmatprep.subr.bf16.mxu0 %v12263_v38 }
 0x793   : > { %9969 = vmatprep.subr.bf16.mxu1 %v12266_v25 }
 0x795   : > { %9806 = vmatpush1.bf16.msra.mxu0 %v12261_v43 }
 0x796   : > { %9970 = vmatpush1.bf16.msra.mxu1 %v12264_v1  ;;  %9807 = vmatprep.subr.bf16.mxu0 %v12269_v4 }
 0x797   : > { %9971 = vmatprep.subr.bf16.mxu1 %v12272_v5 }
 0x799   : > { %9808 = vmatpush1.bf16.msra.mxu0 %v12267_v12 }
 0x79a   : > { %9972 = vmatpush1.bf16.msra.mxu1 %v12270_v44  ;;  %9809 = vmatprep.subr.bf16.mxu0 %v12275_v49 }
 0x79b   : > { %9973 = vmatprep.subr.bf16.mxu1 %v12278_v35 }
 0x79d   : > { %9810 = vmatpush1.bf16.msra.mxu0 %v12273_v50 }
 0x79e   : > { %9974 = vmatpush1.bf16.msra.mxu1 %v12276_v42 }
 0x7a0   : > { %9812 = vmatmul.mubr.bf16.vlgmr.msra.gmra.mrb[16].mxu0 %v8118_v24 }
 0x7a1   : > { %9976 = vmatmul.mubr.bf16.vlgmr.msra.gmra.mrb[16].mxu1 %v8118_v24 }
 0x873   : > { %v9813_v53 = vpop.f32.mrb[16].mxu0 }
 0x874   : > { %v9984_v6 = vrot.slane %v9813_v53, 4  ;;  %v9977_v58 = vpop.f32.mrb[16].mxu1  ;;  %v9815_v29 = vpop.f32.mrb[17].mxu0 }
 0x875   : > { %v9996_v21 = vrot.slane %v9977_v58, 4  ;;  %v9990_v60 = vrot.slane %v9815_v29, 4  ;;  %v9979_v54 = vpop.f32.mrb[17].mxu1  ;;  %v9817_v2 = vpop.f32.mrb[18].mxu0 }
 0x876   : > { %v9985_v62 = vadd.f32 %v9984_v6, %v9813_v53  ;;  %v10002_v63 = vrot.slane %v9979_v54, 4  ;;  %v9981_v0 = vpop.f32.mrb[18].mxu1  ;;  %v9818_v52 = vpop.f32.mrb[19].mxu0 }
 0x877   : > { %v9997_v7 = vadd.f32 %v9996_v21, %v9977_v58  ;;  %v9991_v57 = vadd.f32 %v9990_v60, %v9815_v29  ;;  %v9982_v8 = vpop.f32.mrb[19].mxu1 }
 0x878   : > { %v9986_v9 = vrot.slane %v9985_v62, 2  ;;  %v10003_v32 = vadd.f32 %v10002_v63, %v9979_v54 }
 0x879   : > { %v9998_v3 = vrot.slane %v9997_v7, 2  ;;  %v9992_v10 = vrot.slane %v9991_v57, 2 }
 0x87a   : > { %v9987_v14 = vadd.f32 %v9986_v9, %v9985_v62  ;;  %v10004_v39 = vrot.slane %v10003_v32, 2 }
 0x87b   : > { %v9999_v36 = vadd.f32 %v9998_v3, %v9997_v7  ;;  %v9993_v27 = vadd.f32 %v9992_v10, %v9991_v57 }
 0x87c   : > { %v9988_v30 = vrot.slane %v9987_v14, 1  ;;  %v10005_v11 = vadd.f32 %v10004_v39, %v10003_v32 }
 0x87d   : > { %v10000_v13 = vrot.slane %v9999_v36, 1  ;;  %v9994_v40 = vrot.slane %v9993_v27, 1 }
 0x87e   : > { %v9989_v16 = vadd.f32 %v9988_v30, %v9987_v14  ;;  %v10006_v34 = vrot.slane %v10005_v11, 1 }
 0x87f   : > { %v10001_v17 = vadd.f32 %v10000_v13, %v9999_v36  ;;  %v9995_v18 = vadd.f32 %v9994_v40, %v9993_v27  ;;  %v10048_v40 = vld [vmem:[%s13218_s11] sm:$0xf] }
 0x880   : > { %v10008_v19 = vmul.f32 0.125, %v9989_v16  ;;  %v10007_v33 = vadd.f32 %v10006_v34, %v10005_v11  ;;  %v10112_v34 = vld [vmem:[%s13221_s17] sm:$0xf] }
 0x881   : > { %v10010_v20 = vmul.f32 0.125, %v10001_v17  ;;  %v10009_v22 = vmul.f32 0.125, %v9995_v18  ;;  %v10117_v18 = vrot.slane %v10112_v34, %v13835_v61 }
 0x882   : > { %v14763_v47 = vsub.f32 %v9813_v53, %v10008_v19  ;;  %v10011_v59 = vmul.f32 0.125, %v10007_v33  ;;  %v10121_v19 = vrot.slane %v10112_v34, %v13832_v56  ;;  %v10125_v33 = vrot.slane %v10112_v34, %v13841_v31 }
 0x883   : > { %v14765_v23 = vsub.f32 %v9977_v58, %v10010_v20  ;;  %v14767_v45 = vsub.f32 %v9815_v29, %v10009_v22  ;;  %v10129_v20 = vrot.slane %v10112_v34, %v13838_v15 }
 0x884   : > { %v10016_v46 = vmul.f32 %v14763_v47, %v14763_v47  ;;  %v10015_v28 = vsub.f32 %v9979_v54, %v10011_v59 }
 0x885   : > { %v10018_v37 = vmul.f32 %v14765_v23, %v14765_v23  ;;  %v10017_v41 = vmul.f32 %v14767_v45, %v14767_v45 }
 0x886   : > { %v10020_v48 = vrot.slane %v10016_v46, 4  ;;  %v10019_v55 = vmul.f32 %v10015_v28, %v10015_v28 }
 0x887   : > { %v10032_v38 = vrot.slane %v10018_v37, 4  ;;  %v10026_v25 = vrot.slane %v10017_v41, 4 }
 0x888   : > { %v10021_v43 = vadd.f32 %v10020_v48, %v10016_v46  ;;  %v10038_v1 = vrot.slane %v10019_v55, 4 }
 0x889   : > { %v10033_v4 = vadd.f32 %v10032_v38, %v10018_v37  ;;  %v10027_v5 = vadd.f32 %v10026_v25, %v10017_v41 }
 0x88a   : > { %v10022_v12 = vrot.slane %v10021_v43, 2  ;;  %v10039_v44 = vadd.f32 %v10038_v1, %v10019_v55 }
 0x88b   : > { %v10034_v49 = vrot.slane %v10033_v4, 2  ;;  %v10028_v35 = vrot.slane %v10027_v5, 2 }
 0x88c   : > { %v10023_v50 = vadd.f32 %v10022_v12, %v10021_v43  ;;  %v10040_v42 = vrot.slane %v10039_v44, 2 }
 0x88d   : > { %v10035_v51 = vadd.f32 %v10034_v49, %v10033_v4  ;;  %v10029_v24 = vadd.f32 %v10028_v35, %v10027_v5 }
 0x88e   : > { %v10024_v53 = vrot.slane %v10023_v50, 1  ;;  %v10041_v6 = vadd.f32 %v10040_v42, %v10039_v44 }
 0x88f   : > { %v10036_v58 = vrot.slane %v10035_v51, 1  ;;  %v10030_v29 = vrot.slane %v10029_v24, 1 }
 0x890   : > { %v10025_v21 = vadd.f32 %v10024_v53, %v10023_v50  ;;  %v10042_v60 = vrot.slane %v10041_v6, 1 }
 0x891   : > { %v10037_v54 = vadd.f32 %v10036_v58, %v10035_v51  ;;  %v10031_v2 = vadd.f32 %v10030_v29, %v10029_v24 }
 0x892   : > { %v10044_v62 = vmul.f32 0.125, %v10025_v21  ;;  %v10043_v63 = vadd.f32 %v10042_v60, %v10041_v6 }
 0x893   : > { %v10046_v0 = vmul.f32 0.125, %v10037_v54  ;;  %v10045_v52 = vmul.f32 0.125, %v10031_v2 }
 0x894   : > { %v10049_v7 = vadd.f32 1e-05, %v10044_v62  ;;  %v10047_v57 = vmul.f32 0.125, %v10043_v63 }
 0x895   : > { %v10051_v8 = vadd.f32 1e-05, %v10046_v0  ;;  %v10050_v9 = vadd.f32 1e-05, %v10045_v52 }
 0x896   : > { %12311 = vrsqrt.f32 %v10049_v7  ;;  %v10052_v32 = vadd.f32 1e-05, %v10047_v57 }
 0x897   : > { %12313 = vrsqrt.f32 %v10051_v8 }
 0x898   : > { %12315 = vrsqrt.f32 %v10050_v9 }
 0x899   : > { %12317 = vrsqrt.f32 %v10052_v32 }
 0x8a0   : > { %v12312_v3 = vpop.eup %12311 }
 0x8a1   : > { %v12314_v10 = vpop.eup %12313 }
 0x8a2   : > { %v12316_v14 = vpop.eup %12315 }
 0x8a3   : > { %v12318_v39 = vpop.eup %12317  ;;  %v10061_v36 = vcombine.low %v12312_v3, %v12316_v14 }
 0x8a4   : > { %v10062_v27 = vcombine.low %v12314_v10, %v12318_v39 }
 0x8a5   : > { %v10069_v30 = vrot.slane %v10061_v36, %v13705_v26 }
 0x8a6   : > { %v10076_v11 = vrot.slane %v10062_v27, %v13705_v26 }
 0x8a8   : > { %v10077_v13 = vcombine.low %v10069_v30, %v10076_v11 }
 0x8aa   : > { %v10084_v16 = vrot.slane %v10077_v13, %v13705_v26 }
 0x8ac   : > { %v10086_v17 = vmul.f32 %v10084_v16, %v10048_v40 }
 0x8ae   : > { %v10103_v22 = vrot.slane %v10086_v17, %v13838_v15  ;;  %v10091_v59 = vrot.slane %v10086_v17, %v13835_v61  ;;  %v10095_v46 = vrot.slane %v10086_v17, %v13832_v56  ;;  %v10099_v37 = vrot.slane %v10086_v17, %v13841_v31 }
 0x8b0   : > { %v10111_v41 = vmul.f32 %v10103_v22, %v10015_v28  ;;  %v10108_v26 = vmul.f32 %v10091_v59, %v14763_v47  ;;  %v10109_v48 = vmul.f32 %v10095_v46, %v14767_v45  ;;  %v10110_v55 = vmul.f32 %v10099_v37, %v14765_v23 }
 0x8b2   : > { %v10134_v38 = vadd.f32 %v10117_v18, %v10108_v26  ;;  %v10135_v25 = vadd.f32 %v10121_v19, %v10109_v48  ;;  %v10136_v43 = vadd.f32 %v10125_v33, %v10110_v55  ;;  %v10137_v1 = vadd.f32 %v10129_v20, %v10111_v41 }
 0x8b4   : > { %v10138_v4 = vmax.f32 %v10134_v38, 0.0  ;;  %v10139_v15 = vmax.f32 %v10135_v25, 0.0  ;;  %v10140_v61 = vmax.f32 %v10136_v43, 0.0  ;;  %v10141_v5 = vmax.f32 %v10137_v1, 0.0 }
 0x8b6   : > { %v10142_v56 = vmul.f32 %v10138_v4, %v10138_v4  ;;  %v10143_v12 = vmul.f32 %v10139_v15, %v10139_v15  ;;  %v10144_v31 = vmul.f32 %v10140_v61, %v10140_v61  ;;  %v10145_v44 = vmul.f32 %v10141_v5, %v10141_v5 }
 0x8b8   : > { %v10146_v28 = vadd.f32 %v10143_v12, %v10142_v56 }
 0x8ba   : > { %v10147_v47 = vadd.f32 %v10146_v28, %v10144_v31 }
 0x8bc   : > { %v10148_v49 = vadd.f32 %v10147_v47, %v10145_v44 }
 0x8be   : > { %10149 = vadd.xlane.f32.xlu0 %v10148_v49 }
 0x94b   : > { %v10150_v45 = vpop.xlane.xlu0 %10149 }
 0x94c   : > { %v10151_v23 = vmax.f32 %v10150_v45, 1e-24 }
 0x94e   : > { %12319 = vrsqrt.f32 %v10151_v23 }
 0x958   : > { %v12320_v35 = vpop.eup %12319 }
 0x959   : > { %v10153_v50 = vmul.f32 %v12320_v35, %v10138_v4  ;;  %v10154_v42 = vmul.f32 %v12320_v35, %v10139_v15  ;;  %v10155_v51 = vmul.f32 %v12320_v35, %v10140_v61  ;;  %v10156_v24 = vmul.f32 %v12320_v35, %v10141_v5 }
 0x95b   : > { %10157 = vst [vmem:[%s711_s30] sm:$0xff] %v10153_v50  ;;  %10158 = vst [vmem:[%s711_s30 + $0x8] sm:$0xff] %v10154_v42 }
 0x95c   : > { %10159 = vst [vmem:[%s711_s30 + $0x10] sm:$0xff] %v10155_v51  ;;  %10160 = vst [vmem:[%s711_s30 + $0x18] sm:$0xff] %v10156_v24 }
 0x95d   : > { %12635 = shalt.err (!%p12632_p3)
}
 0x95e   : > { %s12636_s5 = scalar_lea.hbm %s14796_s3, 512  ;;  %s12640_s21 = scalar_lea.hbm %s14911_s28, 1024 }
 0x95f   : > { %p12637_p13 = scmp.ne.s32.totalorder %s14796_s3, %s12636_s5  ;;  %p12641_p9 = scmp.lt.u32.totalorder %s14796_s3, %s14911_s28 }
 0x960   : > { %p12642_p1 = scmp.lt.u32.totalorder %s12640_s21, %s12636_s5  ;;  %p12644_p4 = scmp.lt.u32.totalorder %s12636_s5, %s14796_s3 }
 0x961   : > { %p12638_p11 = pnand %p12637_p13, %p14912_p7 }
 0x962   : > { %p12643_p2 = por %p12642_p1, %p12641_p9 }
 0x963   : > { %p12639_p5 = pneg %p12638_p11 }
 0x964   : > { %p12645_p6 = por %p12644_p4, %p12643_p2 }
 0x966   : > { %p12646_p12 = pnand %p12645_p6, %p12639_p5 }
 0x968   : > { %12649 = shalt.err (!%p12646_p12)
}
 0x969   : > { %11811 = dma.vmem_to_hbm [thread:$0]  (%p14912_p7), %s14798_s10, 512, %s14796_s3, %s10162_s27  }
 0x96a PF: > { %s14913_s11 = sld [smem:[#allocation27_spill]]  ;;  %s14914_s13 = sld [smem:[#allocation34_spill]] }
 0x96b   : > { %p14916_p10 = scmp.ge.s32.totalorder %s12708_s16, 2 }
 0x970   : > { %s10188_s17 = sand.u32 1, %s14913_s11   ;;  %p14915_p0 = scmp.ne.s32.totalorder %s14914_s13, 0 }
 0x971   : > { %s10189_s19 = scalar_lea.sflag [#allocation4], %s10188_s17 }
 0x972   : > { %p11845_p8 = pnand %p14916_p10, %p14915_p0 }
 0x974   : > { %12691 = dma.done.wait (!%p11845_p8), %s10189_s19, 512  }
 0x975   : > { %12693 = vsyncadd (!%p11845_p8), %s10189_s19, 4294966784  ;;  %s14917_s16 = sld [smem:[#allocation30_spill]]  ;;  %s14918_s7 = sld [smem:[#allocation28_spill]] }
 0x976   : > { %s14919_s15 = sld [smem:[#allocation31_spill]]  ;;  %s14920_s13 = smov %s12700_s14 }
 0x97b   : > { %p38_p3 = scmp.ge.s32.totalorder %s14917_s16, 4   ;;  %s14921_s14 = smov %s14918_s7 }
 0x97d   :  { %40 = sbr.rel (!%p38_p3) target bundleno = 21 (0x15), region = 214 }
 0x984   :  { %10194 = vsyncpa [#allocation3], 1 }
 0x985   :  { %10196 = vsyncpa [#allocation3 + $0x1], 1 }
 0x986   :  { %10197 = vsyncpa [#allocation6], 1 }
 0x987   :  { %10199 = vsyncpa [#allocation6 + $0x1], 1 }
 0x988   :  { %10200 = vsyncpa [#allocation9], 1 }
 0x989   :  { %10202 = vsyncpa [#allocation9 + $0x1], 1 }
 0x98a   :  { %10203 = vsyncpa [#allocation12], 1 }
 0x98b   :  { %10205 = vsyncpa [#allocation12 + $0x1], 1 }
 0x98c   :  { %10206 = vsyncpa [#allocation15], 1 }
 0x98d   :  { %10208 = vsyncpa [#allocation15 + $0x1], 1 }
 0x98e   :  { %10209 = vsyncpa [#allocation18], 1 }
 0x98f   :  { %10211 = vsyncpa [#allocation18 + $0x1], 1 }
 0x990   :  { %10212 = vsyncpa [#allocation4], 1 }
 0x991   :  { %10214 = vsyncpa [#allocation4 + $0x1], 1 }

</bundles_post_ra>
